<compile_context>
chip_gen: v7x
topology: tpu7x:2x2x1
jax: 0.10.0
libtpu: 0.0.40
codegen_flags: <defaults>
</compile_context>

<pallas_src>
import functools

import jax
import jax.numpy as jnp
from jax.experimental import pallas as pl
from jax.experimental.pallas import tpu as pltpu


def _round_up(x, m):
    return (x + m - 1) // m * m


@functools.lru_cache(maxsize=1)
def _device_kind():
    try:
        return jax.devices()[0].device_kind.lower()
    except Exception:
        return ""


def _is_v7x():
    kind = _device_kind()
    return ("v7" in kind) or ("tpu7" in kind)


def _dim_semantics():
    # v7x has 2 TensorCores per chip: shard the two independent LSTM directions
    # across them.  Plain PARALLEL elsewhere (1 TC on v5e/v6e).
    if _is_v7x():
        return (pltpu.CORE_PARALLEL, pltpu.ARBITRARY)
    return (pltpu.PARALLEL, pltpu.ARBITRARY)


def _vmem_limit_bytes():
    # v7x: 64 MiB physical per core -> stay well under it.
    # v5e/v6e: 128 MiB physical but only 16/32 MiB default scoped -> raise it.
    if _is_v7x():
        return 48 * 1024 * 1024
    return 96 * 1024 * 1024


def _pick_chunk(t_len, bsz, hid, n_src_max, vmem_budget, target_rows=512):
    """Largest time chunk whose working set fits the VMEM budget; stop once the
    hoisted projection's M-dimension (chunk*B) is big enough to fill the MXU."""
    best = 1
    for c in range(1, t_len + 1):
        if t_len % c:
            continue
        rows = c * bsz
        need = rows * 4 * hid * 4                              # xp scratch (f32)
        need += 2 * n_src_max * rows * hid * 2                 # x blocks, 2 bufs, bf16
        need += 2 * rows * hid * 2                             # out blocks, 2 bufs, bf16
        need += 2 * 2 * (n_src_max + 1) * hid * 4 * hid * 2    # weights (double-buffered)
        need += 4 * bsz * hid * 4                              # h/c state + headroom
        if need > vmem_budget:
            break
        best = c
        if rows >= target_rows:
            break
    return best


# ---------------------------------------------------------------------------
# Fused bidirectional LSTM layer kernel.
# grid = (direction, time_chunk); state (h, c) lives in VMEM scratch and is
# reset at the start of each direction (time_chunk == 0).
# ---------------------------------------------------------------------------
def _bilstm_layer_kernel(x_ref, wih_ref, whh_ref, b_ref, out_ref,
                         xp_scr, h_scr, c_scr, *, bsz, mean_output, inv_t,
                         unroll):
    d = pl.program_id(0)                        # 0 = forward, 1 = backward
    c = pl.program_id(1)                        # time-chunk index
    n_src, rows, _ = x_ref.shape                # (sources, chunk*B, H_in)
    hid = h_scr.shape[-1]
    tc = rows // bsz                            # timesteps in this chunk

    @pl.when(c == 0)
    def _():                                    # fresh state per direction
        h_scr[...] = jnp.zeros_like(h_scr)
        c_scr[...] = jnp.zeros_like(c_scr)
        if mean_output:
            out_ref[...] = jnp.zeros_like(out_ref)

    # ---- hoisted input projection: one (chunk*B, H) x (H, 4H) MXU matmul per
    # source for the whole chunk; no in-kernel reshapes (x is pre-flattened). ----
    xp = jnp.dot(x_ref[0], wih_ref[0], preferred_element_type=jnp.float32)
    for s in range(1, n_src):
        xp = xp + jnp.dot(x_ref[s], wih_ref[s], preferred_element_type=jnp.float32)
    xp_scr[...] = xp + b_ref[...]

    whh = whh_ref[...]                          # (H, 4H) bf16, resident
    w_dtype = whh.dtype

    def run(reverse):
        def step(i, carry):
            h, cell, acc = carry
            t = (tc - 1 - i) if reverse else i          # statically-directed
            row = pl.multiple_of(t * bsz, bsz)           # sublane-aligned offset
            g = xp_scr[pl.ds(row, bsz), :] + jnp.dot(
                h.astype(w_dtype), whh, preferred_element_type=jnp.float32)
            i_g = jax.nn.sigmoid(g[:, 0 * hid:1 * hid])
            f_g = jax.nn.sigmoid(g[:, 1 * hid:2 * hid])
            g_g = jnp.tanh(g[:, 2 * hid:3 * hid])
            o_g = jax.nn.sigmoid(g[:, 3 * hid:4 * hid])
            cell = f_g * cell + i_g * g_g
            h = o_g * jnp.tanh(cell)
            if mean_output:
                acc = acc + h                            # fused time-mean
            else:
                out_ref[pl.ds(row, bsz), :] = h.astype(out_ref.dtype)
            return h, cell, acc

        init = (h_scr[...], c_scr[...], jnp.zeros((bsz, hid), jnp.float32))
        h, cell, acc = jax.lax.fori_loop(0, tc, step, init, unroll=unroll)
        h_scr[...] = h
        c_scr[...] = cell
        if mean_output:
            out_ref[...] = out_ref[...] + acc * inv_t

    @pl.when(d == 0)
    def _():
        run(False)

    @pl.when(d == 1)
    def _():
        run(True)


def bilstm_layer(x, wih, whh, b, *, bsz, chunk, mean_output,
                 out_dtype=jnp.bfloat16):
    """One bidirectional LSTM layer on flattened, padded activations.

    x:   (n_src, T*B, H)   bf16 direction-major input (n_src=1 for embeddings,
                           n_src=2 for outputs of a previous bidirectional layer)
    wih: (2, n_src, H, 4H) bf16 per-direction, per-source transposed input weights
    whh: (2, H, 4H)        bf16 per-direction transposed recurrent weights
    b:   (2, 1, 4H)        f32  per-direction (b_ih + b_hh)
    returns (2, T*B, H) bf16, or the per-direction time-mean (2, B, H) f32.
    """
    n_src, tb, hid = x.shape
    t_len = tb // bsz
    assert t_len % chunk == 0
    n_chunks = t_len // chunk
    rows = chunk * bsz

    # time block index: c for the forward direction, n_chunks-1-c for backward
    in_specs = [
        pl.BlockSpec((n_src, rows, hid),
                     lambda d, c: (0, c + d * (n_chunks - 1 - 2 * c), 0)),
        pl.BlockSpec((None, n_src, hid, 4 * hid), lambda d, c: (d, 0, 0, 0)),
        pl.BlockSpec((None, hid, 4 * hid), lambda d, c: (d, 0, 0)),
        pl.BlockSpec((None, 1, 4 * hid), lambda d, c: (d, 0, 0)),
    ]
    if mean_output:
        out_shape = jax.ShapeDtypeStruct((2, bsz, hid), jnp.float32)
        out_specs = pl.BlockSpec((None, bsz, hid), lambda d, c: (d, 0, 0))
    else:
        out_shape = jax.ShapeDtypeStruct((2, t_len * bsz, hid), out_dtype)
        out_specs = pl.BlockSpec((None, rows, hid),
                                 lambda d, c: (d, c + d * (n_chunks - 1 - 2 * c), 0))

    unroll = True if chunk <= 16 else 4          # full unroll only for tiny chunks
    kernel = functools.partial(_bilstm_layer_kernel, bsz=bsz,
                               mean_output=mean_output, inv_t=1.0 / t_len,
                               unroll=unroll)
    return pl.pallas_call(
        kernel,
        out_shape=out_shape,
        grid=(2, n_chunks),
        in_specs=in_specs,
        out_specs=out_specs,
        scratch_shapes=[
            pltpu.VMEM((rows, 4 * hid), jnp.float32),     # chunk input projection
            pltpu.VMEM((bsz, hid), jnp.float32),          # h state
            pltpu.VMEM((bsz, hid), jnp.float32),          # c state
        ],
        compiler_params=pltpu.CompilerParams(
            dimension_semantics=_dim_semantics(),
            vmem_limit_bytes=_vmem_limit_bytes()),
    )(x, wih, whh, b)


# ---------------------------------------------------------------------------
# Head: LayerNorm over the concatenated (fwd, bwd) time-means -> Linear(2).
# Padded feature columns are exactly zero, so sums over the padded arrays equal
# sums over the real 2*H features (variance via E[x^2] - mu^2, biased, as in
# PyTorch LayerNorm).  Output lane dim is padded to 128 for an unmasked store.
# ---------------------------------------------------------------------------
def _head_kernel(m_ref, gamma_ref, beta_ref, w_ref, b_ref, out_ref, *, inv_feat):
    m0 = m_ref[0]                               # (B, H) forward-direction mean
    m1 = m_ref[1]                               # (B, H) backward-direction mean
    mu = (jnp.sum(m0, -1, keepdims=True) + jnp.sum(m1, -1, keepdims=True)) * inv_feat
    ex2 = (jnp.sum(m0 * m0, -1, keepdims=True)
           + jnp.sum(m1 * m1, -1, keepdims=True)) * inv_feat
    var = ex2 - mu * mu
    inv = jax.lax.rsqrt(var + 1e-5)
    h0 = (m0 - mu) * inv * gamma_ref[0] + beta_ref[0]
    h1 = (m1 - mu) * inv * gamma_ref[1] + beta_ref[1]
    # TODO(synk): nn.Dropout is identity in inference mode (no RNG mask applied).
    out_ref[...] = (jnp.dot(h0, w_ref[0], preferred_element_type=jnp.float32)
                    + jnp.dot(h1, w_ref[1], preferred_element_type=jnp.float32)
                    + b_ref[...])


def sentiment_head(m, gamma, beta, w, b, *, feat_real):
    _, bsz, hid = m.shape
    n_out = w.shape[-1]
    kernel = functools.partial(_head_kernel, inv_feat=1.0 / feat_real)
    return pl.pallas_call(
        kernel,
        out_shape=jax.ShapeDtypeStruct((bsz, n_out), jnp.float32),
        grid=(1,),
        in_specs=[
            pl.BlockSpec((2, bsz, hid), lambda i: (0, 0, 0)),
            pl.BlockSpec((2, 1, hid), lambda i: (0, 0, 0)),
            pl.BlockSpec((2, 1, hid), lambda i: (0, 0, 0)),
            pl.BlockSpec((2, hid, n_out), lambda i: (0, 0, 0)),
            pl.BlockSpec((1, n_out), lambda i: (0, 0)),
        ],
        out_specs=pl.BlockSpec((bsz, n_out), lambda i: (0, 0)),
    )(m, gamma, beta, w, b)


# ---------------------------------------------------------------------------
# Parameters (deterministic, PyTorch-default-style init), stored pre-split and
# zero-padded to the lane-aligned hidden dim Hp = round_up(H, 128):
#   wih[layer]: (2_dir, n_src, Hp, 4Hp) bf16, whh: (2, Hp, 4Hp) bf16,
#   b: (2, 1, 4Hp) f32, per-gate zero-padded so padded hidden units stay 0.
#   fc_w: (2_dir, Hp, 128) f32 split/padded form of the (2, 2H) Linear weight.
# ---------------------------------------------------------------------------
def init_params(key, vocab_size, hidden_dim, n_layers, pad_idx,
                bidirectional=True, param_dtype=jnp.bfloat16):
    assert bidirectional, "this implementation mirrors the bidirectional default"
    H = hidden_dim
    Hp = _round_up(H, 128)
    bound = 1.0 / float(H) ** 0.5
    k_emb, k_fc, k_lstm = jax.random.split(key, 3)

    # Embedding: N(0,1), padding row zeroed (PyTorch padding_idx behaviour).
    emb = jax.random.normal(k_emb, (vocab_size, H), jnp.float32)
    emb = emb.at[pad_idx].set(0.0)
    emb = jnp.pad(emb, ((0, 0), (0, Hp - H))).astype(param_dtype)

    def uni(k, shape, b):
        return jax.random.uniform(k, shape, jnp.float32, -b, b)

    def pad_gates_cols(w):
        # (..., 4H) -> (..., 4Hp): zero-pad each of the [i, f, g, o] gate blocks.
        blocks = jnp.split(w, 4, axis=-1)
        pad_width = [(0, 0)] * (w.ndim - 1) + [(0, Hp - H)]
        blocks = [jnp.pad(blk, pad_width) for blk in blocks]
        return jnp.concatenate(blocks, axis=-1)

    layers = []
    lkeys = jax.random.split(k_lstm, n_layers)
    for l in range(n_layers):
        n_src = 1 if l == 0 else 2
        dkeys = jax.random.split(lkeys[l], 8)
        wih_d, whh_d, b_d = [], [], []
        for d in range(2):
            kw_ih, kw_hh, kb_ih, kb_hh = dkeys[4 * d: 4 * d + 4]
            w_ih = uni(kw_ih, (4 * H, n_src * H), bound)       # PyTorch layout
            w_hh = uni(kw_hh, (4 * H, H), bound)
            b_ih = uni(kb_ih, (4 * H,), bound)
            b_hh = uni(kb_hh, (4 * H,), bound)
            # split W_ih along the input-feature axis into per-source (H, 4H)
            w_ih_t = jnp.transpose(w_ih.reshape(4 * H, n_src, H), (1, 2, 0))
            w_ih_t = pad_gates_cols(w_ih_t)                               # (n_src, H, 4Hp)
            w_ih_t = jnp.pad(w_ih_t, ((0, 0), (0, Hp - H), (0, 0)))       # (n_src, Hp, 4Hp)
            w_hh_t = jnp.pad(pad_gates_cols(w_hh.T), ((0, Hp - H), (0, 0)))
            bias = pad_gates_cols((b_ih + b_hh).reshape(1, 4 * H))        # (1, 4Hp)
            wih_d.append(w_ih_t.astype(param_dtype))
            whh_d.append(w_hh_t.astype(param_dtype))
            b_d.append(bias)
        layers.append({"wih": jnp.stack(wih_d),     # (2, n_src, Hp, 4Hp) bf16
                       "whh": jnp.stack(whh_d),     # (2, Hp, 4Hp)       bf16
                       "b": jnp.stack(b_d)})        # (2, 1, 4Hp)        f32

    # LayerNorm over 2H features, split per direction and zero-padded.
    def split_pad_dir(v):
        halves = [v[:H].reshape(1, H), v[H:].reshape(1, H)]
        return jnp.stack([jnp.pad(h, ((0, 0), (0, Hp - H))) for h in halves])

    gamma = split_pad_dir(jnp.ones((2 * H,), jnp.float32))
    beta = split_pad_dir(jnp.zeros((2 * H,), jnp.float32))

    out_dim = 2 * H
    fb = 1.0 / float(out_dim) ** 0.5
    kfw, kfb = jax.random.split(k_fc)
    fc_w = uni(kfw, (2, out_dim), fb)               # PyTorch Linear weight (2, 2H)
    fc_b = uni(kfb, (2,), fb)
    n_out_pad = 128                                 # lane-dense head output

    def pad_fc(w_half):                             # (H, 2) -> (Hp, 128)
        return jnp.pad(w_half, ((0, Hp - H), (0, n_out_pad - 2)))

    fc_w_split = jnp.stack([pad_fc(fc_w[:, :H].T), pad_fc(fc_w[:, H:].T)])
    fc_b_pad = jnp.pad(fc_b.reshape(1, 2), ((0, 0), (0, n_out_pad - 2)))

    return {"embedding": emb, "lstm": layers,
            "ln_gamma": gamma, "ln_beta": beta,
            "fc_w": fc_w_split, "fc_b": fc_b_pad}


# ---------------------------------------------------------------------------
# Full forward pass.  The only XLA glue is the bf16 embedding gather, the
# wrapper-side (free, HBM) reshape to the flattened layout, and the final
# un-pad slice of the logits.
# ---------------------------------------------------------------------------
@functools.partial(jax.jit, static_argnames=("chunk", "pad_idx", "hidden_real"))
def imdb_forward(tokens, params, *, chunk, pad_idx, hidden_real):
    b_real, t_len = tokens.shape
    b_pad = _round_up(max(b_real, 1), 8)            # sublane-aligned batch
    if b_pad != b_real:
        tokens = jnp.pad(tokens, ((0, b_pad - b_real), (0, 0)),
                         constant_values=pad_idx)

    emb = params["embedding"][tokens.T]             # (T, B_pad, Hp) bf16 gather
    hp = emb.shape[-1]
    x = emb.reshape(1, t_len * b_pad, hp)           # flattened, single "source"

    layers = params["lstm"]
    for li, layer in enumerate(layers):
        x = bilstm_layer(x, layer["wih"], layer["whh"], layer["b"],
                         bsz=b_pad, chunk=chunk,
                         mean_output=(li == len(layers) - 1))

    # x: (2, B_pad, Hp) per-direction time-mean of the last layer's output
    logits = sentiment_head(x, params["ln_gamma"], params["ln_beta"],
                            params["fc_w"], params["fc_b"],
                            feat_real=2 * hidden_real)
    return logits[:b_real, :2]


if __name__ == "__main__":
    VOCAB, HIDDEN, N_LAYERS, PAD_IDX = 50, 32, 2, 0
    B, T = 2, 8

    root = jax.random.PRNGKey(0)
    k_tok, k_par = jax.random.split(root)

    tokens = jax.random.randint(k_tok, (B, T), 0, VOCAB, dtype=jnp.int32)
    params = init_params(k_par, VOCAB, HIDDEN, N_LAYERS, PAD_IDX,
                         bidirectional=True)

    b_pad = _round_up(B, 8)
    h_pad = _round_up(HIDDEN, 128)
    chunk = _pick_chunk(T, b_pad, h_pad, n_src_max=2,
                        vmem_budget=_vmem_limit_bytes())

    logits = imdb_forward(tokens, params, chunk=chunk, pad_idx=PAD_IDX,
                          hidden_real=HIDDEN)
    jax.block_until_ready(logits)
    assert logits.shape == (B, 2) and logits.dtype == jnp.float32
    print("KERNEL_OK")
</pallas_src>

<mosaic_0001>
module attributes {stable_mosaic.version = 11 : i64} {
  func.func @_head_kernel(%arg0: i32, %arg1: memref<2x8x128xf32, #tpu.memory_space<vmem>>, %arg2: memref<2x1x128xf32, #tpu.memory_space<vmem>>, %arg3: memref<2x1x128xf32, #tpu.memory_space<vmem>>, %arg4: memref<2x128x128xf32, #tpu.memory_space<vmem>>, %arg5: memref<1x128xf32, #tpu.memory_space<vmem>>, %arg6: memref<8x128xf32, #tpu.memory_space<vmem>>) attributes {dimension_semantics = [#tpu.dimension_semantics<arbitrary>], iteration_bounds = array<i64: 1>, scalar_prefetch = 0 : i64, scratch_operands = 0 : i64, tpu.core_type = #tpu.core_type<tc>, window_params = [{pipeline_mode = #tpu.pipeline_mode<synchronous>, transform_indices = @transform_0, window_bounds = array<i64: 2, 8, 128>}, {pipeline_mode = #tpu.pipeline_mode<synchronous>, transform_indices = @transform_1, window_bounds = array<i64: 2, 1, 128>}, {pipeline_mode = #tpu.pipeline_mode<synchronous>, transform_indices = @transform_2, window_bounds = array<i64: 2, 1, 128>}, {pipeline_mode = #tpu.pipeline_mode<synchronous>, transform_indices = @transform_3, window_bounds = array<i64: 2, 128, 128>}, {pipeline_mode = #tpu.pipeline_mode<synchronous>, transform_indices = @transform_4, window_bounds = array<i64: 1, 128>}, {pipeline_mode = #tpu.pipeline_mode<synchronous>, transform_indices = @transform_5, window_bounds = array<i64: 8, 128>}]} {
    %c0 = arith.constant 0 : index
    %c0_0 = arith.constant 0 : index
    %c0_1 = arith.constant 0 : index
    %0 = vector.load %arg1[%c0, %c0_0, %c0_1] : memref<2x8x128xf32, #tpu.memory_space<vmem>>, vector<1x8x128xf32>
    %1 = vector.shape_cast %0 : vector<1x8x128xf32> to vector<8x128xf32>
    %c1 = arith.constant 1 : index
    %c0_2 = arith.constant 0 : index
    %c0_3 = arith.constant 0 : index
    %2 = vector.load %arg1[%c1, %c0_2, %c0_3] : memref<2x8x128xf32, #tpu.memory_space<vmem>>, vector<1x8x128xf32>
    %3 = vector.shape_cast %2 : vector<1x8x128xf32> to vector<8x128xf32>
    %cst = arith.constant dense<0.000000e+00> : vector<8xf32>
    %4 = vector.multi_reduction <add>, %1, %cst [1] : vector<8x128xf32> to vector<8xf32>
    %5 = vector.shape_cast %4 : vector<8xf32> to vector<8x1xf32>
    %cst_4 = arith.constant dense<0.000000e+00> : vector<8xf32>
    %6 = vector.multi_reduction <add>, %3, %cst_4 [1] : vector<8x128xf32> to vector<8xf32>
    %7 = vector.shape_cast %6 : vector<8xf32> to vector<8x1xf32>
    %8 = arith.addf %5, %7 : vector<8x1xf32>
    %cst_5 = arith.constant 1.562500e-02 : f32
    %9 = vector.broadcast %cst_5 : f32 to vector<8x1xf32>
    %10 = arith.mulf %8, %9 : vector<8x1xf32>
    %11 = arith.mulf %1, %1 : vector<8x128xf32>
    %cst_6 = arith.constant dense<0.000000e+00> : vector<8xf32>
    %12 = vector.multi_reduction <add>, %11, %cst_6 [1] : vector<8x128xf32> to vector<8xf32>
    %13 = vector.shape_cast %12 : vector<8xf32> to vector<8x1xf32>
    %14 = arith.mulf %3, %3 : vector<8x128xf32>
    %cst_7 = arith.constant dense<0.000000e+00> : vector<8xf32>
    %15 = vector.multi_reduction <add>, %14, %cst_7 [1] : vector<8x128xf32> to vector<8xf32>
    %16 = vector.shape_cast %15 : vector<8xf32> to vector<8x1xf32>
    %17 = arith.addf %13, %16 : vector<8x1xf32>
    %cst_8 = arith.constant 1.562500e-02 : f32
    %18 = vector.broadcast %cst_8 : f32 to vector<8x1xf32>
    %19 = arith.mulf %17, %18 : vector<8x1xf32>
    %20 = arith.mulf %10, %10 : vector<8x1xf32>
    %21 = arith.subf %19, %20 : vector<8x1xf32>
    %cst_9 = arith.constant 9.99999974E-6 : f32
    %22 = vector.broadcast %cst_9 : f32 to vector<8x1xf32>
    %23 = arith.addf %21, %22 : vector<8x1xf32>
    %24 = math.rsqrt %23 : vector<8x1xf32>
    %25 = vector.broadcast %10 : vector<8x1xf32> to vector<8x128xf32>
    %26 = arith.subf %1, %25 : vector<8x128xf32>
    %27 = vector.broadcast %24 : vector<8x1xf32> to vector<8x128xf32>
    %28 = arith.mulf %26, %27 : vector<8x128xf32>
    %c0_10 = arith.constant 0 : index
    %c0_11 = arith.constant 0 : index
    %c0_12 = arith.constant 0 : index
    %29 = vector.load %arg2[%c0_10, %c0_11, %c0_12] : memref<2x1x128xf32, #tpu.memory_space<vmem>>, vector<1x1x128xf32>
    %30 = vector.shape_cast %29 : vector<1x1x128xf32> to vector<1x128xf32>
    %31 = vector.broadcast %30 : vector<1x128xf32> to vector<8x128xf32>
    %32 = arith.mulf %28, %31 : vector<8x128xf32>
    %c0_13 = arith.constant 0 : index
    %c0_14 = arith.constant 0 : index
    %c0_15 = arith.constant 0 : index
    %33 = vector.load %arg3[%c0_13, %c0_14, %c0_15] : memref<2x1x128xf32, #tpu.memory_space<vmem>>, vector<1x1x128xf32>
    %34 = vector.shape_cast %33 : vector<1x1x128xf32> to vector<1x128xf32>
    %35 = vector.broadcast %34 : vector<1x128xf32> to vector<8x128xf32>
    %36 = arith.addf %32, %35 : vector<8x128xf32>
    %37 = vector.broadcast %10 : vector<8x1xf32> to vector<8x128xf32>
    %38 = arith.subf %3, %37 : vector<8x128xf32>
    %39 = vector.broadcast %24 : vector<8x1xf32> to vector<8x128xf32>
    %40 = arith.mulf %38, %39 : vector<8x128xf32>
    %c1_16 = arith.constant 1 : index
    %c0_17 = arith.constant 0 : index
    %c0_18 = arith.constant 0 : index
    %41 = vector.load %arg2[%c1_16, %c0_17, %c0_18] : memref<2x1x128xf32, #tpu.memory_space<vmem>>, vector<1x1x128xf32>
    %42 = vector.shape_cast %41 : vector<1x1x128xf32> to vector<1x128xf32>
    %43 = vector.broadcast %42 : vector<1x128xf32> to vector<8x128xf32>
    %44 = arith.mulf %40, %43 : vector<8x128xf32>
    %c1_19 = arith.constant 1 : index
    %c0_20 = arith.constant 0 : index
    %c0_21 = arith.constant 0 : index
    %45 = vector.load %arg3[%c1_19, %c0_20, %c0_21] : memref<2x1x128xf32, #tpu.memory_space<vmem>>, vector<1x1x128xf32>
    %46 = vector.shape_cast %45 : vector<1x1x128xf32> to vector<1x128xf32>
    %47 = vector.broadcast %46 : vector<1x128xf32> to vector<8x128xf32>
    %48 = arith.addf %44, %47 : vector<8x128xf32>
    %c0_22 = arith.constant 0 : index
    %c0_23 = arith.constant 0 : index
    %c0_24 = arith.constant 0 : index
    %49 = vector.load %arg4[%c0_22, %c0_23, %c0_24] : memref<2x128x128xf32, #tpu.memory_space<vmem>>, vector<1x128x128xf32>
    %50 = vector.shape_cast %49 : vector<1x128x128xf32> to vector<128x128xf32>
    %cst_25 = arith.constant dense<0.000000e+00> : vector<8x128xf32>
    %51 = tpu.matmul %36, %50, %cst_25 {dimension_numbers = #tpu.dot_dimension_numbers<[1], [0], [0], [1], [0, 0, 1, 1], [], []>} : vector<8x128xf32>, vector<128x128xf32>, vector<8x128xf32> -> vector<8x128xf32>
    %c1_26 = arith.constant 1 : index
    %c0_27 = arith.constant 0 : index
    %c0_28 = arith.constant 0 : index
    %52 = vector.load %arg4[%c1_26, %c0_27, %c0_28] : memref<2x128x128xf32, #tpu.memory_space<vmem>>, vector<1x128x128xf32>
    %53 = vector.shape_cast %52 : vector<1x128x128xf32> to vector<128x128xf32>
    %cst_29 = arith.constant dense<0.000000e+00> : vector<8x128xf32>
    %54 = tpu.matmul %48, %53, %cst_29 {dimension_numbers = #tpu.dot_dimension_numbers<[1], [0], [0], [1], [0, 0, 1, 1], [], []>} : vector<8x128xf32>, vector<128x128xf32>, vector<8x128xf32> -> vector<8x128xf32>
    %55 = arith.addf %51, %54 : vector<8x128xf32>
    %c0_30 = arith.constant 0 : index
    %c0_31 = arith.constant 0 : index
    %56 = vector.load %arg5[%c0_30, %c0_31] : memref<1x128xf32, #tpu.memory_space<vmem>>, vector<1x128xf32>
    %57 = vector.broadcast %56 : vector<1x128xf32> to vector<8x128xf32>
    %58 = arith.addf %55, %57 : vector<8x128xf32>
    %c0_32 = arith.constant 0 : index
    %c0_33 = arith.constant 0 : index
    %59 = vector.load %arg6[%c0_32, %c0_33] : memref<8x128xf32, #tpu.memory_space<vmem>>, vector<8x128xf32>
    tpu.vector_store %arg6[%c0_32, %c0_33], %58 {strides = array<i32>} : memref<8x128xf32, #tpu.memory_space<vmem>>, vector<8x128xf32>,
    return
  }
  func.func @transform_0(%arg0: i32) -> (i32, i32, i32) {
    %c0_i32 = arith.constant 0 : i32
    %c0_i32_0 = arith.constant 0 : i32
    %c0_i32_1 = arith.constant 0 : i32
    %c0_i32_2 = arith.constant 0 : i32
    return %c0_i32, %c0_i32_0, %c0_i32_1 : i32, i32, i32
  }
  func.func @transform_1(%arg0: i32) -> (i32, i32, i32) {
    %c0_i32 = arith.constant 0 : i32
    %c0_i32_0 = arith.constant 0 : i32
    %c0_i32_1 = arith.constant 0 : i32
    %c0_i32_2 = arith.constant 0 : i32
    return %c0_i32, %c0_i32_0, %c0_i32_1 : i32, i32, i32
  }
  func.func @transform_2(%arg0: i32) -> (i32, i32, i32) {
    %c0_i32 = arith.constant 0 : i32
    %c0_i32_0 = arith.constant 0 : i32
    %c0_i32_1 = arith.constant 0 : i32
    %c0_i32_2 = arith.constant 0 : i32
    return %c0_i32, %c0_i32_0, %c0_i32_1 : i32, i32, i32
  }
  func.func @transform_3(%arg0: i32) -> (i32, i32, i32) {
    %c0_i32 = arith.constant 0 : i32
    %c0_i32_0 = arith.constant 0 : i32
    %c0_i32_1 = arith.constant 0 : i32
    %c0_i32_2 = arith.constant 0 : i32
    return %c0_i32, %c0_i32_0, %c0_i32_1 : i32, i32, i32
  }
  func.func @transform_4(%arg0: i32) -> (i32, i32) {
    %c0_i32 = arith.constant 0 : i32
    %c0_i32_0 = arith.constant 0 : i32
    %c0_i32_1 = arith.constant 0 : i32
    return %c0_i32, %c0_i32_0 : i32, i32
  }
  func.func @transform_5(%arg0: i32) -> (i32, i32) {
    %c0_i32 = arith.constant 0 : i32
    %c0_i32_0 = arith.constant 0 : i32
    %c0_i32_1 = arith.constant 0 : i32
    return %c0_i32, %c0_i32_0 : i32, i32
  }
}

module attributes {stable_mosaic.version = 11 : i64} {
  func.func @_bilstm_layer_kernel(%arg0: i32, %arg1: i32, %arg2: memref<2x64x128xbf16, #tpu.memory_space<vmem>>, %arg3: memref<1x2x128x512xbf16, #tpu.memory_space<vmem>>, %arg4: memref<1x128x512xbf16, #tpu.memory_space<vmem>>, %arg5: memref<1x1x512xf32, #tpu.memory_space<vmem>>, %arg6: memref<1x8x128xf32, #tpu.memory_space<vmem>>, %arg7: memref<64x512xf32, #tpu.memory_space<vmem>>, %arg8: memref<8x128xf32, #tpu.memory_space<vmem>>, %arg9: memref<8x128xf32, #tpu.memory_space<vmem>>) attributes {dimension_semantics = [#tpu.dimension_semantics<parallel>, #tpu.dimension_semantics<arbitrary>], iteration_bounds = array<i64: 2, 1>, scalar_prefetch = 0 : i64, scratch_operands = 3 : i64, tpu.core_type = #tpu.core_type<tc>, window_params = [{transform_indices = @transform_0, window_bounds = array<i64: 2, 64, 128>}, {transform_indices = @transform_1, window_bounds = array<i64: 1, 2, 128, 512>}, {transform_indices = @transform_2, window_bounds = array<i64: 1, 128, 512>}, {transform_indices = @transform_3, window_bounds = array<i64: 1, 1, 512>}, {transform_indices = @transform_4, window_bounds = array<i64: 1, 8, 128>}]} {
    %c0_i32 = arith.constant 0 : i32
    %0 = arith.cmpi eq, %arg1, %c0_i32 : i32
    %1 = arith.extui %0 : i1 to i32
    %c0_i32_0 = arith.constant 0 : i32
    %2 = arith.cmpi ne, %1, %c0_i32_0 : i32
    scf.if %2 {
      %cst_25 = arith.constant 0.000000e+00 : f32
      %27 = vector.broadcast %cst_25 : f32 to vector<8x128xf32>
      %c0_26 = arith.constant 0 : index
      %c0_27 = arith.constant 0 : index
      %28 = vector.load %arg8[%c0_26, %c0_27] : memref<8x128xf32, #tpu.memory_space<vmem>>, vector<8x128xf32>
      tpu.vector_store %arg8[%c0_26, %c0_27], %27 {strides = array<i32>} : memref<8x128xf32, #tpu.memory_space<vmem>>, vector<8x128xf32>,
      %cst_28 = arith.constant 0.000000e+00 : f32
      %29 = vector.broadcast %cst_28 : f32 to vector<8x128xf32>
      %c0_29 = arith.constant 0 : index
      %c0_30 = arith.constant 0 : index
      %30 = vector.load %arg9[%c0_29, %c0_30] : memref<8x128xf32, #tpu.memory_space<vmem>>, vector<8x128xf32>
      tpu.vector_store %arg9[%c0_29, %c0_30], %29 {strides = array<i32>} : memref<8x128xf32, #tpu.memory_space<vmem>>, vector<8x128xf32>,
      %cst_31 = arith.constant 0.000000e+00 : f32
      %31 = vector.broadcast %cst_31 : f32 to vector<8x128xf32>
      %c0_32 = arith.constant 0 : index
      %c0_33 = arith.constant 0 : index
      %c0_34 = arith.constant 0 : index
      %32 = vector.load %arg6[%c0_32, %c0_33, %c0_34] : memref<1x8x128xf32, #tpu.memory_space<vmem>>, vector<1x8x128xf32>
      %33 = vector.shape_cast %32 : vector<1x8x128xf32> to vector<8x128xf32>
      %34 = vector.shape_cast %31 : vector<8x128xf32> to vector<1x8x128xf32>
      tpu.vector_store %arg6[%c0_32, %c0_33, %c0_34], %34 {strides = array<i32>} : memref<1x8x128xf32, #tpu.memory_space<vmem>>, vector<1x8x128xf32>,
    } else {
    }
    %c0 = arith.constant 0 : index
    %c0_1 = arith.constant 0 : index
    %c0_2 = arith.constant 0 : index
    %3 = vector.load %arg2[%c0, %c0_1, %c0_2] : memref<2x64x128xbf16, #tpu.memory_space<vmem>>, vector<1x64x128xbf16>
    %4 = vector.shape_cast %3 : vector<1x64x128xbf16> to vector<64x128xbf16>
    %c0_3 = arith.constant 0 : index
    %c0_4 = arith.constant 0 : index
    %c0_5 = arith.constant 0 : index
    %c0_6 = arith.constant 0 : index
    %5 = vector.load %arg3[%c0_3, %c0_4, %c0_5, %c0_6] : memref<1x2x128x512xbf16, #tpu.memory_space<vmem>>, vector<1x1x128x512xbf16>
    %6 = vector.shape_cast %5 : vector<1x1x128x512xbf16> to vector<128x512xbf16>
    %cst = arith.constant dense<0.000000e+00> : vector<64x512xf32>
    %7 = tpu.matmul %4, %6, %cst {dimension_numbers = #tpu.dot_dimension_numbers<[1], [0], [0], [1], [0, 0, 1, 1], [], []>} : vector<64x128xbf16>, vector<128x512xbf16>, vector<64x512xf32> -> vector<64x512xf32>
    %c1 = arith.constant 1 : index
    %c0_7 = arith.constant 0 : index
    %c0_8 = arith.constant 0 : index
    %8 = vector.load %arg2[%c1, %c0_7, %c0_8] : memref<2x64x128xbf16, #tpu.memory_space<vmem>>, vector<1x64x128xbf16>
    %9 = vector.shape_cast %8 : vector<1x64x128xbf16> to vector<64x128xbf16>
    %c0_9 = arith.constant 0 : index
    %c1_10 = arith.constant 1 : index
    %c0_11 = arith.constant 0 : index
    %c0_12 = arith.constant 0 : index
    %10 = vector.load %arg3[%c0_9, %c1_10, %c0_11, %c0_12] : memref<1x2x128x512xbf16, #tpu.memory_space<vmem>>, vector<1x1x128x512xbf16>
    %11 = vector.shape_cast %10 : vector<1x1x128x512xbf16> to vector<128x512xbf16>
    %cst_13 = arith.constant dense<0.000000e+00> : vector<64x512xf32>
    %12 = tpu.matmul %9, %11, %cst_13 {dimension_numbers = #tpu.dot_dimension_numbers<[1], [0], [0], [1], [0, 0, 1, 1], [], []>} : vector<64x128xbf16>, vector<128x512xbf16>, vector<64x512xf32> -> vector<64x512xf32>
    %13 = arith.addf %7, %12 : vector<64x512xf32>
    %c0_14 = arith.constant 0 : index
    %c0_15 = arith.constant 0 : index
    %c0_16 = arith.constant 0 : index
    %14 = vector.load %arg5[%c0_14, %c0_15, %c0_16] : memref<1x1x512xf32, #tpu.memory_space<vmem>>, vector<1x1x512xf32>
    %15 = vector.shape_cast %14 : vector<1x1x512xf32> to vector<1x512xf32>
    %16 = vector.broadcast %15 : vector<1x512xf32> to vector<64x512xf32>
    %17 = arith.addf %13, %16 : vector<64x512xf32>
    %c0_17 = arith.constant 0 : index
    %c0_18 = arith.constant 0 : index
    %18 = vector.load %arg7[%c0_17, %c0_18] : memref<64x512xf32, #tpu.memory_space<vmem>>, vector<64x512xf32>
    tpu.vector_store %arg7[%c0_17, %c0_18], %17 {strides = array<i32>} : memref<64x512xf32, #tpu.memory_space<vmem>>, vector<64x512xf32>,
    %c0_19 = arith.constant 0 : index
    %c0_20 = arith.constant 0 : index
    %c0_21 = arith.constant 0 : index
    %19 = vector.load %arg4[%c0_19, %c0_20, %c0_21] : memref<1x128x512xbf16, #tpu.memory_space<vmem>>, vector<1x128x512xbf16>
    %20 = vector.shape_cast %19 : vector<1x128x512xbf16> to vector<128x512xbf16>
    %c0_i32_22 = arith.constant 0 : i32
    %21 = arith.cmpi eq, %arg0, %c0_i32_22 : i32
    %22 = arith.extui %21 : i1 to i32
    %c0_i32_23 = arith.constant 0 : i32
    %23 = arith.cmpi ne, %22, %c0_i32_23 : i32
    scf.if %23 {
      %c0_25 = arith.constant 0 : index
      %c0_26 = arith.constant 0 : index
      %27 = vector.load %arg8[%c0_25, %c0_26] : memref<8x128xf32, #tpu.memory_space<vmem>>, vector<8x128xf32>
      %c0_27 = arith.constant 0 : index
      %c0_28 = arith.constant 0 : index
      %28 = vector.load %arg9[%c0_27, %c0_28] : memref<8x128xf32, #tpu.memory_space<vmem>>, vector<8x128xf32>
      %cst_29 = arith.constant 0.000000e+00 : f32
      %29 = vector.broadcast %cst_29 : f32 to vector<8x128xf32>
      %c0_i32_30 = arith.constant 0 : i32
      %c8_i32 = arith.constant 8 : i32
      %30 = arith.muli %c0_i32_30, %c8_i32 : i32
      %31 = tpu.assume_multiple %30, 8 : i32
      %32 = arith.index_cast %31 : i32 to index
      %c0_31 = arith.constant 0 : index
      %33 = vector.load %arg7[%32, %c0_31] : memref<64x512xf32, #tpu.memory_space<vmem>>, vector<8x512xf32>
      %34 = arith.truncf %27 : vector<8x128xf32> to vector<8x128xbf16>
      %cst_32 = arith.constant dense<0.000000e+00> : vector<8x512xf32>
      %35 = tpu.matmul %34, %20, %cst_32 {dimension_numbers = #tpu.dot_dimension_numbers<[1], [0], [0], [1], [0, 0, 1, 1], [], []>} : vector<8x128xbf16>, vector<128x512xbf16>, vector<8x512xf32> -> vector<8x512xf32>
      %36 = arith.addf %33, %35 : vector<8x512xf32>
      %37 = vector.extract_strided_slice %36 {offsets = [0, 0], sizes = [8, 128], strides = [1, 1]} : vector<8x512xf32> to vector<8x128xf32>
      %38 = arith.negf %37 : vector<8x128xf32>
      %39 = math.exp %38 : vector<8x128xf32>
      %cst_33 = arith.constant 1.000000e+00 : f32
      %40 = vector.broadcast %cst_33 : f32 to vector<8x128xf32>
      %41 = arith.addf %40, %39 : vector<8x128xf32>
      %42 = arith.divf %40, %41 : vector<8x128xf32>
      %43 = vector.extract_strided_slice %36 {offsets = [0, 128], sizes = [8, 128], strides = [1, 1]} : vector<8x512xf32> to vector<8x128xf32>
      %44 = arith.negf %43 : vector<8x128xf32>
      %45 = math.exp %44 : vector<8x128xf32>
      %cst_34 = arith.constant 1.000000e+00 : f32
      %46 = vector.broadcast %cst_34 : f32 to vector<8x128xf32>
      %47 = arith.addf %46, %45 : vector<8x128xf32>
      %48 = arith.divf %46, %47 : vector<8x128xf32>
      %49 = vector.extract_strided_slice %36 {offsets = [0, 256], sizes = [8, 128], strides = [1, 1]} : vector<8x512xf32> to vector<8x128xf32>
      %50 = math.tanh %49 : vector<8x128xf32>
      %51 = vector.extract_strided_slice %36 {offsets = [0, 384], sizes = [8, 128], strides = [1, 1]} : vector<8x512xf32> to vector<8x128xf32>
      %52 = arith.negf %51 : vector<8x128xf32>
      %53 = math.exp %52 : vector<8x128xf32>
      %cst_35 = arith.constant 1.000000e+00 : f32
      %54 = vector.broadcast %cst_35 : f32 to vector<8x128xf32>
      %55 = arith.addf %54, %53 : vector<8x128xf32>
      %56 = arith.divf %54, %55 : vector<8x128xf32>
      %57 = arith.mulf %48, %28 : vector<8x128xf32>
      %58 = arith.mulf %42, %50 : vector<8x128xf32>
      %59 = arith.addf %57, %58 : vector<8x128xf32>
      %60 = math.tanh %59 : vector<8x128xf32>
      %61 = arith.mulf %56, %60 : vector<8x128xf32>
      %62 = arith.addf %29, %61 : vector<8x128xf32>
      %c1_i32_36 = arith.constant 1 : i32
      %c8_i32_37 = arith.constant 8 : i32
      %63 = arith.muli %c1_i32_36, %c8_i32_37 : i32
      %64 = tpu.assume_multiple %63, 8 : i32
      %65 = arith.index_cast %64 : i32 to index
      %c0_38 = arith.constant 0 : index
      %66 = vector.load %arg7[%65, %c0_38] : memref<64x512xf32, #tpu.memory_space<vmem>>, vector<8x512xf32>
      %67 = arith.truncf %61 : vector<8x128xf32> to vector<8x128xbf16>
      %cst_39 = arith.constant dense<0.000000e+00> : vector<8x512xf32>
      %68 = tpu.matmul %67, %20, %cst_39 {dimension_numbers = #tpu.dot_dimension_numbers<[1], [0], [0], [1], [0, 0, 1, 1], [], []>} : vector<8x128xbf16>, vector<128x512xbf16>, vector<8x512xf32> -> vector<8x512xf32>
      %69 = arith.addf %66, %68 : vector<8x512xf32>
      %70 = vector.extract_strided_slice %69 {offsets = [0, 0], sizes = [8, 128], strides = [1, 1]} : vector<8x512xf32> to vector<8x128xf32>
      %71 = arith.negf %70 : vector<8x128xf32>
      %72 = math.exp %71 : vector<8x128xf32>
      %cst_40 = arith.constant 1.000000e+00 : f32
      %73 = vector.broadcast %cst_40 : f32 to vector<8x128xf32>
      %74 = arith.addf %73, %72 : vector<8x128xf32>
      %75 = arith.divf %73, %74 : vector<8x128xf32>
      %76 = vector.extract_strided_slice %69 {offsets = [0, 128], sizes = [8, 128], strides = [1, 1]} : vector<8x512xf32> to vector<8x128xf32>
      %77 = arith.negf %76 : vector<8x128xf32>
      %78 = math.exp %77 : vector<8x128xf32>
      %cst_41 = arith.constant 1.000000e+00 : f32
      %79 = vector.broadcast %cst_41 : f32 to vector<8x128xf32>
      %80 = arith.addf %79, %78 : vector<8x128xf32>
      %81 = arith.divf %79, %80 : vector<8x128xf32>
      %82 = vector.extract_strided_slice %69 {offsets = [0, 256], sizes = [8, 128], strides = [1, 1]} : vector<8x512xf32> to vector<8x128xf32>
      %83 = math.tanh %82 : vector<8x128xf32>
      %84 = vector.extract_strided_slice %69 {offsets = [0, 384], sizes = [8, 128], strides = [1, 1]} : vector<8x512xf32> to vector<8x128xf32>
      %85 = arith.negf %84 : vector<8x128xf32>
      %86 = math.exp %85 : vector<8x128xf32>
      %cst_42 = arith.constant 1.000000e+00 : f32
      %87 = vector.broadcast %cst_42 : f32 to vector<8x128xf32>
      %88 = arith.addf %87, %86 : vector<8x128xf32>
      %89 = arith.divf %87, %88 : vector<8x128xf32>
      %90 = arith.mulf %81, %59 : vector<8x128xf32>
      %91 = arith.mulf %75, %83 : vector<8x128xf32>
      %92 = arith.addf %90, %91 : vector<8x128xf32>
      %93 = math.tanh %92 : vector<8x128xf32>
      %94 = arith.mulf %89, %93 : vector<8x128xf32>
      %95 = arith.addf %62, %94 : vector<8x128xf32>
      %c2_i32 = arith.constant 2 : i32
      %c8_i32_43 = arith.constant 8 : i32
      %96 = arith.muli %c2_i32, %c8_i32_43 : i32
      %97 = tpu.assume_multiple %96, 8 : i32
      %98 = arith.index_cast %97 : i32 to index
      %c0_44 = arith.constant 0 : index
      %99 = vector.load %arg7[%98, %c0_44] : memref<64x512xf32, #tpu.memory_space<vmem>>, vector<8x512xf32>
      %100 = arith.truncf %94 : vector<8x128xf32> to vector<8x128xbf16>
      %cst_45 = arith.constant dense<0.000000e+00> : vector<8x512xf32>
      %101 = tpu.matmul %100, %20, %cst_45 {dimension_numbers = #tpu.dot_dimension_numbers<[1], [0], [0], [1], [0, 0, 1, 1], [], []>} : vector<8x128xbf16>, vector<128x512xbf16>, vector<8x512xf32> -> vector<8x512xf32>
      %102 = arith.addf %99, %101 : vector<8x512xf32>
      %103 = vector.extract_strided_slice %102 {offsets = [0, 0], sizes = [8, 128], strides = [1, 1]} : vector<8x512xf32> to vector<8x128xf32>
      %104 = arith.negf %103 : vector<8x128xf32>
      %105 = math.exp %104 : vector<8x128xf32>
      %cst_46 = arith.constant 1.000000e+00 : f32
      %106 = vector.broadcast %cst_46 : f32 to vector<8x128xf32>
      %107 = arith.addf %106, %105 : vector<8x128xf32>
      %108 = arith.divf %106, %107 : vector<8x128xf32>
      %109 = vector.extract_strided_slice %102 {offsets = [0, 128], sizes = [8, 128], strides = [1, 1]} : vector<8x512xf32> to vector<8x128xf32>
      %110 = arith.negf %109 : vector<8x128xf32>
      %111 = math.exp %110 : vector<8x128xf32>
      %cst_47 = arith.constant 1.000000e+00 : f32
      %112 = vector.broadcast %cst_47 : f32 to vector<8x128xf32>
      %113 = arith.addf %112, %111 : vector<8x128xf32>
      %114 = arith.divf %112, %113 : vector<8x128xf32>
      %115 = vector.extract_strided_slice %102 {offsets = [0, 256], sizes = [8, 128], strides = [1, 1]} : vector<8x512xf32> to vector<8x128xf32>
      %116 = math.tanh %115 : vector<8x128xf32>
      %117 = vector.extract_strided_slice %102 {offsets = [0, 384], sizes = [8, 128], strides = [1, 1]} : vector<8x512xf32> to vector<8x128xf32>
      %118 = arith.negf %117 : vector<8x128xf32>
      %119 = math.exp %118 : vector<8x128xf32>
      %cst_48 = arith.constant 1.000000e+00 : f32
      %120 = vector.broadcast %cst_48 : f32 to vector<8x128xf32>
      %121 = arith.addf %120, %119 : vector<8x128xf32>
      %122 = arith.divf %120, %121 : vector<8x128xf32>
      %123 = arith.mulf %114, %92 : vector<8x128xf32>
      %124 = arith.mulf %108, %116 : vector<8x128xf32>
      %125 = arith.addf %123, %124 : vector<8x128xf32>
      %126 = math.tanh %125 : vector<8x128xf32>
      %127 = arith.mulf %122, %126 : vector<8x128xf32>
      %128 = arith.addf %95, %127 : vector<8x128xf32>
      %c3_i32 = arith.constant 3 : i32
      %c8_i32_49 = arith.constant 8 : i32
      %129 = arith.muli %c3_i32, %c8_i32_49 : i32
      %130 = tpu.assume_multiple %129, 8 : i32
      %131 = arith.index_cast %130 : i32 to index
      %c0_50 = arith.constant 0 : index
      %132 = vector.load %arg7[%131, %c0_50] : memref<64x512xf32, #tpu.memory_space<vmem>>, vector<8x512xf32>
      %133 = arith.truncf %127 : vector<8x128xf32> to vector<8x128xbf16>
      %cst_51 = arith.constant dense<0.000000e+00> : vector<8x512xf32>
      %134 = tpu.matmul %133, %20, %cst_51 {dimension_numbers = #tpu.dot_dimension_numbers<[1], [0], [0], [1], [0, 0, 1, 1], [], []>} : vector<8x128xbf16>, vector<128x512xbf16>, vector<8x512xf32> -> vector<8x512xf32>
      %135 = arith.addf %132, %134 : vector<8x512xf32>
      %136 = vector.extract_strided_slice %135 {offsets = [0, 0], sizes = [8, 128], strides = [1, 1]} : vector<8x512xf32> to vector<8x128xf32>
      %137 = arith.negf %136 : vector<8x128xf32>
      %138 = math.exp %137 : vector<8x128xf32>
      %cst_52 = arith.constant 1.000000e+00 : f32
      %139 = vector.broadcast %cst_52 : f32 to vector<8x128xf32>
      %140 = arith.addf %139, %138 : vector<8x128xf32>
      %141 = arith.divf %139, %140 : vector<8x128xf32>
      %142 = vector.extract_strided_slice %135 {offsets = [0, 128], sizes = [8, 128], strides = [1, 1]} : vector<8x512xf32> to vector<8x128xf32>
      %143 = arith.negf %142 : vector<8x128xf32>
      %144 = math.exp %143 : vector<8x128xf32>
      %cst_53 = arith.constant 1.000000e+00 : f32
      %145 = vector.broadcast %cst_53 : f32 to vector<8x128xf32>
      %146 = arith.addf %145, %144 : vector<8x128xf32>
      %147 = arith.divf %145, %146 : vector<8x128xf32>
      %148 = vector.extract_strided_slice %135 {offsets = [0, 256], sizes = [8, 128], strides = [1, 1]} : vector<8x512xf32> to vector<8x128xf32>
      %149 = math.tanh %148 : vector<8x128xf32>
      %150 = vector.extract_strided_slice %135 {offsets = [0, 384], sizes = [8, 128], strides = [1, 1]} : vector<8x512xf32> to vector<8x128xf32>
      %151 = arith.negf %150 : vector<8x128xf32>
      %152 = math.exp %151 : vector<8x128xf32>
      %cst_54 = arith.constant 1.000000e+00 : f32
      %153 = vector.broadcast %cst_54 : f32 to vector<8x128xf32>
      %154 = arith.addf %153, %152 : vector<8x128xf32>
      %155 = arith.divf %153, %154 : vector<8x128xf32>
      %156 = arith.mulf %147, %125 : vector<8x128xf32>
      %157 = arith.mulf %141, %149 : vector<8x128xf32>
      %158 = arith.addf %156, %157 : vector<8x128xf32>
      %159 = math.tanh %158 : vector<8x128xf32>
      %160 = arith.mulf %155, %159 : vector<8x128xf32>
      %161 = arith.addf %128, %160 : vector<8x128xf32>
      %c4_i32 = arith.constant 4 : i32
      %c8_i32_55 = arith.constant 8 : i32
      %162 = arith.muli %c4_i32, %c8_i32_55 : i32
      %163 = tpu.assume_multiple %162, 8 : i32
      %164 = arith.index_cast %163 : i32 to index
      %c0_56 = arith.constant 0 : index
      %165 = vector.load %arg7[%164, %c0_56] : memref<64x512xf32, #tpu.memory_space<vmem>>, vector<8x512xf32>
      %166 = arith.truncf %160 : vector<8x128xf32> to vector<8x128xbf16>
      %cst_57 = arith.constant dense<0.000000e+00> : vector<8x512xf32>
      %167 = tpu.matmul %166, %20, %cst_57 {dimension_numbers = #tpu.dot_dimension_numbers<[1], [0], [0], [1], [0, 0, 1, 1], [], []>} : vector<8x128xbf16>, vector<128x512xbf16>, vector<8x512xf32> -> vector<8x512xf32>
      %168 = arith.addf %165, %167 : vector<8x512xf32>
      %169 = vector.extract_strided_slice %168 {offsets = [0, 0], sizes = [8, 128], strides = [1, 1]} : vector<8x512xf32> to vector<8x128xf32>
      %170 = arith.negf %169 : vector<8x128xf32>
      %171 = math.exp %170 : vector<8x128xf32>
      %cst_58 = arith.constant 1.000000e+00 : f32
      %172 = vector.broadcast %cst_58 : f32 to vector<8x128xf32>
      %173 = arith.addf %172, %171 : vector<8x128xf32>
      %174 = arith.divf %172, %173 : vector<8x128xf32>
      %175 = vector.extract_strided_slice %168 {offsets = [0, 128], sizes = [8, 128], strides = [1, 1]} : vector<8x512xf32> to vector<8x128xf32>
      %176 = arith.negf %175 : vector<8x128xf32>
      %177 = math.exp %176 : vector<8x128xf32>
      %cst_59 = arith.constant 1.000000e+00 : f32
      %178 = vector.broadcast %cst_59 : f32 to vector<8x128xf32>
      %179 = arith.addf %178, %177 : vector<8x128xf32>
      %180 = arith.divf %178, %179 : vector<8x128xf32>
      %181 = vector.extract_strided_slice %168 {offsets = [0, 256], sizes = [8, 128], strides = [1, 1]} : vector<8x512xf32> to vector<8x128xf32>
      %182 = math.tanh %181 : vector<8x128xf32>
      %183 = vector.extract_strided_slice %168 {offsets = [0, 384], sizes = [8, 128], strides = [1, 1]} : vector<8x512xf32> to vector<8x128xf32>
      %184 = arith.negf %183 : vector<8x128xf32>
      %185 = math.exp %184 : vector<8x128xf32>
      %cst_60 = arith.constant 1.000000e+00 : f32
      %186 = vector.broadcast %cst_60 : f32 to vector<8x128xf32>
      %187 = arith.addf %186, %185 : vector<8x128xf32>
      %188 = arith.divf %186, %187 : vector<8x128xf32>
      %189 = arith.mulf %180, %158 : vector<8x128xf32>
      %190 = arith.mulf %174, %182 : vector<8x128xf32>
      %191 = arith.addf %189, %190 : vector<8x128xf32>
      %192 = math.tanh %191 : vector<8x128xf32>
      %193 = arith.mulf %188, %192 : vector<8x128xf32>
      %194 = arith.addf %161, %193 : vector<8x128xf32>
      %c5_i32 = arith.constant 5 : i32
      %c8_i32_61 = arith.constant 8 : i32
      %195 = arith.muli %c5_i32, %c8_i32_61 : i32
      %196 = tpu.assume_multiple %195, 8 : i32
      %197 = arith.index_cast %196 : i32 to index
      %c0_62 = arith.constant 0 : index
      %198 = vector.load %arg7[%197, %c0_62] : memref<64x512xf32, #tpu.memory_space<vmem>>, vector<8x512xf32>
      %199 = arith.truncf %193 : vector<8x128xf32> to vector<8x128xbf16>
      %cst_63 = arith.constant dense<0.000000e+00> : vector<8x512xf32>
      %200 = tpu.matmul %199, %20, %cst_63 {dimension_numbers = #tpu.dot_dimension_numbers<[1], [0], [0], [1], [0, 0, 1, 1], [], []>} : vector<8x128xbf16>, vector<128x512xbf16>, vector<8x512xf32> -> vector<8x512xf32>
      %201 = arith.addf %198, %200 : vector<8x512xf32>
      %202 = vector.extract_strided_slice %201 {offsets = [0, 0], sizes = [8, 128], strides = [1, 1]} : vector<8x512xf32> to vector<8x128xf32>
      %203 = arith.negf %202 : vector<8x128xf32>
      %204 = math.exp %203 : vector<8x128xf32>
      %cst_64 = arith.constant 1.000000e+00 : f32
      %205 = vector.broadcast %cst_64 : f32 to vector<8x128xf32>
      %206 = arith.addf %205, %204 : vector<8x128xf32>
      %207 = arith.divf %205, %206 : vector<8x128xf32>
      %208 = vector.extract_strided_slice %201 {offsets = [0, 128], sizes = [8, 128], strides = [1, 1]} : vector<8x512xf32> to vector<8x128xf32>
      %209 = arith.negf %208 : vector<8x128xf32>
      %210 = math.exp %209 : vector<8x128xf32>
      %cst_65 = arith.constant 1.000000e+00 : f32
      %211 = vector.broadcast %cst_65 : f32 to vector<8x128xf32>
      %212 = arith.addf %211, %210 : vector<8x128xf32>
      %213 = arith.divf %211, %212 : vector<8x128xf32>
      %214 = vector.extract_strided_slice %201 {offsets = [0, 256], sizes = [8, 128], strides = [1, 1]} : vector<8x512xf32> to vector<8x128xf32>
      %215 = math.tanh %214 : vector<8x128xf32>
      %216 = vector.extract_strided_slice %201 {offsets = [0, 384], sizes = [8, 128], strides = [1, 1]} : vector<8x512xf32> to vector<8x128xf32>
      %217 = arith.negf %216 : vector<8x128xf32>
      %218 = math.exp %217 : vector<8x128xf32>
      %cst_66 = arith.constant 1.000000e+00 : f32
      %219 = vector.broadcast %cst_66 : f32 to vector<8x128xf32>
      %220 = arith.addf %219, %218 : vector<8x128xf32>
      %221 = arith.divf %219, %220 : vector<8x128xf32>
      %222 = arith.mulf %213, %191 : vector<8x128xf32>
      %223 = arith.mulf %207, %215 : vector<8x128xf32>
      %224 = arith.addf %222, %223 : vector<8x128xf32>
      %225 = math.tanh %224 : vector<8x128xf32>
      %226 = arith.mulf %221, %225 : vector<8x128xf32>
      %227 = arith.addf %194, %226 : vector<8x128xf32>
      %c6_i32 = arith.constant 6 : i32
      %c8_i32_67 = arith.constant 8 : i32
      %228 = arith.muli %c6_i32, %c8_i32_67 : i32
      %229 = tpu.assume_multiple %228, 8 : i32
      %230 = arith.index_cast %229 : i32 to index
      %c0_68 = arith.constant 0 : index
      %231 = vector.load %arg7[%230, %c0_68] : memref<64x512xf32, #tpu.memory_space<vmem>>, vector<8x512xf32>
      %232 = arith.truncf %226 : vector<8x128xf32> to vector<8x128xbf16>
      %cst_69 = arith.constant dense<0.000000e+00> : vector<8x512xf32>
      %233 = tpu.matmul %232, %20, %cst_69 {dimension_numbers = #tpu.dot_dimension_numbers<[1], [0], [0], [1], [0, 0, 1, 1], [], []>} : vector<8x128xbf16>, vector<128x512xbf16>, vector<8x512xf32> -> vector<8x512xf32>
      %234 = arith.addf %231, %233 : vector<8x512xf32>
      %235 = vector.extract_strided_slice %234 {offsets = [0, 0], sizes = [8, 128], strides = [1, 1]} : vector<8x512xf32> to vector<8x128xf32>
      %236 = arith.negf %235 : vector<8x128xf32>
      %237 = math.exp %236 : vector<8x128xf32>
      %cst_70 = arith.constant 1.000000e+00 : f32
      %238 = vector.broadcast %cst_70 : f32 to vector<8x128xf32>
      %239 = arith.addf %238, %237 : vector<8x128xf32>
      %240 = arith.divf %238, %239 : vector<8x128xf32>
      %241 = vector.extract_strided_slice %234 {offsets = [0, 128], sizes = [8, 128], strides = [1, 1]} : vector<8x512xf32> to vector<8x128xf32>
      %242 = arith.negf %241 : vector<8x128xf32>
      %243 = math.exp %242 : vector<8x128xf32>
      %cst_71 = arith.constant 1.000000e+00 : f32
      %244 = vector.broadcast %cst_71 : f32 to vector<8x128xf32>
      %245 = arith.addf %244, %243 : vector<8x128xf32>
      %246 = arith.divf %244, %245 : vector<8x128xf32>
      %247 = vector.extract_strided_slice %234 {offsets = [0, 256], sizes = [8, 128], strides = [1, 1]} : vector<8x512xf32> to vector<8x128xf32>
      %248 = math.tanh %247 : vector<8x128xf32>
      %249 = vector.extract_strided_slice %234 {offsets = [0, 384], sizes = [8, 128], strides = [1, 1]} : vector<8x512xf32> to vector<8x128xf32>
      %250 = arith.negf %249 : vector<8x128xf32>
      %251 = math.exp %250 : vector<8x128xf32>
      %cst_72 = arith.constant 1.000000e+00 : f32
      %252 = vector.broadcast %cst_72 : f32 to vector<8x128xf32>
      %253 = arith.addf %252, %251 : vector<8x128xf32>
      %254 = arith.divf %252, %253 : vector<8x128xf32>
      %255 = arith.mulf %246, %224 : vector<8x128xf32>
      %256 = arith.mulf %240, %248 : vector<8x128xf32>
      %257 = arith.addf %255, %256 : vector<8x128xf32>
      %258 = math.tanh %257 : vector<8x128xf32>
      %259 = arith.mulf %254, %258 : vector<8x128xf32>
      %260 = arith.addf %227, %259 : vector<8x128xf32>
      %c7_i32 = arith.constant 7 : i32
      %c8_i32_73 = arith.constant 8 : i32
      %261 = arith.muli %c7_i32, %c8_i32_73 : i32
      %262 = tpu.assume_multiple %261, 8 : i32
      %263 = arith.index_cast %262 : i32 to index
      %c0_74 = arith.constant 0 : index
      %264 = vector.load %arg7[%263, %c0_74] : memref<64x512xf32, #tpu.memory_space<vmem>>, vector<8x512xf32>
      %265 = arith.truncf %259 : vector<8x128xf32> to vector<8x128xbf16>
      %cst_75 = arith.constant dense<0.000000e+00> : vector<8x512xf32>
      %266 = tpu.matmul %265, %20, %cst_75 {dimension_numbers = #tpu.dot_dimension_numbers<[1], [0], [0], [1], [0, 0, 1, 1], [], []>} : vector<8x128xbf16>, vector<128x512xbf16>, vector<8x512xf32> -> vector<8x512xf32>
      %267 = arith.addf %264, %266 : vector<8x512xf32>
      %268 = vector.extract_strided_slice %267 {offsets = [0, 0], sizes = [8, 128], strides = [1, 1]} : vector<8x512xf32> to vector<8x128xf32>
      %269 = arith.negf %268 : vector<8x128xf32>
      %270 = math.exp %269 : vector<8x128xf32>
      %cst_76 = arith.constant 1.000000e+00 : f32
      %271 = vector.broadcast %cst_76 : f32 to vector<8x128xf32>
      %272 = arith.addf %271, %270 : vector<8x128xf32>
      %273 = arith.divf %271, %272 : vector<8x128xf32>
      %274 = vector.extract_strided_slice %267 {offsets = [0, 128], sizes = [8, 128], strides = [1, 1]} : vector<8x512xf32> to vector<8x128xf32>
      %275 = arith.negf %274 : vector<8x128xf32>
      %276 = math.exp %275 : vector<8x128xf32>
      %cst_77 = arith.constant 1.000000e+00 : f32
      %277 = vector.broadcast %cst_77 : f32 to vector<8x128xf32>
      %278 = arith.addf %277, %276 : vector<8x128xf32>
      %279 = arith.divf %277, %278 : vector<8x128xf32>
      %280 = vector.extract_strided_slice %267 {offsets = [0, 256], sizes = [8, 128], strides = [1, 1]} : vector<8x512xf32> to vector<8x128xf32>
      %281 = math.tanh %280 : vector<8x128xf32>
      %282 = vector.extract_strided_slice %267 {offsets = [0, 384], sizes = [8, 128], strides = [1, 1]} : vector<8x512xf32> to vector<8x128xf32>
      %283 = arith.negf %282 : vector<8x128xf32>
      %284 = math.exp %283 : vector<8x128xf32>
      %cst_78 = arith.constant 1.000000e+00 : f32
      %285 = vector.broadcast %cst_78 : f32 to vector<8x128xf32>
      %286 = arith.addf %285, %284 : vector<8x128xf32>
      %287 = arith.divf %285, %286 : vector<8x128xf32>
      %288 = arith.mulf %279, %257 : vector<8x128xf32>
      %289 = arith.mulf %273, %281 : vector<8x128xf32>
      %290 = arith.addf %288, %289 : vector<8x128xf32>
      %291 = math.tanh %290 : vector<8x128xf32>
      %292 = arith.mulf %287, %291 : vector<8x128xf32>
      %293 = arith.addf %260, %292 : vector<8x128xf32>
      %c8_i32_79 = arith.constant 8 : i32
      %c0_80 = arith.constant 0 : index
      %c0_81 = arith.constant 0 : index
      %294 = vector.load %arg8[%c0_80, %c0_81] : memref<8x128xf32, #tpu.memory_space<vmem>>, vector<8x128xf32>
      tpu.vector_store %arg8[%c0_80, %c0_81], %292 {strides = array<i32>} : memref<8x128xf32, #tpu.memory_space<vmem>>, vector<8x128xf32>,
      %c0_82 = arith.constant 0 : index
      %c0_83 = arith.constant 0 : index
      %295 = vector.load %arg9[%c0_82, %c0_83] : memref<8x128xf32, #tpu.memory_space<vmem>>, vector<8x128xf32>
      tpu.vector_store %arg9[%c0_82, %c0_83], %290 {strides = array<i32>} : memref<8x128xf32, #tpu.memory_space<vmem>>, vector<8x128xf32>,
      %c0_84 = arith.constant 0 : index
      %c0_85 = arith.constant 0 : index
      %c0_86 = arith.constant 0 : index
      %296 = vector.load %arg6[%c0_84, %c0_85, %c0_86] : memref<1x8x128xf32, #tpu.memory_space<vmem>>, vector<1x8x128xf32>
      %297 = vector.shape_cast %296 : vector<1x8x128xf32> to vector<8x128xf32>
      %cst_87 = arith.constant 1.250000e-01 : f32
      %298 = vector.broadcast %cst_87 : f32 to vector<8x128xf32>
      %299 = arith.mulf %293, %298 : vector<8x128xf32>
      %300 = arith.addf %297, %299 : vector<8x128xf32>
      %c0_88 = arith.constant 0 : index
      %c0_89 = arith.constant 0 : index
      %c0_90 = arith.constant 0 : index
      %301 = vector.load %arg6[%c0_88, %c0_89, %c0_90] : memref<1x8x128xf32, #tpu.memory_space<vmem>>, vector<1x8x128xf32>
      %302 = vector.shape_cast %301 : vector<1x8x128xf32> to vector<8x128xf32>
      %303 = vector.shape_cast %300 : vector<8x128xf32> to vector<1x8x128xf32>
      tpu.vector_store %arg6[%c0_88, %c0_89, %c0_90], %303 {strides = array<i32>} : memref<1x8x128xf32, #tpu.memory_space<vmem>>, vector<1x8x128xf32>,
    } else {
    }
    %c1_i32 = arith.constant 1 : i32
    %24 = arith.cmpi eq, %arg0, %c1_i32 : i32
    %25 = arith.extui %24 : i1 to i32
    %c0_i32_24 = arith.constant 0 : i32
    %26 = arith.cmpi ne, %25, %c0_i32_24 : i32
    scf.if %26 {
      %c0_25 = arith.constant 0 : index
      %c0_26 = arith.constant 0 : index
      %27 = vector.load %arg8[%c0_25, %c0_26] : memref<8x128xf32, #tpu.memory_space<vmem>>, vector<8x128xf32>
      %c0_27 = arith.constant 0 : index
      %c0_28 = arith.constant 0 : index
      %28 = vector.load %arg9[%c0_27, %c0_28] : memref<8x128xf32, #tpu.memory_space<vmem>>, vector<8x128xf32>
      %cst_29 = arith.constant 0.000000e+00 : f32
      %29 = vector.broadcast %cst_29 : f32 to vector<8x128xf32>
      %c0_i32_30 = arith.constant 0 : i32
      %c7_i32 = arith.constant 7 : i32
      %30 = arith.subi %c7_i32, %c0_i32_30 : i32
      %c8_i32 = arith.constant 8 : i32
      %31 = arith.muli %30, %c8_i32 : i32
      %32 = tpu.assume_multiple %31, 8 : i32
      %33 = arith.index_cast %32 : i32 to index
      %c0_31 = arith.constant 0 : index
      %34 = vector.load %arg7[%33, %c0_31] : memref<64x512xf32, #tpu.memory_space<vmem>>, vector<8x512xf32>
      %35 = arith.truncf %27 : vector<8x128xf32> to vector<8x128xbf16>
      %cst_32 = arith.constant dense<0.000000e+00> : vector<8x512xf32>
      %36 = tpu.matmul %35, %20, %cst_32 {dimension_numbers = #tpu.dot_dimension_numbers<[1], [0], [0], [1], [0, 0, 1, 1], [], []>} : vector<8x128xbf16>, vector<128x512xbf16>, vector<8x512xf32> -> vector<8x512xf32>
      %37 = arith.addf %34, %36 : vector<8x512xf32>
      %38 = vector.extract_strided_slice %37 {offsets = [0, 0], sizes = [8, 128], strides = [1, 1]} : vector<8x512xf32> to vector<8x128xf32>
      %39 = arith.negf %38 : vector<8x128xf32>
      %40 = math.exp %39 : vector<8x128xf32>
      %cst_33 = arith.constant 1.000000e+00 : f32
      %41 = vector.broadcast %cst_33 : f32 to vector<8x128xf32>
      %42 = arith.addf %41, %40 : vector<8x128xf32>
      %43 = arith.divf %41, %42 : vector<8x128xf32>
      %44 = vector.extract_strided_slice %37 {offsets = [0, 128], sizes = [8, 128], strides = [1, 1]} : vector<8x512xf32> to vector<8x128xf32>
      %45 = arith.negf %44 : vector<8x128xf32>
      %46 = math.exp %45 : vector<8x128xf32>
      %cst_34 = arith.constant 1.000000e+00 : f32
      %47 = vector.broadcast %cst_34 : f32 to vector<8x128xf32>
      %48 = arith.addf %47, %46 : vector<8x128xf32>
      %49 = arith.divf %47, %48 : vector<8x128xf32>
      %50 = vector.extract_strided_slice %37 {offsets = [0, 256], sizes = [8, 128], strides = [1, 1]} : vector<8x512xf32> to vector<8x128xf32>
      %51 = math.tanh %50 : vector<8x128xf32>
      %52 = vector.extract_strided_slice %37 {offsets = [0, 384], sizes = [8, 128], strides = [1, 1]} : vector<8x512xf32> to vector<8x128xf32>
      %53 = arith.negf %52 : vector<8x128xf32>
      %54 = math.exp %53 : vector<8x128xf32>
      %cst_35 = arith.constant 1.000000e+00 : f32
      %55 = vector.broadcast %cst_35 : f32 to vector<8x128xf32>
      %56 = arith.addf %55, %54 : vector<8x128xf32>
      %57 = arith.divf %55, %56 : vector<8x128xf32>
      %58 = arith.mulf %49, %28 : vector<8x128xf32>
      %59 = arith.mulf %43, %51 : vector<8x128xf32>
      %60 = arith.addf %58, %59 : vector<8x128xf32>
      %61 = math.tanh %60 : vector<8x128xf32>
      %62 = arith.mulf %57, %61 : vector<8x128xf32>
      %63 = arith.addf %29, %62 : vector<8x128xf32>
      %c1_i32_36 = arith.constant 1 : i32
      %c7_i32_37 = arith.constant 7 : i32
      %64 = arith.subi %c7_i32_37, %c1_i32_36 : i32
      %c8_i32_38 = arith.constant 8 : i32
      %65 = arith.muli %64, %c8_i32_38 : i32
      %66 = tpu.assume_multiple %65, 8 : i32
      %67 = arith.index_cast %66 : i32 to index
      %c0_39 = arith.constant 0 : index
      %68 = vector.load %arg7[%67, %c0_39] : memref<64x512xf32, #tpu.memory_space<vmem>>, vector<8x512xf32>
      %69 = arith.truncf %62 : vector<8x128xf32> to vector<8x128xbf16>
      %cst_40 = arith.constant dense<0.000000e+00> : vector<8x512xf32>
      %70 = tpu.matmul %69, %20, %cst_40 {dimension_numbers = #tpu.dot_dimension_numbers<[1], [0], [0], [1], [0, 0, 1, 1], [], []>} : vector<8x128xbf16>, vector<128x512xbf16>, vector<8x512xf32> -> vector<8x512xf32>
      %71 = arith.addf %68, %70 : vector<8x512xf32>
      %72 = vector.extract_strided_slice %71 {offsets = [0, 0], sizes = [8, 128], strides = [1, 1]} : vector<8x512xf32> to vector<8x128xf32>
      %73 = arith.negf %72 : vector<8x128xf32>
      %74 = math.exp %73 : vector<8x128xf32>
      %cst_41 = arith.constant 1.000000e+00 : f32
      %75 = vector.broadcast %cst_41 : f32 to vector<8x128xf32>
      %76 = arith.addf %75, %74 : vector<8x128xf32>
      %77 = arith.divf %75, %76 : vector<8x128xf32>
      %78 = vector.extract_strided_slice %71 {offsets = [0, 128], sizes = [8, 128], strides = [1, 1]} : vector<8x512xf32> to vector<8x128xf32>
      %79 = arith.negf %78 : vector<8x128xf32>
      %80 = math.exp %79 : vector<8x128xf32>
      %cst_42 = arith.constant 1.000000e+00 : f32
      %81 = vector.broadcast %cst_42 : f32 to vector<8x128xf32>
      %82 = arith.addf %81, %80 : vector<8x128xf32>
      %83 = arith.divf %81, %82 : vector<8x128xf32>
      %84 = vector.extract_strided_slice %71 {offsets = [0, 256], sizes = [8, 128], strides = [1, 1]} : vector<8x512xf32> to vector<8x128xf32>
      %85 = math.tanh %84 : vector<8x128xf32>
      %86 = vector.extract_strided_slice %71 {offsets = [0, 384], sizes = [8, 128], strides = [1, 1]} : vector<8x512xf32> to vector<8x128xf32>
      %87 = arith.negf %86 : vector<8x128xf32>
      %88 = math.exp %87 : vector<8x128xf32>
      %cst_43 = arith.constant 1.000000e+00 : f32
      %89 = vector.broadcast %cst_43 : f32 to vector<8x128xf32>
      %90 = arith.addf %89, %88 : vector<8x128xf32>
      %91 = arith.divf %89, %90 : vector<8x128xf32>
      %92 = arith.mulf %83, %60 : vector<8x128xf32>
      %93 = arith.mulf %77, %85 : vector<8x128xf32>
      %94 = arith.addf %92, %93 : vector<8x128xf32>
      %95 = math.tanh %94 : vector<8x128xf32>
      %96 = arith.mulf %91, %95 : vector<8x128xf32>
      %97 = arith.addf %63, %96 : vector<8x128xf32>
      %c2_i32 = arith.constant 2 : i32
      %c7_i32_44 = arith.constant 7 : i32
      %98 = arith.subi %c7_i32_44, %c2_i32 : i32
      %c8_i32_45 = arith.constant 8 : i32
      %99 = arith.muli %98, %c8_i32_45 : i32
      %100 = tpu.assume_multiple %99, 8 : i32
      %101 = arith.index_cast %100 : i32 to index
      %c0_46 = arith.constant 0 : index
      %102 = vector.load %arg7[%101, %c0_46] : memref<64x512xf32, #tpu.memory_space<vmem>>, vector<8x512xf32>
      %103 = arith.truncf %96 : vector<8x128xf32> to vector<8x128xbf16>
      %cst_47 = arith.constant dense<0.000000e+00> : vector<8x512xf32>
      %104 = tpu.matmul %103, %20, %cst_47 {dimension_numbers = #tpu.dot_dimension_numbers<[1], [0], [0], [1], [0, 0, 1, 1], [], []>} : vector<8x128xbf16>, vector<128x512xbf16>, vector<8x512xf32> -> vector<8x512xf32>
      %105 = arith.addf %102, %104 : vector<8x512xf32>
      %106 = vector.extract_strided_slice %105 {offsets = [0, 0], sizes = [8, 128], strides = [1, 1]} : vector<8x512xf32> to vector<8x128xf32>
      %107 = arith.negf %106 : vector<8x128xf32>
      %108 = math.exp %107 : vector<8x128xf32>
      %cst_48 = arith.constant 1.000000e+00 : f32
      %109 = vector.broadcast %cst_48 : f32 to vector<8x128xf32>
      %110 = arith.addf %109, %108 : vector<8x128xf32>
      %111 = arith.divf %109, %110 : vector<8x128xf32>
      %112 = vector.extract_strided_slice %105 {offsets = [0, 128], sizes = [8, 128], strides = [1, 1]} : vector<8x512xf32> to vector<8x128xf32>
      %113 = arith.negf %112 : vector<8x128xf32>
      %114 = math.exp %113 : vector<8x128xf32>
      %cst_49 = arith.constant 1.000000e+00 : f32
      %115 = vector.broadcast %cst_49 : f32 to vector<8x128xf32>
      %116 = arith.addf %115, %114 : vector<8x128xf32>
      %117 = arith.divf %115, %116 : vector<8x128xf32>
      %118 = vector.extract_strided_slice %105 {offsets = [0, 256], sizes = [8, 128], strides = [1, 1]} : vector<8x512xf32> to vector<8x128xf32>
      %119 = math.tanh %118 : vector<8x128xf32>
      %120 = vector.extract_strided_slice %105 {offsets = [0, 384], sizes = [8, 128], strides = [1, 1]} : vector<8x512xf32> to vector<8x128xf32>
      %121 = arith.negf %120 : vector<8x128xf32>
      %122 = math.exp %121 : vector<8x128xf32>
      %cst_50 = arith.constant 1.000000e+00 : f32
      %123 = vector.broadcast %cst_50 : f32 to vector<8x128xf32>
      %124 = arith.addf %123, %122 : vector<8x128xf32>
      %125 = arith.divf %123, %124 : vector<8x128xf32>
      %126 = arith.mulf %117, %94 : vector<8x128xf32>
      %127 = arith.mulf %111, %119 : vector<8x128xf32>
      %128 = arith.addf %126, %127 : vector<8x128xf32>
      %129 = math.tanh %128 : vector<8x128xf32>
      %130 = arith.mulf %125, %129 : vector<8x128xf32>
      %131 = arith.addf %97, %130 : vector<8x128xf32>
      %c3_i32 = arith.constant 3 : i32
      %c7_i32_51 = arith.constant 7 : i32
      %132 = arith.subi %c7_i32_51, %c3_i32 : i32
      %c8_i32_52 = arith.constant 8 : i32
      %133 = arith.muli %132, %c8_i32_52 : i32
      %134 = tpu.assume_multiple %133, 8 : i32
      %135 = arith.index_cast %134 : i32 to index
      %c0_53 = arith.constant 0 : index
      %136 = vector.load %arg7[%135, %c0_53] : memref<64x512xf32, #tpu.memory_space<vmem>>, vector<8x512xf32>
      %137 = arith.truncf %130 : vector<8x128xf32> to vector<8x128xbf16>
      %cst_54 = arith.constant dense<0.000000e+00> : vector<8x512xf32>
      %138 = tpu.matmul %137, %20, %cst_54 {dimension_numbers = #tpu.dot_dimension_numbers<[1], [0], [0], [1], [0, 0, 1, 1], [], []>} : vector<8x128xbf16>, vector<128x512xbf16>, vector<8x512xf32> -> vector<8x512xf32>
      %139 = arith.addf %136, %138 : vector<8x512xf32>
      %140 = vector.extract_strided_slice %139 {offsets = [0, 0], sizes = [8, 128], strides = [1, 1]} : vector<8x512xf32> to vector<8x128xf32>
      %141 = arith.negf %140 : vector<8x128xf32>
      %142 = math.exp %141 : vector<8x128xf32>
      %cst_55 = arith.constant 1.000000e+00 : f32
      %143 = vector.broadcast %cst_55 : f32 to vector<8x128xf32>
      %144 = arith.addf %143, %142 : vector<8x128xf32>
      %145 = arith.divf %143, %144 : vector<8x128xf32>
      %146 = vector.extract_strided_slice %139 {offsets = [0, 128], sizes = [8, 128], strides = [1, 1]} : vector<8x512xf32> to vector<8x128xf32>
      %147 = arith.negf %146 : vector<8x128xf32>
      %148 = math.exp %147 : vector<8x128xf32>
      %cst_56 = arith.constant 1.000000e+00 : f32
      %149 = vector.broadcast %cst_56 : f32 to vector<8x128xf32>
      %150 = arith.addf %149, %148 : vector<8x128xf32>
      %151 = arith.divf %149, %150 : vector<8x128xf32>
      %152 = vector.extract_strided_slice %139 {offsets = [0, 256], sizes = [8, 128], strides = [1, 1]} : vector<8x512xf32> to vector<8x128xf32>
      %153 = math.tanh %152 : vector<8x128xf32>
      %154 = vector.extract_strided_slice %139 {offsets = [0, 384], sizes = [8, 128], strides = [1, 1]} : vector<8x512xf32> to vector<8x128xf32>
      %155 = arith.negf %154 : vector<8x128xf32>
      %156 = math.exp %155 : vector<8x128xf32>
      %cst_57 = arith.constant 1.000000e+00 : f32
      %157 = vector.broadcast %cst_57 : f32 to vector<8x128xf32>
      %158 = arith.addf %157, %156 : vector<8x128xf32>
      %159 = arith.divf %157, %158 : vector<8x128xf32>
      %160 = arith.mulf %151, %128 : vector<8x128xf32>
      %161 = arith.mulf %145, %153 : vector<8x128xf32>
      %162 = arith.addf %160, %161 : vector<8x128xf32>
      %163 = math.tanh %162 : vector<8x128xf32>
      %164 = arith.mulf %159, %163 : vector<8x128xf32>
      %165 = arith.addf %131, %164 : vector<8x128xf32>
      %c4_i32 = arith.constant 4 : i32
      %c7_i32_58 = arith.constant 7 : i32
      %166 = arith.subi %c7_i32_58, %c4_i32 : i32
      %c8_i32_59 = arith.constant 8 : i32
      %167 = arith.muli %166, %c8_i32_59 : i32
      %168 = tpu.assume_multiple %167, 8 : i32
      %169 = arith.index_cast %168 : i32 to index
      %c0_60 = arith.constant 0 : index
      %170 = vector.load %arg7[%169, %c0_60] : memref<64x512xf32, #tpu.memory_space<vmem>>, vector<8x512xf32>
      %171 = arith.truncf %164 : vector<8x128xf32> to vector<8x128xbf16>
      %cst_61 = arith.constant dense<0.000000e+00> : vector<8x512xf32>
      %172 = tpu.matmul %171, %20, %cst_61 {dimension_numbers = #tpu.dot_dimension_numbers<[1], [0], [0], [1], [0, 0, 1, 1], [], []>} : vector<8x128xbf16>, vector<128x512xbf16>, vector<8x512xf32> -> vector<8x512xf32>
      %173 = arith.addf %170, %172 : vector<8x512xf32>
      %174 = vector.extract_strided_slice %173 {offsets = [0, 0], sizes = [8, 128], strides = [1, 1]} : vector<8x512xf32> to vector<8x128xf32>
      %175 = arith.negf %174 : vector<8x128xf32>
      %176 = math.exp %175 : vector<8x128xf32>
      %cst_62 = arith.constant 1.000000e+00 : f32
      %177 = vector.broadcast %cst_62 : f32 to vector<8x128xf32>
      %178 = arith.addf %177, %176 : vector<8x128xf32>
      %179 = arith.divf %177, %178 : vector<8x128xf32>
      %180 = vector.extract_strided_slice %173 {offsets = [0, 128], sizes = [8, 128], strides = [1, 1]} : vector<8x512xf32> to vector<8x128xf32>
      %181 = arith.negf %180 : vector<8x128xf32>
      %182 = math.exp %181 : vector<8x128xf32>
      %cst_63 = arith.constant 1.000000e+00 : f32
      %183 = vector.broadcast %cst_63 : f32 to vector<8x128xf32>
      %184 = arith.addf %183, %182 : vector<8x128xf32>
      %185 = arith.divf %183, %184 : vector<8x128xf32>
      %186 = vector.extract_strided_slice %173 {offsets = [0, 256], sizes = [8, 128], strides = [1, 1]} : vector<8x512xf32> to vector<8x128xf32>
      %187 = math.tanh %186 : vector<8x128xf32>
      %188 = vector.extract_strided_slice %173 {offsets = [0, 384], sizes = [8, 128], strides = [1, 1]} : vector<8x512xf32> to vector<8x128xf32>
      %189 = arith.negf %188 : vector<8x128xf32>
      %190 = math.exp %189 : vector<8x128xf32>
      %cst_64 = arith.constant 1.000000e+00 : f32
      %191 = vector.broadcast %cst_64 : f32 to vector<8x128xf32>
      %192 = arith.addf %191, %190 : vector<8x128xf32>
      %193 = arith.divf %191, %192 : vector<8x128xf32>
      %194 = arith.mulf %185, %162 : vector<8x128xf32>
      %195 = arith.mulf %179, %187 : vector<8x128xf32>
      %196 = arith.addf %194, %195 : vector<8x128xf32>
      %197 = math.tanh %196 : vector<8x128xf32>
      %198 = arith.mulf %193, %197 : vector<8x128xf32>
      %199 = arith.addf %165, %198 : vector<8x128xf32>
      %c5_i32 = arith.constant 5 : i32
      %c7_i32_65 = arith.constant 7 : i32
      %200 = arith.subi %c7_i32_65, %c5_i32 : i32
      %c8_i32_66 = arith.constant 8 : i32
      %201 = arith.muli %200, %c8_i32_66 : i32
      %202 = tpu.assume_multiple %201, 8 : i32
      %203 = arith.index_cast %202 : i32 to index
      %c0_67 = arith.constant 0 : index
      %204 = vector.load %arg7[%203, %c0_67] : memref<64x512xf32, #tpu.memory_space<vmem>>, vector<8x512xf32>
      %205 = arith.truncf %198 : vector<8x128xf32> to vector<8x128xbf16>
      %cst_68 = arith.constant dense<0.000000e+00> : vector<8x512xf32>
      %206 = tpu.matmul %205, %20, %cst_68 {dimension_numbers = #tpu.dot_dimension_numbers<[1], [0], [0], [1], [0, 0, 1, 1], [], []>} : vector<8x128xbf16>, vector<128x512xbf16>, vector<8x512xf32> -> vector<8x512xf32>
      %207 = arith.addf %204, %206 : vector<8x512xf32>
      %208 = vector.extract_strided_slice %207 {offsets = [0, 0], sizes = [8, 128], strides = [1, 1]} : vector<8x512xf32> to vector<8x128xf32>
      %209 = arith.negf %208 : vector<8x128xf32>
      %210 = math.exp %209 : vector<8x128xf32>
      %cst_69 = arith.constant 1.000000e+00 : f32
      %211 = vector.broadcast %cst_69 : f32 to vector<8x128xf32>
      %212 = arith.addf %211, %210 : vector<8x128xf32>
      %213 = arith.divf %211, %212 : vector<8x128xf32>
      %214 = vector.extract_strided_slice %207 {offsets = [0, 128], sizes = [8, 128], strides = [1, 1]} : vector<8x512xf32> to vector<8x128xf32>
      %215 = arith.negf %214 : vector<8x128xf32>
      %216 = math.exp %215 : vector<8x128xf32>
      %cst_70 = arith.constant 1.000000e+00 : f32
      %217 = vector.broadcast %cst_70 : f32 to vector<8x128xf32>
      %218 = arith.addf %217, %216 : vector<8x128xf32>
      %219 = arith.divf %217, %218 : vector<8x128xf32>
      %220 = vector.extract_strided_slice %207 {offsets = [0, 256], sizes = [8, 128], strides = [1, 1]} : vector<8x512xf32> to vector<8x128xf32>
      %221 = math.tanh %220 : vector<8x128xf32>
      %222 = vector.extract_strided_slice %207 {offsets = [0, 384], sizes = [8, 128], strides = [1, 1]} : vector<8x512xf32> to vector<8x128xf32>
      %223 = arith.negf %222 : vector<8x128xf32>
      %224 = math.exp %223 : vector<8x128xf32>
      %cst_71 = arith.constant 1.000000e+00 : f32
      %225 = vector.broadcast %cst_71 : f32 to vector<8x128xf32>
      %226 = arith.addf %225, %224 : vector<8x128xf32>
      %227 = arith.divf %225, %226 : vector<8x128xf32>
      %228 = arith.mulf %219, %196 : vector<8x128xf32>
      %229 = arith.mulf %213, %221 : vector<8x128xf32>
      %230 = arith.addf %228, %229 : vector<8x128xf32>
      %231 = math.tanh %230 : vector<8x128xf32>
      %232 = arith.mulf %227, %231 : vector<8x128xf32>
      %233 = arith.addf %199, %232 : vector<8x128xf32>
      %c6_i32 = arith.constant 6 : i32
      %c7_i32_72 = arith.constant 7 : i32
      %234 = arith.subi %c7_i32_72, %c6_i32 : i32
      %c8_i32_73 = arith.constant 8 : i32
      %235 = arith.muli %234, %c8_i32_73 : i32
      %236 = tpu.assume_multiple %235, 8 : i32
      %237 = arith.index_cast %236 : i32 to index
      %c0_74 = arith.constant 0 : index
      %238 = vector.load %arg7[%237, %c0_74] : memref<64x512xf32, #tpu.memory_space<vmem>>, vector<8x512xf32>
      %239 = arith.truncf %232 : vector<8x128xf32> to vector<8x128xbf16>
      %cst_75 = arith.constant dense<0.000000e+00> : vector<8x512xf32>
      %240 = tpu.matmul %239, %20, %cst_75 {dimension_numbers = #tpu.dot_dimension_numbers<[1], [0], [0], [1], [0, 0, 1, 1], [], []>} : vector<8x128xbf16>, vector<128x512xbf16>, vector<8x512xf32> -> vector<8x512xf32>
      %241 = arith.addf %238, %240 : vector<8x512xf32>
      %242 = vector.extract_strided_slice %241 {offsets = [0, 0], sizes = [8, 128], strides = [1, 1]} : vector<8x512xf32> to vector<8x128xf32>
      %243 = arith.negf %242 : vector<8x128xf32>
      %244 = math.exp %243 : vector<8x128xf32>
      %cst_76 = arith.constant 1.000000e+00 : f32
      %245 = vector.broadcast %cst_76 : f32 to vector<8x128xf32>
      %246 = arith.addf %245, %244 : vector<8x128xf32>
      %247 = arith.divf %245, %246 : vector<8x128xf32>
      %248 = vector.extract_strided_slice %241 {offsets = [0, 128], sizes = [8, 128], strides = [1, 1]} : vector<8x512xf32> to vector<8x128xf32>
      %249 = arith.negf %248 : vector<8x128xf32>
      %250 = math.exp %249 : vector<8x128xf32>
      %cst_77 = arith.constant 1.000000e+00 : f32
      %251 = vector.broadcast %cst_77 : f32 to vector<8x128xf32>
      %252 = arith.addf %251, %250 : vector<8x128xf32>
      %253 = arith.divf %251, %252 : vector<8x128xf32>
      %254 = vector.extract_strided_slice %241 {offsets = [0, 256], sizes = [8, 128], strides = [1, 1]} : vector<8x512xf32> to vector<8x128xf32>
      %255 = math.tanh %254 : vector<8x128xf32>
      %256 = vector.extract_strided_slice %241 {offsets = [0, 384], sizes = [8, 128], strides = [1, 1]} : vector<8x512xf32> to vector<8x128xf32>
      %257 = arith.negf %256 : vector<8x128xf32>
      %258 = math.exp %257 : vector<8x128xf32>
      %cst_78 = arith.constant 1.000000e+00 : f32
      %259 = vector.broadcast %cst_78 : f32 to vector<8x128xf32>
      %260 = arith.addf %259, %258 : vector<8x128xf32>
      %261 = arith.divf %259, %260 : vector<8x128xf32>
      %262 = arith.mulf %253, %230 : vector<8x128xf32>
      %263 = arith.mulf %247, %255 : vector<8x128xf32>
      %264 = arith.addf %262, %263 : vector<8x128xf32>
      %265 = math.tanh %264 : vector<8x128xf32>
      %266 = arith.mulf %261, %265 : vector<8x128xf32>
      %267 = arith.addf %233, %266 : vector<8x128xf32>
      %c7_i32_79 = arith.constant 7 : i32
      %c7_i32_80 = arith.constant 7 : i32
      %268 = arith.subi %c7_i32_80, %c7_i32_79 : i32
      %c8_i32_81 = arith.constant 8 : i32
      %269 = arith.muli %268, %c8_i32_81 : i32
      %270 = tpu.assume_multiple %269, 8 : i32
      %271 = arith.index_cast %270 : i32 to index
      %c0_82 = arith.constant 0 : index
      %272 = vector.load %arg7[%271, %c0_82] : memref<64x512xf32, #tpu.memory_space<vmem>>, vector<8x512xf32>
      %273 = arith.truncf %266 : vector<8x128xf32> to vector<8x128xbf16>
      %cst_83 = arith.constant dense<0.000000e+00> : vector<8x512xf32>
      %274 = tpu.matmul %273, %20, %cst_83 {dimension_numbers = #tpu.dot_dimension_numbers<[1], [0], [0], [1], [0, 0, 1, 1], [], []>} : vector<8x128xbf16>, vector<128x512xbf16>, vector<8x512xf32> -> vector<8x512xf32>
      %275 = arith.addf %272, %274 : vector<8x512xf32>
      %276 = vector.extract_strided_slice %275 {offsets = [0, 0], sizes = [8, 128], strides = [1, 1]} : vector<8x512xf32> to vector<8x128xf32>
      %277 = arith.negf %276 : vector<8x128xf32>
      %278 = math.exp %277 : vector<8x128xf32>
      %cst_84 = arith.constant 1.000000e+00 : f32
      %279 = vector.broadcast %cst_84 : f32 to vector<8x128xf32>
      %280 = arith.addf %279, %278 : vector<8x128xf32>
      %281 = arith.divf %279, %280 : vector<8x128xf32>
      %282 = vector.extract_strided_slice %275 {offsets = [0, 128], sizes = [8, 128], strides = [1, 1]} : vector<8x512xf32> to vector<8x128xf32>
      %283 = arith.negf %282 : vector<8x128xf32>
      %284 = math.exp %283 : vector<8x128xf32>
      %cst_85 = arith.constant 1.000000e+00 : f32
      %285 = vector.broadcast %cst_85 : f32 to vector<8x128xf32>
      %286 = arith.addf %285, %284 : vector<8x128xf32>
      %287 = arith.divf %285, %286 : vector<8x128xf32>
      %288 = vector.extract_strided_slice %275 {offsets = [0, 256], sizes = [8, 128], strides = [1, 1]} : vector<8x512xf32> to vector<8x128xf32>
      %289 = math.tanh %288 : vector<8x128xf32>
      %290 = vector.extract_strided_slice %275 {offsets = [0, 384], sizes = [8, 128], strides = [1, 1]} : vector<8x512xf32> to vector<8x128xf32>
      %291 = arith.negf %290 : vector<8x128xf32>
      %292 = math.exp %291 : vector<8x128xf32>
      %cst_86 = arith.constant 1.000000e+00 : f32
      %293 = vector.broadcast %cst_86 : f32 to vector<8x128xf32>
      %294 = arith.addf %293, %292 : vector<8x128xf32>
      %295 = arith.divf %293, %294 : vector<8x128xf32>
      %296 = arith.mulf %287, %264 : vector<8x128xf32>
      %297 = arith.mulf %281, %289 : vector<8x128xf32>
      %298 = arith.addf %296, %297 : vector<8x128xf32>
      %299 = math.tanh %298 : vector<8x128xf32>
      %300 = arith.mulf %295, %299 : vector<8x128xf32>
      %301 = arith.addf %267, %300 : vector<8x128xf32>
      %c8_i32_87 = arith.constant 8 : i32
      %c0_88 = arith.constant 0 : index
      %c0_89 = arith.constant 0 : index
      %302 = vector.load %arg8[%c0_88, %c0_89] : memref<8x128xf32, #tpu.memory_space<vmem>>, vector<8x128xf32>
      tpu.vector_store %arg8[%c0_88, %c0_89], %300 {strides = array<i32>} : memref<8x128xf32, #tpu.memory_space<vmem>>, vector<8x128xf32>,
      %c0_90 = arith.constant 0 : index
      %c0_91 = arith.constant 0 : index
      %303 = vector.load %arg9[%c0_90, %c0_91] : memref<8x128xf32, #tpu.memory_space<vmem>>, vector<8x128xf32>
      tpu.vector_store %arg9[%c0_90, %c0_91], %298 {strides = array<i32>} : memref<8x128xf32, #tpu.memory_space<vmem>>, vector<8x128xf32>,
      %c0_92 = arith.constant 0 : index
      %c0_93 = arith.constant 0 : index
      %c0_94 = arith.constant 0 : index
      %304 = vector.load %arg6[%c0_92, %c0_93, %c0_94] : memref<1x8x128xf32, #tpu.memory_space<vmem>>, vector<1x8x128xf32>
      %305 = vector.shape_cast %304 : vector<1x8x128xf32> to vector<8x128xf32>
      %cst_95 = arith.constant 1.250000e-01 : f32
      %306 = vector.broadcast %cst_95 : f32 to vector<8x128xf32>
      %307 = arith.mulf %301, %306 : vector<8x128xf32>
      %308 = arith.addf %305, %307 : vector<8x128xf32>
      %c0_96 = arith.constant 0 : index
      %c0_97 = arith.constant 0 : index
      %c0_98 = arith.constant 0 : index
      %309 = vector.load %arg6[%c0_96, %c0_97, %c0_98] : memref<1x8x128xf32, #tpu.memory_space<vmem>>, vector<1x8x128xf32>
      %310 = vector.shape_cast %309 : vector<1x8x128xf32> to vector<8x128xf32>
      %311 = vector.shape_cast %308 : vector<8x128xf32> to vector<1x8x128xf32>
      tpu.vector_store %arg6[%c0_96, %c0_97, %c0_98], %311 {strides = array<i32>} : memref<1x8x128xf32, #tpu.memory_space<vmem>>, vector<1x8x128xf32>,
    } else {
    }
    return
  }
  func.func @transform_0(%arg0: i32, %arg1: i32) -> (i32, i32, i32) {
    %c2_i32 = arith.constant 2 : i32
    %0 = arith.muli %c2_i32, %arg1 : i32
    %c0_i32 = arith.constant 0 : i32
    %1 = arith.subi %c0_i32, %0 : i32
    %2 = arith.muli %arg0, %1 : i32
    %3 = arith.addi %arg1, %2 : i32
    %c0_i32_0 = arith.constant 0 : i32
    %c0_i32_1 = arith.constant 0 : i32
    %c0_i32_2 = arith.constant 0 : i32
    return %c0_i32_0, %3, %c0_i32_1 : i32, i32, i32
  }
  func.func @transform_1(%arg0: i32, %arg1: i32) -> (i32, i32, i32, i32) {
    %c0_i32 = arith.constant 0 : i32
    %c0_i32_0 = arith.constant 0 : i32
    %c0_i32_1 = arith.constant 0 : i32
    %c0_i32_2 = arith.constant 0 : i32
    return %arg0, %c0_i32, %c0_i32_0, %c0_i32_1 : i32, i32, i32, i32
  }
  func.func @transform_2(%arg0: i32, %arg1: i32) -> (i32, i32, i32) {
    %c0_i32 = arith.constant 0 : i32
    %c0_i32_0 = arith.constant 0 : i32
    %c0_i32_1 = arith.constant 0 : i32
    return %arg0, %c0_i32, %c0_i32_0 : i32, i32, i32
  }
  func.func @transform_3(%arg0: i32, %arg1: i32) -> (i32, i32, i32) {
    %c0_i32 = arith.constant 0 : i32
    %c0_i32_0 = arith.constant 0 : i32
    %c0_i32_1 = arith.constant 0 : i32
    return %arg0, %c0_i32, %c0_i32_0 : i32, i32, i32
  }
  func.func @transform_4(%arg0: i32, %arg1: i32) -> (i32, i32, i32) {
    %c0_i32 = arith.constant 0 : i32
    %c0_i32_0 = arith.constant 0 : i32
    %c0_i32_1 = arith.constant 0 : i32
    return %arg0, %c0_i32, %c0_i32_0 : i32, i32, i32
  }
}

module attributes {stable_mosaic.version = 11 : i64} {
  func.func @_bilstm_layer_kernel(%arg0: i32, %arg1: i32, %arg2: memref<1x64x128xbf16, #tpu.memory_space<vmem>>, %arg3: memref<1x1x128x512xbf16, #tpu.memory_space<vmem>>, %arg4: memref<1x128x512xbf16, #tpu.memory_space<vmem>>, %arg5: memref<1x1x512xf32, #tpu.memory_space<vmem>>, %arg6: memref<1x64x128xbf16, #tpu.memory_space<vmem>>, %arg7: memref<64x512xf32, #tpu.memory_space<vmem>>, %arg8: memref<8x128xf32, #tpu.memory_space<vmem>>, %arg9: memref<8x128xf32, #tpu.memory_space<vmem>>) attributes {dimension_semantics = [#tpu.dimension_semantics<parallel>, #tpu.dimension_semantics<arbitrary>], iteration_bounds = array<i64: 2, 1>, scalar_prefetch = 0 : i64, scratch_operands = 3 : i64, tpu.core_type = #tpu.core_type<tc>, window_params = [{transform_indices = @transform_0, window_bounds = array<i64: 1, 64, 128>}, {transform_indices = @transform_1, window_bounds = array<i64: 1, 1, 128, 512>}, {transform_indices = @transform_2, window_bounds = array<i64: 1, 128, 512>}, {transform_indices = @transform_3, window_bounds = array<i64: 1, 1, 512>}, {transform_indices = @transform_4, window_bounds = array<i64: 1, 64, 128>}]} {
    %c0_i32 = arith.constant 0 : i32
    %0 = arith.cmpi eq, %arg1, %c0_i32 : i32
    %1 = arith.extui %0 : i1 to i32
    %c0_i32_0 = arith.constant 0 : i32
    %2 = arith.cmpi ne, %1, %c0_i32_0 : i32
    scf.if %2 {
      %cst_18 = arith.constant 0.000000e+00 : f32
      %21 = vector.broadcast %cst_18 : f32 to vector<8x128xf32>
      %c0_19 = arith.constant 0 : index
      %c0_20 = arith.constant 0 : index
      %22 = vector.load %arg8[%c0_19, %c0_20] : memref<8x128xf32, #tpu.memory_space<vmem>>, vector<8x128xf32>
      tpu.vector_store %arg8[%c0_19, %c0_20], %21 {strides = array<i32>} : memref<8x128xf32, #tpu.memory_space<vmem>>, vector<8x128xf32>,
      %cst_21 = arith.constant 0.000000e+00 : f32
      %23 = vector.broadcast %cst_21 : f32 to vector<8x128xf32>
      %c0_22 = arith.constant 0 : index
      %c0_23 = arith.constant 0 : index
      %24 = vector.load %arg9[%c0_22, %c0_23] : memref<8x128xf32, #tpu.memory_space<vmem>>, vector<8x128xf32>
      tpu.vector_store %arg9[%c0_22, %c0_23], %23 {strides = array<i32>} : memref<8x128xf32, #tpu.memory_space<vmem>>, vector<8x128xf32>,
    } else {
    }
    %c0 = arith.constant 0 : index
    %c0_1 = arith.constant 0 : index
    %c0_2 = arith.constant 0 : index
    %3 = vector.load %arg2[%c0, %c0_1, %c0_2] : memref<1x64x128xbf16, #tpu.memory_space<vmem>>, vector<1x64x128xbf16>
    %4 = vector.shape_cast %3 : vector<1x64x128xbf16> to vector<64x128xbf16>
    %c0_3 = arith.constant 0 : index
    %c0_4 = arith.constant 0 : index
    %c0_5 = arith.constant 0 : index
    %c0_6 = arith.constant 0 : index
    %5 = vector.load %arg3[%c0_3, %c0_4, %c0_5, %c0_6] : memref<1x1x128x512xbf16, #tpu.memory_space<vmem>>, vector<1x1x128x512xbf16>
    %6 = vector.shape_cast %5 : vector<1x1x128x512xbf16> to vector<128x512xbf16>
    %cst = arith.constant dense<0.000000e+00> : vector<64x512xf32>
    %7 = tpu.matmul %4, %6, %cst {dimension_numbers = #tpu.dot_dimension_numbers<[1], [0], [0], [1], [0, 0, 1, 1], [], []>} : vector<64x128xbf16>, vector<128x512xbf16>, vector<64x512xf32> -> vector<64x512xf32>
    %c0_7 = arith.constant 0 : index
    %c0_8 = arith.constant 0 : index
    %c0_9 = arith.constant 0 : index
    %8 = vector.load %arg5[%c0_7, %c0_8, %c0_9] : memref<1x1x512xf32, #tpu.memory_space<vmem>>, vector<1x1x512xf32>
    %9 = vector.shape_cast %8 : vector<1x1x512xf32> to vector<1x512xf32>
    %10 = vector.broadcast %9 : vector<1x512xf32> to vector<64x512xf32>
    %11 = arith.addf %7, %10 : vector<64x512xf32>
    %c0_10 = arith.constant 0 : index
    %c0_11 = arith.constant 0 : index
    %12 = vector.load %arg7[%c0_10, %c0_11] : memref<64x512xf32, #tpu.memory_space<vmem>>, vector<64x512xf32>
    tpu.vector_store %arg7[%c0_10, %c0_11], %11 {strides = array<i32>} : memref<64x512xf32, #tpu.memory_space<vmem>>, vector<64x512xf32>,
    %c0_12 = arith.constant 0 : index
    %c0_13 = arith.constant 0 : index
    %c0_14 = arith.constant 0 : index
    %13 = vector.load %arg4[%c0_12, %c0_13, %c0_14] : memref<1x128x512xbf16, #tpu.memory_space<vmem>>, vector<1x128x512xbf16>
    %14 = vector.shape_cast %13 : vector<1x128x512xbf16> to vector<128x512xbf16>
    %c0_i32_15 = arith.constant 0 : i32
    %15 = arith.cmpi eq, %arg0, %c0_i32_15 : i32
    %16 = arith.extui %15 : i1 to i32
    %c0_i32_16 = arith.constant 0 : i32
    %17 = arith.cmpi ne, %16, %c0_i32_16 : i32
    scf.if %17 {
      %c0_18 = arith.constant 0 : index
      %c0_19 = arith.constant 0 : index
      %21 = vector.load %arg8[%c0_18, %c0_19] : memref<8x128xf32, #tpu.memory_space<vmem>>, vector<8x128xf32>
      %c0_20 = arith.constant 0 : index
      %c0_21 = arith.constant 0 : index
      %22 = vector.load %arg9[%c0_20, %c0_21] : memref<8x128xf32, #tpu.memory_space<vmem>>, vector<8x128xf32>
      %c0_i32_22 = arith.constant 0 : i32
      %c8_i32 = arith.constant 8 : i32
      %23 = arith.muli %c0_i32_22, %c8_i32 : i32
      %24 = tpu.assume_multiple %23, 8 : i32
      %25 = arith.index_cast %24 : i32 to index
      %c0_23 = arith.constant 0 : index
      %26 = vector.load %arg7[%25, %c0_23] : memref<64x512xf32, #tpu.memory_space<vmem>>, vector<8x512xf32>
      %27 = arith.truncf %21 : vector<8x128xf32> to vector<8x128xbf16>
      %cst_24 = arith.constant dense<0.000000e+00> : vector<8x512xf32>
      %28 = tpu.matmul %27, %14, %cst_24 {dimension_numbers = #tpu.dot_dimension_numbers<[1], [0], [0], [1], [0, 0, 1, 1], [], []>} : vector<8x128xbf16>, vector<128x512xbf16>, vector<8x512xf32> -> vector<8x512xf32>
      %29 = arith.addf %26, %28 : vector<8x512xf32>
      %30 = vector.extract_strided_slice %29 {offsets = [0, 0], sizes = [8, 128], strides = [1, 1]} : vector<8x512xf32> to vector<8x128xf32>
      %31 = arith.negf %30 : vector<8x128xf32>
      %32 = math.exp %31 : vector<8x128xf32>
      %cst_25 = arith.constant 1.000000e+00 : f32
      %33 = vector.broadcast %cst_25 : f32 to vector<8x128xf32>
      %34 = arith.addf %33, %32 : vector<8x128xf32>
      %35 = arith.divf %33, %34 : vector<8x128xf32>
      %36 = vector.extract_strided_slice %29 {offsets = [0, 128], sizes = [8, 128], strides = [1, 1]} : vector<8x512xf32> to vector<8x128xf32>
      %37 = arith.negf %36 : vector<8x128xf32>
      %38 = math.exp %37 : vector<8x128xf32>
      %cst_26 = arith.constant 1.000000e+00 : f32
      %39 = vector.broadcast %cst_26 : f32 to vector<8x128xf32>
      %40 = arith.addf %39, %38 : vector<8x128xf32>
      %41 = arith.divf %39, %40 : vector<8x128xf32>
      %42 = vector.extract_strided_slice %29 {offsets = [0, 256], sizes = [8, 128], strides = [1, 1]} : vector<8x512xf32> to vector<8x128xf32>
      %43 = math.tanh %42 : vector<8x128xf32>
      %44 = vector.extract_strided_slice %29 {offsets = [0, 384], sizes = [8, 128], strides = [1, 1]} : vector<8x512xf32> to vector<8x128xf32>
      %45 = arith.negf %44 : vector<8x128xf32>
      %46 = math.exp %45 : vector<8x128xf32>
      %cst_27 = arith.constant 1.000000e+00 : f32
      %47 = vector.broadcast %cst_27 : f32 to vector<8x128xf32>
      %48 = arith.addf %47, %46 : vector<8x128xf32>
      %49 = arith.divf %47, %48 : vector<8x128xf32>
      %50 = arith.mulf %41, %22 : vector<8x128xf32>
      %51 = arith.mulf %35, %43 : vector<8x128xf32>
      %52 = arith.addf %50, %51 : vector<8x128xf32>
      %53 = math.tanh %52 : vector<8x128xf32>
      %54 = arith.mulf %49, %53 : vector<8x128xf32>
      %55 = arith.truncf %54 : vector<8x128xf32> to vector<8x128xbf16>
      %c0_28 = arith.constant 0 : index
      %56 = arith.index_cast %24 : i32 to index
      %c0_29 = arith.constant 0 : index
      %57 = vector.load %arg6[%c0_28, %56, %c0_29] : memref<1x64x128xbf16, #tpu.memory_space<vmem>>, vector<1x8x128xbf16>
      %58 = vector.shape_cast %57 : vector<1x8x128xbf16> to vector<8x128xbf16>
      %59 = vector.shape_cast %55 : vector<8x128xbf16> to vector<1x8x128xbf16>
      tpu.vector_store %arg6[%c0_28, %56, %c0_29], %59 {strides = array<i32>} : memref<1x64x128xbf16, #tpu.memory_space<vmem>>, vector<1x8x128xbf16>,
      %c1_i32_30 = arith.constant 1 : i32
      %c8_i32_31 = arith.constant 8 : i32
      %60 = arith.muli %c1_i32_30, %c8_i32_31 : i32
      %61 = tpu.assume_multiple %60, 8 : i32
      %62 = arith.index_cast %61 : i32 to index
      %c0_32 = arith.constant 0 : index
      %63 = vector.load %arg7[%62, %c0_32] : memref<64x512xf32, #tpu.memory_space<vmem>>, vector<8x512xf32>
      %64 = arith.truncf %54 : vector<8x128xf32> to vector<8x128xbf16>
      %cst_33 = arith.constant dense<0.000000e+00> : vector<8x512xf32>
      %65 = tpu.matmul %64, %14, %cst_33 {dimension_numbers = #tpu.dot_dimension_numbers<[1], [0], [0], [1], [0, 0, 1, 1], [], []>} : vector<8x128xbf16>, vector<128x512xbf16>, vector<8x512xf32> -> vector<8x512xf32>
      %66 = arith.addf %63, %65 : vector<8x512xf32>
      %67 = vector.extract_strided_slice %66 {offsets = [0, 0], sizes = [8, 128], strides = [1, 1]} : vector<8x512xf32> to vector<8x128xf32>
      %68 = arith.negf %67 : vector<8x128xf32>
      %69 = math.exp %68 : vector<8x128xf32>
      %cst_34 = arith.constant 1.000000e+00 : f32
      %70 = vector.broadcast %cst_34 : f32 to vector<8x128xf32>
      %71 = arith.addf %70, %69 : vector<8x128xf32>
      %72 = arith.divf %70, %71 : vector<8x128xf32>
      %73 = vector.extract_strided_slice %66 {offsets = [0, 128], sizes = [8, 128], strides = [1, 1]} : vector<8x512xf32> to vector<8x128xf32>
      %74 = arith.negf %73 : vector<8x128xf32>
      %75 = math.exp %74 : vector<8x128xf32>
      %cst_35 = arith.constant 1.000000e+00 : f32
      %76 = vector.broadcast %cst_35 : f32 to vector<8x128xf32>
      %77 = arith.addf %76, %75 : vector<8x128xf32>
      %78 = arith.divf %76, %77 : vector<8x128xf32>
      %79 = vector.extract_strided_slice %66 {offsets = [0, 256], sizes = [8, 128], strides = [1, 1]} : vector<8x512xf32> to vector<8x128xf32>
      %80 = math.tanh %79 : vector<8x128xf32>
      %81 = vector.extract_strided_slice %66 {offsets = [0, 384], sizes = [8, 128], strides = [1, 1]} : vector<8x512xf32> to vector<8x128xf32>
      %82 = arith.negf %81 : vector<8x128xf32>
      %83 = math.exp %82 : vector<8x128xf32>
      %cst_36 = arith.constant 1.000000e+00 : f32
      %84 = vector.broadcast %cst_36 : f32 to vector<8x128xf32>
      %85 = arith.addf %84, %83 : vector<8x128xf32>
      %86 = arith.divf %84, %85 : vector<8x128xf32>
      %87 = arith.mulf %78, %52 : vector<8x128xf32>
      %88 = arith.mulf %72, %80 : vector<8x128xf32>
      %89 = arith.addf %87, %88 : vector<8x128xf32>
      %90 = math.tanh %89 : vector<8x128xf32>
      %91 = arith.mulf %86, %90 : vector<8x128xf32>
      %92 = arith.truncf %91 : vector<8x128xf32> to vector<8x128xbf16>
      %c0_37 = arith.constant 0 : index
      %93 = arith.index_cast %61 : i32 to index
      %c0_38 = arith.constant 0 : index
      %94 = vector.load %arg6[%c0_37, %93, %c0_38] : memref<1x64x128xbf16, #tpu.memory_space<vmem>>, vector<1x8x128xbf16>
      %95 = vector.shape_cast %94 : vector<1x8x128xbf16> to vector<8x128xbf16>
      %96 = vector.shape_cast %92 : vector<8x128xbf16> to vector<1x8x128xbf16>
      tpu.vector_store %arg6[%c0_37, %93, %c0_38], %96 {strides = array<i32>} : memref<1x64x128xbf16, #tpu.memory_space<vmem>>, vector<1x8x128xbf16>,
      %c2_i32 = arith.constant 2 : i32
      %c8_i32_39 = arith.constant 8 : i32
      %97 = arith.muli %c2_i32, %c8_i32_39 : i32
      %98 = tpu.assume_multiple %97, 8 : i32
      %99 = arith.index_cast %98 : i32 to index
      %c0_40 = arith.constant 0 : index
      %100 = vector.load %arg7[%99, %c0_40] : memref<64x512xf32, #tpu.memory_space<vmem>>, vector<8x512xf32>
      %101 = arith.truncf %91 : vector<8x128xf32> to vector<8x128xbf16>
      %cst_41 = arith.constant dense<0.000000e+00> : vector<8x512xf32>
      %102 = tpu.matmul %101, %14, %cst_41 {dimension_numbers = #tpu.dot_dimension_numbers<[1], [0], [0], [1], [0, 0, 1, 1], [], []>} : vector<8x128xbf16>, vector<128x512xbf16>, vector<8x512xf32> -> vector<8x512xf32>
      %103 = arith.addf %100, %102 : vector<8x512xf32>
      %104 = vector.extract_strided_slice %103 {offsets = [0, 0], sizes = [8, 128], strides = [1, 1]} : vector<8x512xf32> to vector<8x128xf32>
      %105 = arith.negf %104 : vector<8x128xf32>
      %106 = math.exp %105 : vector<8x128xf32>
      %cst_42 = arith.constant 1.000000e+00 : f32
      %107 = vector.broadcast %cst_42 : f32 to vector<8x128xf32>
      %108 = arith.addf %107, %106 : vector<8x128xf32>
      %109 = arith.divf %107, %108 : vector<8x128xf32>
      %110 = vector.extract_strided_slice %103 {offsets = [0, 128], sizes = [8, 128], strides = [1, 1]} : vector<8x512xf32> to vector<8x128xf32>
      %111 = arith.negf %110 : vector<8x128xf32>
      %112 = math.exp %111 : vector<8x128xf32>
      %cst_43 = arith.constant 1.000000e+00 : f32
      %113 = vector.broadcast %cst_43 : f32 to vector<8x128xf32>
      %114 = arith.addf %113, %112 : vector<8x128xf32>
      %115 = arith.divf %113, %114 : vector<8x128xf32>
      %116 = vector.extract_strided_slice %103 {offsets = [0, 256], sizes = [8, 128], strides = [1, 1]} : vector<8x512xf32> to vector<8x128xf32>
      %117 = math.tanh %116 : vector<8x128xf32>
      %118 = vector.extract_strided_slice %103 {offsets = [0, 384], sizes = [8, 128], strides = [1, 1]} : vector<8x512xf32> to vector<8x128xf32>
      %119 = arith.negf %118 : vector<8x128xf32>
      %120 = math.exp %119 : vector<8x128xf32>
      %cst_44 = arith.constant 1.000000e+00 : f32
      %121 = vector.broadcast %cst_44 : f32 to vector<8x128xf32>
      %122 = arith.addf %121, %120 : vector<8x128xf32>
      %123 = arith.divf %121, %122 : vector<8x128xf32>
      %124 = arith.mulf %115, %89 : vector<8x128xf32>
      %125 = arith.mulf %109, %117 : vector<8x128xf32>
      %126 = arith.addf %124, %125 : vector<8x128xf32>
      %127 = math.tanh %126 : vector<8x128xf32>
      %128 = arith.mulf %123, %127 : vector<8x128xf32>
      %129 = arith.truncf %128 : vector<8x128xf32> to vector<8x128xbf16>
      %c0_45 = arith.constant 0 : index
      %130 = arith.index_cast %98 : i32 to index
      %c0_46 = arith.constant 0 : index
      %131 = vector.load %arg6[%c0_45, %130, %c0_46] : memref<1x64x128xbf16, #tpu.memory_space<vmem>>, vector<1x8x128xbf16>
      %132 = vector.shape_cast %131 : vector<1x8x128xbf16> to vector<8x128xbf16>
      %133 = vector.shape_cast %129 : vector<8x128xbf16> to vector<1x8x128xbf16>
      tpu.vector_store %arg6[%c0_45, %130, %c0_46], %133 {strides = array<i32>} : memref<1x64x128xbf16, #tpu.memory_space<vmem>>, vector<1x8x128xbf16>,
      %c3_i32 = arith.constant 3 : i32
      %c8_i32_47 = arith.constant 8 : i32
      %134 = arith.muli %c3_i32, %c8_i32_47 : i32
      %135 = tpu.assume_multiple %134, 8 : i32
      %136 = arith.index_cast %135 : i32 to index
      %c0_48 = arith.constant 0 : index
      %137 = vector.load %arg7[%136, %c0_48] : memref<64x512xf32, #tpu.memory_space<vmem>>, vector<8x512xf32>
      %138 = arith.truncf %128 : vector<8x128xf32> to vector<8x128xbf16>
      %cst_49 = arith.constant dense<0.000000e+00> : vector<8x512xf32>
      %139 = tpu.matmul %138, %14, %cst_49 {dimension_numbers = #tpu.dot_dimension_numbers<[1], [0], [0], [1], [0, 0, 1, 1], [], []>} : vector<8x128xbf16>, vector<128x512xbf16>, vector<8x512xf32> -> vector<8x512xf32>
      %140 = arith.addf %137, %139 : vector<8x512xf32>
      %141 = vector.extract_strided_slice %140 {offsets = [0, 0], sizes = [8, 128], strides = [1, 1]} : vector<8x512xf32> to vector<8x128xf32>
      %142 = arith.negf %141 : vector<8x128xf32>
      %143 = math.exp %142 : vector<8x128xf32>
      %cst_50 = arith.constant 1.000000e+00 : f32
      %144 = vector.broadcast %cst_50 : f32 to vector<8x128xf32>
      %145 = arith.addf %144, %143 : vector<8x128xf32>
      %146 = arith.divf %144, %145 : vector<8x128xf32>
      %147 = vector.extract_strided_slice %140 {offsets = [0, 128], sizes = [8, 128], strides = [1, 1]} : vector<8x512xf32> to vector<8x128xf32>
      %148 = arith.negf %147 : vector<8x128xf32>
      %149 = math.exp %148 : vector<8x128xf32>
      %cst_51 = arith.constant 1.000000e+00 : f32
      %150 = vector.broadcast %cst_51 : f32 to vector<8x128xf32>
      %151 = arith.addf %150, %149 : vector<8x128xf32>
      %152 = arith.divf %150, %151 : vector<8x128xf32>
      %153 = vector.extract_strided_slice %140 {offsets = [0, 256], sizes = [8, 128], strides = [1, 1]} : vector<8x512xf32> to vector<8x128xf32>
      %154 = math.tanh %153 : vector<8x128xf32>
      %155 = vector.extract_strided_slice %140 {offsets = [0, 384], sizes = [8, 128], strides = [1, 1]} : vector<8x512xf32> to vector<8x128xf32>
      %156 = arith.negf %155 : vector<8x128xf32>
      %157 = math.exp %156 : vector<8x128xf32>
      %cst_52 = arith.constant 1.000000e+00 : f32
      %158 = vector.broadcast %cst_52 : f32 to vector<8x128xf32>
      %159 = arith.addf %158, %157 : vector<8x128xf32>
      %160 = arith.divf %158, %159 : vector<8x128xf32>
      %161 = arith.mulf %152, %126 : vector<8x128xf32>
      %162 = arith.mulf %146, %154 : vector<8x128xf32>
      %163 = arith.addf %161, %162 : vector<8x128xf32>
      %164 = math.tanh %163 : vector<8x128xf32>
      %165 = arith.mulf %160, %164 : vector<8x128xf32>
      %166 = arith.truncf %165 : vector<8x128xf32> to vector<8x128xbf16>
      %c0_53 = arith.constant 0 : index
      %167 = arith.index_cast %135 : i32 to index
      %c0_54 = arith.constant 0 : index
      %168 = vector.load %arg6[%c0_53, %167, %c0_54] : memref<1x64x128xbf16, #tpu.memory_space<vmem>>, vector<1x8x128xbf16>
      %169 = vector.shape_cast %168 : vector<1x8x128xbf16> to vector<8x128xbf16>
      %170 = vector.shape_cast %166 : vector<8x128xbf16> to vector<1x8x128xbf16>
      tpu.vector_store %arg6[%c0_53, %167, %c0_54], %170 {strides = array<i32>} : memref<1x64x128xbf16, #tpu.memory_space<vmem>>, vector<1x8x128xbf16>,
      %c4_i32 = arith.constant 4 : i32
      %c8_i32_55 = arith.constant 8 : i32
      %171 = arith.muli %c4_i32, %c8_i32_55 : i32
      %172 = tpu.assume_multiple %171, 8 : i32
      %173 = arith.index_cast %172 : i32 to index
      %c0_56 = arith.constant 0 : index
      %174 = vector.load %arg7[%173, %c0_56] : memref<64x512xf32, #tpu.memory_space<vmem>>, vector<8x512xf32>
      %175 = arith.truncf %165 : vector<8x128xf32> to vector<8x128xbf16>
      %cst_57 = arith.constant dense<0.000000e+00> : vector<8x512xf32>
      %176 = tpu.matmul %175, %14, %cst_57 {dimension_numbers = #tpu.dot_dimension_numbers<[1], [0], [0], [1], [0, 0, 1, 1], [], []>} : vector<8x128xbf16>, vector<128x512xbf16>, vector<8x512xf32> -> vector<8x512xf32>
      %177 = arith.addf %174, %176 : vector<8x512xf32>
      %178 = vector.extract_strided_slice %177 {offsets = [0, 0], sizes = [8, 128], strides = [1, 1]} : vector<8x512xf32> to vector<8x128xf32>
      %179 = arith.negf %178 : vector<8x128xf32>
      %180 = math.exp %179 : vector<8x128xf32>
      %cst_58 = arith.constant 1.000000e+00 : f32
      %181 = vector.broadcast %cst_58 : f32 to vector<8x128xf32>
      %182 = arith.addf %181, %180 : vector<8x128xf32>
      %183 = arith.divf %181, %182 : vector<8x128xf32>
      %184 = vector.extract_strided_slice %177 {offsets = [0, 128], sizes = [8, 128], strides = [1, 1]} : vector<8x512xf32> to vector<8x128xf32>
      %185 = arith.negf %184 : vector<8x128xf32>
      %186 = math.exp %185 : vector<8x128xf32>
      %cst_59 = arith.constant 1.000000e+00 : f32
      %187 = vector.broadcast %cst_59 : f32 to vector<8x128xf32>
      %188 = arith.addf %187, %186 : vector<8x128xf32>
      %189 = arith.divf %187, %188 : vector<8x128xf32>
      %190 = vector.extract_strided_slice %177 {offsets = [0, 256], sizes = [8, 128], strides = [1, 1]} : vector<8x512xf32> to vector<8x128xf32>
      %191 = math.tanh %190 : vector<8x128xf32>
      %192 = vector.extract_strided_slice %177 {offsets = [0, 384], sizes = [8, 128], strides = [1, 1]} : vector<8x512xf32> to vector<8x128xf32>
      %193 = arith.negf %192 : vector<8x128xf32>
      %194 = math.exp %193 : vector<8x128xf32>
      %cst_60 = arith.constant 1.000000e+00 : f32
      %195 = vector.broadcast %cst_60 : f32 to vector<8x128xf32>
      %196 = arith.addf %195, %194 : vector<8x128xf32>
      %197 = arith.divf %195, %196 : vector<8x128xf32>
      %198 = arith.mulf %189, %163 : vector<8x128xf32>
      %199 = arith.mulf %183, %191 : vector<8x128xf32>
      %200 = arith.addf %198, %199 : vector<8x128xf32>
      %201 = math.tanh %200 : vector<8x128xf32>
      %202 = arith.mulf %197, %201 : vector<8x128xf32>
      %203 = arith.truncf %202 : vector<8x128xf32> to vector<8x128xbf16>
      %c0_61 = arith.constant 0 : index
      %204 = arith.index_cast %172 : i32 to index
      %c0_62 = arith.constant 0 : index
      %205 = vector.load %arg6[%c0_61, %204, %c0_62] : memref<1x64x128xbf16, #tpu.memory_space<vmem>>, vector<1x8x128xbf16>
      %206 = vector.shape_cast %205 : vector<1x8x128xbf16> to vector<8x128xbf16>
      %207 = vector.shape_cast %203 : vector<8x128xbf16> to vector<1x8x128xbf16>
      tpu.vector_store %arg6[%c0_61, %204, %c0_62], %207 {strides = array<i32>} : memref<1x64x128xbf16, #tpu.memory_space<vmem>>, vector<1x8x128xbf16>,
      %c5_i32 = arith.constant 5 : i32
      %c8_i32_63 = arith.constant 8 : i32
      %208 = arith.muli %c5_i32, %c8_i32_63 : i32
      %209 = tpu.assume_multiple %208, 8 : i32
      %210 = arith.index_cast %209 : i32 to index
      %c0_64 = arith.constant 0 : index
      %211 = vector.load %arg7[%210, %c0_64] : memref<64x512xf32, #tpu.memory_space<vmem>>, vector<8x512xf32>
      %212 = arith.truncf %202 : vector<8x128xf32> to vector<8x128xbf16>
      %cst_65 = arith.constant dense<0.000000e+00> : vector<8x512xf32>
      %213 = tpu.matmul %212, %14, %cst_65 {dimension_numbers = #tpu.dot_dimension_numbers<[1], [0], [0], [1], [0, 0, 1, 1], [], []>} : vector<8x128xbf16>, vector<128x512xbf16>, vector<8x512xf32> -> vector<8x512xf32>
      %214 = arith.addf %211, %213 : vector<8x512xf32>
      %215 = vector.extract_strided_slice %214 {offsets = [0, 0], sizes = [8, 128], strides = [1, 1]} : vector<8x512xf32> to vector<8x128xf32>
      %216 = arith.negf %215 : vector<8x128xf32>
      %217 = math.exp %216 : vector<8x128xf32>
      %cst_66 = arith.constant 1.000000e+00 : f32
      %218 = vector.broadcast %cst_66 : f32 to vector<8x128xf32>
      %219 = arith.addf %218, %217 : vector<8x128xf32>
      %220 = arith.divf %218, %219 : vector<8x128xf32>
      %221 = vector.extract_strided_slice %214 {offsets = [0, 128], sizes = [8, 128], strides = [1, 1]} : vector<8x512xf32> to vector<8x128xf32>
      %222 = arith.negf %221 : vector<8x128xf32>
      %223 = math.exp %222 : vector<8x128xf32>
      %cst_67 = arith.constant 1.000000e+00 : f32
      %224 = vector.broadcast %cst_67 : f32 to vector<8x128xf32>
      %225 = arith.addf %224, %223 : vector<8x128xf32>
      %226 = arith.divf %224, %225 : vector<8x128xf32>
      %227 = vector.extract_strided_slice %214 {offsets = [0, 256], sizes = [8, 128], strides = [1, 1]} : vector<8x512xf32> to vector<8x128xf32>
      %228 = math.tanh %227 : vector<8x128xf32>
      %229 = vector.extract_strided_slice %214 {offsets = [0, 384], sizes = [8, 128], strides = [1, 1]} : vector<8x512xf32> to vector<8x128xf32>
      %230 = arith.negf %229 : vector<8x128xf32>
      %231 = math.exp %230 : vector<8x128xf32>
      %cst_68 = arith.constant 1.000000e+00 : f32
      %232 = vector.broadcast %cst_68 : f32 to vector<8x128xf32>
      %233 = arith.addf %232, %231 : vector<8x128xf32>
      %234 = arith.divf %232, %233 : vector<8x128xf32>
      %235 = arith.mulf %226, %200 : vector<8x128xf32>
      %236 = arith.mulf %220, %228 : vector<8x128xf32>
      %237 = arith.addf %235, %236 : vector<8x128xf32>
      %238 = math.tanh %237 : vector<8x128xf32>
      %239 = arith.mulf %234, %238 : vector<8x128xf32>
      %240 = arith.truncf %239 : vector<8x128xf32> to vector<8x128xbf16>
      %c0_69 = arith.constant 0 : index
      %241 = arith.index_cast %209 : i32 to index
      %c0_70 = arith.constant 0 : index
      %242 = vector.load %arg6[%c0_69, %241, %c0_70] : memref<1x64x128xbf16, #tpu.memory_space<vmem>>, vector<1x8x128xbf16>
      %243 = vector.shape_cast %242 : vector<1x8x128xbf16> to vector<8x128xbf16>
      %244 = vector.shape_cast %240 : vector<8x128xbf16> to vector<1x8x128xbf16>
      tpu.vector_store %arg6[%c0_69, %241, %c0_70], %244 {strides = array<i32>} : memref<1x64x128xbf16, #tpu.memory_space<vmem>>, vector<1x8x128xbf16>,
      %c6_i32 = arith.constant 6 : i32
      %c8_i32_71 = arith.constant 8 : i32
      %245 = arith.muli %c6_i32, %c8_i32_71 : i32
      %246 = tpu.assume_multiple %245, 8 : i32
      %247 = arith.index_cast %246 : i32 to index
      %c0_72 = arith.constant 0 : index
      %248 = vector.load %arg7[%247, %c0_72] : memref<64x512xf32, #tpu.memory_space<vmem>>, vector<8x512xf32>
      %249 = arith.truncf %239 : vector<8x128xf32> to vector<8x128xbf16>
      %cst_73 = arith.constant dense<0.000000e+00> : vector<8x512xf32>
      %250 = tpu.matmul %249, %14, %cst_73 {dimension_numbers = #tpu.dot_dimension_numbers<[1], [0], [0], [1], [0, 0, 1, 1], [], []>} : vector<8x128xbf16>, vector<128x512xbf16>, vector<8x512xf32> -> vector<8x512xf32>
      %251 = arith.addf %248, %250 : vector<8x512xf32>
      %252 = vector.extract_strided_slice %251 {offsets = [0, 0], sizes = [8, 128], strides = [1, 1]} : vector<8x512xf32> to vector<8x128xf32>
      %253 = arith.negf %252 : vector<8x128xf32>
      %254 = math.exp %253 : vector<8x128xf32>
      %cst_74 = arith.constant 1.000000e+00 : f32
      %255 = vector.broadcast %cst_74 : f32 to vector<8x128xf32>
      %256 = arith.addf %255, %254 : vector<8x128xf32>
      %257 = arith.divf %255, %256 : vector<8x128xf32>
      %258 = vector.extract_strided_slice %251 {offsets = [0, 128], sizes = [8, 128], strides = [1, 1]} : vector<8x512xf32> to vector<8x128xf32>
      %259 = arith.negf %258 : vector<8x128xf32>
      %260 = math.exp %259 : vector<8x128xf32>
      %cst_75 = arith.constant 1.000000e+00 : f32
      %261 = vector.broadcast %cst_75 : f32 to vector<8x128xf32>
      %262 = arith.addf %261, %260 : vector<8x128xf32>
      %263 = arith.divf %261, %262 : vector<8x128xf32>
      %264 = vector.extract_strided_slice %251 {offsets = [0, 256], sizes = [8, 128], strides = [1, 1]} : vector<8x512xf32> to vector<8x128xf32>
      %265 = math.tanh %264 : vector<8x128xf32>
      %266 = vector.extract_strided_slice %251 {offsets = [0, 384], sizes = [8, 128], strides = [1, 1]} : vector<8x512xf32> to vector<8x128xf32>
      %267 = arith.negf %266 : vector<8x128xf32>
      %268 = math.exp %267 : vector<8x128xf32>
      %cst_76 = arith.constant 1.000000e+00 : f32
      %269 = vector.broadcast %cst_76 : f32 to vector<8x128xf32>
      %270 = arith.addf %269, %268 : vector<8x128xf32>
      %271 = arith.divf %269, %270 : vector<8x128xf32>
      %272 = arith.mulf %263, %237 : vector<8x128xf32>
      %273 = arith.mulf %257, %265 : vector<8x128xf32>
      %274 = arith.addf %272, %273 : vector<8x128xf32>
      %275 = math.tanh %274 : vector<8x128xf32>
      %276 = arith.mulf %271, %275 : vector<8x128xf32>
      %277 = arith.truncf %276 : vector<8x128xf32> to vector<8x128xbf16>
      %c0_77 = arith.constant 0 : index
      %278 = arith.index_cast %246 : i32 to index
      %c0_78 = arith.constant 0 : index
      %279 = vector.load %arg6[%c0_77, %278, %c0_78] : memref<1x64x128xbf16, #tpu.memory_space<vmem>>, vector<1x8x128xbf16>
      %280 = vector.shape_cast %279 : vector<1x8x128xbf16> to vector<8x128xbf16>
      %281 = vector.shape_cast %277 : vector<8x128xbf16> to vector<1x8x128xbf16>
      tpu.vector_store %arg6[%c0_77, %278, %c0_78], %281 {strides = array<i32>} : memref<1x64x128xbf16, #tpu.memory_space<vmem>>, vector<1x8x128xbf16>,
      %c7_i32 = arith.constant 7 : i32
      %c8_i32_79 = arith.constant 8 : i32
      %282 = arith.muli %c7_i32, %c8_i32_79 : i32
      %283 = tpu.assume_multiple %282, 8 : i32
      %284 = arith.index_cast %283 : i32 to index
      %c0_80 = arith.constant 0 : index
      %285 = vector.load %arg7[%284, %c0_80] : memref<64x512xf32, #tpu.memory_space<vmem>>, vector<8x512xf32>
      %286 = arith.truncf %276 : vector<8x128xf32> to vector<8x128xbf16>
      %cst_81 = arith.constant dense<0.000000e+00> : vector<8x512xf32>
      %287 = tpu.matmul %286, %14, %cst_81 {dimension_numbers = #tpu.dot_dimension_numbers<[1], [0], [0], [1], [0, 0, 1, 1], [], []>} : vector<8x128xbf16>, vector<128x512xbf16>, vector<8x512xf32> -> vector<8x512xf32>
      %288 = arith.addf %285, %287 : vector<8x512xf32>
      %289 = vector.extract_strided_slice %288 {offsets = [0, 0], sizes = [8, 128], strides = [1, 1]} : vector<8x512xf32> to vector<8x128xf32>
      %290 = arith.negf %289 : vector<8x128xf32>
      %291 = math.exp %290 : vector<8x128xf32>
      %cst_82 = arith.constant 1.000000e+00 : f32
      %292 = vector.broadcast %cst_82 : f32 to vector<8x128xf32>
      %293 = arith.addf %292, %291 : vector<8x128xf32>
      %294 = arith.divf %292, %293 : vector<8x128xf32>
      %295 = vector.extract_strided_slice %288 {offsets = [0, 128], sizes = [8, 128], strides = [1, 1]} : vector<8x512xf32> to vector<8x128xf32>
      %296 = arith.negf %295 : vector<8x128xf32>
      %297 = math.exp %296 : vector<8x128xf32>
      %cst_83 = arith.constant 1.000000e+00 : f32
      %298 = vector.broadcast %cst_83 : f32 to vector<8x128xf32>
      %299 = arith.addf %298, %297 : vector<8x128xf32>
      %300 = arith.divf %298, %299 : vector<8x128xf32>
      %301 = vector.extract_strided_slice %288 {offsets = [0, 256], sizes = [8, 128], strides = [1, 1]} : vector<8x512xf32> to vector<8x128xf32>
      %302 = math.tanh %301 : vector<8x128xf32>
      %303 = vector.extract_strided_slice %288 {offsets = [0, 384], sizes = [8, 128], strides = [1, 1]} : vector<8x512xf32> to vector<8x128xf32>
      %304 = arith.negf %303 : vector<8x128xf32>
      %305 = math.exp %304 : vector<8x128xf32>
      %cst_84 = arith.constant 1.000000e+00 : f32
      %306 = vector.broadcast %cst_84 : f32 to vector<8x128xf32>
      %307 = arith.addf %306, %305 : vector<8x128xf32>
      %308 = arith.divf %306, %307 : vector<8x128xf32>
      %309 = arith.mulf %300, %274 : vector<8x128xf32>
      %310 = arith.mulf %294, %302 : vector<8x128xf32>
      %311 = arith.addf %309, %310 : vector<8x128xf32>
      %312 = math.tanh %311 : vector<8x128xf32>
      %313 = arith.mulf %308, %312 : vector<8x128xf32>
      %314 = arith.truncf %313 : vector<8x128xf32> to vector<8x128xbf16>
      %c0_85 = arith.constant 0 : index
      %315 = arith.index_cast %283 : i32 to index
      %c0_86 = arith.constant 0 : index
      %316 = vector.load %arg6[%c0_85, %315, %c0_86] : memref<1x64x128xbf16, #tpu.memory_space<vmem>>, vector<1x8x128xbf16>
      %317 = vector.shape_cast %316 : vector<1x8x128xbf16> to vector<8x128xbf16>
      %318 = vector.shape_cast %314 : vector<8x128xbf16> to vector<1x8x128xbf16>
      tpu.vector_store %arg6[%c0_85, %315, %c0_86], %318 {strides = array<i32>} : memref<1x64x128xbf16, #tpu.memory_space<vmem>>, vector<1x8x128xbf16>,
      %c8_i32_87 = arith.constant 8 : i32
      %c0_88 = arith.constant 0 : index
      %c0_89 = arith.constant 0 : index
      %319 = vector.load %arg8[%c0_88, %c0_89] : memref<8x128xf32, #tpu.memory_space<vmem>>, vector<8x128xf32>
      tpu.vector_store %arg8[%c0_88, %c0_89], %313 {strides = array<i32>} : memref<8x128xf32, #tpu.memory_space<vmem>>, vector<8x128xf32>,
      %c0_90 = arith.constant 0 : index
      %c0_91 = arith.constant 0 : index
      %320 = vector.load %arg9[%c0_90, %c0_91] : memref<8x128xf32, #tpu.memory_space<vmem>>, vector<8x128xf32>
      tpu.vector_store %arg9[%c0_90, %c0_91], %311 {strides = array<i32>} : memref<8x128xf32, #tpu.memory_space<vmem>>, vector<8x128xf32>,
    } else {
    }
    %c1_i32 = arith.constant 1 : i32
    %18 = arith.cmpi eq, %arg0, %c1_i32 : i32
    %19 = arith.extui %18 : i1 to i32
    %c0_i32_17 = arith.constant 0 : i32
    %20 = arith.cmpi ne, %19, %c0_i32_17 : i32
    scf.if %20 {
      %c0_18 = arith.constant 0 : index
      %c0_19 = arith.constant 0 : index
      %21 = vector.load %arg8[%c0_18, %c0_19] : memref<8x128xf32, #tpu.memory_space<vmem>>, vector<8x128xf32>
      %c0_20 = arith.constant 0 : index
      %c0_21 = arith.constant 0 : index
      %22 = vector.load %arg9[%c0_20, %c0_21] : memref<8x128xf32, #tpu.memory_space<vmem>>, vector<8x128xf32>
      %c0_i32_22 = arith.constant 0 : i32
      %c7_i32 = arith.constant 7 : i32
      %23 = arith.subi %c7_i32, %c0_i32_22 : i32
      %c8_i32 = arith.constant 8 : i32
      %24 = arith.muli %23, %c8_i32 : i32
      %25 = tpu.assume_multiple %24, 8 : i32
      %26 = arith.index_cast %25 : i32 to index
      %c0_23 = arith.constant 0 : index
      %27 = vector.load %arg7[%26, %c0_23] : memref<64x512xf32, #tpu.memory_space<vmem>>, vector<8x512xf32>
      %28 = arith.truncf %21 : vector<8x128xf32> to vector<8x128xbf16>
      %cst_24 = arith.constant dense<0.000000e+00> : vector<8x512xf32>
      %29 = tpu.matmul %28, %14, %cst_24 {dimension_numbers = #tpu.dot_dimension_numbers<[1], [0], [0], [1], [0, 0, 1, 1], [], []>} : vector<8x128xbf16>, vector<128x512xbf16>, vector<8x512xf32> -> vector<8x512xf32>
      %30 = arith.addf %27, %29 : vector<8x512xf32>
      %31 = vector.extract_strided_slice %30 {offsets = [0, 0], sizes = [8, 128], strides = [1, 1]} : vector<8x512xf32> to vector<8x128xf32>
      %32 = arith.negf %31 : vector<8x128xf32>
      %33 = math.exp %32 : vector<8x128xf32>
      %cst_25 = arith.constant 1.000000e+00 : f32
      %34 = vector.broadcast %cst_25 : f32 to vector<8x128xf32>
      %35 = arith.addf %34, %33 : vector<8x128xf32>
      %36 = arith.divf %34, %35 : vector<8x128xf32>
      %37 = vector.extract_strided_slice %30 {offsets = [0, 128], sizes = [8, 128], strides = [1, 1]} : vector<8x512xf32> to vector<8x128xf32>
      %38 = arith.negf %37 : vector<8x128xf32>
      %39 = math.exp %38 : vector<8x128xf32>
      %cst_26 = arith.constant 1.000000e+00 : f32
      %40 = vector.broadcast %cst_26 : f32 to vector<8x128xf32>
      %41 = arith.addf %40, %39 : vector<8x128xf32>
      %42 = arith.divf %40, %41 : vector<8x128xf32>
      %43 = vector.extract_strided_slice %30 {offsets = [0, 256], sizes = [8, 128], strides = [1, 1]} : vector<8x512xf32> to vector<8x128xf32>
      %44 = math.tanh %43 : vector<8x128xf32>
      %45 = vector.extract_strided_slice %30 {offsets = [0, 384], sizes = [8, 128], strides = [1, 1]} : vector<8x512xf32> to vector<8x128xf32>
      %46 = arith.negf %45 : vector<8x128xf32>
      %47 = math.exp %46 : vector<8x128xf32>
      %cst_27 = arith.constant 1.000000e+00 : f32
      %48 = vector.broadcast %cst_27 : f32 to vector<8x128xf32>
      %49 = arith.addf %48, %47 : vector<8x128xf32>
      %50 = arith.divf %48, %49 : vector<8x128xf32>
      %51 = arith.mulf %42, %22 : vector<8x128xf32>
      %52 = arith.mulf %36, %44 : vector<8x128xf32>
      %53 = arith.addf %51, %52 : vector<8x128xf32>
      %54 = math.tanh %53 : vector<8x128xf32>
      %55 = arith.mulf %50, %54 : vector<8x128xf32>
      %56 = arith.truncf %55 : vector<8x128xf32> to vector<8x128xbf16>
      %c0_28 = arith.constant 0 : index
      %57 = arith.index_cast %25 : i32 to index
      %c0_29 = arith.constant 0 : index
      %58 = vector.load %arg6[%c0_28, %57, %c0_29] : memref<1x64x128xbf16, #tpu.memory_space<vmem>>, vector<1x8x128xbf16>
      %59 = vector.shape_cast %58 : vector<1x8x128xbf16> to vector<8x128xbf16>
      %60 = vector.shape_cast %56 : vector<8x128xbf16> to vector<1x8x128xbf16>
      tpu.vector_store %arg6[%c0_28, %57, %c0_29], %60 {strides = array<i32>} : memref<1x64x128xbf16, #tpu.memory_space<vmem>>, vector<1x8x128xbf16>,
      %c1_i32_30 = arith.constant 1 : i32
      %c7_i32_31 = arith.constant 7 : i32
      %61 = arith.subi %c7_i32_31, %c1_i32_30 : i32
      %c8_i32_32 = arith.constant 8 : i32
      %62 = arith.muli %61, %c8_i32_32 : i32
      %63 = tpu.assume_multiple %62, 8 : i32
      %64 = arith.index_cast %63 : i32 to index
      %c0_33 = arith.constant 0 : index
      %65 = vector.load %arg7[%64, %c0_33] : memref<64x512xf32, #tpu.memory_space<vmem>>, vector<8x512xf32>
      %66 = arith.truncf %55 : vector<8x128xf32> to vector<8x128xbf16>
      %cst_34 = arith.constant dense<0.000000e+00> : vector<8x512xf32>
      %67 = tpu.matmul %66, %14, %cst_34 {dimension_numbers = #tpu.dot_dimension_numbers<[1], [0], [0], [1], [0, 0, 1, 1], [], []>} : vector<8x128xbf16>, vector<128x512xbf16>, vector<8x512xf32> -> vector<8x512xf32>
      %68 = arith.addf %65, %67 : vector<8x512xf32>
      %69 = vector.extract_strided_slice %68 {offsets = [0, 0], sizes = [8, 128], strides = [1, 1]} : vector<8x512xf32> to vector<8x128xf32>
      %70 = arith.negf %69 : vector<8x128xf32>
      %71 = math.exp %70 : vector<8x128xf32>
      %cst_35 = arith.constant 1.000000e+00 : f32
      %72 = vector.broadcast %cst_35 : f32 to vector<8x128xf32>
      %73 = arith.addf %72, %71 : vector<8x128xf32>
      %74 = arith.divf %72, %73 : vector<8x128xf32>
      %75 = vector.extract_strided_slice %68 {offsets = [0, 128], sizes = [8, 128], strides = [1, 1]} : vector<8x512xf32> to vector<8x128xf32>
      %76 = arith.negf %75 : vector<8x128xf32>
      %77 = math.exp %76 : vector<8x128xf32>
      %cst_36 = arith.constant 1.000000e+00 : f32
      %78 = vector.broadcast %cst_36 : f32 to vector<8x128xf32>
      %79 = arith.addf %78, %77 : vector<8x128xf32>
      %80 = arith.divf %78, %79 : vector<8x128xf32>
      %81 = vector.extract_strided_slice %68 {offsets = [0, 256], sizes = [8, 128], strides = [1, 1]} : vector<8x512xf32> to vector<8x128xf32>
      %82 = math.tanh %81 : vector<8x128xf32>
      %83 = vector.extract_strided_slice %68 {offsets = [0, 384], sizes = [8, 128], strides = [1, 1]} : vector<8x512xf32> to vector<8x128xf32>
      %84 = arith.negf %83 : vector<8x128xf32>
      %85 = math.exp %84 : vector<8x128xf32>
      %cst_37 = arith.constant 1.000000e+00 : f32
      %86 = vector.broadcast %cst_37 : f32 to vector<8x128xf32>
      %87 = arith.addf %86, %85 : vector<8x128xf32>
      %88 = arith.divf %86, %87 : vector<8x128xf32>
      %89 = arith.mulf %80, %53 : vector<8x128xf32>
      %90 = arith.mulf %74, %82 : vector<8x128xf32>
      %91 = arith.addf %89, %90 : vector<8x128xf32>
      %92 = math.tanh %91 : vector<8x128xf32>
      %93 = arith.mulf %88, %92 : vector<8x128xf32>
      %94 = arith.truncf %93 : vector<8x128xf32> to vector<8x128xbf16>
      %c0_38 = arith.constant 0 : index
      %95 = arith.index_cast %63 : i32 to index
      %c0_39 = arith.constant 0 : index
      %96 = vector.load %arg6[%c0_38, %95, %c0_39] : memref<1x64x128xbf16, #tpu.memory_space<vmem>>, vector<1x8x128xbf16>
      %97 = vector.shape_cast %96 : vector<1x8x128xbf16> to vector<8x128xbf16>
      %98 = vector.shape_cast %94 : vector<8x128xbf16> to vector<1x8x128xbf16>
      tpu.vector_store %arg6[%c0_38, %95, %c0_39], %98 {strides = array<i32>} : memref<1x64x128xbf16, #tpu.memory_space<vmem>>, vector<1x8x128xbf16>,
      %c2_i32 = arith.constant 2 : i32
      %c7_i32_40 = arith.constant 7 : i32
      %99 = arith.subi %c7_i32_40, %c2_i32 : i32
      %c8_i32_41 = arith.constant 8 : i32
      %100 = arith.muli %99, %c8_i32_41 : i32
      %101 = tpu.assume_multiple %100, 8 : i32
      %102 = arith.index_cast %101 : i32 to index
      %c0_42 = arith.constant 0 : index
      %103 = vector.load %arg7[%102, %c0_42] : memref<64x512xf32, #tpu.memory_space<vmem>>, vector<8x512xf32>
      %104 = arith.truncf %93 : vector<8x128xf32> to vector<8x128xbf16>
      %cst_43 = arith.constant dense<0.000000e+00> : vector<8x512xf32>
      %105 = tpu.matmul %104, %14, %cst_43 {dimension_numbers = #tpu.dot_dimension_numbers<[1], [0], [0], [1], [0, 0, 1, 1], [], []>} : vector<8x128xbf16>, vector<128x512xbf16>, vector<8x512xf32> -> vector<8x512xf32>
      %106 = arith.addf %103, %105 : vector<8x512xf32>
      %107 = vector.extract_strided_slice %106 {offsets = [0, 0], sizes = [8, 128], strides = [1, 1]} : vector<8x512xf32> to vector<8x128xf32>
      %108 = arith.negf %107 : vector<8x128xf32>
      %109 = math.exp %108 : vector<8x128xf32>
      %cst_44 = arith.constant 1.000000e+00 : f32
      %110 = vector.broadcast %cst_44 : f32 to vector<8x128xf32>
      %111 = arith.addf %110, %109 : vector<8x128xf32>
      %112 = arith.divf %110, %111 : vector<8x128xf32>
      %113 = vector.extract_strided_slice %106 {offsets = [0, 128], sizes = [8, 128], strides = [1, 1]} : vector<8x512xf32> to vector<8x128xf32>
      %114 = arith.negf %113 : vector<8x128xf32>
      %115 = math.exp %114 : vector<8x128xf32>
      %cst_45 = arith.constant 1.000000e+00 : f32
      %116 = vector.broadcast %cst_45 : f32 to vector<8x128xf32>
      %117 = arith.addf %116, %115 : vector<8x128xf32>
      %118 = arith.divf %116, %117 : vector<8x128xf32>
      %119 = vector.extract_strided_slice %106 {offsets = [0, 256], sizes = [8, 128], strides = [1, 1]} : vector<8x512xf32> to vector<8x128xf32>
      %120 = math.tanh %119 : vector<8x128xf32>
      %121 = vector.extract_strided_slice %106 {offsets = [0, 384], sizes = [8, 128], strides = [1, 1]} : vector<8x512xf32> to vector<8x128xf32>
      %122 = arith.negf %121 : vector<8x128xf32>
      %123 = math.exp %122 : vector<8x128xf32>
      %cst_46 = arith.constant 1.000000e+00 : f32
      %124 = vector.broadcast %cst_46 : f32 to vector<8x128xf32>
      %125 = arith.addf %124, %123 : vector<8x128xf32>
      %126 = arith.divf %124, %125 : vector<8x128xf32>
      %127 = arith.mulf %118, %91 : vector<8x128xf32>
      %128 = arith.mulf %112, %120 : vector<8x128xf32>
      %129 = arith.addf %127, %128 : vector<8x128xf32>
      %130 = math.tanh %129 : vector<8x128xf32>
      %131 = arith.mulf %126, %130 : vector<8x128xf32>
      %132 = arith.truncf %131 : vector<8x128xf32> to vector<8x128xbf16>
      %c0_47 = arith.constant 0 : index
      %133 = arith.index_cast %101 : i32 to index
      %c0_48 = arith.constant 0 : index
      %134 = vector.load %arg6[%c0_47, %133, %c0_48] : memref<1x64x128xbf16, #tpu.memory_space<vmem>>, vector<1x8x128xbf16>
      %135 = vector.shape_cast %134 : vector<1x8x128xbf16> to vector<8x128xbf16>
      %136 = vector.shape_cast %132 : vector<8x128xbf16> to vector<1x8x128xbf16>
      tpu.vector_store %arg6[%c0_47, %133, %c0_48], %136 {strides = array<i32>} : memref<1x64x128xbf16, #tpu.memory_space<vmem>>, vector<1x8x128xbf16>,
      %c3_i32 = arith.constant 3 : i32
      %c7_i32_49 = arith.constant 7 : i32
      %137 = arith.subi %c7_i32_49, %c3_i32 : i32
      %c8_i32_50 = arith.constant 8 : i32
      %138 = arith.muli %137, %c8_i32_50 : i32
      %139 = tpu.assume_multiple %138, 8 : i32
      %140 = arith.index_cast %139 : i32 to index
      %c0_51 = arith.constant 0 : index
      %141 = vector.load %arg7[%140, %c0_51] : memref<64x512xf32, #tpu.memory_space<vmem>>, vector<8x512xf32>
      %142 = arith.truncf %131 : vector<8x128xf32> to vector<8x128xbf16>
      %cst_52 = arith.constant dense<0.000000e+00> : vector<8x512xf32>
      %143 = tpu.matmul %142, %14, %cst_52 {dimension_numbers = #tpu.dot_dimension_numbers<[1], [0], [0], [1], [0, 0, 1, 1], [], []>} : vector<8x128xbf16>, vector<128x512xbf16>, vector<8x512xf32> -> vector<8x512xf32>
      %144 = arith.addf %141, %143 : vector<8x512xf32>
      %145 = vector.extract_strided_slice %144 {offsets = [0, 0], sizes = [8, 128], strides = [1, 1]} : vector<8x512xf32> to vector<8x128xf32>
      %146 = arith.negf %145 : vector<8x128xf32>
      %147 = math.exp %146 : vector<8x128xf32>
      %cst_53 = arith.constant 1.000000e+00 : f32
      %148 = vector.broadcast %cst_53 : f32 to vector<8x128xf32>
      %149 = arith.addf %148, %147 : vector<8x128xf32>
      %150 = arith.divf %148, %149 : vector<8x128xf32>
      %151 = vector.extract_strided_slice %144 {offsets = [0, 128], sizes = [8, 128], strides = [1, 1]} : vector<8x512xf32> to vector<8x128xf32>
      %152 = arith.negf %151 : vector<8x128xf32>
      %153 = math.exp %152 : vector<8x128xf32>
      %cst_54 = arith.constant 1.000000e+00 : f32
      %154 = vector.broadcast %cst_54 : f32 to vector<8x128xf32>
      %155 = arith.addf %154, %153 : vector<8x128xf32>
      %156 = arith.divf %154, %155 : vector<8x128xf32>
      %157 = vector.extract_strided_slice %144 {offsets = [0, 256], sizes = [8, 128], strides = [1, 1]} : vector<8x512xf32> to vector<8x128xf32>
      %158 = math.tanh %157 : vector<8x128xf32>
      %159 = vector.extract_strided_slice %144 {offsets = [0, 384], sizes = [8, 128], strides = [1, 1]} : vector<8x512xf32> to vector<8x128xf32>
      %160 = arith.negf %159 : vector<8x128xf32>
      %161 = math.exp %160 : vector<8x128xf32>
      %cst_55 = arith.constant 1.000000e+00 : f32
      %162 = vector.broadcast %cst_55 : f32 to vector<8x128xf32>
      %163 = arith.addf %162, %161 : vector<8x128xf32>
      %164 = arith.divf %162, %163 : vector<8x128xf32>
      %165 = arith.mulf %156, %129 : vector<8x128xf32>
      %166 = arith.mulf %150, %158 : vector<8x128xf32>
      %167 = arith.addf %165, %166 : vector<8x128xf32>
      %168 = math.tanh %167 : vector<8x128xf32>
      %169 = arith.mulf %164, %168 : vector<8x128xf32>
      %170 = arith.truncf %169 : vector<8x128xf32> to vector<8x128xbf16>
      %c0_56 = arith.constant 0 : index
      %171 = arith.index_cast %139 : i32 to index
      %c0_57 = arith.constant 0 : index
      %172 = vector.load %arg6[%c0_56, %171, %c0_57] : memref<1x64x128xbf16, #tpu.memory_space<vmem>>, vector<1x8x128xbf16>
      %173 = vector.shape_cast %172 : vector<1x8x128xbf16> to vector<8x128xbf16>
      %174 = vector.shape_cast %170 : vector<8x128xbf16> to vector<1x8x128xbf16>
      tpu.vector_store %arg6[%c0_56, %171, %c0_57], %174 {strides = array<i32>} : memref<1x64x128xbf16, #tpu.memory_space<vmem>>, vector<1x8x128xbf16>,
      %c4_i32 = arith.constant 4 : i32
      %c7_i32_58 = arith.constant 7 : i32
      %175 = arith.subi %c7_i32_58, %c4_i32 : i32
      %c8_i32_59 = arith.constant 8 : i32
      %176 = arith.muli %175, %c8_i32_59 : i32
      %177 = tpu.assume_multiple %176, 8 : i32
      %178 = arith.index_cast %177 : i32 to index
      %c0_60 = arith.constant 0 : index
      %179 = vector.load %arg7[%178, %c0_60] : memref<64x512xf32, #tpu.memory_space<vmem>>, vector<8x512xf32>
      %180 = arith.truncf %169 : vector<8x128xf32> to vector<8x128xbf16>
      %cst_61 = arith.constant dense<0.000000e+00> : vector<8x512xf32>
      %181 = tpu.matmul %180, %14, %cst_61 {dimension_numbers = #tpu.dot_dimension_numbers<[1], [0], [0], [1], [0, 0, 1, 1], [], []>} : vector<8x128xbf16>, vector<128x512xbf16>, vector<8x512xf32> -> vector<8x512xf32>
      %182 = arith.addf %179, %181 : vector<8x512xf32>
      %183 = vector.extract_strided_slice %182 {offsets = [0, 0], sizes = [8, 128], strides = [1, 1]} : vector<8x512xf32> to vector<8x128xf32>
      %184 = arith.negf %183 : vector<8x128xf32>
      %185 = math.exp %184 : vector<8x128xf32>
      %cst_62 = arith.constant 1.000000e+00 : f32
      %186 = vector.broadcast %cst_62 : f32 to vector<8x128xf32>
      %187 = arith.addf %186, %185 : vector<8x128xf32>
      %188 = arith.divf %186, %187 : vector<8x128xf32>
      %189 = vector.extract_strided_slice %182 {offsets = [0, 128], sizes = [8, 128], strides = [1, 1]} : vector<8x512xf32> to vector<8x128xf32>
      %190 = arith.negf %189 : vector<8x128xf32>
      %191 = math.exp %190 : vector<8x128xf32>
      %cst_63 = arith.constant 1.000000e+00 : f32
      %192 = vector.broadcast %cst_63 : f32 to vector<8x128xf32>
      %193 = arith.addf %192, %191 : vector<8x128xf32>
      %194 = arith.divf %192, %193 : vector<8x128xf32>
      %195 = vector.extract_strided_slice %182 {offsets = [0, 256], sizes = [8, 128], strides = [1, 1]} : vector<8x512xf32> to vector<8x128xf32>
      %196 = math.tanh %195 : vector<8x128xf32>
      %197 = vector.extract_strided_slice %182 {offsets = [0, 384], sizes = [8, 128], strides = [1, 1]} : vector<8x512xf32> to vector<8x128xf32>
      %198 = arith.negf %197 : vector<8x128xf32>
      %199 = math.exp %198 : vector<8x128xf32>
      %cst_64 = arith.constant 1.000000e+00 : f32
      %200 = vector.broadcast %cst_64 : f32 to vector<8x128xf32>
      %201 = arith.addf %200, %199 : vector<8x128xf32>
      %202 = arith.divf %200, %201 : vector<8x128xf32>
      %203 = arith.mulf %194, %167 : vector<8x128xf32>
      %204 = arith.mulf %188, %196 : vector<8x128xf32>
      %205 = arith.addf %203, %204 : vector<8x128xf32>
      %206 = math.tanh %205 : vector<8x128xf32>
      %207 = arith.mulf %202, %206 : vector<8x128xf32>
      %208 = arith.truncf %207 : vector<8x128xf32> to vector<8x128xbf16>
      %c0_65 = arith.constant 0 : index
      %209 = arith.index_cast %177 : i32 to index
      %c0_66 = arith.constant 0 : index
      %210 = vector.load %arg6[%c0_65, %209, %c0_66] : memref<1x64x128xbf16, #tpu.memory_space<vmem>>, vector<1x8x128xbf16>
      %211 = vector.shape_cast %210 : vector<1x8x128xbf16> to vector<8x128xbf16>
      %212 = vector.shape_cast %208 : vector<8x128xbf16> to vector<1x8x128xbf16>
      tpu.vector_store %arg6[%c0_65, %209, %c0_66], %212 {strides = array<i32>} : memref<1x64x128xbf16, #tpu.memory_space<vmem>>, vector<1x8x128xbf16>,
      %c5_i32 = arith.constant 5 : i32
      %c7_i32_67 = arith.constant 7 : i32
      %213 = arith.subi %c7_i32_67, %c5_i32 : i32
      %c8_i32_68 = arith.constant 8 : i32
      %214 = arith.muli %213, %c8_i32_68 : i32
      %215 = tpu.assume_multiple %214, 8 : i32
      %216 = arith.index_cast %215 : i32 to index
      %c0_69 = arith.constant 0 : index
      %217 = vector.load %arg7[%216, %c0_69] : memref<64x512xf32, #tpu.memory_space<vmem>>, vector<8x512xf32>
      %218 = arith.truncf %207 : vector<8x128xf32> to vector<8x128xbf16>
      %cst_70 = arith.constant dense<0.000000e+00> : vector<8x512xf32>
      %219 = tpu.matmul %218, %14, %cst_70 {dimension_numbers = #tpu.dot_dimension_numbers<[1], [0], [0], [1], [0, 0, 1, 1], [], []>} : vector<8x128xbf16>, vector<128x512xbf16>, vector<8x512xf32> -> vector<8x512xf32>
      %220 = arith.addf %217, %219 : vector<8x512xf32>
      %221 = vector.extract_strided_slice %220 {offsets = [0, 0], sizes = [8, 128], strides = [1, 1]} : vector<8x512xf32> to vector<8x128xf32>
      %222 = arith.negf %221 : vector<8x128xf32>
      %223 = math.exp %222 : vector<8x128xf32>
      %cst_71 = arith.constant 1.000000e+00 : f32
      %224 = vector.broadcast %cst_71 : f32 to vector<8x128xf32>
      %225 = arith.addf %224, %223 : vector<8x128xf32>
      %226 = arith.divf %224, %225 : vector<8x128xf32>
      %227 = vector.extract_strided_slice %220 {offsets = [0, 128], sizes = [8, 128], strides = [1, 1]} : vector<8x512xf32> to vector<8x128xf32>
      %228 = arith.negf %227 : vector<8x128xf32>
      %229 = math.exp %228 : vector<8x128xf32>
      %cst_72 = arith.constant 1.000000e+00 : f32
      %230 = vector.broadcast %cst_72 : f32 to vector<8x128xf32>
      %231 = arith.addf %230, %229 : vector<8x128xf32>
      %232 = arith.divf %230, %231 : vector<8x128xf32>
      %233 = vector.extract_strided_slice %220 {offsets = [0, 256], sizes = [8, 128], strides = [1, 1]} : vector<8x512xf32> to vector<8x128xf32>
      %234 = math.tanh %233 : vector<8x128xf32>
      %235 = vector.extract_strided_slice %220 {offsets = [0, 384], sizes = [8, 128], strides = [1, 1]} : vector<8x512xf32> to vector<8x128xf32>
      %236 = arith.negf %235 : vector<8x128xf32>
      %237 = math.exp %236 : vector<8x128xf32>
      %cst_73 = arith.constant 1.000000e+00 : f32
      %238 = vector.broadcast %cst_73 : f32 to vector<8x128xf32>
      %239 = arith.addf %238, %237 : vector<8x128xf32>
      %240 = arith.divf %238, %239 : vector<8x128xf32>
      %241 = arith.mulf %232, %205 : vector<8x128xf32>
      %242 = arith.mulf %226, %234 : vector<8x128xf32>
      %243 = arith.addf %241, %242 : vector<8x128xf32>
      %244 = math.tanh %243 : vector<8x128xf32>
      %245 = arith.mulf %240, %244 : vector<8x128xf32>
      %246 = arith.truncf %245 : vector<8x128xf32> to vector<8x128xbf16>
      %c0_74 = arith.constant 0 : index
      %247 = arith.index_cast %215 : i32 to index
      %c0_75 = arith.constant 0 : index
      %248 = vector.load %arg6[%c0_74, %247, %c0_75] : memref<1x64x128xbf16, #tpu.memory_space<vmem>>, vector<1x8x128xbf16>
      %249 = vector.shape_cast %248 : vector<1x8x128xbf16> to vector<8x128xbf16>
      %250 = vector.shape_cast %246 : vector<8x128xbf16> to vector<1x8x128xbf16>
      tpu.vector_store %arg6[%c0_74, %247, %c0_75], %250 {strides = array<i32>} : memref<1x64x128xbf16, #tpu.memory_space<vmem>>, vector<1x8x128xbf16>,
      %c6_i32 = arith.constant 6 : i32
      %c7_i32_76 = arith.constant 7 : i32
      %251 = arith.subi %c7_i32_76, %c6_i32 : i32
      %c8_i32_77 = arith.constant 8 : i32
      %252 = arith.muli %251, %c8_i32_77 : i32
      %253 = tpu.assume_multiple %252, 8 : i32
      %254 = arith.index_cast %253 : i32 to index
      %c0_78 = arith.constant 0 : index
      %255 = vector.load %arg7[%254, %c0_78] : memref<64x512xf32, #tpu.memory_space<vmem>>, vector<8x512xf32>
      %256 = arith.truncf %245 : vector<8x128xf32> to vector<8x128xbf16>
      %cst_79 = arith.constant dense<0.000000e+00> : vector<8x512xf32>
      %257 = tpu.matmul %256, %14, %cst_79 {dimension_numbers = #tpu.dot_dimension_numbers<[1], [0], [0], [1], [0, 0, 1, 1], [], []>} : vector<8x128xbf16>, vector<128x512xbf16>, vector<8x512xf32> -> vector<8x512xf32>
      %258 = arith.addf %255, %257 : vector<8x512xf32>
      %259 = vector.extract_strided_slice %258 {offsets = [0, 0], sizes = [8, 128], strides = [1, 1]} : vector<8x512xf32> to vector<8x128xf32>
      %260 = arith.negf %259 : vector<8x128xf32>
      %261 = math.exp %260 : vector<8x128xf32>
      %cst_80 = arith.constant 1.000000e+00 : f32
      %262 = vector.broadcast %cst_80 : f32 to vector<8x128xf32>
      %263 = arith.addf %262, %261 : vector<8x128xf32>
      %264 = arith.divf %262, %263 : vector<8x128xf32>
      %265 = vector.extract_strided_slice %258 {offsets = [0, 128], sizes = [8, 128], strides = [1, 1]} : vector<8x512xf32> to vector<8x128xf32>
      %266 = arith.negf %265 : vector<8x128xf32>
      %267 = math.exp %266 : vector<8x128xf32>
      %cst_81 = arith.constant 1.000000e+00 : f32
      %268 = vector.broadcast %cst_81 : f32 to vector<8x128xf32>
      %269 = arith.addf %268, %267 : vector<8x128xf32>
      %270 = arith.divf %268, %269 : vector<8x128xf32>
      %271 = vector.extract_strided_slice %258 {offsets = [0, 256], sizes = [8, 128], strides = [1, 1]} : vector<8x512xf32> to vector<8x128xf32>
      %272 = math.tanh %271 : vector<8x128xf32>
      %273 = vector.extract_strided_slice %258 {offsets = [0, 384], sizes = [8, 128], strides = [1, 1]} : vector<8x512xf32> to vector<8x128xf32>
      %274 = arith.negf %273 : vector<8x128xf32>
      %275 = math.exp %274 : vector<8x128xf32>
      %cst_82 = arith.constant 1.000000e+00 : f32
      %276 = vector.broadcast %cst_82 : f32 to vector<8x128xf32>
      %277 = arith.addf %276, %275 : vector<8x128xf32>
      %278 = arith.divf %276, %277 : vector<8x128xf32>
      %279 = arith.mulf %270, %243 : vector<8x128xf32>
      %280 = arith.mulf %264, %272 : vector<8x128xf32>
      %281 = arith.addf %279, %280 : vector<8x128xf32>
      %282 = math.tanh %281 : vector<8x128xf32>
      %283 = arith.mulf %278, %282 : vector<8x128xf32>
      %284 = arith.truncf %283 : vector<8x128xf32> to vector<8x128xbf16>
      %c0_83 = arith.constant 0 : index
      %285 = arith.index_cast %253 : i32 to index
      %c0_84 = arith.constant 0 : index
      %286 = vector.load %arg6[%c0_83, %285, %c0_84] : memref<1x64x128xbf16, #tpu.memory_space<vmem>>, vector<1x8x128xbf16>
      %287 = vector.shape_cast %286 : vector<1x8x128xbf16> to vector<8x128xbf16>
      %288 = vector.shape_cast %284 : vector<8x128xbf16> to vector<1x8x128xbf16>
      tpu.vector_store %arg6[%c0_83, %285, %c0_84], %288 {strides = array<i32>} : memref<1x64x128xbf16, #tpu.memory_space<vmem>>, vector<1x8x128xbf16>,
      %c7_i32_85 = arith.constant 7 : i32
      %c7_i32_86 = arith.constant 7 : i32
      %289 = arith.subi %c7_i32_86, %c7_i32_85 : i32
      %c8_i32_87 = arith.constant 8 : i32
      %290 = arith.muli %289, %c8_i32_87 : i32
      %291 = tpu.assume_multiple %290, 8 : i32
      %292 = arith.index_cast %291 : i32 to index
      %c0_88 = arith.constant 0 : index
      %293 = vector.load %arg7[%292, %c0_88] : memref<64x512xf32, #tpu.memory_space<vmem>>, vector<8x512xf32>
      %294 = arith.truncf %283 : vector<8x128xf32> to vector<8x128xbf16>
      %cst_89 = arith.constant dense<0.000000e+00> : vector<8x512xf32>
      %295 = tpu.matmul %294, %14, %cst_89 {dimension_numbers = #tpu.dot_dimension_numbers<[1], [0], [0], [1], [0, 0, 1, 1], [], []>} : vector<8x128xbf16>, vector<128x512xbf16>, vector<8x512xf32> -> vector<8x512xf32>
      %296 = arith.addf %293, %295 : vector<8x512xf32>
      %297 = vector.extract_strided_slice %296 {offsets = [0, 0], sizes = [8, 128], strides = [1, 1]} : vector<8x512xf32> to vector<8x128xf32>
      %298 = arith.negf %297 : vector<8x128xf32>
      %299 = math.exp %298 : vector<8x128xf32>
      %cst_90 = arith.constant 1.000000e+00 : f32
      %300 = vector.broadcast %cst_90 : f32 to vector<8x128xf32>
      %301 = arith.addf %300, %299 : vector<8x128xf32>
      %302 = arith.divf %300, %301 : vector<8x128xf32>
      %303 = vector.extract_strided_slice %296 {offsets = [0, 128], sizes = [8, 128], strides = [1, 1]} : vector<8x512xf32> to vector<8x128xf32>
      %304 = arith.negf %303 : vector<8x128xf32>
      %305 = math.exp %304 : vector<8x128xf32>
      %cst_91 = arith.constant 1.000000e+00 : f32
      %306 = vector.broadcast %cst_91 : f32 to vector<8x128xf32>
      %307 = arith.addf %306, %305 : vector<8x128xf32>
      %308 = arith.divf %306, %307 : vector<8x128xf32>
      %309 = vector.extract_strided_slice %296 {offsets = [0, 256], sizes = [8, 128], strides = [1, 1]} : vector<8x512xf32> to vector<8x128xf32>
      %310 = math.tanh %309 : vector<8x128xf32>
      %311 = vector.extract_strided_slice %296 {offsets = [0, 384], sizes = [8, 128], strides = [1, 1]} : vector<8x512xf32> to vector<8x128xf32>
      %312 = arith.negf %311 : vector<8x128xf32>
      %313 = math.exp %312 : vector<8x128xf32>
      %cst_92 = arith.constant 1.000000e+00 : f32
      %314 = vector.broadcast %cst_92 : f32 to vector<8x128xf32>
      %315 = arith.addf %314, %313 : vector<8x128xf32>
      %316 = arith.divf %314, %315 : vector<8x128xf32>
      %317 = arith.mulf %308, %281 : vector<8x128xf32>
      %318 = arith.mulf %302, %310 : vector<8x128xf32>
      %319 = arith.addf %317, %318 : vector<8x128xf32>
      %320 = math.tanh %319 : vector<8x128xf32>
      %321 = arith.mulf %316, %320 : vector<8x128xf32>
      %322 = arith.truncf %321 : vector<8x128xf32> to vector<8x128xbf16>
      %c0_93 = arith.constant 0 : index
      %323 = arith.index_cast %291 : i32 to index
      %c0_94 = arith.constant 0 : index
      %324 = vector.load %arg6[%c0_93, %323, %c0_94] : memref<1x64x128xbf16, #tpu.memory_space<vmem>>, vector<1x8x128xbf16>
      %325 = vector.shape_cast %324 : vector<1x8x128xbf16> to vector<8x128xbf16>
      %326 = vector.shape_cast %322 : vector<8x128xbf16> to vector<1x8x128xbf16>
      tpu.vector_store %arg6[%c0_93, %323, %c0_94], %326 {strides = array<i32>} : memref<1x64x128xbf16, #tpu.memory_space<vmem>>, vector<1x8x128xbf16>,
      %c8_i32_95 = arith.constant 8 : i32
      %c0_96 = arith.constant 0 : index
      %c0_97 = arith.constant 0 : index
      %327 = vector.load %arg8[%c0_96, %c0_97] : memref<8x128xf32, #tpu.memory_space<vmem>>, vector<8x128xf32>
      tpu.vector_store %arg8[%c0_96, %c0_97], %321 {strides = array<i32>} : memref<8x128xf32, #tpu.memory_space<vmem>>, vector<8x128xf32>,
      %c0_98 = arith.constant 0 : index
      %c0_99 = arith.constant 0 : index
      %328 = vector.load %arg9[%c0_98, %c0_99] : memref<8x128xf32, #tpu.memory_space<vmem>>, vector<8x128xf32>
      tpu.vector_store %arg9[%c0_98, %c0_99], %319 {strides = array<i32>} : memref<8x128xf32, #tpu.memory_space<vmem>>, vector<8x128xf32>,
    } else {
    }
    return
  }
  func.func @transform_0(%arg0: i32, %arg1: i32) -> (i32, i32, i32) {
    %c2_i32 = arith.constant 2 : i32
    %0 = arith.muli %c2_i32, %arg1 : i32
    %c0_i32 = arith.constant 0 : i32
    %1 = arith.subi %c0_i32, %0 : i32
    %2 = arith.muli %arg0, %1 : i32
    %3 = arith.addi %arg1, %2 : i32
    %c0_i32_0 = arith.constant 0 : i32
    %c0_i32_1 = arith.constant 0 : i32
    %c0_i32_2 = arith.constant 0 : i32
    return %c0_i32_0, %3, %c0_i32_1 : i32, i32, i32
  }
  func.func @transform_1(%arg0: i32, %arg1: i32) -> (i32, i32, i32, i32) {
    %c0_i32 = arith.constant 0 : i32
    %c0_i32_0 = arith.constant 0 : i32
    %c0_i32_1 = arith.constant 0 : i32
    %c0_i32_2 = arith.constant 0 : i32
    return %arg0, %c0_i32, %c0_i32_0, %c0_i32_1 : i32, i32, i32, i32
  }
  func.func @transform_2(%arg0: i32, %arg1: i32) -> (i32, i32, i32) {
    %c0_i32 = arith.constant 0 : i32
    %c0_i32_0 = arith.constant 0 : i32
    %c0_i32_1 = arith.constant 0 : i32
    return %arg0, %c0_i32, %c0_i32_0 : i32, i32, i32
  }
  func.func @transform_3(%arg0: i32, %arg1: i32) -> (i32, i32, i32) {
    %c0_i32 = arith.constant 0 : i32
    %c0_i32_0 = arith.constant 0 : i32
    %c0_i32_1 = arith.constant 0 : i32
    return %arg0, %c0_i32, %c0_i32_0 : i32, i32, i32
  }
  func.func @transform_4(%arg0: i32, %arg1: i32) -> (i32, i32, i32) {
    %c2_i32 = arith.constant 2 : i32
    %0 = arith.muli %c2_i32, %arg1 : i32
    %c0_i32 = arith.constant 0 : i32
    %1 = arith.subi %c0_i32, %0 : i32
    %2 = arith.muli %arg0, %1 : i32
    %3 = arith.addi %arg1, %2 : i32
    %c0_i32_0 = arith.constant 0 : i32
    %c0_i32_1 = arith.constant 0 : i32
    return %arg0, %3, %c0_i32_0 : i32, i32, i32
  }
}

</mosaic_0001>

<bundles_post_ra>
// kernel: imdb_forward.5
= control target key start
LH: loop header
LB: loop body
LE: loop exit
PB: predicated region body
PF: predicated region fallthrough
CT: control target
= control target key end

     0   :  { %10 = vsyncpa [#allocation3], 0  ;;  %s760_s0 = inlined_call_operand.hbm [shape: f32[2,8,128], index: 0, kind: input, shape index: {}]   ;;  %s761_s1 = inlined_call_operand.hbm [shape: f32[2,1,128], index: 1, kind: input, shape index: {}]   ;;  %s762_s2 = inlined_call_operand.hbm [shape: f32[2,1,128], index: 2, kind: input, shape index: {}]   ;;  %s763_s3 = inlined_call_operand.hbm [shape: f32[2,128,128], index: 3, kind: input, shape index: {}]   ;;  %s764_s4 = inlined_call_operand.hbm [shape: f32[1,128], index: 4, kind: input, shape index: {}]   ;;  %s765_s5 = inlined_call_operand.vmem [shape: f32[8,128], index: 5, kind: output, shape index: {}]  }
   0x1   :  { %11 = vsyncpa [#allocation5], 0 }
   0x2   :  { %12 = vsyncpa [#allocation8], 0  ;;  %s621_s18 = smov [#allocation4]   ;;  %s505_s22 = scalar_lea.hbm %s761_s1, 32 }
   0x3   :  { %s30_s19 = sshll.u32 %s621_s18, 4  ;;  %p506_p0 = scmp.ne.s32.totalorder %s761_s1, %s505_s22  ;;  %s31_s19 = int_to_ptr.vmem [resolvable:$true] %s30_s19 }
   0x4   :  { %p509_p1 = scmp.lt.u32.totalorder %s505_s22, %s761_s1 }
   0x6   :  { %p511_p2 = pnand %p509_p1, %p506_p0 }
   0x8   :  { %514 = shalt.err (!%p511_p2)
}
   0x9   :  { %s515_s27 = scalar_lea.vmem %s31_s19, 32  ;;  %p520_p4 = scmp.lt.s32.totalorder %s31_s19, %s31_s19 }
   0xa   :  { %p516_p3 = scmp.ne.s32.totalorder %s31_s19, %s515_s27  ;;  %p521_p5 = scmp.lt.s32.totalorder %s515_s27, %s515_s27 }
   0xc   :  { %p522_p6 = por %p521_p5, %p520_p4 }
   0xe   :  { %p523_p7 = pnand %p522_p6, %p516_p3 }
  0x10   :  { %526 = shalt.err (!%p523_p7)
}
  0x11   :  { %s622_s28 = smov 16   ;;  %s623_s29 = smov 1  }
  0x12   :  { %36 = dma.hbm_to_vmem [thread:$0]  %s761_s1, 32, %s31_s19, [#allocation5], %s622_s28, %s622_s28, %s623_s29  }
  0x13   :  { %s624_s7 = smov [#allocation7]   ;;  %s625_s9 = smov [#allocation2]  }
  0x14   :  { %s54_s8 = sshll.u32 %s624_s7, 4  ;;  %s18_s10 = sshll.u32 %s625_s9, 4  ;;  %s55_s8 = int_to_ptr.vmem [resolvable:$true] %s54_s8  ;;  %s19_s10 = int_to_ptr.vmem [resolvable:$true] %s18_s10 }
  0x15   :  { %s527_s13 = scalar_lea.hbm %s763_s3, 4096 }
  0x16   :  { %p528_p8 = scmp.ne.s32.totalorder %s763_s3, %s527_s13  ;;  %p531_p9 = scmp.lt.u32.totalorder %s527_s13, %s763_s3 }
  0x18   :  { %p533_p10 = pnand %p531_p9, %p528_p8 }
  0x1a   :  { %536 = shalt.err (!%p533_p10)
}
  0x1b   :  { %s537_s1 = scalar_lea.vmem %s55_s8, 4096  ;;  %p542_p12 = scmp.lt.s32.totalorder %s55_s8, %s55_s8 }
  0x1c   :  { %p538_p11 = scmp.ne.s32.totalorder %s55_s8, %s537_s1  ;;  %p543_p13 = scmp.lt.s32.totalorder %s537_s1, %s537_s1 }
  0x1e   :  { %p544_p0 = por %p543_p13, %p542_p12 }
  0x20   :  { %p545_p1 = pnand %p544_p0, %p538_p11 }
  0x22   :  { %548 = shalt.err (!%p545_p1)
}
  0x23   :  { %s626_s18 = smov 128   ;;  %s627_s19 = smov 8  }
  0x24   :  { %60 = dma.hbm_to_vmem [thread:$0]  %s763_s3, 4096, %s55_s8, [#allocation8], %s626_s18, %s626_s18, %s627_s19  }
  0x25   :  { %s549_s24 = scalar_lea.hbm %s760_s0, 256 }
  0x26   :  { %p550_p2 = scmp.ne.s32.totalorder %s760_s0, %s549_s24  ;;  %p553_p3 = scmp.lt.u32.totalorder %s549_s24, %s760_s0 }
  0x28   :  { %p555_p4 = pnand %p553_p3, %p550_p2 }
  0x2a   :  { %558 = shalt.err (!%p555_p4)
}
  0x2b   :  { %s559_s6 = scalar_lea.vmem %s19_s10, 256  ;;  %p564_p6 = scmp.lt.s32.totalorder %s19_s10, %s19_s10 }
  0x2c   :  { %p560_p5 = scmp.ne.s32.totalorder %s19_s10, %s559_s6  ;;  %p565_p7 = scmp.lt.s32.totalorder %s559_s6, %s559_s6 }
  0x2e   :  { %p566_p8 = por %p565_p7, %p564_p6 }
  0x30   :  { %p567_p9 = pnand %p566_p8, %p560_p5 }
  0x32   :  { %570 = shalt.err (!%p567_p9)
}
  0x33   :  { %24 = dma.hbm_to_vmem [thread:$0]  %s760_s0, 256, %s19_s10, [#allocation3], %s626_s18, %s626_s18, %s627_s19  }
  0x34   :  { %s628_s8 = smov [#allocation6]   ;;  %s629_s11 = smov [#allocation9]  }
  0x35   :  { %s42_s9 = sshll.u32 %s628_s8, 4  ;;  %s67_s12 = sshll.u32 %s629_s11, 4  ;;  %s43_s9 = int_to_ptr.vmem [resolvable:$true] %s42_s9  ;;  %s68_s12 = int_to_ptr.vmem [resolvable:$true] %s67_s12 }
  0x36   :  { %s571_s15 = scalar_lea.hbm %s762_s2, 32 }
  0x37   :  { %p572_p10 = scmp.ne.s32.totalorder %s762_s2, %s571_s15  ;;  %p575_p11 = scmp.lt.u32.totalorder %s571_s15, %s762_s2 }
  0x39   :  { %p577_p12 = pnand %p575_p11, %p572_p10 }
  0x3b   :  { %580 = shalt.err (!%p577_p12)
}
  0x3c   :  { %s581_s0 = scalar_lea.vmem %s43_s9, 32  ;;  %p586_p0 = scmp.lt.s32.totalorder %s43_s9, %s43_s9 }
  0x3d   :  { %p582_p13 = scmp.ne.s32.totalorder %s43_s9, %s581_s0  ;;  %p587_p1 = scmp.lt.s32.totalorder %s581_s0, %s581_s0 }
  0x3f   :  { %p588_p2 = por %p587_p1, %p586_p0 }
  0x41   :  { %p589_p3 = pnand %p588_p2, %p582_p13 }
  0x43   :  { %592 = shalt.err (!%p589_p3)
}
  0x44   :  { %48 = dma.hbm_to_vmem [thread:$0]  %s762_s2, 32, %s43_s9, [#allocation5], %s622_s28, %s622_s28, %s623_s29  }
  0x45   :  { %s593_s22 = scalar_lea.hbm %s764_s4, 16 }
  0x46   :  { %p594_p4 = scmp.ne.s32.totalorder %s764_s4, %s593_s22  ;;  %p597_p5 = scmp.lt.u32.totalorder %s593_s22, %s764_s4 }
  0x48   :  { %p599_p6 = pnand %p597_p5, %p594_p4 }
  0x4a   :  { %602 = shalt.err (!%p599_p6)
}
  0x4b   :  { %s603_s27 = scalar_lea.vmem %s68_s12, 16  ;;  %s607_s30 = scalar_lea.vmem %s68_s12, 32 }
  0x4c   :  { %p604_p7 = scmp.ne.s32.totalorder %s68_s12, %s603_s27  ;;  %p608_p8 = scmp.lt.s32.totalorder %s68_s12, %s68_s12 }
  0x4d   :  { %p609_p9 = scmp.lt.s32.totalorder %s607_s30, %s603_s27 }
  0x4f   :  { %p610_p10 = por %p609_p9, %p608_p8 }
  0x51   :  { %p611_p11 = pnand %p610_p10, %p604_p7 }
  0x53   :  { %614 = shalt.err (!%p611_p11)
}
  0x54   :  { %70 = dma.hbm_to_vmem [thread:$0]  %s764_s4, 16, %s68_s12, [#allocation8]  }
  0x55   :  { %615 = dma.done.wait [#allocation3], 256  }
  0x56   :  { %616 = vsyncadd [#allocation3], 4294967040 }
  0x57   :  { %617 = dma.done.wait [#allocation5], 64  }
  0x58   :  { %618 = vsyncadd [#allocation5], 4294967232 }
  0x59   :  { %619 = dma.done.wait [#allocation8], 4112  }
  0x5a   :  { %620 = vsyncadd [#allocation8], 4294963184  ;;  %v630_v0 = vmov 0.0|0.0   ;;  %v731_v1 = vld [vmem:[#allocation2] sm:$0xff]  ;;  %v733_v2 = vld [vmem:[#allocation2 + $0x8] sm:$0xff]  ;;  %vm631_vm0 = vmmov 0  }
  0x5b   :  { %443 = vmatprep.subr.bf16.mxu0 %v630_v0  ;;  %467 = vmatprep.subr.bf16.mxu1 %v630_v0  ;;  %v95_v3 = vmul.f32 %v731_v1, %v731_v1  ;;  %v98_v4 = vmul.f32 %v733_v2, %v733_v2  ;;  %v162_v5 = vld [vmem:[#allocation7 + $0x80] sm:$0xff]  ;;  %v163_v6 = vld [vmem:[#allocation7 + $0x88] sm:$0xff]  ;;  %v164_v11 = vld [vmem:[#allocation7 + $0x90] sm:$0xff]  ;;  %v632_v39 = vmov 0.0  }
  0x5c   :  { %89 = vadd.xlane.f32.xlu0 %v731_v1  ;;  %v145_v7 = vld [vmem:[#allocation7] sm:$0xff]  ;;  %v444_v8 = vpack.c.bf16 %v163_v6, %v162_v5  ;;  %v146_v9 = vld [vmem:[#allocation7 + $0x8] sm:$0xff]  ;;  %v165_v12 = vld [vmem:[#allocation7 + $0x98] sm:$0xff]  ;;  %405 = vmatprep.mubr.msk.f32.mxu0 %vm631_vm0, %v632_v39 }
  0x5d   :  { %96 = vadd.xlane.f32.xlu1 %v95_v3  ;;  %v468_v10 = vpack.c.bf16 %v146_v9, %v145_v7  ;;  %v147_v13 = vld [vmem:[#allocation7 + $0x10] sm:$0xff]  ;;  %v447_v14 = vpack.c.bf16 %v165_v12, %v164_v11  ;;  %v148_v15 = vld [vmem:[#allocation7 + $0x18] sm:$0xff]  ;;  %v166_v17 = vld [vmem:[#allocation7 + $0xa0] sm:$0xff]  ;;  %440 = vmatprep.mubr.msk.f32.mxu1 %vm631_vm0, %v632_v39 }
  0x5e   :  { %445 = vmatpush3.bf16.msra.mxu0 %v444_v8  ;;  %v471_v16 = vpack.c.bf16 %v148_v15, %v147_v13  ;;  %v167_v18 = vld [vmem:[#allocation7 + $0xa8] sm:$0xff]  ;;  %v149_v19 = vld [vmem:[#allocation7 + $0x20] sm:$0xff]  ;;  %v168_v23 = vld [vmem:[#allocation7 + $0xb0] sm:$0xff] }
  0x5f   :  { %469 = vmatpush3.bf16.msra.mxu1 %v468_v10  ;;  %446 = vmatprep.subr.bf16.mxu0 %v630_v0  ;;  %v450_v20 = vpack.c.bf16 %v167_v18, %v166_v17  ;;  %v150_v21 = vld [vmem:[#allocation7 + $0x28] sm:$0xff]  ;;  %v169_v24 = vld [vmem:[#allocation7 + $0xb8] sm:$0xff]  ;;  %v151_v25 = vld [vmem:[#allocation7 + $0x30] sm:$0xff] }
  0x60   :  { %91 = vadd.xlane.f32.xlu0 %v733_v2  ;;  %470 = vmatprep.subr.bf16.mxu1 %v630_v0  ;;  %v474_v22 = vpack.c.bf16 %v150_v21, %v149_v19  ;;  %v453_v26 = vpack.c.bf16 %v169_v24, %v168_v23  ;;  %v152_v27 = vld [vmem:[#allocation7 + $0x38] sm:$0xff]  ;;  %v170_v29 = vld [vmem:[#allocation7 + $0xc0] sm:$0xff]  ;;  %v171_v30 = vld [vmem:[#allocation7 + $0xc8] sm:$0xff] }
  0x61   :  { %99 = vadd.xlane.f32.xlu1 %v98_v4  ;;  %v477_v28 = vpack.c.bf16 %v152_v27, %v151_v25  ;;  %v153_v31 = vld [vmem:[#allocation7 + $0x40] sm:$0xff]  ;;  %v456_v32 = vpack.c.bf16 %v171_v30, %v170_v29  ;;  %v154_v33 = vld [vmem:[#allocation7 + $0x48] sm:$0xff]  ;;  %v172_v34 = vld [vmem:[#allocation7 + $0xd0] sm:$0xff] }
  0x62   :  { %448 = vmatpush3.bf16.msra.mxu0 %v447_v14  ;;  %v173_v35 = vld [vmem:[#allocation7 + $0xd8] sm:$0xff]  ;;  %v480_v36 = vpack.c.bf16 %v154_v33, %v153_v31  ;;  %v155_v37 = vld [vmem:[#allocation7 + $0x50] sm:$0xff]  ;;  %v174_v42 = vld [vmem:[#allocation7 + $0xe0] sm:$0xff] }
  0x63   :  { %472 = vmatpush3.bf16.msra.mxu1 %v471_v16  ;;  %449 = vmatprep.subr.bf16.mxu0 %v630_v0  ;;  %v156_v38 = vld [vmem:[#allocation7 + $0x58] sm:$0xff]  ;;  %v459_v40 = vpack.c.bf16 %v173_v35, %v172_v34  ;;  %v175_v43 = vld [vmem:[#allocation7 + $0xe8] sm:$0xff]  ;;  %v157_v44 = vld [vmem:[#allocation7 + $0x60] sm:$0xff] }
  0x64   :  { %473 = vmatprep.subr.bf16.mxu1 %v630_v0  ;;  %v483_v41 = vpack.c.bf16 %v156_v38, %v155_v37  ;;  %v158_v45 = vld [vmem:[#allocation7 + $0x68] sm:$0xff]  ;;  %v462_v46 = vpack.c.bf16 %v175_v43, %v174_v42  ;;  %v176_v48 = vld [vmem:[#allocation7 + $0xf0] sm:$0xff]  ;;  %v177_v49 = vld [vmem:[#allocation7 + $0xf8] sm:$0xff] }
  0x65   :  { %v486_v47 = vpack.c.bf16 %v158_v45, %v157_v44  ;;  %v159_v50 = vld [vmem:[#allocation7 + $0x70] sm:$0xff]  ;;  %v160_v51 = vld [vmem:[#allocation7 + $0x78] sm:$0xff]  ;;  %v465_v52 = vpack.c.bf16 %v177_v49, %v176_v48  ;;  %v338_v18 = vld [vmem:[#allocation9] ss:$0 sm:$0xff] }
  0x66   :  { %451 = vmatpush3.bf16.msra.mxu0 %v450_v20  ;;  %v489_v53 = vpack.c.bf16 %v160_v51, %v159_v50  ;;  %v334_v7 = vld [vmem:[#allocation4] ss:$0 sm:$0xff]  ;;  %v337_v10 = vld [vmem:[#allocation6 + $0x1] ss:$0 sm:$0xff]  ;;  %v335_v11 = vld [vmem:[#allocation6] ss:$0 sm:$0xff] }
  0x67   :  { %475 = vmatpush3.bf16.msra.mxu1 %v474_v22  ;;  %452 = vmatprep.subr.bf16.mxu0 %v630_v0 }
  0x68   :  { %476 = vmatprep.subr.bf16.mxu1 %v630_v0 }
  0x6a   :  { %454 = vmatpush3.bf16.msra.mxu0 %v453_v26 }
  0x6b   :  { %478 = vmatpush3.bf16.msra.mxu1 %v477_v28  ;;  %455 = vmatprep.subr.bf16.mxu0 %v630_v0 }
  0x6c   :  { %479 = vmatprep.subr.bf16.mxu1 %v630_v0 }
  0x6e   :  { %457 = vmatpush3.bf16.msra.mxu0 %v456_v32 }
  0x6f   :  { %481 = vmatpush3.bf16.msra.mxu1 %v480_v36  ;;  %458 = vmatprep.subr.bf16.mxu0 %v630_v0 }
  0x70   :  { %482 = vmatprep.subr.bf16.mxu1 %v630_v0 }
  0x72   :  { %460 = vmatpush3.bf16.msra.mxu0 %v459_v40 }
  0x73   :  { %484 = vmatpush3.bf16.msra.mxu1 %v483_v41  ;;  %461 = vmatprep.subr.bf16.mxu0 %v630_v0 }
  0x74   :  { %485 = vmatprep.subr.bf16.mxu1 %v630_v0 }
  0x76   :  { %463 = vmatpush3.bf16.msra.mxu0 %v462_v46 }
  0x77   :  { %487 = vmatpush3.bf16.msra.mxu1 %v486_v47  ;;  %464 = vmatprep.subr.bf16.mxu0 %v630_v0 }
  0x78   :  { %488 = vmatprep.subr.bf16.mxu1 %v630_v0  ;;  %v336_v0 = vld [vmem:[#allocation4 + $0x1] ss:$0 sm:$0xff] }
  0x7a   :  { %466 = vmatpush3.bf16.msra.mxu0 %v465_v52 }
  0x7b   :  { %490 = vmatpush3.bf16.msra.mxu1 %v489_v53 }
  0xe9   :  { %v90_v54 = vpop.xlane.xlu0 %89 }
  0xea   :  { %v97_v55 = vpop.xlane.xlu1 %96 }
  0xed   :  { %v92_v56 = vpop.xlane.xlu0 %91 }
  0xee   :  { %v93_v57 = vadd.f32 %v92_v56, %v90_v54  ;;  %v100_v58 = vpop.xlane.xlu1 %99 }
  0xef   :  { %v101_v60 = vadd.f32 %v100_v58, %v97_v55 }
  0xf0   :  { %v94_v59 = vmul.f32 0.015625, %v93_v57 }
  0xf1   :  { %v102_v62 = vmul.f32 0.015625, %v101_v60 }
  0xf2   :  { %v103_v61 = vmul.f32 %v94_v59, %v94_v59  ;;  %v107_v4 = vsub.f32 %v731_v1, %v94_v59  ;;  %v125_v5 = vsub.f32 %v733_v2, %v94_v59 }
  0xf4   :  { %v104_v63 = vsub.f32 %v102_v62, %v103_v61 }
  0xf6   :  { %v105_v3 = vadd.f32 1e-05, %v104_v63 }
  0xf8   :  { %503 = vrsqrt.f32 %v105_v3 }
 0x102   :  { %v504_v6 = vpop.eup %503 }
 0x103   :  { %v126_v8 = vmul.f32 %v504_v6, %v125_v5  ;;  %v108_v9 = vmul.f32 %v504_v6, %v107_v4 }
 0x105   :  { %v135_v12 = vmul.f32 %v336_v0, %v126_v8  ;;  %v116_v13 = vmul.f32 %v334_v7, %v108_v9 }
 0x107   :  { %v144_v14 = vadd.f32 %v337_v10, %v135_v12  ;;  %v124_v15 = vadd.f32 %v335_v11, %v116_v13 }
 0x109   :  { %406 = vmatmul.mubr.f32.vlgmr.msra.gmra.mrb[0].mxu0 %v144_v14  ;;  %441 = vmatmul.mubr.f32.vlgmr.msra.gmra.mrb[0].mxu1 %v124_v15 }
 0x1dc   :  { %v244_v16 = vpop.f32.mrb[0].mxu0  ;;  %v314_v17 = vpop.f32.mrb[0].mxu1 }
 0x1dd   :  { %v315_v19 = vadd.f32 %v314_v17, %v244_v16  ;;  %v407_v1 = vpop.f32.mrb[1].mxu0  ;;  %v442_v20 = vpop.f32.mrb[1].mxu1 }
 0x1df   :  { %v325_v2 = vadd.f32 %v338_v18, %v315_v19 }
 0x1e1   :  { %326 = vst [vmem:[%s765_s5] sm:$0xff] %v325_v2 }
 0x1e2   :  { %331 = vsyncpa [#allocation3], 1 }
 0x1e3   :  { %332 = vsyncpa [#allocation5], 1 }
 0x1e4   :  { %333 = vsyncpa [#allocation8], 1 }

// kernel: imdb_forward.3
= control target key start
LH: loop header
LB: loop body
LE: loop exit
PB: predicated region body
PF: predicated region fallthrough
CT: control target
= control target key end

     0   :  { %s5475_s0 = inlined_call_operand.hbm [shape: bf16[1,64,128], index: 0, kind: input, shape index: {}]   ;;  %s5476_s1 = inlined_call_operand.hbm [shape: bf16[2,1,128,512], index: 1, kind: input, shape index: {}]   ;;  %s5477_s2 = inlined_call_operand.hbm [shape: bf16[2,128,512], index: 2, kind: input, shape index: {}]   ;;  %s5478_s3 = inlined_call_operand.hbm [shape: f32[2,1,512], index: 3, kind: input, shape index: {}]   ;;  %s5479_s4 = inlined_call_operand.hbm [shape: bf16[2,64,128], index: 4, kind: output, shape index: {}]  }
   0x1   :  { %5546 = sst [smem:[#allocation46_spill]] %s5476_s1 }
   0x2   :  { %9 = vsyncpa [#allocation6], 0 }
   0x3   :  { %11 = vsyncpa [#allocation6 + $0x1], 0 }
   0x4   :  { %12 = vsyncpa [#allocation9], 0 }
   0x5   :  { %14 = vsyncpa [#allocation9 + $0x1], 0 }
   0x6   :  { %15 = vsyncpa [#allocation12], 0 }
   0x7   :  { %17 = vsyncpa [#allocation12 + $0x1], 0 }
   0x8   :  { %18 = vsyncpa [#allocation7], 0 }
   0x9   :  { %20 = vsyncpa [#allocation7 + $0x1], 0  ;;  %s4123_s15 = smov 0   ;;  %s4125_s16 = smov 0  }
   0xa   :  { %s4127_s17 = smov 0   ;;  %s4129_s18 = smov 0  }
   0xb   :  { %s4131_s19 = smov 0   ;;  %s4133_s20 = smov 0  }
   0xc LB: > { %5547 = sst [smem:[#allocation18_spill]] %s4069_s17  ;;  %s4154_s21 = sadd.s32 4294967295, %s4081_s20   ;;  %s4081_s20 = sphi %s4133_s20, %s26_s20   ;;  %s4077_s19 = sphi %s4131_s19, %s5631_s19   ;;  %s4073_s18 = sphi %s4129_s18, %s5630_s18   ;;  %s4069_s17 = sphi %s4127_s17, %s5626_s17   ;;  %s4065_s16 = sphi %s4125_s16, %s5629_s16   ;;  %s4061_s15 = sphi %s4123_s15, %s5628_s15  }
   0xd   : > { %5548 = sst [smem:[#allocation19_spill]] %s4081_s20  ;;  %s3281_s22 = sadd.s32 4294967294, %s4081_s20  }
   0xe   : > { %s38_s23 = sadd.s32 1, %s4077_s19  ;;  %s79_s24 = sadd.s32 1, %s4069_s17 }
   0xf   : > { %p40_p0 = scmp.ge.s32.totalorder %s38_s23, 2  ;;  %p86_p1 = scmp.ne.s32.totalorder %s4069_s17, %s4065_s16 }
  0x10   : > { %p5483_p2 = scmp.eq.s32.totalorder %s4081_s20, 0  ;;  %p92_p3 = scmp.ne.s32.totalorder %s4065_s16, %s4061_s15 }
  0x11   : > { %s5633_s23 = smov (%p40_p0, %s38_s23), 0  ;;  %p5481_p5 = scmp.eq.s32.totalorder %s4154_s21, 0 }
  0x12   : > { %5549 = sst [smem:[#allocation20_spill]] %s5633_s23  ;;  %p4168_p4 = por %p5483_p2, %p86_p1 }
  0x13   : > { %s76_s26 = ssub.s32 %s4077_s19, %s5633_s23  ;;  %p178_p6 = scmp.eq.s32.totalorder %s4154_s21, 1 }
  0x14   : > { %p77_p7 = scmp.eq.s32.totalorder %s76_s26, 0  ;;  %p4178_p8 = por %p5481_p5, %p92_p3 }
  0x15   : > { %p4182_p9 = por %p178_p6, %p86_p1  ;;  %p184_p10 = scmp.eq.s32.totalorder %s3281_s22, 1 }
  0x16   : > { %s5551_s27 = scalar_select %p4178_p8, 1, 0 }
  0x17   : > { %s5552_s28 = scalar_select %p4182_p9, 1, 0 }
  0x18   : > { %s4187_s29 = scalar_select %p77_p7, %s4069_s17, %s79_s24  }
  0x19   : > { %p4189_p11 = por %p184_p10, %p92_p3  ;;  %p5482_p13 = scmp.lt.s32.totalorder %s4081_s20, 2 }
  0x1a   : > { %5553 = sst [smem:[#allocation21_spill]] %s4187_s29  ;;  %s229_s5 = sand.u32 1, %s4081_s20  }
  0x1b   : > { %s5554_s30 = scalar_select %p4189_p11, 1, 0 }
  0x1c   : > { %s4197_s6 = sand.u32 1, %s4069_s17   ;;  %s3469_s8 = sshll.u32 %s4077_s19, 12 }
  0x1d   : > { %s5480_s7 = sshll.u32 %s4197_s6, 8  ;;  %s5555_s1 = sld [smem:[#allocation46_spill]] }
  0x1e   : > { %s233_s12 = scalar_lea.vmem [#allocation8], %s5480_s7  ;;  %p4216_p0 = pnand %p5482_p13, %p4168_p4 }
  0x1f   : > { %s240_s13 = sshll.u32 %s233_s12, 4  ;;  %s4220_s22 = scalar_lea.sflag [#allocation9], %s229_s5  ;;  %s4210_s13 = int_to_ptr.vmem [resolvable:$true] %s240_s13 }
  0x20   : > { %s5556_s14 = scalar_select %p4216_p0, 1, 0 }
  0x21   : > { %p4226_p3 = pneg %p4216_p0 }
  0x23   : > { %s4206_s11 = scalar_lea.hbm %s5555_s1, %s3469_s8  ;;  %s3878_s10 = scalar_lea.hbm %s5555_s1, 8192 }
  0x24   : > { %s3873_s24 = scalar_lea.hbm %s4206_s11, 4096  ;;  %p3879_p4 = scmp.lt.u32.totalorder %s4206_s11, %s5555_s1 }
  0x25   : > { %p3874_p1 = scmp.ne.s32.totalorder %s4206_s11, %s3873_s24  ;;  %p3880_p10 = scmp.lt.u32.totalorder %s3878_s10, %s3873_s24 }
  0x26   : > { %s5557_s26 = scalar_select %p4226_p3, 1, 0 }
  0x27   : > { %p3876_p6 = pnand %p4226_p3, %p3874_p1  ;;  %p3881_p12 = por %p3880_p10, %p3879_p4 }
  0x28   : > { %p3882_p5 = scmp.lt.u32.totalorder %s3873_s24, %s4206_s11 }
  0x29   : > { %p3877_p7 = pneg %p3876_p6 }
  0x2a   : > { %p3883_p13 = por %p3882_p5, %p3881_p12 }
  0x2c   : > { %p3884_p2 = pnand %p3883_p13, %p3877_p7 }
  0x2e   : > { %3887 = shalt.err (!%p3884_p2)
}
  0x2f   : > { %s3888_s5 = scalar_lea.vmem %s4210_s13, 4096  ;;  %s4083_s25 = smov [#allocation8]  }
  0x30   : > { %p3889_p1 = scmp.ne.s32.totalorder %s4210_s13, %s3888_s5  ;;  %s3893_s9 = sshll.u32 %s4083_s25, 4  ;;  %s3894_s9 = int_to_ptr.vmem [resolvable:$false] %s3893_s9 }
  0x31   : > { %s3895_s7 = scalar_lea.vmem %s3894_s9, 8192  ;;  %p3896_p9 = scmp.lt.s32.totalorder %s4210_s13, %s3894_s9 }
  0x32   : > { %p3891_p6 = pnand %p3889_p1, %p4226_p3  ;;  %p3897_p8 = scmp.lt.s32.totalorder %s3895_s7, %s3888_s5 }
  0x34   : > { %p3892_p11 = pneg %p3891_p6  ;;  %p3898_p4 = por %p3897_p8, %p3896_p9 }
  0x36   : > { %p3899_p10 = pnand %p3898_p4, %p3892_p11 }
  0x38   : > { %3902 = shalt.err (!%p3899_p10)
}
  0x39   : > { %s5488_s24 = smov 256   ;;  %s5493_s10 = smov 16  }
  0x3a   : > { %3491 = dma.hbm_to_vmem [thread:$0]  (!%p4216_p0), %s4206_s11, 4096, %s4210_s13, %s4220_s22, %s5488_s24, %s5488_s24, %s5493_s10  }
  0x3b   : > { %s4258_s25 = scalar_lea.hbm %s5477_s2, %s3469_s8  ;;  %s5558_s9 = sshll.u32 %s4197_s6, 8 }
  0x3c   : > { %s254_s7 = scalar_lea.vmem [#allocation10], %s5558_s9  ;;  %p3294_p2 = scmp.ge.s32.totalorder %s4081_s20, 1 }
  0x3d   : > { %s261_s1 = sshll.u32 %s254_s7, 4  ;;  %p288_p5 = scmp.lt.s32.totalorder %s4081_s20, 3  ;;  %s4262_s1 = int_to_ptr.vmem [resolvable:$true] %s261_s1 }
  0x3e   : > { %s4086_s29 = smov [#allocation5]   ;;  %p5560_p9 = scmp.eq.s32.totalorder %s4081_s20, 0 }
  0x3f   : > { %p4266_p8 = pnand %p3294_p2, %p288_p5  ;;  %s219_s17 = sshll.u32 %s4086_s29, 4  ;;  %s220_s17 = int_to_ptr.vmem [resolvable:$true] %s219_s17 }
  0x40   : > { %p5561_p11 = scmp.lt.s32.totalorder %s4081_s20, 2  ;;  %s3903_s12 = scalar_lea.hbm %s5475_s0, 512 }
  0x41   : > { %s5559_s23 = scalar_select %p4266_p8, 1, 0 }
  0x42   : > { %p4274_p12 = pnand %p5561_p11, %p5560_p9  ;;  %p3904_p13 = scmp.ne.s32.totalorder %s5475_s0, %s3903_s12 }
  0x43   : > { %p3910_p4 = scmp.lt.u32.totalorder %s3903_s12, %s5475_s0 }
  0x44   : > { %p3905_p7 = pneg %p4274_p12 }
  0x46   : > { %p3906_p1 = pnand %p3905_p7, %p3904_p13 }
  0x48   : > { %p3907_p6 = pneg %p3906_p1 }
  0x4a   : > { %p3912_p10 = pnand %p3910_p4, %p3907_p6 }
  0x4c   : > { %3915 = shalt.err (!%p3912_p10)
}
  0x4d   : > { %s3916_s24 = scalar_lea.vmem %s220_s17, 512  ;;  %s3923_s8 = scalar_lea.vmem %s220_s17, 1024 }
  0x4e   : > { %p3917_p2 = scmp.ne.s32.totalorder %s220_s17, %s3916_s24  ;;  %p3924_p11 = scmp.lt.s32.totalorder %s220_s17, %s220_s17 }
  0x4f   : > { %p3925_p8 = scmp.lt.s32.totalorder %s3923_s8, %s3916_s24 }
  0x50   : > { %p3919_p5 = pnand %p3917_p2, %p3905_p7 }
  0x51   : > { %p3926_p0 = por %p3925_p8, %p3924_p11 }
  0x52   : > { %p3920_p9 = pneg %p3919_p5 }
  0x54   : > { %p3927_p3 = pnand %p3926_p0, %p3920_p9 }
  0x56   : > { %3930 = shalt.err (!%p3927_p3)
}
  0x57   : > { %s4087_s13 = smov 64   ;;  %s4088_s12 = smov 4  }
  0x58   : > { %3488 = dma.hbm_to_vmem [thread:$0]  (!%p4274_p12), %s5475_s0, 512, %s220_s17, [#allocation6], %s4087_s13, %s4087_s13, %s4088_s12  }
  0x59   : > { %s3931_s29 = scalar_lea.hbm %s4258_s25, 4096  ;;  %p5563_p7 = scmp.ne.s32.totalorder %s5557_s26, 0 }
  0x5a   : > { %p3932_p13 = scmp.ne.s32.totalorder %s4258_s25, %s3931_s29  ;;  %s3936_s8 = scalar_lea.hbm %s5477_s2, 8192 }
  0x5b   : > { %p3937_p0 = scmp.lt.u32.totalorder %s4258_s25, %s5477_s2  ;;  %p3938_p3 = scmp.lt.u32.totalorder %s3936_s8, %s3931_s29 }
  0x5c   : > { %p3934_p1 = pnand %p3932_p13, %p5563_p7  ;;  %p3940_p4 = scmp.lt.u32.totalorder %s3931_s29, %s4258_s25 }
  0x5d   : > { %p3939_p6 = por %p3938_p3, %p3937_p0 }
  0x5e   : > { %p3935_p8 = pneg %p3934_p1 }
  0x5f   : > { %p3941_p10 = por %p3940_p4, %p3939_p6 }
  0x61   : > { %p3942_p2 = pnand %p3941_p10, %p3935_p8 }
  0x63   : > { %3945 = shalt.err (!%p3942_p2)
}
  0x64   : > { %s3946_s17 = scalar_lea.vmem %s4262_s1, 4096  ;;  %s4089_s11 = smov [#allocation10]  }
  0x65   : > { %p3947_p12 = scmp.ne.s32.totalorder %s4262_s1, %s3946_s17  ;;  %s3951_s13 = sshll.u32 %s4089_s11, 4  ;;  %s3952_s13 = int_to_ptr.vmem [resolvable:$false] %s3951_s13 }
  0x66   : > { %s3953_s20 = scalar_lea.vmem %s3952_s13, 8192  ;;  %p3954_p11 = scmp.lt.s32.totalorder %s4262_s1, %s3952_s13 }
  0x67   : > { %p3949_p5 = pnand %p3947_p12, %p5563_p7  ;;  %p3955_p13 = scmp.lt.s32.totalorder %s3953_s20, %s3946_s17 }
  0x69   : > { %p3950_p9 = pneg %p3949_p5  ;;  %p3956_p1 = por %p3955_p13, %p3954_p11 }
  0x6b   : > { %p3957_p0 = pnand %p3956_p1, %p3950_p9 }
  0x6d   : > { %3960 = shalt.err (!%p3957_p0)
}
  0x6e   : > { %p5564_p8 = scmp.ne.s32.totalorder %s5556_s14, 0  ;;  %s5565_s10 = smov 16  }
  0x6f   : > { %s5566_s12 = smov 256   ;;  %s3291_s5 = sshll.u32 %s4197_s6, 2 }
  0x70   : > { %3494 = dma.hbm_to_vmem [thread:$0]  (!%p5564_p8), %s4258_s25, 4096, %s4262_s1, %s4220_s22, %s5566_s12, %s5566_s12, %s5565_s10  }
  0x71   : > { %s3471_s9 = sshll.u32 %s4077_s19, 6  ;;  %s275_s8 = scalar_lea.vmem [#allocation11], %s3291_s5 }
  0x72   : > { %s4324_s7 = scalar_lea.hbm %s5478_s3, %s3471_s9  ;;  %s283_s17 = sshll.u32 %s275_s8, 4  ;;  %s284_s17 = int_to_ptr.vmem [resolvable:$true] %s283_s17 }
  0x73   : > { %s272_s11 = scalar_lea.sflag [#allocation12], %s4197_s6  ;;  %s3961_s13 = scalar_lea.hbm %s4324_s7, 64 }
  0x74   : > { %p3962_p3 = scmp.ne.s32.totalorder %s4324_s7, %s3961_s13  ;;  %s3966_s25 = scalar_lea.hbm %s5478_s3, 128 }
  0x75   : > { %p3967_p10 = scmp.lt.u32.totalorder %s4324_s7, %s5478_s3  ;;  %p3968_p2 = scmp.lt.u32.totalorder %s3966_s25, %s3961_s13 }
  0x76   : > { %p3964_p6 = pnand %p3962_p3, %p5563_p7  ;;  %p3970_p5 = scmp.lt.u32.totalorder %s3961_s13, %s4324_s7 }
  0x77   : > { %p3969_p12 = por %p3968_p2, %p3967_p10 }
  0x78   : > { %p3965_p4 = pneg %p3964_p6 }
  0x79   : > { %p3971_p9 = por %p3970_p5, %p3969_p12 }
  0x7b   : > { %p3972_p11 = pnand %p3971_p9, %p3965_p4 }
  0x7d   : > { %3975 = shalt.err (!%p3972_p11)
}
  0x7e   : > { %s3976_s6 = scalar_lea.vmem %s284_s17, 64  ;;  %s4090_s12 = smov [#allocation11]  }
  0x7f   : > { %p3977_p13 = scmp.ne.s32.totalorder %s284_s17, %s3976_s6  ;;  %s3981_s5 = sshll.u32 %s4090_s12, 4  ;;  %s3982_s5 = int_to_ptr.vmem [resolvable:$false] %s3981_s5 }
  0x80   : > { %s3983_s9 = scalar_lea.vmem %s3982_s5, 128  ;;  %p3984_p3 = scmp.lt.s32.totalorder %s284_s17, %s3982_s5 }
  0x81   : > { %p3979_p1 = pnand %p3977_p13, %p5563_p7  ;;  %p3985_p6 = scmp.lt.s32.totalorder %s3983_s9, %s3976_s6 }
  0x83   : > { %p3980_p0 = pneg %p3979_p1  ;;  %p3986_p8 = por %p3985_p6, %p3984_p3 }
  0x85   : > { %p3987_p2 = pnand %p3986_p8, %p3980_p0 }
  0x87   : > { %3990 = shalt.err (!%p3987_p2)
}
  0x88   : > { %p5567_p10 = scmp.ne.s32.totalorder %s5556_s14, 0  ;;  %p5568_p4 = scmp.ne.s32.totalorder %s5559_s23, 0 }
  0x8a   : > { %3497 = dma.hbm_to_vmem [thread:$0]  (!%p5567_p10), %s4324_s7, 64, %s284_s17, %s272_s11  }
  0x8b   : > { %292 = sbr.rel (%p5568_p4) target bundleno = 4700 (0x125c), region = 36 }
  0x92   : > { %p5569_p12 = scmp.eq.s32.totalorder %s4154_s21, 0 }
  0x94   : > { %4044 = dma.done.wait (%p5569_p12), [#allocation6], 512   ;;  %p5570_p7 = pmov %p5569_p12 }
  0x95   : > { %s303_s26 = sand.u32 1, %s4154_s21   ;;  %s4352_s29 = sand.u32 1, %s4065_s16  }
  0x96   : > { %4046 = vsyncadd (%p5570_p7), [#allocation6], 4294966784  ;;  %s3296_s24 = sshll.u32 %s4352_s29, 8  ;;  %s304_s14 = scalar_lea.sflag [#allocation9], %s303_s26 }
  0x97   : > { %s4355_s8 = scalar_lea.vmem [#allocation8], %s3296_s24  ;;  %p5571_p8 = scmp.ne.s32.totalorder %s5551_s27, 0 }
  0x99   : > { %4048 = dma.done.wait (%p5571_p8), %s304_s14, 8192  }
  0x9a   : > { %4050 = vsyncadd (%p5571_p8), %s304_s14, 4294959104  ;;  %s3298_s23 = sshll.u32 %s4352_s29, 2  ;;  %s4362_s7 = scalar_lea.vmem [#allocation10], %s3296_s24 }
  0x9b   : > { %s322_s17 = scalar_lea.sflag [#allocation12], %s4352_s29  ;;  %s4365_s21 = scalar_lea.vmem [#allocation11], %s3298_s23 }
  0x9c   : > { %4052 = dma.done.wait (%p5571_p8), %s322_s17, 64  }
  0x9d   : > { %4054 = vsyncadd (%p5571_p8), %s322_s17, 4294967232  ;;  %s3299_s11 = sshll.u32 %s4352_s29, 5  ;;  %v4091_v0 = vmov 0.0   ;;  %v4092_v1 = vmov 0   ;;  %v4375_v2 = vld [vmem:[%s4362_s7] sm:$0xff]  ;;  %v4378_v3 = vld [vmem:[%s4362_s7 + $0x8] sm:$0xff] }
  0x9e   : > { %380 = vst [vmem:[#allocation3] sm:$0xff] %v4091_v0  ;;  %381 = vst [vmem:[#allocation4] sm:$0xff] %v4091_v0  ;;  %660 = vmatprep.mubr.bf16.mxu0 %v4092_v1  ;;  %733 = vmatprep.mubr.bf16.mxu1 %v4092_v1  ;;  %v4381_v4 = vld [vmem:[%s4362_s7 + $0x10] sm:$0xff]  ;;  %v4384_v5 = vld [vmem:[%s4362_s7 + $0x18] sm:$0xff]  ;;  %s4551_s27 = scalar_lea.vmem [#allocation13], %s3299_s11  ;;  %p3336_p5 = scmp.ne.s32.totalorder %s4073_s18, 0 }
  0x9f   : > { %v4387_v6 = vld [vmem:[%s4362_s7 + $0x20] sm:$0xff]  ;;  %v4390_v7 = vld [vmem:[%s4362_s7 + $0x28] sm:$0xff]  ;;  %v4393_v8 = vld [vmem:[%s4362_s7 + $0x30] sm:$0xff] }
  0xa0   : > { %v4396_v9 = vld [vmem:[%s4362_s7 + $0x38] sm:$0xff]  ;;  %v4399_v10 = vld [vmem:[%s4362_s7 + $0x40] sm:$0xff]  ;;  %v4402_v11 = vld [vmem:[%s4362_s7 + $0x48] sm:$0xff] }
  0xa1   : > { %5572 = vst [vmem:[#allocation22_spill] sm:$0xff] %v4399_v10  ;;  %5573 = vst [vmem:[#allocation23_spill] sm:$0xff] %v4402_v11  ;;  %v4405_v12 = vld [vmem:[%s4362_s7 + $0x50] sm:$0xff]  ;;  %v4408_v13 = vld [vmem:[%s4362_s7 + $0x58] sm:$0xff] }
  0xa2   : > { %5574 = vst [vmem:[#allocation24_spill] sm:$0xff] %v4405_v12  ;;  %5575 = vst [vmem:[#allocation25_spill] sm:$0xff] %v4408_v13  ;;  %v4411_v14 = vld [vmem:[%s4362_s7 + $0x60] sm:$0xff]  ;;  %v4414_v15 = vld [vmem:[%s4362_s7 + $0x68] sm:$0xff] }
  0xa3   : > { %5576 = vst [vmem:[#allocation26_spill] sm:$0xff] %v4411_v14  ;;  %5577 = vst [vmem:[#allocation27_spill] sm:$0xff] %v4414_v15  ;;  %v4417_v16 = vld [vmem:[%s4362_s7 + $0x70] sm:$0xff]  ;;  %v4420_v17 = vld [vmem:[%s4362_s7 + $0x78] sm:$0xff] }
  0xa4   : > { %5578 = vst [vmem:[#allocation28_spill] sm:$0xff] %v4417_v16  ;;  %5579 = vst [vmem:[#allocation29_spill] sm:$0xff] %v4420_v17  ;;  %v4423_v18 = vld [vmem:[%s4362_s7 + $0x80] sm:$0xff]  ;;  %v4426_v19 = vld [vmem:[%s4362_s7 + $0x88] sm:$0xff] }
  0xa5   : > { %5580 = vst [vmem:[#allocation30_spill] sm:$0xff] %v4423_v18  ;;  %5581 = vst [vmem:[#allocation31_spill] sm:$0xff] %v4426_v19  ;;  %v4429_v20 = vld [vmem:[%s4362_s7 + $0x90] sm:$0xff]  ;;  %v4432_v21 = vld [vmem:[%s4362_s7 + $0x98] sm:$0xff] }
  0xa6   : > { %5582 = vst [vmem:[#allocation32_spill] sm:$0xff] %v4429_v20  ;;  %5583 = vst [vmem:[#allocation33_spill] sm:$0xff] %v4432_v21  ;;  %v4435_v22 = vld [vmem:[%s4362_s7 + $0xa0] sm:$0xff]  ;;  %v4438_v23 = vld [vmem:[%s4362_s7 + $0xa8] sm:$0xff] }
  0xa7   : > { %5584 = vst [vmem:[#allocation34_spill] sm:$0xff] %v4435_v22  ;;  %5585 = vst [vmem:[#allocation35_spill] sm:$0xff] %v4438_v23  ;;  %v4441_v24 = vld [vmem:[%s4362_s7 + $0xb0] sm:$0xff]  ;;  %v4444_v25 = vld [vmem:[%s4362_s7 + $0xb8] sm:$0xff] }
  0xa8   : > { %5586 = vst [vmem:[#allocation36_spill] sm:$0xff] %v4441_v24  ;;  %5587 = vst [vmem:[#allocation37_spill] sm:$0xff] %v4444_v25  ;;  %v4447_v26 = vld [vmem:[%s4362_s7 + $0xc0] sm:$0xff]  ;;  %v4450_v27 = vld [vmem:[%s4362_s7 + $0xc8] sm:$0xff] }
  0xa9   : > { %5588 = vst [vmem:[#allocation38_spill] sm:$0xff] %v4447_v26  ;;  %5589 = vst [vmem:[#allocation39_spill] sm:$0xff] %v4450_v27  ;;  %v4453_v28 = vld [vmem:[%s4362_s7 + $0xd0] sm:$0xff]  ;;  %v4456_v29 = vld [vmem:[%s4362_s7 + $0xd8] sm:$0xff] }
  0xaa   : > { %5590 = vst [vmem:[#allocation40_spill] sm:$0xff] %v4453_v28  ;;  %5591 = vst [vmem:[#allocation41_spill] sm:$0xff] %v4456_v29  ;;  %v4459_v30 = vld [vmem:[%s4362_s7 + $0xe0] sm:$0xff]  ;;  %v4462_v31 = vld [vmem:[%s4362_s7 + $0xe8] sm:$0xff] }
  0xab   : > { %5592 = vst [vmem:[#allocation42_spill] sm:$0xff] %v4459_v30  ;;  %5593 = vst [vmem:[#allocation43_spill] sm:$0xff] %v4462_v31  ;;  %v4465_v32 = vld [vmem:[%s4362_s7 + $0xf0] sm:$0xff]  ;;  %v4468_v33 = vld [vmem:[%s4362_s7 + $0xf8] sm:$0xff] }
  0xac   : > { %5594 = vst [vmem:[#allocation44_spill] sm:$0xff] %v4465_v32  ;;  %5595 = vst [vmem:[#allocation45_spill] sm:$0xff] %v4468_v33  ;;  %v3565_v34 = vld [vmem:[%s4355_s8 + $0x4] ss:$16 sps:$4 sm:$0xff]   ;;  %v3567_v35 = vld [vmem:[%s4355_s8 + $0xc] ss:$16 sps:$4 sm:$0xff]  }
  0xad   : > { %v3569_v36 = vld [vmem:[%s4355_s8] ss:$16 sps:$4 sm:$0xff]   ;;  %628 = vmatprep.subr.bf16.mxu0 %v3565_v34  ;;  %v3570_v37 = vld [vmem:[%s4355_s8 + $0x8] ss:$16 sps:$4 sm:$0xff]   ;;  %701 = vmatprep.subr.bf16.mxu1 %v3567_v35  ;;  %v3571_v38 = vld [vmem:[%s4355_s8 + $0x24] ss:$16 sps:$4 sm:$0xff]  }
  0xae   : > { %629 = vmatpush1.bf16.msra.mxu0 %v3569_v36  ;;  %702 = vmatpush1.bf16.msra.mxu1 %v3570_v37  ;;  %v3573_v39 = vld [vmem:[%s4355_s8 + $0x2c] ss:$16 sps:$4 sm:$0xff]   ;;  %v3575_v40 = vld [vmem:[%s4355_s8 + $0x20] ss:$16 sps:$4 sm:$0xff]   ;;  %v3576_v41 = vld [vmem:[%s4355_s8 + $0x28] ss:$16 sps:$4 sm:$0xff]  }
  0xaf   : > { %630 = vmatprep.subr.bf16.mxu0 %v3571_v38  ;;  %v3577_v42 = vld [vmem:[%s4355_s8 + $0x44] ss:$16 sps:$4 sm:$0xff]   ;;  %703 = vmatprep.subr.bf16.mxu1 %v3573_v39  ;;  %v3579_v43 = vld [vmem:[%s4355_s8 + $0x4c] ss:$16 sps:$4 sm:$0xff]   ;;  %v3581_v44 = vld [vmem:[%s4355_s8 + $0x40] ss:$16 sps:$4 sm:$0xff]   ;;  %v424_v39 = vlaneseq }
  0xb0   : > { %v3582_v45 = vld [vmem:[%s4355_s8 + $0x48] ss:$16 sps:$4 sm:$0xff]   ;;  %v3583_v46 = vld [vmem:[%s4355_s8 + $0x64] ss:$16 sps:$4 sm:$0xff]   ;;  %v3585_v47 = vld [vmem:[%s4355_s8 + $0x6c] ss:$16 sps:$4 sm:$0xff]  }
  0xb1   : > { %v3587_v48 = vld [vmem:[%s4355_s8 + $0x60] ss:$16 sps:$4 sm:$0xff]   ;;  %v3588_v49 = vld [vmem:[%s4355_s8 + $0x68] ss:$16 sps:$4 sm:$0xff]   ;;  %v3589_v50 = vld [vmem:[%s4355_s8 + $0x84] ss:$16 sps:$4 sm:$0xff]  }
  0xb2   : > { %631 = vmatpush1.bf16.msra.mxu0 %v3575_v40  ;;  %704 = vmatpush1.bf16.msra.mxu1 %v3576_v41  ;;  %v3591_v51 = vld [vmem:[%s4355_s8 + $0x8c] ss:$16 sps:$4 sm:$0xff]   ;;  %v3593_v52 = vld [vmem:[%s4355_s8 + $0x80] ss:$16 sps:$4 sm:$0xff]   ;;  %v3594_v53 = vld [vmem:[%s4355_s8 + $0x88] ss:$16 sps:$4 sm:$0xff]  }
  0xb3   : > { %632 = vmatprep.subr.bf16.mxu0 %v3577_v42  ;;  %705 = vmatprep.subr.bf16.mxu1 %v3579_v43  ;;  %v3595_v54 = vld [vmem:[%s4355_s8 + $0xa4] ss:$16 sps:$4 sm:$0xff]   ;;  %v3597_v55 = vld [vmem:[%s4355_s8 + $0xac] ss:$16 sps:$4 sm:$0xff]   ;;  %v3599_v56 = vld [vmem:[%s4355_s8 + $0xa0] ss:$16 sps:$4 sm:$0xff]  }
  0xb4   : > { %v3600_v57 = vld [vmem:[%s4355_s8 + $0xa8] ss:$16 sps:$4 sm:$0xff]   ;;  %v3601_v58 = vld [vmem:[%s4355_s8 + $0xc4] ss:$16 sps:$4 sm:$0xff]   ;;  %v3603_v59 = vld [vmem:[%s4355_s8 + $0xcc] ss:$16 sps:$4 sm:$0xff]  }
  0xb5   : > { %v3605_v60 = vld [vmem:[%s4355_s8 + $0xc0] ss:$16 sps:$4 sm:$0xff]   ;;  %v3606_v61 = vld [vmem:[%s4355_s8 + $0xc8] ss:$16 sps:$4 sm:$0xff]   ;;  %v3607_v62 = vld [vmem:[%s4355_s8 + $0xe4] ss:$16 sps:$4 sm:$0xff]  }
  0xb6   : > { %633 = vmatpush1.bf16.msra.mxu0 %v3581_v44  ;;  %706 = vmatpush1.bf16.msra.mxu1 %v3582_v45  ;;  %v3609_v63 = vld [vmem:[%s4355_s8 + $0xec] ss:$16 sps:$4 sm:$0xff]   ;;  %v3611_v0 = vld [vmem:[%s4355_s8 + $0xe0] ss:$16 sps:$4 sm:$0xff]   ;;  %v3612_v34 = vld [vmem:[%s4355_s8 + $0xe8] ss:$16 sps:$4 sm:$0xff]  }
  0xb7   : > { %634 = vmatprep.subr.bf16.mxu0 %v3583_v46  ;;  %707 = vmatprep.subr.bf16.mxu1 %v3585_v47  ;;  %v3613_v35 = vld [vmem:[#allocation5] sm:$0xff]   ;;  %v3614_v36 = vld [vmem:[#allocation5 + $0x8] sm:$0xff]   ;;  %v3615_v37 = vld [vmem:[#allocation5 + $0x10] sm:$0xff]   ;;  %v425_v40 = vshrl.u32 %v424_v39, 7 }
  0xb8   : > { %v3616_v38 = vld [vmem:[#allocation5 + $0x18] sm:$0xff]   ;;  %v422_v42 = vld [vmem:[%s4365_s21] sm:$0xf] }
  0xb9   : > { %v426_v41 = vsub.s32 0, %v425_v40  ;;  %v434_v43 = vsub.s32 2, %v425_v40  ;;  %v430_v44 = vsub.s32 1, %v425_v40  ;;  %v438_v45 = vsub.s32 3, %v425_v40 }
  0xba   : > { %635 = vmatpush1.bf16.msra.mxu0 %v3587_v48  ;;  %708 = vmatpush1.bf16.msra.mxu1 %v3588_v49 }
  0xbb   : > { %636 = vmatprep.subr.bf16.mxu0 %v3589_v50  ;;  %709 = vmatprep.subr.bf16.mxu1 %v3591_v51  ;;  %v4509_v46 = vrot.slane %v422_v42, %v426_v41  ;;  %v4511_v47 = vrot.slane %v422_v42, %v434_v43  ;;  %v4513_v48 = vrot.slane %v422_v42, %v430_v44 }
  0xbc   : > { %v4515_v49 = vrot.slane %v422_v42, %v438_v45 }
  0xbe   : > { %637 = vmatpush1.bf16.msra.mxu0 %v3593_v52  ;;  %710 = vmatpush1.bf16.msra.mxu1 %v3594_v53 }
  0xbf   : > { %638 = vmatprep.subr.bf16.mxu0 %v3595_v54  ;;  %711 = vmatprep.subr.bf16.mxu1 %v3597_v55 }
  0xc2   : > { %639 = vmatpush1.bf16.msra.mxu0 %v3599_v56  ;;  %712 = vmatpush1.bf16.msra.mxu1 %v3600_v57 }
  0xc3   : > { %640 = vmatprep.subr.bf16.mxu0 %v3601_v58  ;;  %713 = vmatprep.subr.bf16.mxu1 %v3603_v59 }
  0xc6   : > { %641 = vmatpush1.bf16.msra.mxu0 %v3605_v60  ;;  %714 = vmatpush1.bf16.msra.mxu1 %v3606_v61 }
  0xc7   : > { %642 = vmatprep.subr.bf16.mxu0 %v3607_v62  ;;  %715 = vmatprep.subr.bf16.mxu1 %v3609_v63 }
  0xca   : > { %643 = vmatpush1.bf16.msra.mxu0 %v3611_v0  ;;  %716 = vmatpush1.bf16.msra.mxu1 %v3612_v34 }
  0xcd   : > { %661 = vmatmul.mubr.bf16.vlgmr.msra.gmra.mrb[0].mxu0 %v3613_v35  ;;  %734 = vmatmul.mubr.bf16.vlgmr.msra.gmra.mrb[0].mxu1 %v3613_v35 }
  0xce   : > { %670 = vmatprep.mubr.bf16.mxu0 %v4092_v1  ;;  %743 = vmatprep.mubr.bf16.mxu1 %v4092_v1 }
  0xd5   : > { %671 = vmatmul.mubr.bf16.gmra.mrb[4].mxu0 %v3614_v36  ;;  %744 = vmatmul.mubr.bf16.gmra.mrb[4].mxu1 %v3614_v36 }
  0xd6   : > { %680 = vmatprep.mubr.bf16.mxu0 %v4092_v1  ;;  %753 = vmatprep.mubr.bf16.mxu1 %v4092_v1 }
  0xdd   : > { %681 = vmatmul.mubr.bf16.gmra.mrb[8].mxu0 %v3615_v37  ;;  %754 = vmatmul.mubr.bf16.gmra.mrb[8].mxu1 %v3615_v37 }
  0xde   : > { %690 = vmatprep.mubr.bf16.mxu0 %v4092_v1  ;;  %763 = vmatprep.mubr.bf16.mxu1 %v4092_v1 }
  0xe5   : > { %691 = vmatmul.mubr.bf16.gmra.mrb[12].mxu0 %v3616_v38  ;;  %764 = vmatmul.mubr.bf16.gmra.mrb[12].mxu1 %v3616_v38 }
 0x1a0   : > { %v662_v50 = vpop.f32.mrb[0].mxu0  ;;  %v735_v51 = vpop.f32.mrb[0].mxu1 }
 0x1a1   : > { %v663_v1 = vadd.f32 %v662_v50, %v4509_v46  ;;  %v664_v52 = vpop.f32.mrb[1].mxu0  ;;  %v736_v53 = vadd.f32 %v735_v51, %v4511_v47  ;;  %v737_v55 = vpop.f32.mrb[1].mxu1 }
 0x1a2   : > { %v665_v54 = vadd.f32 %v664_v52, %v4513_v48  ;;  %v666_v56 = vpop.f32.mrb[2].mxu0  ;;  %v738_v57 = vadd.f32 %v737_v55, %v4515_v49  ;;  %v739_v59 = vpop.f32.mrb[2].mxu1 }
 0x1a3   : > { %774 = vst [vmem:[#allocation2] sm:$0xff] %v663_v1  ;;  %v667_v58 = vadd.f32 %v666_v56, %v4509_v46  ;;  %v668_v60 = vpop.f32.mrb[3].mxu0  ;;  %776 = vst [vmem:[#allocation2 + $0x10] sm:$0xff] %v736_v53  ;;  %v740_v61 = vadd.f32 %v739_v59, %v4511_v47  ;;  %v741_v63 = vpop.f32.mrb[3].mxu1 }
 0x1a4   : > { %775 = vst [vmem:[#allocation2 + $0x8] sm:$0xff] %v665_v54  ;;  %v669_v62 = vadd.f32 %v668_v60, %v4513_v48  ;;  %777 = vst [vmem:[#allocation2 + $0x18] sm:$0xff] %v738_v57  ;;  %v742_v0 = vadd.f32 %v741_v63, %v4515_v49 }
 0x1a5   : > { %778 = vst [vmem:[#allocation2 + $0x20] sm:$0xff] %v667_v58  ;;  %780 = vst [vmem:[#allocation2 + $0x30] sm:$0xff] %v740_v61 }
 0x1a6   : > { %779 = vst [vmem:[#allocation2 + $0x28] sm:$0xff] %v669_v62  ;;  %781 = vst [vmem:[#allocation2 + $0x38] sm:$0xff] %v742_v0 }
 0x1a8   : > { %v672_v34 = vpop.f32.mrb[4].mxu0  ;;  %v745_v36 = vpop.f32.mrb[4].mxu1 }
 0x1a9   : > { %v673_v35 = vadd.f32 %v672_v34, %v4509_v46  ;;  %v674_v37 = vpop.f32.mrb[5].mxu0  ;;  %v746_v38 = vadd.f32 %v745_v36, %v4511_v47  ;;  %v747_v40 = vpop.f32.mrb[5].mxu1 }
 0x1aa   : > { %v675_v39 = vadd.f32 %v674_v37, %v4513_v48  ;;  %v676_v41 = vpop.f32.mrb[6].mxu0  ;;  %v748_v42 = vadd.f32 %v747_v40, %v4515_v49  ;;  %v749_v44 = vpop.f32.mrb[6].mxu1 }
 0x1ab   : > { %782 = vst [vmem:[#allocation2 + $0x40] sm:$0xff] %v673_v35  ;;  %v677_v43 = vadd.f32 %v676_v41, %v4509_v46  ;;  %v678_v45 = vpop.f32.mrb[7].mxu0  ;;  %784 = vst [vmem:[#allocation2 + $0x50] sm:$0xff] %v746_v38  ;;  %v750_v50 = vadd.f32 %v749_v44, %v4511_v47  ;;  %v751_v51 = vpop.f32.mrb[7].mxu1 }
 0x1ac   : > { %783 = vst [vmem:[#allocation2 + $0x48] sm:$0xff] %v675_v39  ;;  %v679_v1 = vadd.f32 %v678_v45, %v4513_v48  ;;  %785 = vst [vmem:[#allocation2 + $0x58] sm:$0xff] %v748_v42  ;;  %v752_v52 = vadd.f32 %v751_v51, %v4515_v49 }
 0x1ad   : > { %786 = vst [vmem:[#allocation2 + $0x60] sm:$0xff] %v677_v43  ;;  %788 = vst [vmem:[#allocation2 + $0x70] sm:$0xff] %v750_v50 }
 0x1ae   : > { %787 = vst [vmem:[#allocation2 + $0x68] sm:$0xff] %v679_v1  ;;  %789 = vst [vmem:[#allocation2 + $0x78] sm:$0xff] %v752_v52 }
 0x1b0   : > { %v682_v53 = vpop.f32.mrb[8].mxu0  ;;  %v755_v55 = vpop.f32.mrb[8].mxu1 }
 0x1b1   : > { %v683_v54 = vadd.f32 %v682_v53, %v4509_v46  ;;  %v684_v56 = vpop.f32.mrb[9].mxu0  ;;  %v756_v57 = vadd.f32 %v755_v55, %v4511_v47  ;;  %v757_v59 = vpop.f32.mrb[9].mxu1 }
 0x1b2   : > { %v685_v58 = vadd.f32 %v684_v56, %v4513_v48  ;;  %v686_v60 = vpop.f32.mrb[10].mxu0  ;;  %v758_v61 = vadd.f32 %v757_v59, %v4515_v49  ;;  %v759_v63 = vpop.f32.mrb[10].mxu1  ;;  %v4582_v59 = vcombine.low (!%p3336_p5), %v4387_v6, %v4393_v8 }
 0x1b3   : > { %790 = vst [vmem:[#allocation2 + $0x80] sm:$0xff] %v683_v54  ;;  %v687_v62 = vadd.f32 %v686_v60, %v4509_v46  ;;  %v688_v0 = vpop.f32.mrb[11].mxu0  ;;  %792 = vst [vmem:[#allocation2 + $0x90] sm:$0xff] %v756_v57  ;;  %v760_v34 = vadd.f32 %v759_v63, %v4511_v47  ;;  %v761_v36 = vpop.f32.mrb[11].mxu1  ;;  %v4573_v57 = vcombine.low (!%p3336_p5), %v4378_v3, %v4384_v5  ;;  %v5496_v63 = vmov (!%p3336_p5), 0  }
 0x1b4   : > { %791 = vst [vmem:[#allocation2 + $0x88] sm:$0xff] %v685_v58  ;;  %v689_v35 = vadd.f32 %v688_v0, %v4513_v48  ;;  %793 = vst [vmem:[#allocation2 + $0x98] sm:$0xff] %v758_v61  ;;  %v762_v37 = vadd.f32 %v761_v36, %v4515_v49  ;;  %v4577_v58 = vcombine.high (!%p3336_p5), %v4390_v7, %v4396_v9  ;;  %1044 = vmatprep.mubr.bf16.mxu0 (!%p3336_p5), %v5496_v63 }
 0x1b5   : > { %794 = vst [vmem:[#allocation2 + $0xa0] sm:$0xff] %v687_v62  ;;  %796 = vst [vmem:[#allocation2 + $0xb0] sm:$0xff] %v760_v34  ;;  %v4588_v60 = vcombine.high (!%p3336_p5), %v4399_v10, %v4405_v12  ;;  %v4593_v61 = vcombine.low (!%p3336_p5), %v4390_v7, %v4396_v9  ;;  %v4598_v62 = vcombine.high (!%p3336_p5), %v4402_v11, %v4408_v13  ;;  %1085 = vmatprep.mubr.bf16.mxu1 (!%p3336_p5), %v5496_v63  ;;  %v842_v63 = vld [vmem:[#allocation3] sm:$0xff] (!%p3336_p5) }
 0x1b6   : > { %795 = vst [vmem:[#allocation2 + $0xa8] sm:$0xff] %v689_v35  ;;  %797 = vst [vmem:[#allocation2 + $0xb8] sm:$0xff] %v762_v37  ;;  %v4604_v0 = vcombine.low (!%p3336_p5), %v4399_v10, %v4405_v12  ;;  %v4609_v34 = vcombine.high (!%p3336_p5), %v4411_v14, %v4417_v16  ;;  %v4614_v35 = vcombine.low (!%p3336_p5), %v4402_v11, %v4408_v13 }
 0x1b7   : > { %v4619_v36 = vcombine.high (!%p3336_p5), %v4414_v15, %v4420_v17  ;;  %v4625_v37 = vcombine.low (!%p3336_p5), %v4411_v14, %v4417_v16 }
 0x1b8   : > { %v692_v38 = vpop.f32.mrb[12].mxu0  ;;  %v765_v40 = vpop.f32.mrb[12].mxu1  ;;  %841 = sbr.rel (%p3336_p5) target bundleno = 2558 (0x9fe), region = 60 }
 0x1b9   : > { %v693_v39 = vadd.f32 %v692_v38, %v4509_v46  ;;  %v694_v41 = vpop.f32.mrb[13].mxu0  ;;  %v766_v42 = vadd.f32 %v765_v40, %v4511_v47  ;;  %v767_v44 = vpop.f32.mrb[13].mxu1  ;;  %v4630_v38 = vcombine.high (!%p3336_p5), %v4423_v18, %v4429_v20  ;;  %v4640_v40 = vcombine.high (!%p3336_p5), %v4426_v19, %v4432_v21 }
 0x1ba   : > { %v695_v43 = vadd.f32 %v694_v41, %v4513_v48  ;;  %v696_v45 = vpop.f32.mrb[14].mxu0  ;;  %v768_v50 = vadd.f32 %v767_v44, %v4515_v49  ;;  %v769_v51 = vpop.f32.mrb[14].mxu1  ;;  %v4645_v41 = vcombine.low (!%p3336_p5), %v4423_v18, %v4429_v20  ;;  %v4660_v44 = vcombine.high (!%p3336_p5), %v4438_v23, %v4444_v25  ;;  %v850_v18 = vld [vmem:[#allocation2 + $0x18] sm:$0xff] (!%p3336_p5) }
 0x1bb   : > { %798 = vst [vmem:[#allocation2 + $0xc0] sm:$0xff] %v693_v39  ;;  %v697_v1 = vadd.f32 %v696_v45, %v4509_v46  ;;  %v698_v52 = vpop.f32.mrb[15].mxu0  ;;  %800 = vst [vmem:[#allocation2 + $0xd0] sm:$0xff] %v766_v42  ;;  %v770_v53 = vadd.f32 %v769_v51, %v4511_v47  ;;  %v771_v55 = vpop.f32.mrb[15].mxu1  ;;  %v4556_v46 = vcombine.high (!%p3336_p5), %v4375_v2, %v4381_v4 }
 0x1bc   : > { %799 = vst [vmem:[#allocation2 + $0xc8] sm:$0xff] %v695_v43  ;;  %v699_v54 = vadd.f32 %v698_v52, %v4513_v48  ;;  %801 = vst [vmem:[#allocation2 + $0xd8] sm:$0xff] %v768_v50  ;;  %v772_v56 = vadd.f32 %v771_v55, %v4515_v49  ;;  %v4560_v47 = vcombine.low (!%p3336_p5), %v4375_v2, %v4381_v4 }
 0x1bd   : > { %802 = vst [vmem:[#allocation2 + $0xe0] sm:$0xff] %v697_v1  ;;  %804 = vst [vmem:[#allocation2 + $0xf0] sm:$0xff] %v770_v53  ;;  %v4564_v48 = vcombine.high (!%p3336_p5), %v4387_v6, %v4393_v8  ;;  %v4568_v49 = vcombine.high (!%p3336_p5), %v4378_v3, %v4384_v5  ;;  %1012 = vmatprep.subr.bf16.mxu0 (!%p3336_p5), %v4556_v46  ;;  %v4635_v39 = vcombine.low (!%p3336_p5), %v4414_v15, %v4420_v17  ;;  %v849_v17 = vld [vmem:[#allocation2 + $0x10] sm:$0xff] (!%p3336_p5) }
 0x1be   : > { %803 = vst [vmem:[#allocation2 + $0xe8] sm:$0xff] %v699_v54  ;;  %805 = vst [vmem:[#allocation2 + $0xf8] sm:$0xff] %v772_v56  ;;  %1013 = vmatpush1.bf16.msra.mxu0 (!%p3336_p5), %v4560_v47  ;;  %v4650_v42 = vcombine.high (!%p3336_p5), %v4435_v22, %v4441_v24  ;;  %v4655_v43 = vcombine.low (!%p3336_p5), %v4426_v19, %v4432_v21  ;;  %v4665_v45 = vcombine.low (!%p3336_p5), %v4435_v22, %v4441_v24 }
 0x1bf   : > { %1053 = vmatprep.subr.bf16.mxu1 %v4568_v49  ;;  %1014 = vmatprep.subr.bf16.mxu0 %v4564_v48  ;;  %v4670_v50 = vcombine.high %v4447_v26, %v4453_v28  ;;  %v4675_v1 = vcombine.low %v4438_v23, %v4444_v25  ;;  %v4680_v51 = vcombine.high %v4450_v27, %v4456_v29 }
 0x1c0   : > { %1054 = vmatpush1.bf16.msra.mxu1 %v4573_v57  ;;  %v4685_v52 = vcombine.low %v4447_v26, %v4453_v28  ;;  %v4690_v53 = vcombine.high %v4459_v30, %v4465_v32  ;;  %v4695_v54 = vcombine.low %v4450_v27, %v4456_v29  ;;  %v4700_v55 = vcombine.high %v4462_v31, %v4468_v33 }
 0x1c1   : > { %1055 = vmatprep.subr.bf16.mxu1 %v4577_v58  ;;  %v4705_v56 = vcombine.low %v4459_v30, %v4465_v32  ;;  %v4711_v27 = vcombine.low %v4462_v31, %v4468_v33  ;;  %v851_v29 = vpack.c.bf16 %v842_v63, %v842_v63  ;;  %v5596_v31 = vmov 0   ;;  %v848_v63 = vld [vmem:[#allocation2 + $0x8] sm:$0xff] }
 0x1c2   : > { %1015 = vmatpush1.bf16.msra.mxu0 %v4582_v59 }
 0x1c3   : > { %1016 = vmatprep.subr.bf16.mxu0 %v4588_v60 }
 0x1c4   : > { %1056 = vmatpush1.bf16.msra.mxu1 %v4593_v61 }
 0x1c5   : > { %1057 = vmatprep.subr.bf16.mxu1 %v4598_v62 }
 0x1c6   : > { %1017 = vmatpush1.bf16.msra.mxu0 %v4604_v0 }
 0x1c7   : > { %1018 = vmatprep.subr.bf16.mxu0 %v4609_v34 }
 0x1c8   : > { %1058 = vmatpush1.bf16.msra.mxu1 %v4614_v35 }
 0x1c9   : > { %1059 = vmatprep.subr.bf16.mxu1 %v4619_v36 }
 0x1ca   : > { %1019 = vmatpush1.bf16.msra.mxu0 %v4625_v37 }
 0x1cb   : > { %1020 = vmatprep.subr.bf16.mxu0 %v4630_v38 }
 0x1cc   : > { %1060 = vmatpush1.bf16.msra.mxu1 %v4635_v39 }
 0x1cd   : > { %1061 = vmatprep.subr.bf16.mxu1 %v4640_v40 }
 0x1ce   : > { %1021 = vmatpush1.bf16.msra.mxu0 %v4645_v41 }
 0x1cf   : > { %1022 = vmatprep.subr.bf16.mxu0 %v4650_v42 }
 0x1d0   : > { %1062 = vmatpush1.bf16.msra.mxu1 %v4655_v43 }
 0x1d1   : > { %1063 = vmatprep.subr.bf16.mxu1 %v4660_v44 }
 0x1d2   : > { %1023 = vmatpush1.bf16.msra.mxu0 %v4665_v45 }
 0x1d3   : > { %1024 = vmatprep.subr.bf16.mxu0 %v4670_v50 }
 0x1d4   : > { %1064 = vmatpush1.bf16.msra.mxu1 %v4675_v1 }
 0x1d5   : > { %1065 = vmatprep.subr.bf16.mxu1 %v4680_v51 }
 0x1d6   : > { %1025 = vmatpush1.bf16.msra.mxu0 %v4685_v52 }
 0x1d7   : > { %1026 = vmatprep.subr.bf16.mxu0 %v4690_v53 }
 0x1d8   : > { %1066 = vmatpush1.bf16.msra.mxu1 %v4695_v54 }
 0x1d9   : > { %1067 = vmatprep.subr.bf16.mxu1 %v4700_v55 }
 0x1da   : > { %1027 = vmatpush1.bf16.msra.mxu0 %v4705_v56 }
 0x1db   : > { %1131 = vmatprep.subr.bf16.mxu0 %v4556_v46 }
 0x1dc   : > { %1068 = vmatpush1.bf16.msra.mxu1 %v4711_v27 }
 0x1dd   : > { %1172 = vmatprep.subr.bf16.mxu1 %v4568_v49  ;;  %1045 = vmatmul.mubr.bf16.vlgmr.msra.gmra.mrb[0].mxu0 %v851_v29 }
 0x1de   : > { %1132 = vmatpush1.bf16.msra.mxu0 %v4560_v47  ;;  %1163 = vmatprep.mubr.bf16.mxu0 %v5596_v31 }
 0x1df   : > { %1086 = vmatmul.mubr.bf16.vlgmr.msra.gmra.mrb[0].mxu1 %v851_v29  ;;  %1133 = vmatprep.subr.bf16.mxu0 %v4564_v48  ;;  %v847_v29 = vld [vmem:[#allocation2] sm:$0xff] }
 0x1e0   : > { %1173 = vmatpush1.bf16.msra.mxu1 %v4573_v57  ;;  %1204 = vmatprep.mubr.bf16.mxu1 %v5596_v31 }
 0x1e1   : > { %1174 = vmatprep.subr.bf16.mxu1 %v4577_v58 }
 0x1e2   : > { %1134 = vmatpush1.bf16.msra.mxu0 %v4582_v59 }
 0x1e3   : > { %1135 = vmatprep.subr.bf16.mxu0 %v4588_v60 }
 0x1e4   : > { %1175 = vmatpush1.bf16.msra.mxu1 %v4593_v61 }
 0x1e5   : > { %1176 = vmatprep.subr.bf16.mxu1 %v4598_v62 }
 0x1e6   : > { %1136 = vmatpush1.bf16.msra.mxu0 %v4604_v0 }
 0x1e7   : > { %1137 = vmatprep.subr.bf16.mxu0 %v4609_v34 }
 0x1e8   : > { %1177 = vmatpush1.bf16.msra.mxu1 %v4614_v35 }
 0x1e9   : > { %1178 = vmatprep.subr.bf16.mxu1 %v4619_v36 }
 0x1ea   : > { %1138 = vmatpush1.bf16.msra.mxu0 %v4625_v37 }
 0x1eb   : > { %1139 = vmatprep.subr.bf16.mxu0 %v4630_v38 }
 0x1ec   : > { %1179 = vmatpush1.bf16.msra.mxu1 %v4635_v39 }
 0x1ed   : > { %1180 = vmatprep.subr.bf16.mxu1 %v4640_v40 }
 0x1ee   : > { %1140 = vmatpush1.bf16.msra.mxu0 %v4645_v41 }
 0x1ef   : > { %1141 = vmatprep.subr.bf16.mxu0 %v4650_v42 }
 0x1f0   : > { %1181 = vmatpush1.bf16.msra.mxu1 %v4655_v43 }
 0x1f1   : > { %1182 = vmatprep.subr.bf16.mxu1 %v4660_v44 }
 0x1f2   : > { %1142 = vmatpush1.bf16.msra.mxu0 %v4665_v45 }
 0x1f3   : > { %1143 = vmatprep.subr.bf16.mxu0 %v4670_v50 }
 0x1f4   : > { %1183 = vmatpush1.bf16.msra.mxu1 %v4675_v1 }
 0x1f5   : > { %1184 = vmatprep.subr.bf16.mxu1 %v4680_v51 }
 0x1f6   : > { %1144 = vmatpush1.bf16.msra.mxu0 %v4685_v52 }
 0x1f7   : > { %1145 = vmatprep.subr.bf16.mxu0 %v4690_v53 }
 0x1f8   : > { %1185 = vmatpush1.bf16.msra.mxu1 %v4695_v54 }
 0x1f9   : > { %1186 = vmatprep.subr.bf16.mxu1 %v4700_v55 }
 0x1fa   : > { %1146 = vmatpush1.bf16.msra.mxu0 %v4705_v56 }
 0x1fb   : > { %1251 = vmatprep.subr.bf16.mxu0 %v4556_v46 }
 0x1fc   : > { %1187 = vmatpush1.bf16.msra.mxu1 %v4711_v27 }
 0x1fd   : > { %1292 = vmatprep.subr.bf16.mxu1 %v4568_v49 }
 0x2b0   : > { %v1046_v33 = vpop.f32.mrb[0].mxu0 }
 0x2b1   : > { %v1094_v30 = vadd.f32 %v1046_v33, %v847_v29  ;;  %v1048_v32 = vpop.f32.mrb[1].mxu0 }
 0x2b2   : > { %v1087_v26 = vpop.f32.mrb[0].mxu1  ;;  %v1095_v28 = vadd.f32 %v1048_v32, %v848_v63  ;;  %v1050_v23 = vpop.f32.mrb[2].mxu0 }
 0x2b3   : > { %v1089_v25 = vpop.f32.mrb[1].mxu1  ;;  %v3369_v22 = vmul.f32 -1.442695, %v1094_v30  ;;  %v1051_v24 = vpop.f32.mrb[3].mxu0  ;;  %v1096_v16 = vadd.f32 %v1087_v26, %v849_v17  ;;  %v1127_v17 = vld [vmem:[#allocation2 + $0x20] sm:$0xff]  ;;  %v1128_v26 = vld [vmem:[#allocation2 + $0x28] sm:$0xff] }
 0x2b4   : > { %v1091_v19 = vpop.f32.mrb[2].mxu1  ;;  %v3370_v21 = vmul.f32 -1.442695, %v1095_v28  ;;  %v1097_v15 = vadd.f32 %v1089_v25, %v850_v18  ;;  %v843_v24 = vld [vmem:[#allocation4] sm:$0xff] }
 0x2b5   : > { %v1092_v20 = vpop.f32.mrb[3].mxu1  ;;  %3617 = vpow2.f32 %v3369_v22 }
 0x2b6   : > { %3619 = vpow2.f32 %v3370_v21  ;;  %v3371_v14 = vmul.f32 -1.442695, %v1097_v15 }
 0x2b8   : > { %3621 = vpow2.f32 %v3371_v14 }
 0x2b9   : > { %3623 = vtanh.f32 %v1096_v16 }
 0x2bf   : > { %v3618_v11 = vpop.eup %3617 }
 0x2c0   : > { %v3620_v33 = vpop.eup %3619  ;;  %v1101_v29 = vadd.f32 1.0, %v3618_v11 }
 0x2c1   : > { %v1107_v32 = vadd.f32 1.0, %v3620_v33 }
 0x2c2   : > { %3625 = vrcp.f32 %v1101_v29  ;;  %v3622_v23 = vpop.eup %3621 }
 0x2c3   : > { %3627 = vrcp.f32 %v1107_v32  ;;  %v3624_v19 = vpop.eup %3623  ;;  %v1114_v20 = vadd.f32 1.0, %v3622_v23 }
 0x2c5   : > { %3629 = vrcp.f32 %v1114_v20 }
 0x2cc   : > { %v3626_v28 = vpop.eup %3625 }
 0x2cd   : > { %v3628_v22 = vpop.eup %3627  ;;  %v1118_v21 = vmul.f32 %v3626_v28, %v3624_v19 }
 0x2ce   : > { %v1117_v18 = vmul.f32 %v3628_v22, %v843_v24 }
 0x2cf   : > { %v3630_v14 = vpop.eup %3629 }
 0x2d0   : > { %v4752_v25 = vadd.f32 %v1118_v21, %v1117_v18  ;;  %v1130_v18 = vld [vmem:[#allocation2 + $0x38] sm:$0xff] }
 0x2d2   : > { %3631 = vtanh.f32 %v4752_v25 }
 0x2dc   : > { %v3632_v11 = vpop.eup %3631 }
 0x2dd   : > { %v1121_v15 = vmul.f32 %v3632_v11, %v3630_v14  ;;  %v1129_v11 = vld [vmem:[#allocation2 + $0x30] sm:$0xff] }
 0x2df   : > { %v1122_v16 = vpack.c.bf16 %v1121_v15, %v1121_v15 }
 0x2e1   : > { %1123 = vst [vmem:[%s4551_s27] sm:$0xf] %v1122_v16  ;;  %1164 = vmatmul.mubr.bf16.vlgmr.msra.gmra.mrb[4].mxu0 %v1122_v16  ;;  %1205 = vmatmul.mubr.bf16.vlgmr.msra.gmra.mrb[4].mxu1 %v1122_v16 }
 0x2e2   : > { %1252 = vmatpush1.bf16.msra.mxu0 %v4560_v47  ;;  %1293 = vmatpush1.bf16.msra.mxu1 %v4573_v57 }
 0x2e3   : > { %1253 = vmatprep.subr.bf16.mxu0 %v4564_v48  ;;  %1294 = vmatprep.subr.bf16.mxu1 %v4577_v58 }
 0x2e4   : > { %1283 = vmatprep.mubr.bf16.mxu0 %v5596_v31  ;;  %1324 = vmatprep.mubr.bf16.mxu1 %v5596_v31 }
 0x2e6   : > { %1254 = vmatpush1.bf16.msra.mxu0 %v4582_v59  ;;  %1295 = vmatpush1.bf16.msra.mxu1 %v4593_v61 }
 0x2e7   : > { %1255 = vmatprep.subr.bf16.mxu0 %v4588_v60  ;;  %1296 = vmatprep.subr.bf16.mxu1 %v4598_v62 }
 0x2ea   : > { %1256 = vmatpush1.bf16.msra.mxu0 %v4604_v0  ;;  %1297 = vmatpush1.bf16.msra.mxu1 %v4614_v35 }
 0x2eb   : > { %1257 = vmatprep.subr.bf16.mxu0 %v4609_v34  ;;  %1298 = vmatprep.subr.bf16.mxu1 %v4619_v36 }
 0x2ee   : > { %1258 = vmatpush1.bf16.msra.mxu0 %v4625_v37  ;;  %1299 = vmatpush1.bf16.msra.mxu1 %v4635_v39 }
 0x2ef   : > { %1259 = vmatprep.subr.bf16.mxu0 %v4630_v38  ;;  %1300 = vmatprep.subr.bf16.mxu1 %v4640_v40 }
 0x2f2   : > { %1260 = vmatpush1.bf16.msra.mxu0 %v4645_v41  ;;  %1301 = vmatpush1.bf16.msra.mxu1 %v4655_v43 }
 0x2f3   : > { %1261 = vmatprep.subr.bf16.mxu0 %v4650_v42  ;;  %1302 = vmatprep.subr.bf16.mxu1 %v4660_v44 }
 0x2f6   : > { %1262 = vmatpush1.bf16.msra.mxu0 %v4665_v45  ;;  %1303 = vmatpush1.bf16.msra.mxu1 %v4675_v1 }
 0x2f7   : > { %1263 = vmatprep.subr.bf16.mxu0 %v4670_v50  ;;  %1304 = vmatprep.subr.bf16.mxu1 %v4680_v51 }
 0x2fa   : > { %1264 = vmatpush1.bf16.msra.mxu0 %v4685_v52  ;;  %1305 = vmatpush1.bf16.msra.mxu1 %v4695_v54 }
 0x2fb   : > { %1265 = vmatprep.subr.bf16.mxu0 %v4690_v53  ;;  %1306 = vmatprep.subr.bf16.mxu1 %v4700_v55 }
 0x2fe   : > { %1266 = vmatpush1.bf16.msra.mxu0 %v4705_v56  ;;  %1307 = vmatpush1.bf16.msra.mxu1 %v4711_v27 }
 0x2ff   : > { %1371 = vmatprep.subr.bf16.mxu0 %v4556_v46  ;;  %1412 = vmatprep.subr.bf16.mxu1 %v4568_v49 }
 0x3b4   : > { %v1165_v30 = vpop.f32.mrb[4].mxu0  ;;  %v1206_v63 = vpop.f32.mrb[4].mxu1 }
 0x3b5   : > { %v1213_v33 = vadd.f32 %v1165_v30, %v1127_v17  ;;  %v1167_v29 = vpop.f32.mrb[5].mxu0  ;;  %v1208_v32 = vpop.f32.mrb[5].mxu1  ;;  %v1215_v16 = vadd.f32 %v1206_v63, %v1129_v11 }
 0x3b6   : > { %v1214_v23 = vadd.f32 %v1167_v29, %v1128_v26  ;;  %v1169_v19 = vpop.f32.mrb[6].mxu0  ;;  %v1210_v24 = vpop.f32.mrb[6].mxu1  ;;  %v1216_v14 = vadd.f32 %v1208_v32, %v1130_v18 }
 0x3b7   : > { %v3372_v28 = vmul.f32 -1.442695, %v1213_v33  ;;  %v1170_v20 = vpop.f32.mrb[7].mxu0  ;;  %v1211_v22 = vpop.f32.mrb[7].mxu1 }
 0x3b8   : > { %v3373_v21 = vmul.f32 -1.442695, %v1214_v23  ;;  %v3374_v15 = vmul.f32 -1.442695, %v1216_v14 }
 0x3b9   : > { %3633 = vpow2.f32 %v3372_v28 }
 0x3ba   : > { %3635 = vpow2.f32 %v3373_v21 }
 0x3bb   : > { %3637 = vpow2.f32 %v3374_v15 }
 0x3bc   : > { %3639 = vtanh.f32 %v1215_v16 }
 0x3c3   : > { %v3634_v13 = vpop.eup %3633 }
 0x3c4   : > { %v3636_v10 = vpop.eup %3635  ;;  %v1220_v12 = vadd.f32 1.0, %v3634_v13 }
 0x3c5   : > { %v1226_v17 = vadd.f32 1.0, %v3636_v10  ;;  %v3638_v26 = vpop.eup %3637 }
 0x3c6   : > { %3641 = vrcp.f32 %v1220_v12  ;;  %v3640_v30 = vpop.eup %3639  ;;  %v1233_v19 = vadd.f32 1.0, %v3638_v26  ;;  %v1247_v12 = vld [vmem:[#allocation2 + $0x40] sm:$0xff] }
 0x3c7   : > { %3643 = vrcp.f32 %v1226_v17 }
 0x3c8   : > { %3645 = vrcp.f32 %v1233_v19  ;;  %v1249_v19 = vld [vmem:[#allocation2 + $0x50] sm:$0xff] }
 0x3d0   : > { %v3642_v33 = vpop.eup %3641 }
 0x3d1   : > { %v3644_v29 = vpop.eup %3643  ;;  %v1237_v23 = vmul.f32 %v3642_v33, %v3640_v30 }
 0x3d2   : > { %v1236_v32 = vmul.f32 %v3644_v29, %v4752_v25  ;;  %v3646_v13 = vpop.eup %3645  ;;  %v1248_v25 = vld [vmem:[#allocation2 + $0x48] sm:$0xff]  ;;  %v1250_v29 = vld [vmem:[#allocation2 + $0x58] sm:$0xff] }
 0x3d4   : > { %v4791_v24 = vadd.f32 %v1237_v23, %v1236_v32 }
 0x3d6   : > { %3647 = vtanh.f32 %v4791_v24 }
 0x3e0   : > { %v3648_v63 = vpop.eup %3647 }
 0x3e1   : > { %v1240_v28 = vmul.f32 %v3648_v63, %v3646_v13 }
 0x3e3   : > { %v1241_v10 = vpack.c.bf16 %v1240_v28, %v1240_v28 }
 0x3e5   : > { %3375 = vst [vmem:[%s4551_s27 + $0x4] sm:$0xf] %v1241_v10  ;;  %1284 = vmatmul.mubr.bf16.vlgmr.msra.gmra.mrb[8].mxu0 %v1241_v10  ;;  %1325 = vmatmul.mubr.bf16.vlgmr.msra.gmra.mrb[8].mxu1 %v1241_v10 }
 0x3e6   : > { %1372 = vmatpush1.bf16.msra.mxu0 %v4560_v47  ;;  %1413 = vmatpush1.bf16.msra.mxu1 %v4573_v57 }
 0x3e7   : > { %1373 = vmatprep.subr.bf16.mxu0 %v4564_v48  ;;  %1414 = vmatprep.subr.bf16.mxu1 %v4577_v58 }
 0x3e8   : > { %1403 = vmatprep.mubr.bf16.mxu0 %v5596_v31  ;;  %1444 = vmatprep.mubr.bf16.mxu1 %v5596_v31 }
 0x3ea   : > { %1374 = vmatpush1.bf16.msra.mxu0 %v4582_v59  ;;  %1415 = vmatpush1.bf16.msra.mxu1 %v4593_v61 }
 0x3eb   : > { %1375 = vmatprep.subr.bf16.mxu0 %v4588_v60  ;;  %1416 = vmatprep.subr.bf16.mxu1 %v4598_v62 }
 0x3ee   : > { %1376 = vmatpush1.bf16.msra.mxu0 %v4604_v0  ;;  %1417 = vmatpush1.bf16.msra.mxu1 %v4614_v35 }
 0x3ef   : > { %1377 = vmatprep.subr.bf16.mxu0 %v4609_v34  ;;  %1418 = vmatprep.subr.bf16.mxu1 %v4619_v36 }
 0x3f2   : > { %1378 = vmatpush1.bf16.msra.mxu0 %v4625_v37  ;;  %1419 = vmatpush1.bf16.msra.mxu1 %v4635_v39 }
 0x3f3   : > { %1379 = vmatprep.subr.bf16.mxu0 %v4630_v38  ;;  %1420 = vmatprep.subr.bf16.mxu1 %v4640_v40 }
 0x3f6   : > { %1380 = vmatpush1.bf16.msra.mxu0 %v4645_v41  ;;  %1421 = vmatpush1.bf16.msra.mxu1 %v4655_v43 }
 0x3f7   : > { %1381 = vmatprep.subr.bf16.mxu0 %v4650_v42  ;;  %1422 = vmatprep.subr.bf16.mxu1 %v4660_v44 }
 0x3fa   : > { %1382 = vmatpush1.bf16.msra.mxu0 %v4665_v45  ;;  %1423 = vmatpush1.bf16.msra.mxu1 %v4675_v1 }
 0x3fb   : > { %1383 = vmatprep.subr.bf16.mxu0 %v4670_v50  ;;  %1424 = vmatprep.subr.bf16.mxu1 %v4680_v51 }
 0x3fe   : > { %1384 = vmatpush1.bf16.msra.mxu0 %v4685_v52  ;;  %1425 = vmatpush1.bf16.msra.mxu1 %v4695_v54 }
 0x3ff   : > { %1385 = vmatprep.subr.bf16.mxu0 %v4690_v53  ;;  %1426 = vmatprep.subr.bf16.mxu1 %v4700_v55 }
 0x402   : > { %1386 = vmatpush1.bf16.msra.mxu0 %v4705_v56  ;;  %1427 = vmatpush1.bf16.msra.mxu1 %v4711_v27 }
 0x403   : > { %1491 = vmatprep.subr.bf16.mxu0 %v4556_v46  ;;  %1532 = vmatprep.subr.bf16.mxu1 %v4568_v49 }
 0x4b8   : > { %v1285_v20 = vpop.f32.mrb[8].mxu0  ;;  %v1326_v22 = vpop.f32.mrb[8].mxu1 }
 0x4b9   : > { %v1333_v21 = vadd.f32 %v1285_v20, %v1247_v12  ;;  %v1287_v18 = vpop.f32.mrb[9].mxu0  ;;  %v1328_v14 = vpop.f32.mrb[9].mxu1  ;;  %v1335_v13 = vadd.f32 %v1326_v22, %v1249_v19 }
 0x4ba   : > { %v1334_v11 = vadd.f32 %v1287_v18, %v1248_v25  ;;  %v1289_v15 = vpop.f32.mrb[10].mxu0  ;;  %v1330_v16 = vpop.f32.mrb[10].mxu1  ;;  %v1336_v23 = vadd.f32 %v1328_v14, %v1250_v29 }
 0x4bb   : > { %v3376_v17 = vmul.f32 -1.442695, %v1333_v21  ;;  %v1290_v26 = vpop.f32.mrb[11].mxu0  ;;  %v1331_v30 = vpop.f32.mrb[11].mxu1 }
 0x4bc   : > { %v3377_v33 = vmul.f32 -1.442695, %v1334_v11  ;;  %v3378_v32 = vmul.f32 -1.442695, %v1336_v23 }
 0x4bd   : > { %3649 = vpow2.f32 %v3376_v17 }
 0x4be   : > { %3651 = vpow2.f32 %v3377_v33  ;;  %v1368_v33 = vld [vmem:[#allocation2 + $0x68] sm:$0xff] }
 0x4bf   : > { %3653 = vpow2.f32 %v3378_v32 }
 0x4c0   : > { %3655 = vtanh.f32 %v1335_v13 }
 0x4c7   : > { %v3650_v63 = vpop.eup %3649 }
 0x4c8   : > { %v3652_v28 = vpop.eup %3651  ;;  %v1340_v10 = vadd.f32 1.0, %v3650_v63 }
 0x4c9   : > { %v1346_v12 = vadd.f32 1.0, %v3652_v28  ;;  %v3654_v25 = vpop.eup %3653 }
 0x4ca   : > { %3657 = vrcp.f32 %v1340_v10  ;;  %v3656_v20 = vpop.eup %3655  ;;  %v1353_v15 = vadd.f32 1.0, %v3654_v25 }
 0x4cb   : > { %3659 = vrcp.f32 %v1346_v12 }
 0x4cc   : > { %3661 = vrcp.f32 %v1353_v15  ;;  %v1369_v15 = vld [vmem:[#allocation2 + $0x70] sm:$0xff] }
 0x4d4   : > { %v3658_v21 = vpop.eup %3657 }
 0x4d5   : > { %v3660_v18 = vpop.eup %3659  ;;  %v1357_v11 = vmul.f32 %v3658_v21, %v3656_v20 }
 0x4d6   : > { %v1356_v14 = vmul.f32 %v3660_v18, %v4791_v24  ;;  %v3662_v22 = vpop.eup %3661  ;;  %v1367_v24 = vld [vmem:[#allocation2 + $0x60] sm:$0xff]  ;;  %v1370_v18 = vld [vmem:[#allocation2 + $0x78] sm:$0xff] }
 0x4d8   : > { %v4830_v16 = vadd.f32 %v1357_v11, %v1356_v14 }
 0x4da   : > { %3663 = vtanh.f32 %v4830_v16 }
 0x4e4   : > { %v3664_v17 = vpop.eup %3663 }
 0x4e5   : > { %v1360_v26 = vmul.f32 %v3664_v17, %v3662_v22 }
 0x4e7   : > { %v1361_v30 = vpack.c.bf16 %v1360_v26, %v1360_v26 }
 0x4e9   : > { %3379 = vst [vmem:[%s4551_s27 + $0x8] sm:$0xf] %v1361_v30  ;;  %1404 = vmatmul.mubr.bf16.vlgmr.msra.gmra.mrb[12].mxu0 %v1361_v30  ;;  %1445 = vmatmul.mubr.bf16.vlgmr.msra.gmra.mrb[12].mxu1 %v1361_v30 }
 0x4ea   : > { %1492 = vmatpush1.bf16.msra.mxu0 %v4560_v47  ;;  %1533 = vmatpush1.bf16.msra.mxu1 %v4573_v57 }
 0x4eb   : > { %1493 = vmatprep.subr.bf16.mxu0 %v4564_v48  ;;  %1534 = vmatprep.subr.bf16.mxu1 %v4577_v58 }
 0x4ec   : > { %1523 = vmatprep.mubr.bf16.mxu0 %v5596_v31  ;;  %1564 = vmatprep.mubr.bf16.mxu1 %v5596_v31 }
 0x4ee   : > { %1494 = vmatpush1.bf16.msra.mxu0 %v4582_v59  ;;  %1535 = vmatpush1.bf16.msra.mxu1 %v4593_v61 }
 0x4ef   : > { %1495 = vmatprep.subr.bf16.mxu0 %v4588_v60  ;;  %1536 = vmatprep.subr.bf16.mxu1 %v4598_v62 }
 0x4f2   : > { %1496 = vmatpush1.bf16.msra.mxu0 %v4604_v0  ;;  %1537 = vmatpush1.bf16.msra.mxu1 %v4614_v35 }
 0x4f3   : > { %1497 = vmatprep.subr.bf16.mxu0 %v4609_v34  ;;  %1538 = vmatprep.subr.bf16.mxu1 %v4619_v36 }
 0x4f6   : > { %1498 = vmatpush1.bf16.msra.mxu0 %v4625_v37  ;;  %1539 = vmatpush1.bf16.msra.mxu1 %v4635_v39 }
 0x4f7   : > { %1499 = vmatprep.subr.bf16.mxu0 %v4630_v38  ;;  %1540 = vmatprep.subr.bf16.mxu1 %v4640_v40 }
 0x4fa   : > { %1500 = vmatpush1.bf16.msra.mxu0 %v4645_v41  ;;  %1541 = vmatpush1.bf16.msra.mxu1 %v4655_v43 }
 0x4fb   : > { %1501 = vmatprep.subr.bf16.mxu0 %v4650_v42  ;;  %1542 = vmatprep.subr.bf16.mxu1 %v4660_v44 }
 0x4fe   : > { %1502 = vmatpush1.bf16.msra.mxu0 %v4665_v45  ;;  %1543 = vmatpush1.bf16.msra.mxu1 %v4675_v1 }
 0x4ff   : > { %1503 = vmatprep.subr.bf16.mxu0 %v4670_v50  ;;  %1544 = vmatprep.subr.bf16.mxu1 %v4680_v51 }
 0x502   : > { %1504 = vmatpush1.bf16.msra.mxu0 %v4685_v52  ;;  %1545 = vmatpush1.bf16.msra.mxu1 %v4695_v54 }
 0x503   : > { %1505 = vmatprep.subr.bf16.mxu0 %v4690_v53  ;;  %1546 = vmatprep.subr.bf16.mxu1 %v4700_v55 }
 0x506   : > { %1506 = vmatpush1.bf16.msra.mxu0 %v4705_v56  ;;  %1547 = vmatpush1.bf16.msra.mxu1 %v4711_v27 }
 0x507   : > { %1611 = vmatprep.subr.bf16.mxu0 %v4556_v46  ;;  %1652 = vmatprep.subr.bf16.mxu1 %v4568_v49 }
 0x5bc   : > { %v1405_v29 = vpop.f32.mrb[12].mxu0  ;;  %v1446_v23 = vpop.f32.mrb[12].mxu1 }
 0x5bd   : > { %v1453_v19 = vadd.f32 %v1405_v29, %v1367_v24  ;;  %v1407_v32 = vpop.f32.mrb[13].mxu0  ;;  %v1448_v13 = vpop.f32.mrb[13].mxu1  ;;  %v1455_v22 = vadd.f32 %v1446_v23, %v1369_v15 }
 0x5be   : > { %v1454_v63 = vadd.f32 %v1407_v32, %v1368_v33  ;;  %v1409_v28 = vpop.f32.mrb[14].mxu0  ;;  %v1450_v10 = vpop.f32.mrb[14].mxu1  ;;  %v1456_v11 = vadd.f32 %v1448_v13, %v1370_v18 }
 0x5bf   : > { %v3380_v12 = vmul.f32 -1.442695, %v1453_v19  ;;  %v1410_v25 = vpop.f32.mrb[15].mxu0  ;;  %v1451_v20 = vpop.f32.mrb[15].mxu1 }
 0x5c0   : > { %v3381_v21 = vmul.f32 -1.442695, %v1454_v63  ;;  %v3382_v14 = vmul.f32 -1.442695, %v1456_v11 }
 0x5c1   : > { %3665 = vpow2.f32 %v3380_v12 }
 0x5c2   : > { %3667 = vpow2.f32 %v3381_v21  ;;  %v1488_v21 = vld [vmem:[#allocation2 + $0x88] sm:$0xff] }
 0x5c3   : > { %3669 = vpow2.f32 %v3382_v14 }
 0x5c4   : > { %3671 = vtanh.f32 %v1455_v22 }
 0x5cb   : > { %v3666_v17 = vpop.eup %3665 }
 0x5cc   : > { %v3668_v26 = vpop.eup %3667  ;;  %v1460_v30 = vadd.f32 1.0, %v3666_v17 }
 0x5cd   : > { %v1466_v24 = vadd.f32 1.0, %v3668_v26  ;;  %v3670_v33 = vpop.eup %3669 }
 0x5ce   : > { %3673 = vrcp.f32 %v1460_v30  ;;  %v3672_v29 = vpop.eup %3671  ;;  %v1473_v28 = vadd.f32 1.0, %v3670_v33 }
 0x5cf   : > { %3675 = vrcp.f32 %v1466_v24 }
 0x5d0   : > { %3677 = vrcp.f32 %v1473_v28  ;;  %v1489_v28 = vld [vmem:[#allocation2 + $0x90] sm:$0xff] }
 0x5d8   : > { %v3674_v19 = vpop.eup %3673 }
 0x5d9   : > { %v3676_v32 = vpop.eup %3675  ;;  %v1477_v63 = vmul.f32 %v3674_v19, %v3672_v29 }
 0x5da   : > { %v1476_v13 = vmul.f32 %v3676_v32, %v4830_v16  ;;  %v3678_v23 = vpop.eup %3677  ;;  %v1487_v16 = vld [vmem:[#allocation2 + $0x80] sm:$0xff]  ;;  %v1490_v32 = vld [vmem:[#allocation2 + $0x98] sm:$0xff] }
 0x5dc   : > { %v4869_v10 = vadd.f32 %v1477_v63, %v1476_v13 }
 0x5de   : > { %3679 = vtanh.f32 %v4869_v10 }
 0x5e8   : > { %v3680_v12 = vpop.eup %3679 }
 0x5e9   : > { %v1480_v25 = vmul.f32 %v3680_v12, %v3678_v23 }
 0x5eb   : > { %v1481_v20 = vpack.c.bf16 %v1480_v25, %v1480_v25 }
 0x5ed   : > { %3383 = vst [vmem:[%s4551_s27 + $0xc] sm:$0xf] %v1481_v20  ;;  %1524 = vmatmul.mubr.bf16.vlgmr.msra.gmra.mrb[16].mxu0 %v1481_v20  ;;  %1565 = vmatmul.mubr.bf16.vlgmr.msra.gmra.mrb[16].mxu1 %v1481_v20 }
 0x5ee   : > { %1612 = vmatpush1.bf16.msra.mxu0 %v4560_v47  ;;  %1653 = vmatpush1.bf16.msra.mxu1 %v4573_v57 }
 0x5ef   : > { %1613 = vmatprep.subr.bf16.mxu0 %v4564_v48  ;;  %1654 = vmatprep.subr.bf16.mxu1 %v4577_v58 }
 0x5f0   : > { %1643 = vmatprep.mubr.bf16.mxu0 %v5596_v31  ;;  %1684 = vmatprep.mubr.bf16.mxu1 %v5596_v31 }
 0x5f2   : > { %1614 = vmatpush1.bf16.msra.mxu0 %v4582_v59  ;;  %1655 = vmatpush1.bf16.msra.mxu1 %v4593_v61 }
 0x5f3   : > { %1615 = vmatprep.subr.bf16.mxu0 %v4588_v60  ;;  %1656 = vmatprep.subr.bf16.mxu1 %v4598_v62 }
 0x5f6   : > { %1616 = vmatpush1.bf16.msra.mxu0 %v4604_v0  ;;  %1657 = vmatpush1.bf16.msra.mxu1 %v4614_v35 }
 0x5f7   : > { %1617 = vmatprep.subr.bf16.mxu0 %v4609_v34  ;;  %1658 = vmatprep.subr.bf16.mxu1 %v4619_v36 }
 0x5fa   : > { %1618 = vmatpush1.bf16.msra.mxu0 %v4625_v37  ;;  %1659 = vmatpush1.bf16.msra.mxu1 %v4635_v39 }
 0x5fb   : > { %1619 = vmatprep.subr.bf16.mxu0 %v4630_v38  ;;  %1660 = vmatprep.subr.bf16.mxu1 %v4640_v40 }
 0x5fe   : > { %1620 = vmatpush1.bf16.msra.mxu0 %v4645_v41  ;;  %1661 = vmatpush1.bf16.msra.mxu1 %v4655_v43 }
 0x5ff   : > { %1621 = vmatprep.subr.bf16.mxu0 %v4650_v42  ;;  %1662 = vmatprep.subr.bf16.mxu1 %v4660_v44 }
 0x602   : > { %1622 = vmatpush1.bf16.msra.mxu0 %v4665_v45  ;;  %1663 = vmatpush1.bf16.msra.mxu1 %v4675_v1 }
 0x603   : > { %1623 = vmatprep.subr.bf16.mxu0 %v4670_v50  ;;  %1664 = vmatprep.subr.bf16.mxu1 %v4680_v51 }
 0x606   : > { %1624 = vmatpush1.bf16.msra.mxu0 %v4685_v52  ;;  %1665 = vmatpush1.bf16.msra.mxu1 %v4695_v54 }
 0x607   : > { %1625 = vmatprep.subr.bf16.mxu0 %v4690_v53  ;;  %1666 = vmatprep.subr.bf16.mxu1 %v4700_v55 }
 0x60a   : > { %1626 = vmatpush1.bf16.msra.mxu0 %v4705_v56  ;;  %1667 = vmatpush1.bf16.msra.mxu1 %v4711_v27 }
 0x60b   : > { %1731 = vmatprep.subr.bf16.mxu0 %v4556_v46  ;;  %1772 = vmatprep.subr.bf16.mxu1 %v4568_v49 }
 0x6c0   : > { %v1525_v18 = vpop.f32.mrb[16].mxu0  ;;  %v1566_v11 = vpop.f32.mrb[16].mxu1 }
 0x6c1   : > { %v1573_v15 = vadd.f32 %v1525_v18, %v1487_v16  ;;  %v1527_v14 = vpop.f32.mrb[17].mxu0  ;;  %v1568_v22 = vpop.f32.mrb[17].mxu1  ;;  %v1575_v23 = vadd.f32 %v1566_v11, %v1489_v28 }
 0x6c2   : > { %v1574_v17 = vadd.f32 %v1527_v14, %v1488_v21  ;;  %v1529_v26 = vpop.f32.mrb[18].mxu0  ;;  %v1570_v30 = vpop.f32.mrb[18].mxu1  ;;  %v1576_v63 = vadd.f32 %v1568_v22, %v1490_v32 }
 0x6c3   : > { %v3384_v24 = vmul.f32 -1.442695, %v1573_v15  ;;  %v1530_v33 = vpop.f32.mrb[19].mxu0  ;;  %v1571_v29 = vpop.f32.mrb[19].mxu1 }
 0x6c4   : > { %v3385_v19 = vmul.f32 -1.442695, %v1574_v17  ;;  %v3386_v13 = vmul.f32 -1.442695, %v1576_v63 }
 0x6c5   : > { %3681 = vpow2.f32 %v3384_v24 }
 0x6c6   : > { %3683 = vpow2.f32 %v3385_v19  ;;  %v1608_v19 = vld [vmem:[#allocation2 + $0xa8] sm:$0xff] }
 0x6c7   : > { %3685 = vpow2.f32 %v3386_v13 }
 0x6c8   : > { %3687 = vtanh.f32 %v1575_v23 }
 0x6cf   : > { %v3682_v12 = vpop.eup %3681 }
 0x6d0   : > { %v3684_v25 = vpop.eup %3683  ;;  %v1580_v20 = vadd.f32 1.0, %v3682_v12 }
 0x6d1   : > { %v1586_v16 = vadd.f32 1.0, %v3684_v25  ;;  %v3686_v21 = vpop.eup %3685 }
 0x6d2   : > { %3689 = vrcp.f32 %v1580_v20  ;;  %v3688_v18 = vpop.eup %3687  ;;  %v1593_v26 = vadd.f32 1.0, %v3686_v21 }
 0x6d3   : > { %3691 = vrcp.f32 %v1586_v16 }
 0x6d4   : > { %3693 = vrcp.f32 %v1593_v26 }
 0x6dc   : > { %v3690_v15 = vpop.eup %3689 }
 0x6dd   : > { %v3692_v14 = vpop.eup %3691  ;;  %v1597_v17 = vmul.f32 %v3690_v15, %v3688_v18 }
 0x6de   : > { %v1596_v22 = vmul.f32 %v3692_v14, %v4869_v10  ;;  %v3694_v11 = vpop.eup %3693  ;;  %v1607_v10 = vld [vmem:[#allocation2 + $0xa0] sm:$0xff]  ;;  %v1610_v14 = vld [vmem:[#allocation2 + $0xb8] sm:$0xff] }
 0x6e0   : > { %v4908_v30 = vadd.f32 %v1597_v17, %v1596_v22  ;;  %v1609_v17 = vld [vmem:[#allocation2 + $0xb0] sm:$0xff] }
 0x6e2   : > { %3695 = vtanh.f32 %v4908_v30 }
 0x6ec   : > { %v3696_v24 = vpop.eup %3695 }
 0x6ed   : > { %v1600_v33 = vmul.f32 %v3696_v24, %v3694_v11 }
 0x6ef   : > { %v1601_v29 = vpack.c.bf16 %v1600_v33, %v1600_v33 }
 0x6f1   : > { %3387 = vst [vmem:[%s4551_s27 + $0x10] sm:$0xf] %v1601_v29  ;;  %1644 = vmatmul.mubr.bf16.vlgmr.msra.gmra.mrb[20].mxu0 %v1601_v29  ;;  %1685 = vmatmul.mubr.bf16.vlgmr.msra.gmra.mrb[20].mxu1 %v1601_v29 }
 0x6f2   : > { %1732 = vmatpush1.bf16.msra.mxu0 %v4560_v47  ;;  %1773 = vmatpush1.bf16.msra.mxu1 %v4573_v57 }
 0x6f3   : > { %1733 = vmatprep.subr.bf16.mxu0 %v4564_v48  ;;  %1774 = vmatprep.subr.bf16.mxu1 %v4577_v58 }
 0x6f4   : > { %1763 = vmatprep.mubr.bf16.mxu0 %v5596_v31  ;;  %1804 = vmatprep.mubr.bf16.mxu1 %v5596_v31 }
 0x6f6   : > { %1734 = vmatpush1.bf16.msra.mxu0 %v4582_v59  ;;  %1775 = vmatpush1.bf16.msra.mxu1 %v4593_v61 }
 0x6f7   : > { %1735 = vmatprep.subr.bf16.mxu0 %v4588_v60  ;;  %1776 = vmatprep.subr.bf16.mxu1 %v4598_v62 }
 0x6fa   : > { %1736 = vmatpush1.bf16.msra.mxu0 %v4604_v0  ;;  %1777 = vmatpush1.bf16.msra.mxu1 %v4614_v35 }
 0x6fb   : > { %1737 = vmatprep.subr.bf16.mxu0 %v4609_v34  ;;  %1778 = vmatprep.subr.bf16.mxu1 %v4619_v36 }
 0x6fe   : > { %1738 = vmatpush1.bf16.msra.mxu0 %v4625_v37  ;;  %1779 = vmatpush1.bf16.msra.mxu1 %v4635_v39 }
 0x6ff   : > { %1739 = vmatprep.subr.bf16.mxu0 %v4630_v38  ;;  %1780 = vmatprep.subr.bf16.mxu1 %v4640_v40 }
 0x702   : > { %1740 = vmatpush1.bf16.msra.mxu0 %v4645_v41  ;;  %1781 = vmatpush1.bf16.msra.mxu1 %v4655_v43 }
 0x703   : > { %1741 = vmatprep.subr.bf16.mxu0 %v4650_v42  ;;  %1782 = vmatprep.subr.bf16.mxu1 %v4660_v44 }
 0x706   : > { %1742 = vmatpush1.bf16.msra.mxu0 %v4665_v45  ;;  %1783 = vmatpush1.bf16.msra.mxu1 %v4675_v1 }
 0x707   : > { %1743 = vmatprep.subr.bf16.mxu0 %v4670_v50  ;;  %1784 = vmatprep.subr.bf16.mxu1 %v4680_v51 }
 0x70a   : > { %1744 = vmatpush1.bf16.msra.mxu0 %v4685_v52  ;;  %1785 = vmatpush1.bf16.msra.mxu1 %v4695_v54 }
 0x70b   : > { %1745 = vmatprep.subr.bf16.mxu0 %v4690_v53  ;;  %1786 = vmatprep.subr.bf16.mxu1 %v4700_v55 }
 0x70e   : > { %1746 = vmatpush1.bf16.msra.mxu0 %v4705_v56  ;;  %1787 = vmatpush1.bf16.msra.mxu1 %v4711_v27 }
 0x70f   : > { %1851 = vmatprep.subr.bf16.mxu0 %v4556_v46  ;;  %1892 = vmatprep.subr.bf16.mxu1 %v4568_v49 }
 0x7c4   : > { %v1645_v32 = vpop.f32.mrb[20].mxu0  ;;  %v1686_v63 = vpop.f32.mrb[20].mxu1 }
 0x7c5   : > { %v1693_v28 = vadd.f32 %v1645_v32, %v1607_v10  ;;  %v1647_v13 = vpop.f32.mrb[21].mxu0  ;;  %v1688_v23 = vpop.f32.mrb[21].mxu1  ;;  %v1695_v26 = vadd.f32 %v1686_v63, %v1609_v17 }
 0x7c6   : > { %v1694_v12 = vadd.f32 %v1647_v13, %v1608_v19  ;;  %v1649_v25 = vpop.f32.mrb[22].mxu0  ;;  %v1690_v20 = vpop.f32.mrb[22].mxu1  ;;  %v1696_v46 = vadd.f32 %v1688_v23, %v1610_v14  ;;  %v1847_v14 = vld [vmem:[#allocation2 + $0xe0] sm:$0xff] }
 0x7c7   : > { %v3388_v16 = vmul.f32 -1.442695, %v1693_v28  ;;  %v1650_v21 = vpop.f32.mrb[23].mxu0  ;;  %v1691_v18 = vpop.f32.mrb[23].mxu1 }
 0x7c8   : > { %v3389_v15 = vmul.f32 -1.442695, %v1694_v12  ;;  %v3390_v49 = vmul.f32 -1.442695, %v1696_v46  ;;  %v1848_v46 = vld [vmem:[#allocation2 + $0xe8] sm:$0xff] }
 0x7c9   : > { %3697 = vpow2.f32 %v3388_v16 }
 0x7ca   : > { %3699 = vpow2.f32 %v3389_v15 }
 0x7cb   : > { %3701 = vpow2.f32 %v3390_v49 }
 0x7cc   : > { %3703 = vtanh.f32 %v1695_v26 }
 0x7d3   : > { %v3698_v22 = vpop.eup %3697 }
 0x7d4   : > { %v3700_v11 = vpop.eup %3699  ;;  %v1700_v24 = vadd.f32 1.0, %v3698_v22 }
 0x7d5   : > { %v1706_v33 = vadd.f32 1.0, %v3700_v11  ;;  %v3702_v29 = vpop.eup %3701 }
 0x7d6   : > { %3705 = vrcp.f32 %v1700_v24  ;;  %v3704_v10 = vpop.eup %3703  ;;  %v1713_v13 = vadd.f32 1.0, %v3702_v29 }
 0x7d7   : > { %3707 = vrcp.f32 %v1706_v33 }
 0x7d8   : > { %3709 = vrcp.f32 %v1713_v13  ;;  %v1850_v13 = vld [vmem:[#allocation2 + $0xf8] sm:$0xff] }
 0x7e0   : > { %v3706_v19 = vpop.eup %3705 }
 0x7e1   : > { %v3708_v32 = vpop.eup %3707  ;;  %v1717_v28 = vmul.f32 %v3706_v19, %v3704_v10 }
 0x7e2   : > { %v1716_v23 = vmul.f32 %v3708_v32, %v4908_v30  ;;  %v3710_v63 = vpop.eup %3709 }
 0x7e4   : > { %v4947_v12 = vadd.f32 %v1717_v28, %v1716_v23 }
 0x7e6   : > { %3711 = vtanh.f32 %v4947_v12 }
 0x7f0   : > { %v3712_v25 = vpop.eup %3711 }
 0x7f1   : > { %v1720_v20 = vmul.f32 %v3712_v25, %v3710_v63 }
 0x7f3   : > { %v1721_v16 = vpack.c.bf16 %v1720_v20, %v1720_v20 }
 0x7f5   : > { %3391 = vst [vmem:[%s4551_s27 + $0x14] sm:$0xf] %v1721_v16  ;;  %1764 = vmatmul.mubr.bf16.vlgmr.msra.gmra.mrb[24].mxu0 %v1721_v16  ;;  %1805 = vmatmul.mubr.bf16.vlgmr.msra.gmra.mrb[24].mxu1 %v1721_v16 }
 0x7f6   : > { %1852 = vmatpush1.bf16.msra.mxu0 %v4560_v47  ;;  %1893 = vmatpush1.bf16.msra.mxu1 %v4573_v57  ;;  %v1728_v47 = vld [vmem:[#allocation2 + $0xc8] sm:$0xff] }
 0x7f7   : > { %1853 = vmatprep.subr.bf16.mxu0 %v4564_v48  ;;  %1894 = vmatprep.subr.bf16.mxu1 %v4577_v58 }
 0x7f8   : > { %1883 = vmatprep.mubr.bf16.mxu0 %v5596_v31  ;;  %1924 = vmatprep.mubr.bf16.mxu1 %v5596_v31  ;;  %v1727_v31 = vld [vmem:[#allocation2 + $0xc0] sm:$0xff] }
 0x7fa   : > { %1854 = vmatpush1.bf16.msra.mxu0 %v4582_v59  ;;  %1895 = vmatpush1.bf16.msra.mxu1 %v4593_v61 }
 0x7fb   : > { %1855 = vmatprep.subr.bf16.mxu0 %v4588_v60  ;;  %1896 = vmatprep.subr.bf16.mxu1 %v4598_v62 }
 0x7fe   : > { %1856 = vmatpush1.bf16.msra.mxu0 %v4604_v0  ;;  %1897 = vmatpush1.bf16.msra.mxu1 %v4614_v35 }
 0x7ff   : > { %1857 = vmatprep.subr.bf16.mxu0 %v4609_v34  ;;  %1898 = vmatprep.subr.bf16.mxu1 %v4619_v36 }
 0x802   : > { %1858 = vmatpush1.bf16.msra.mxu0 %v4625_v37  ;;  %1899 = vmatpush1.bf16.msra.mxu1 %v4635_v39 }
 0x803   : > { %1859 = vmatprep.subr.bf16.mxu0 %v4630_v38  ;;  %1900 = vmatprep.subr.bf16.mxu1 %v4640_v40  ;;  %v1730_v38 = vld [vmem:[#allocation2 + $0xd8] sm:$0xff]  ;;  %v1729_v40 = vld [vmem:[#allocation2 + $0xd0] sm:$0xff] }
 0x806   : > { %1860 = vmatpush1.bf16.msra.mxu0 %v4645_v41  ;;  %1901 = vmatpush1.bf16.msra.mxu1 %v4655_v43 }
 0x807   : > { %1861 = vmatprep.subr.bf16.mxu0 %v4650_v42  ;;  %1902 = vmatprep.subr.bf16.mxu1 %v4660_v44 }
 0x80a   : > { %1862 = vmatpush1.bf16.msra.mxu0 %v4665_v45  ;;  %1903 = vmatpush1.bf16.msra.mxu1 %v4675_v1 }
 0x80b   : > { %1863 = vmatprep.subr.bf16.mxu0 %v4670_v50  ;;  %1904 = vmatprep.subr.bf16.mxu1 %v4680_v51 }
 0x80e   : > { %1864 = vmatpush1.bf16.msra.mxu0 %v4685_v52  ;;  %1905 = vmatpush1.bf16.msra.mxu1 %v4695_v54 }
 0x80f   : > { %1865 = vmatprep.subr.bf16.mxu0 %v4690_v53  ;;  %1906 = vmatprep.subr.bf16.mxu1 %v4700_v55 }
 0x812   : > { %1866 = vmatpush1.bf16.msra.mxu0 %v4705_v56  ;;  %1907 = vmatpush1.bf16.msra.mxu1 %v4711_v27 }
 0x8c8   : > { %v1765_v48 = vpop.f32.mrb[24].mxu0  ;;  %v1806_v57 = vpop.f32.mrb[24].mxu1 }
 0x8c9   : > { %v1813_v58 = vadd.f32 %v1765_v48, %v1727_v31  ;;  %v1767_v59 = vpop.f32.mrb[25].mxu0  ;;  %v1808_v60 = vpop.f32.mrb[25].mxu1  ;;  %v1815_v41 = vadd.f32 %v1806_v57, %v1729_v40 }
 0x8ca   : > { %v1814_v61 = vadd.f32 %v1767_v59, %v1728_v47  ;;  %v1769_v62 = vpop.f32.mrb[26].mxu0  ;;  %v1810_v0 = vpop.f32.mrb[26].mxu1  ;;  %v1816_v39 = vadd.f32 %v1808_v60, %v1730_v38 }
 0x8cb   : > { %v3392_v34 = vmul.f32 -1.442695, %v1813_v58  ;;  %v1770_v35 = vpop.f32.mrb[27].mxu0  ;;  %v1811_v36 = vpop.f32.mrb[27].mxu1 }
 0x8cc   : > { %v3393_v37 = vmul.f32 -1.442695, %v1814_v61  ;;  %v3394_v27 = vmul.f32 -1.442695, %v1816_v39 }
 0x8cd   : > { %3713 = vpow2.f32 %v3392_v34 }
 0x8ce   : > { %3715 = vpow2.f32 %v3393_v37 }
 0x8cf   : > { %3717 = vpow2.f32 %v3394_v27 }
 0x8d0   : > { %3719 = vtanh.f32 %v1815_v41 }
 0x8d7   : > { %v3714_v42 = vpop.eup %3713 }
 0x8d8   : > { %v3716_v43 = vpop.eup %3715  ;;  %v1820_v44 = vadd.f32 1.0, %v3714_v42 }
 0x8d9   : > { %v1826_v45 = vadd.f32 1.0, %v3716_v43  ;;  %v3718_v50 = vpop.eup %3717 }
 0x8da   : > { %3721 = vrcp.f32 %v1820_v44  ;;  %v3720_v1 = vpop.eup %3719  ;;  %v1833_v54 = vadd.f32 1.0, %v3718_v50 }
 0x8db   : > { %3723 = vrcp.f32 %v1826_v45 }
 0x8dc   : > { %3725 = vrcp.f32 %v1833_v54 }
 0x8e4   : > { %v3722_v51 = vpop.eup %3721 }
 0x8e5   : > { %v3724_v52 = vpop.eup %3723  ;;  %v1837_v53 = vmul.f32 %v3722_v51, %v3720_v1 }
 0x8e6   : > { %v1836_v55 = vmul.f32 %v3724_v52, %v4947_v12  ;;  %v3726_v30 = vpop.eup %3725  ;;  %v1849_v12 = vld [vmem:[#allocation2 + $0xf0] sm:$0xff] }
 0x8e8   : > { %v1838_v56 = vadd.f32 %v1837_v53, %v1836_v55 }
 0x8ea   : > { %3727 = vtanh.f32 %v1838_v56 }
 0x8f4   : > { %v3728_v21 = vpop.eup %3727 }
 0x8f5   : > { %v1840_v18 = vmul.f32 %v3728_v21, %v3726_v30 }
 0x8f7   : > { %v1841_v15 = vpack.c.bf16 %v1840_v18, %v1840_v18 }
 0x8f9   : > { %3395 = vst [vmem:[%s4551_s27 + $0x18] sm:$0xf] %v1841_v15  ;;  %1884 = vmatmul.mubr.bf16.vlgmr.msra.gmra.mrb[28].mxu0 %v1841_v15  ;;  %1925 = vmatmul.mubr.bf16.vlgmr.msra.gmra.mrb[28].mxu1 %v1841_v15 }
 0x9cc   : > { %v1885_v17 = vpop.f32.mrb[28].mxu0  ;;  %v1926_v49 = vpop.f32.mrb[28].mxu1 }
 0x9cd   : > { %v1933_v26 = vadd.f32 %v1885_v17, %v1847_v14  ;;  %v1887_v22 = vpop.f32.mrb[29].mxu0  ;;  %v1928_v11 = vpop.f32.mrb[29].mxu1  ;;  %v1935_v25 = vadd.f32 %v1926_v49, %v1849_v12 }
 0x9ce   : > { %v1934_v24 = vadd.f32 %v1887_v22, %v1848_v46  ;;  %v1889_v33 = vpop.f32.mrb[30].mxu0  ;;  %v1930_v29 = vpop.f32.mrb[30].mxu1  ;;  %v1936_v23 = vadd.f32 %v1928_v11, %v1850_v13 }
 0x9cf   : > { %v3396_v10 = vmul.f32 -1.442695, %v1933_v26  ;;  %v1890_v19 = vpop.f32.mrb[31].mxu0  ;;  %v1931_v32 = vpop.f32.mrb[31].mxu1 }
 0x9d0   : > { %v3397_v28 = vmul.f32 -1.442695, %v1934_v24  ;;  %v3398_v63 = vmul.f32 -1.442695, %v1936_v23 }
 0x9d1   : > { %3729 = vpow2.f32 %v3396_v10 }
 0x9d2   : > { %3731 = vpow2.f32 %v3397_v28 }
 0x9d3   : > { %3733 = vpow2.f32 %v3398_v63 }
 0x9d4   : > { %3735 = vtanh.f32 %v1935_v25 }
 0x9db   : > { %v3730_v20 = vpop.eup %3729 }
 0x9dc   : > { %v3732_v16 = vpop.eup %3731  ;;  %v1940_v31 = vadd.f32 1.0, %v3730_v20 }
 0x9dd   : > { %v1946_v47 = vadd.f32 1.0, %v3732_v16  ;;  %v3734_v48 = vpop.eup %3733 }
 0x9de   : > { %3737 = vrcp.f32 %v1940_v31  ;;  %v3736_v57 = vpop.eup %3735  ;;  %v1953_v61 = vadd.f32 1.0, %v3734_v48 }
 0x9df   : > { %3739 = vrcp.f32 %v1946_v47 }
 0x9e0   : > { %3741 = vrcp.f32 %v1953_v61 }
 0x9e8   : > { %v3738_v58 = vpop.eup %3737 }
 0x9e9   : > { %v3740_v59 = vpop.eup %3739  ;;  %v1957_v60 = vmul.f32 %v3738_v58, %v3736_v57 }
 0x9ea   : > { %v1956_v62 = vmul.f32 %v3740_v59, %v1838_v56  ;;  %v3742_v34 = vpop.eup %3741 }
 0x9ec   : > { %v1958_v0 = vadd.f32 %v1957_v60, %v1956_v62 }
 0x9ee   : > { %3743 = vtanh.f32 %v1958_v0  ;;  %1965 = vst [vmem:[#allocation4] sm:$0xff] %v1958_v0 }
 0x9f8   : > { %v3744_v35 = vpop.eup %3743 }
 0x9f9   : > { %v1960_v36 = vmul.f32 %v3744_v35, %v3742_v34 }
 0x9fb   : > { %v1961_v37 = vpack.c.bf16 %v1960_v36, %v1960_v36  ;;  %1964 = vst [vmem:[#allocation3] sm:$0xff] %v1960_v36 }
 0x9fd   : > { %3399 = vst [vmem:[%s4551_s27 + $0x1c] sm:$0xf] %v1961_v37 }
 0x9fe PF: > { %p3400_p9 = scmp.ne.s32.totalorder %s4073_s18, 1 }
 0x9ff   : > { %v4989_v38 = vcombine.high (!%p3400_p9), %v4375_v2, %v4381_v4  ;;  %v4993_v39 = vcombine.low (!%p3400_p9), %v4375_v2, %v4381_v4  ;;  %v4997_v40 = vcombine.high (!%p3400_p9), %v4387_v6, %v4393_v8  ;;  %v5001_v27 = vcombine.high (!%p3400_p9), %v4378_v3, %v4384_v5  ;;  %v5597_v4 = vld [vmem:[#allocation24_spill] sm:$0xff] (!%p3400_p9)  ;;  %v5598_v43 = vld [vmem:[#allocation22_spill] sm:$0xff] (!%p3400_p9)  ;;  %v5600_v45 = vld [vmem:[#allocation23_spill] sm:$0xff] (!%p3400_p9) }
 0xa00   : > { %1969 = sbr.rel (%p3400_p9) target bundleno = 4674 (0x1242), region = 64  ;;  %v5006_v41 = vcombine.low (!%p3400_p9), %v4378_v3, %v4384_v5  ;;  %v5010_v42 = vcombine.high (!%p3400_p9), %v4390_v7, %v4396_v9  ;;  %v5015_v2 = vcombine.low (!%p3400_p9), %v4387_v6, %v4393_v8  ;;  %v5021_v44 = vcombine.high (!%p3400_p9), %v5598_v43, %v5597_v4  ;;  %v5599_v5 = vld [vmem:[#allocation25_spill] sm:$0xff] (!%p3400_p9)  ;;  %v5601_v1 = vld [vmem:[#allocation28_spill] sm:$0xff] (!%p3400_p9)  ;;  %v5604_v53 = vld [vmem:[#allocation27_spill] sm:$0xff] (!%p3400_p9) }
 0xa01   : > { %2140 = vmatprep.subr.bf16.mxu0 (!%p3400_p9), %v4989_v38  ;;  %2181 = vmatprep.subr.bf16.mxu1 (!%p3400_p9), %v5001_v27  ;;  %v5026_v3 = vcombine.low (!%p3400_p9), %v4390_v7, %v4396_v9  ;;  %v5031_v6 = vcombine.high (!%p3400_p9), %v5600_v45, %v5599_v5  ;;  %v4094_v8 = vmov (!%p3400_p9), 0   ;;  %v5037_v50 = vcombine.low (!%p3400_p9), %v5598_v43, %v5597_v4  ;;  %v5602_v7 = vld [vmem:[#allocation26_spill] sm:$0xff] (!%p3400_p9)  ;;  %v5603_v52 = vld [vmem:[#allocation29_spill] sm:$0xff] (!%p3400_p9)  ;;  %v5605_v56 = vld [vmem:[#allocation32_spill] sm:$0xff] (!%p3400_p9) }
 0xa02   : > { %2141 = vmatpush1.bf16.msra.mxu0 (!%p3400_p9), %v4993_v39  ;;  %2182 = vmatpush1.bf16.msra.mxu1 (!%p3400_p9), %v5006_v41  ;;  %v5042_v9 = vcombine.high (!%p3400_p9), %v5602_v7, %v5601_v1  ;;  %v5047_v51 = vcombine.low (!%p3400_p9), %v5600_v45, %v5599_v5  ;;  %v5052_v54 = vcombine.high (!%p3400_p9), %v5604_v53, %v5603_v52  ;;  %v5606_v30 = vld [vmem:[#allocation30_spill] sm:$0xff] (!%p3400_p9)  ;;  %v5607_v15 = vld [vmem:[#allocation33_spill] sm:$0xff] (!%p3400_p9)  ;;  %v5608_v14 = vld [vmem:[#allocation31_spill] sm:$0xff] (!%p3400_p9) }
 0xa03   : > { %2142 = vmatprep.subr.bf16.mxu0 (!%p3400_p9), %v4997_v40  ;;  %2183 = vmatprep.subr.bf16.mxu1 (!%p3400_p9), %v5010_v42  ;;  %v5058_v55 = vcombine.low (!%p3400_p9), %v5602_v7, %v5601_v1  ;;  %v5063_v21 = vcombine.high (!%p3400_p9), %v5606_v30, %v5605_v56  ;;  %v5068_v18 = vcombine.low (!%p3400_p9), %v5604_v53, %v5603_v52  ;;  %v5609_v49 = vld [vmem:[#allocation36_spill] sm:$0xff] (!%p3400_p9)  ;;  %v5610_v26 = vld [vmem:[#allocation34_spill] sm:$0xff] (!%p3400_p9)  ;;  %v5611_v24 = vld [vmem:[#allocation37_spill] sm:$0xff] (!%p3400_p9) }
 0xa04   : > { %2172 = vmatprep.mubr.bf16.mxu0 (!%p3400_p9), %v4094_v8  ;;  %2213 = vmatprep.mubr.bf16.mxu1 (!%p3400_p9), %v4094_v8  ;;  %v5073_v46 = vcombine.high (!%p3400_p9), %v5608_v14, %v5607_v15  ;;  %v5078_v17 = vcombine.low (!%p3400_p9), %v5606_v30, %v5605_v56  ;;  %v5083_v22 = vcombine.high (!%p3400_p9), %v5610_v26, %v5609_v49  ;;  %v5612_v33 = vld [vmem:[#allocation35_spill] sm:$0xff] (!%p3400_p9)  ;;  %v5613_v19 = vld [vmem:[#allocation40_spill] sm:$0xff] (!%p3400_p9)  ;;  %v5614_v32 = vld [vmem:[#allocation38_spill] sm:$0xff] (!%p3400_p9) }
 0xa05   : > { %v5088_v11 = vcombine.low (!%p3400_p9), %v5608_v14, %v5607_v15  ;;  %v5093_v29 = vcombine.high (!%p3400_p9), %v5612_v33, %v5611_v24  ;;  %v5098_v10 = vcombine.low (!%p3400_p9), %v5610_v26, %v5609_v49  ;;  %v5103_v28 = vcombine.high (!%p3400_p9), %v5614_v32, %v5613_v19  ;;  %v5615_v23 = vld [vmem:[#allocation41_spill] sm:$0xff] (!%p3400_p9)  ;;  %v5616_v12 = vld [vmem:[#allocation39_spill] sm:$0xff] (!%p3400_p9)  ;;  %v5617_v20 = vld [vmem:[#allocation44_spill] sm:$0xff] (!%p3400_p9) }
 0xa06   : > { %2143 = vmatpush1.bf16.msra.mxu0 (!%p3400_p9), %v5015_v2  ;;  %2184 = vmatpush1.bf16.msra.mxu1 (!%p3400_p9), %v5026_v3  ;;  %v5108_v13 = vcombine.low (!%p3400_p9), %v5612_v33, %v5611_v24  ;;  %v5113_v63 = vcombine.high (!%p3400_p9), %v5616_v12, %v5615_v23  ;;  %v5118_v25 = vcombine.low (!%p3400_p9), %v5614_v32, %v5613_v19  ;;  %v5618_v16 = vld [vmem:[#allocation42_spill] sm:$0xff] (!%p3400_p9)  ;;  %v5619_v48 = vld [vmem:[#allocation45_spill] sm:$0xff] (!%p3400_p9)  ;;  %v5620_v57 = vld [vmem:[#allocation43_spill] sm:$0xff] (!%p3400_p9) }
 0xa07   : > { %2144 = vmatprep.subr.bf16.mxu0 %v5021_v44  ;;  %2185 = vmatprep.subr.bf16.mxu1 %v5031_v6  ;;  %v5123_v31 = vcombine.high %v5618_v16, %v5617_v20  ;;  %v5128_v47 = vcombine.low %v5616_v12, %v5615_v23  ;;  %v5133_v58 = vcombine.high %v5620_v57, %v5619_v48  ;;  %v1970_v60 = vld [vmem:[#allocation3] sm:$0xff]  ;;  %v1976_v34 = vld [vmem:[#allocation2 + $0xe8] sm:$0xff]  ;;  %v1978_v56 = vld [vmem:[#allocation2 + $0xf8] sm:$0xff] }
 0xa08   : > { %v5138_v59 = vcombine.low %v5618_v16, %v5617_v20  ;;  %v5144_v61 = vcombine.low %v5620_v57, %v5619_v48  ;;  %v1979_v62 = vpack.c.bf16 %v1970_v60, %v1970_v60  ;;  %v1975_v0 = vld [vmem:[#allocation2 + $0xe0] sm:$0xff]  ;;  %v1977_v14 = vld [vmem:[#allocation2 + $0xf0] sm:$0xff]  ;;  %v1971_v20 = vld [vmem:[#allocation4] sm:$0xff] }
 0xa0a   : > { %2145 = vmatpush1.bf16.msra.mxu0 %v5037_v50  ;;  %2186 = vmatpush1.bf16.msra.mxu1 %v5047_v51 }
 0xa0b   : > { %2146 = vmatprep.subr.bf16.mxu0 %v5042_v9  ;;  %2187 = vmatprep.subr.bf16.mxu1 %v5052_v54 }
 0xa0e   : > { %2147 = vmatpush1.bf16.msra.mxu0 %v5058_v55  ;;  %2188 = vmatpush1.bf16.msra.mxu1 %v5068_v18 }
 0xa0f   : > { %2148 = vmatprep.subr.bf16.mxu0 %v5063_v21  ;;  %2189 = vmatprep.subr.bf16.mxu1 %v5073_v46 }
 0xa12   : > { %2149 = vmatpush1.bf16.msra.mxu0 %v5078_v17  ;;  %2190 = vmatpush1.bf16.msra.mxu1 %v5088_v11 }
 0xa13   : > { %2150 = vmatprep.subr.bf16.mxu0 %v5083_v22  ;;  %2191 = vmatprep.subr.bf16.mxu1 %v5093_v29 }
 0xa16   : > { %2151 = vmatpush1.bf16.msra.mxu0 %v5098_v10  ;;  %2192 = vmatpush1.bf16.msra.mxu1 %v5108_v13 }
 0xa17   : > { %2152 = vmatprep.subr.bf16.mxu0 %v5103_v28  ;;  %2193 = vmatprep.subr.bf16.mxu1 %v5113_v63 }
 0xa1a   : > { %2153 = vmatpush1.bf16.msra.mxu0 %v5118_v25  ;;  %2194 = vmatpush1.bf16.msra.mxu1 %v5128_v47 }
 0xa1b   : > { %2154 = vmatprep.subr.bf16.mxu0 %v5123_v31  ;;  %2195 = vmatprep.subr.bf16.mxu1 %v5133_v58 }
 0xa1e   : > { %2155 = vmatpush1.bf16.msra.mxu0 %v5138_v59  ;;  %2196 = vmatpush1.bf16.msra.mxu1 %v5144_v61 }
 0xa1f   : > { %2260 = vmatprep.subr.bf16.mxu0 %v4989_v38  ;;  %2301 = vmatprep.subr.bf16.mxu1 %v5001_v27 }
 0xa21   : > { %2173 = vmatmul.mubr.bf16.vlgmr.msra.gmra.mrb[0].mxu0 %v1979_v62  ;;  %2214 = vmatmul.mubr.bf16.vlgmr.msra.gmra.mrb[0].mxu1 %v1979_v62 }
 0xa22   : > { %2261 = vmatpush1.bf16.msra.mxu0 %v4993_v39  ;;  %2302 = vmatpush1.bf16.msra.mxu1 %v5006_v41 }
 0xa23   : > { %2262 = vmatprep.subr.bf16.mxu0 %v4997_v40  ;;  %2303 = vmatprep.subr.bf16.mxu1 %v5010_v42 }
 0xa24   : > { %2292 = vmatprep.mubr.bf16.mxu0 %v4094_v8  ;;  %2333 = vmatprep.mubr.bf16.mxu1 %v4094_v8 }
 0xa26   : > { %2263 = vmatpush1.bf16.msra.mxu0 %v5015_v2  ;;  %2304 = vmatpush1.bf16.msra.mxu1 %v5026_v3 }
 0xa27   : > { %2264 = vmatprep.subr.bf16.mxu0 %v5021_v44  ;;  %2305 = vmatprep.subr.bf16.mxu1 %v5031_v6 }
 0xa2a   : > { %2265 = vmatpush1.bf16.msra.mxu0 %v5037_v50  ;;  %2306 = vmatpush1.bf16.msra.mxu1 %v5047_v51 }
 0xa2b   : > { %2266 = vmatprep.subr.bf16.mxu0 %v5042_v9  ;;  %2307 = vmatprep.subr.bf16.mxu1 %v5052_v54 }
 0xa2e   : > { %2267 = vmatpush1.bf16.msra.mxu0 %v5058_v55  ;;  %2308 = vmatpush1.bf16.msra.mxu1 %v5068_v18 }
 0xa2f   : > { %2268 = vmatprep.subr.bf16.mxu0 %v5063_v21  ;;  %2309 = vmatprep.subr.bf16.mxu1 %v5073_v46 }
 0xa32   : > { %2269 = vmatpush1.bf16.msra.mxu0 %v5078_v17  ;;  %2310 = vmatpush1.bf16.msra.mxu1 %v5088_v11 }
 0xa33   : > { %2270 = vmatprep.subr.bf16.mxu0 %v5083_v22  ;;  %2311 = vmatprep.subr.bf16.mxu1 %v5093_v29 }
 0xa36   : > { %2271 = vmatpush1.bf16.msra.mxu0 %v5098_v10  ;;  %2312 = vmatpush1.bf16.msra.mxu1 %v5108_v13 }
 0xa37   : > { %2272 = vmatprep.subr.bf16.mxu0 %v5103_v28  ;;  %2313 = vmatprep.subr.bf16.mxu1 %v5113_v63 }
 0xa3a   : > { %2273 = vmatpush1.bf16.msra.mxu0 %v5118_v25  ;;  %2314 = vmatpush1.bf16.msra.mxu1 %v5128_v47 }
 0xa3b   : > { %2274 = vmatprep.subr.bf16.mxu0 %v5123_v31  ;;  %2315 = vmatprep.subr.bf16.mxu1 %v5133_v58 }
 0xa3e   : > { %2275 = vmatpush1.bf16.msra.mxu0 %v5138_v59  ;;  %2316 = vmatpush1.bf16.msra.mxu1 %v5144_v61 }
 0xa3f   : > { %2380 = vmatprep.subr.bf16.mxu0 %v4989_v38  ;;  %2421 = vmatprep.subr.bf16.mxu1 %v5001_v27 }
 0xaf4   : > { %v2174_v35 = vpop.f32.mrb[0].mxu0  ;;  %v2215_v4 = vpop.f32.mrb[0].mxu1 }
 0xaf5   : > { %v2222_v36 = vadd.f32 %v2174_v35, %v1975_v0  ;;  %v2176_v37 = vpop.f32.mrb[1].mxu0  ;;  %v2217_v45 = vpop.f32.mrb[1].mxu1  ;;  %v2224_v26 = vadd.f32 %v2215_v4, %v1977_v14  ;;  %v2256_v4 = vld [vmem:[#allocation2 + $0xc0] sm:$0xff] }
 0xaf6   : > { %v2223_v43 = vadd.f32 %v2176_v37, %v1976_v34  ;;  %v2178_v5 = vpop.f32.mrb[2].mxu0  ;;  %v2219_v52 = vpop.f32.mrb[2].mxu1  ;;  %v2225_v15 = vadd.f32 %v2217_v45, %v1978_v56 }
 0xaf7   : > { %v3433_v1 = vmul.f32 -1.442695, %v2222_v36  ;;  %v2179_v7 = vpop.f32.mrb[3].mxu0  ;;  %v2220_v30 = vpop.f32.mrb[3].mxu1 }
 0xaf8   : > { %v3434_v53 = vmul.f32 -1.442695, %v2223_v43  ;;  %v3435_v49 = vmul.f32 -1.442695, %v2225_v15  ;;  %v2257_v43 = vld [vmem:[#allocation2 + $0xc8] sm:$0xff] }
 0xaf9   : > { %3745 = vpow2.f32 %v3433_v1 }
 0xafa   : > { %3747 = vpow2.f32 %v3434_v53 }
 0xafb   : > { %3749 = vpow2.f32 %v3435_v49 }
 0xafc   : > { %3751 = vtanh.f32 %v2224_v26 }
 0xb03   : > { %v3746_v24 = vpop.eup %3745 }
 0xb04   : > { %v3748_v33 = vpop.eup %3747  ;;  %v2229_v19 = vadd.f32 1.0, %v3746_v24  ;;  %v2259_v24 = vld [vmem:[#allocation2 + $0xd8] sm:$0xff] }
 0xb05   : > { %v2235_v32 = vadd.f32 1.0, %v3748_v33  ;;  %v3750_v23 = vpop.eup %3749 }
 0xb06   : > { %3753 = vrcp.f32 %v2229_v19  ;;  %v3752_v12 = vpop.eup %3751  ;;  %v2242_v48 = vadd.f32 1.0, %v3750_v23  ;;  %v2258_v19 = vld [vmem:[#allocation2 + $0xd0] sm:$0xff] }
 0xb07   : > { %3755 = vrcp.f32 %v2235_v32 }
 0xb08   : > { %3757 = vrcp.f32 %v2242_v48 }
 0xb10   : > { %v3754_v16 = vpop.eup %3753 }
 0xb11   : > { %v3756_v57 = vpop.eup %3755  ;;  %v2246_v60 = vmul.f32 %v3754_v16, %v3752_v12 }
 0xb12   : > { %v2245_v62 = vmul.f32 %v3756_v57, %v1971_v20  ;;  %v3758_v34 = vpop.eup %3757 }
 0xb14   : > { %v5185_v0 = vadd.f32 %v2246_v60, %v2245_v62 }
 0xb16   : > { %3759 = vtanh.f32 %v5185_v0 }
 0xb20   : > { %v3760_v35 = vpop.eup %3759 }
 0xb21   : > { %v2249_v36 = vmul.f32 %v3760_v35, %v3758_v34 }
 0xb23   : > { %v2250_v37 = vpack.c.bf16 %v2249_v36, %v2249_v36 }
 0xb25   : > { %3436 = vst [vmem:[%s4551_s27 + $0x1c] sm:$0xf] %v2250_v37  ;;  %2293 = vmatmul.mubr.bf16.vlgmr.msra.gmra.mrb[4].mxu0 %v2250_v37  ;;  %2334 = vmatmul.mubr.bf16.vlgmr.msra.gmra.mrb[4].mxu1 %v2250_v37 }
 0xb26   : > { %2381 = vmatpush1.bf16.msra.mxu0 %v4993_v39  ;;  %2422 = vmatpush1.bf16.msra.mxu1 %v5006_v41 }
 0xb27   : > { %2382 = vmatprep.subr.bf16.mxu0 %v4997_v40  ;;  %2423 = vmatprep.subr.bf16.mxu1 %v5010_v42 }
 0xb28   : > { %2412 = vmatprep.mubr.bf16.mxu0 %v4094_v8  ;;  %2453 = vmatprep.mubr.bf16.mxu1 %v4094_v8 }
 0xb2a   : > { %2383 = vmatpush1.bf16.msra.mxu0 %v5015_v2  ;;  %2424 = vmatpush1.bf16.msra.mxu1 %v5026_v3 }
 0xb2b   : > { %2384 = vmatprep.subr.bf16.mxu0 %v5021_v44  ;;  %2425 = vmatprep.subr.bf16.mxu1 %v5031_v6 }
 0xb2e   : > { %2385 = vmatpush1.bf16.msra.mxu0 %v5037_v50  ;;  %2426 = vmatpush1.bf16.msra.mxu1 %v5047_v51 }
 0xb2f   : > { %2386 = vmatprep.subr.bf16.mxu0 %v5042_v9  ;;  %2427 = vmatprep.subr.bf16.mxu1 %v5052_v54 }
 0xb32   : > { %2387 = vmatpush1.bf16.msra.mxu0 %v5058_v55  ;;  %2428 = vmatpush1.bf16.msra.mxu1 %v5068_v18 }
 0xb33   : > { %2388 = vmatprep.subr.bf16.mxu0 %v5063_v21  ;;  %2429 = vmatprep.subr.bf16.mxu1 %v5073_v46 }
 0xb36   : > { %2389 = vmatpush1.bf16.msra.mxu0 %v5078_v17  ;;  %2430 = vmatpush1.bf16.msra.mxu1 %v5088_v11 }
 0xb37   : > { %2390 = vmatprep.subr.bf16.mxu0 %v5083_v22  ;;  %2431 = vmatprep.subr.bf16.mxu1 %v5093_v29 }
 0xb3a   : > { %2391 = vmatpush1.bf16.msra.mxu0 %v5098_v10  ;;  %2432 = vmatpush1.bf16.msra.mxu1 %v5108_v13 }
 0xb3b   : > { %2392 = vmatprep.subr.bf16.mxu0 %v5103_v28  ;;  %2433 = vmatprep.subr.bf16.mxu1 %v5113_v63 }
 0xb3e   : > { %2393 = vmatpush1.bf16.msra.mxu0 %v5118_v25  ;;  %2434 = vmatpush1.bf16.msra.mxu1 %v5128_v47 }
 0xb3f   : > { %2394 = vmatprep.subr.bf16.mxu0 %v5123_v31  ;;  %2435 = vmatprep.subr.bf16.mxu1 %v5133_v58 }
 0xb42   : > { %2395 = vmatpush1.bf16.msra.mxu0 %v5138_v59  ;;  %2436 = vmatpush1.bf16.msra.mxu1 %v5144_v61 }
 0xb43   : > { %2500 = vmatprep.subr.bf16.mxu0 %v4989_v38  ;;  %2541 = vmatprep.subr.bf16.mxu1 %v5001_v27 }
 0xbf8   : > { %v2294_v5 = vpop.f32.mrb[4].mxu0  ;;  %v2335_v45 = vpop.f32.mrb[4].mxu1 }
 0xbf9   : > { %v2342_v1 = vadd.f32 %v2294_v5, %v2256_v4  ;;  %v2296_v7 = vpop.f32.mrb[5].mxu0  ;;  %v2337_v52 = vpop.f32.mrb[5].mxu1  ;;  %v2344_v23 = vadd.f32 %v2335_v45, %v2258_v19 }
 0xbfa   : > { %v2343_v53 = vadd.f32 %v2296_v7, %v2257_v43  ;;  %v2298_v56 = vpop.f32.mrb[6].mxu0  ;;  %v2339_v30 = vpop.f32.mrb[6].mxu1  ;;  %v2345_v33 = vadd.f32 %v2337_v52, %v2259_v24  ;;  %v2377_v7 = vld [vmem:[#allocation2 + $0xa8] sm:$0xff] }
 0xbfb   : > { %v3437_v15 = vmul.f32 -1.442695, %v2342_v1  ;;  %v2299_v14 = vpop.f32.mrb[7].mxu0  ;;  %v2340_v49 = vpop.f32.mrb[7].mxu1 }
 0xbfc   : > { %v3438_v26 = vmul.f32 -1.442695, %v2343_v53  ;;  %v3439_v32 = vmul.f32 -1.442695, %v2345_v33 }
 0xbfd   : > { %3761 = vpow2.f32 %v3437_v15 }
 0xbfe   : > { %3763 = vpow2.f32 %v3438_v26 }
 0xbff   : > { %3765 = vpow2.f32 %v3439_v32 }
 0xc00   : > { %3767 = vtanh.f32 %v2344_v23  ;;  %v2379_v23 = vld [vmem:[#allocation2 + $0xb8] sm:$0xff] }
 0xc07   : > { %v3762_v12 = vpop.eup %3761 }
 0xc08   : > { %v3764_v20 = vpop.eup %3763  ;;  %v2349_v16 = vadd.f32 1.0, %v3762_v12 }
 0xc09   : > { %v2355_v48 = vadd.f32 1.0, %v3764_v20  ;;  %v3766_v57 = vpop.eup %3765  ;;  %v2378_v20 = vld [vmem:[#allocation2 + $0xb0] sm:$0xff] }
 0xc0a   : > { %3769 = vrcp.f32 %v2349_v16  ;;  %v3768_v60 = vpop.eup %3767  ;;  %v2362_v36 = vadd.f32 1.0, %v3766_v57 }
 0xc0b   : > { %3771 = vrcp.f32 %v2355_v48 }
 0xc0c   : > { %3773 = vrcp.f32 %v2362_v36 }
 0xc14   : > { %v3770_v62 = vpop.eup %3769 }
 0xc15   : > { %v3772_v34 = vpop.eup %3771  ;;  %v2366_v35 = vmul.f32 %v3770_v62, %v3768_v60 }
 0xc16   : > { %v2365_v37 = vmul.f32 %v3772_v34, %v5185_v0  ;;  %v3774_v43 = vpop.eup %3773  ;;  %v2376_v0 = vld [vmem:[#allocation2 + $0xa0] sm:$0xff] }
 0xc18   : > { %v5224_v4 = vadd.f32 %v2366_v35, %v2365_v37 }
 0xc1a   : > { %3775 = vtanh.f32 %v5224_v4 }
 0xc24   : > { %v3776_v5 = vpop.eup %3775 }
 0xc25   : > { %v2369_v45 = vmul.f32 %v3776_v5, %v3774_v43 }
 0xc27   : > { %v2370_v1 = vpack.c.bf16 %v2369_v45, %v2369_v45 }
 0xc29   : > { %3440 = vst [vmem:[%s4551_s27 + $0x18] sm:$0xf] %v2370_v1  ;;  %2413 = vmatmul.mubr.bf16.vlgmr.msra.gmra.mrb[8].mxu0 %v2370_v1  ;;  %2454 = vmatmul.mubr.bf16.vlgmr.msra.gmra.mrb[8].mxu1 %v2370_v1 }
 0xc2a   : > { %2501 = vmatpush1.bf16.msra.mxu0 %v4993_v39  ;;  %2542 = vmatpush1.bf16.msra.mxu1 %v5006_v41 }
 0xc2b   : > { %2502 = vmatprep.subr.bf16.mxu0 %v4997_v40  ;;  %2543 = vmatprep.subr.bf16.mxu1 %v5010_v42 }
 0xc2c   : > { %2532 = vmatprep.mubr.bf16.mxu0 %v4094_v8  ;;  %2573 = vmatprep.mubr.bf16.mxu1 %v4094_v8 }
 0xc2e   : > { %2503 = vmatpush1.bf16.msra.mxu0 %v5015_v2  ;;  %2544 = vmatpush1.bf16.msra.mxu1 %v5026_v3 }
 0xc2f   : > { %2504 = vmatprep.subr.bf16.mxu0 %v5021_v44  ;;  %2545 = vmatprep.subr.bf16.mxu1 %v5031_v6 }
 0xc32   : > { %2505 = vmatpush1.bf16.msra.mxu0 %v5037_v50  ;;  %2546 = vmatpush1.bf16.msra.mxu1 %v5047_v51 }
 0xc33   : > { %2506 = vmatprep.subr.bf16.mxu0 %v5042_v9  ;;  %2547 = vmatprep.subr.bf16.mxu1 %v5052_v54 }
 0xc36   : > { %2507 = vmatpush1.bf16.msra.mxu0 %v5058_v55  ;;  %2548 = vmatpush1.bf16.msra.mxu1 %v5068_v18 }
 0xc37   : > { %2508 = vmatprep.subr.bf16.mxu0 %v5063_v21  ;;  %2549 = vmatprep.subr.bf16.mxu1 %v5073_v46 }
 0xc3a   : > { %2509 = vmatpush1.bf16.msra.mxu0 %v5078_v17  ;;  %2550 = vmatpush1.bf16.msra.mxu1 %v5088_v11 }
 0xc3b   : > { %2510 = vmatprep.subr.bf16.mxu0 %v5083_v22  ;;  %2551 = vmatprep.subr.bf16.mxu1 %v5093_v29 }
 0xc3e   : > { %2511 = vmatpush1.bf16.msra.mxu0 %v5098_v10  ;;  %2552 = vmatpush1.bf16.msra.mxu1 %v5108_v13 }
 0xc3f   : > { %2512 = vmatprep.subr.bf16.mxu0 %v5103_v28  ;;  %2553 = vmatprep.subr.bf16.mxu1 %v5113_v63 }
 0xc42   : > { %2513 = vmatpush1.bf16.msra.mxu0 %v5118_v25  ;;  %2554 = vmatpush1.bf16.msra.mxu1 %v5128_v47 }
 0xc43   : > { %2514 = vmatprep.subr.bf16.mxu0 %v5123_v31  ;;  %2555 = vmatprep.subr.bf16.mxu1 %v5133_v58 }
 0xc46   : > { %2515 = vmatpush1.bf16.msra.mxu0 %v5138_v59  ;;  %2556 = vmatpush1.bf16.msra.mxu1 %v5144_v61 }
 0xc47   : > { %2620 = vmatprep.subr.bf16.mxu0 %v4989_v38  ;;  %2661 = vmatprep.subr.bf16.mxu1 %v5001_v27 }
 0xcfc   : > { %v2414_v52 = vpop.f32.mrb[8].mxu0  ;;  %v2455_v53 = vpop.f32.mrb[8].mxu1 }
 0xcfd   : > { %v2462_v56 = vadd.f32 %v2414_v52, %v2376_v0  ;;  %v2416_v30 = vpop.f32.mrb[9].mxu0  ;;  %v2457_v15 = vpop.f32.mrb[9].mxu1  ;;  %v2464_v48 = vadd.f32 %v2455_v53, %v2378_v20 }
 0xcfe   : > { %v2463_v14 = vadd.f32 %v2416_v30, %v2377_v7  ;;  %v2418_v49 = vpop.f32.mrb[10].mxu0  ;;  %v2459_v26 = vpop.f32.mrb[10].mxu1  ;;  %v2465_v12 = vadd.f32 %v2457_v15, %v2379_v23  ;;  %v2497_v30 = vld [vmem:[#allocation2 + $0x88] sm:$0xff] }
 0xcff   : > { %v3441_v24 = vmul.f32 -1.442695, %v2462_v56  ;;  %v2419_v33 = vpop.f32.mrb[11].mxu0  ;;  %v2460_v19 = vpop.f32.mrb[11].mxu1 }
 0xd00   : > { %v3442_v32 = vmul.f32 -1.442695, %v2463_v14  ;;  %v3443_v16 = vmul.f32 -1.442695, %v2465_v12 }
 0xd01   : > { %3777 = vpow2.f32 %v3441_v24 }
 0xd02   : > { %3779 = vpow2.f32 %v3442_v32 }
 0xd03   : > { %3781 = vpow2.f32 %v3443_v16 }
 0xd04   : > { %3783 = vtanh.f32 %v2464_v48  ;;  %v2499_v48 = vld [vmem:[#allocation2 + $0x98] sm:$0xff] }
 0xd0b   : > { %v3778_v57 = vpop.eup %3777 }
 0xd0c   : > { %v3780_v60 = vpop.eup %3779  ;;  %v2469_v62 = vadd.f32 1.0, %v3778_v57 }
 0xd0d   : > { %v2475_v34 = vadd.f32 1.0, %v3780_v60  ;;  %v3782_v35 = vpop.eup %3781  ;;  %v2498_v60 = vld [vmem:[#allocation2 + $0x90] sm:$0xff] }
 0xd0e   : > { %3785 = vrcp.f32 %v2469_v62  ;;  %v3784_v36 = vpop.eup %3783  ;;  %v2482_v45 = vadd.f32 1.0, %v3782_v35 }
 0xd0f   : > { %3787 = vrcp.f32 %v2475_v34 }
 0xd10   : > { %3789 = vrcp.f32 %v2482_v45 }
 0xd18   : > { %v3786_v37 = vpop.eup %3785 }
 0xd19   : > { %v3788_v43 = vpop.eup %3787  ;;  %v2486_v5 = vmul.f32 %v3786_v37, %v3784_v36 }
 0xd1a   : > { %v2485_v1 = vmul.f32 %v3788_v43, %v5224_v4  ;;  %v3790_v7 = vpop.eup %3789  ;;  %v2496_v4 = vld [vmem:[#allocation2 + $0x80] sm:$0xff] }
 0xd1c   : > { %v5263_v0 = vadd.f32 %v2486_v5, %v2485_v1 }
 0xd1e   : > { %3791 = vtanh.f32 %v5263_v0 }
 0xd28   : > { %v3792_v52 = vpop.eup %3791 }
 0xd29   : > { %v2489_v53 = vmul.f32 %v3792_v52, %v3790_v7 }
 0xd2b   : > { %v2490_v56 = vpack.c.bf16 %v2489_v53, %v2489_v53 }
 0xd2d   : > { %3444 = vst [vmem:[%s4551_s27 + $0x14] sm:$0xf] %v2490_v56  ;;  %2533 = vmatmul.mubr.bf16.vlgmr.msra.gmra.mrb[12].mxu0 %v2490_v56  ;;  %2574 = vmatmul.mubr.bf16.vlgmr.msra.gmra.mrb[12].mxu1 %v2490_v56 }
 0xd2e   : > { %2621 = vmatpush1.bf16.msra.mxu0 %v4993_v39  ;;  %2662 = vmatpush1.bf16.msra.mxu1 %v5006_v41 }
 0xd2f   : > { %2622 = vmatprep.subr.bf16.mxu0 %v4997_v40  ;;  %2663 = vmatprep.subr.bf16.mxu1 %v5010_v42 }
 0xd30   : > { %2652 = vmatprep.mubr.bf16.mxu0 %v4094_v8  ;;  %2693 = vmatprep.mubr.bf16.mxu1 %v4094_v8 }
 0xd32   : > { %2623 = vmatpush1.bf16.msra.mxu0 %v5015_v2  ;;  %2664 = vmatpush1.bf16.msra.mxu1 %v5026_v3 }
 0xd33   : > { %2624 = vmatprep.subr.bf16.mxu0 %v5021_v44  ;;  %2665 = vmatprep.subr.bf16.mxu1 %v5031_v6 }
 0xd36   : > { %2625 = vmatpush1.bf16.msra.mxu0 %v5037_v50  ;;  %2666 = vmatpush1.bf16.msra.mxu1 %v5047_v51 }
 0xd37   : > { %2626 = vmatprep.subr.bf16.mxu0 %v5042_v9  ;;  %2667 = vmatprep.subr.bf16.mxu1 %v5052_v54 }
 0xd3a   : > { %2627 = vmatpush1.bf16.msra.mxu0 %v5058_v55  ;;  %2668 = vmatpush1.bf16.msra.mxu1 %v5068_v18 }
 0xd3b   : > { %2628 = vmatprep.subr.bf16.mxu0 %v5063_v21  ;;  %2669 = vmatprep.subr.bf16.mxu1 %v5073_v46 }
 0xd3e   : > { %2629 = vmatpush1.bf16.msra.mxu0 %v5078_v17  ;;  %2670 = vmatpush1.bf16.msra.mxu1 %v5088_v11 }
 0xd3f   : > { %2630 = vmatprep.subr.bf16.mxu0 %v5083_v22  ;;  %2671 = vmatprep.subr.bf16.mxu1 %v5093_v29 }
 0xd42   : > { %2631 = vmatpush1.bf16.msra.mxu0 %v5098_v10  ;;  %2672 = vmatpush1.bf16.msra.mxu1 %v5108_v13 }
 0xd43   : > { %2632 = vmatprep.subr.bf16.mxu0 %v5103_v28  ;;  %2673 = vmatprep.subr.bf16.mxu1 %v5113_v63 }
 0xd46   : > { %2633 = vmatpush1.bf16.msra.mxu0 %v5118_v25  ;;  %2674 = vmatpush1.bf16.msra.mxu1 %v5128_v47 }
 0xd47   : > { %2634 = vmatprep.subr.bf16.mxu0 %v5123_v31  ;;  %2675 = vmatprep.subr.bf16.mxu1 %v5133_v58 }
 0xd4a   : > { %2635 = vmatpush1.bf16.msra.mxu0 %v5138_v59  ;;  %2676 = vmatpush1.bf16.msra.mxu1 %v5144_v61 }
 0xd4b   : > { %2740 = vmatprep.subr.bf16.mxu0 %v4989_v38  ;;  %2781 = vmatprep.subr.bf16.mxu1 %v5001_v27 }
 0xe00   : > { %v2534_v15 = vpop.f32.mrb[12].mxu0  ;;  %v2575_v14 = vpop.f32.mrb[12].mxu1 }
 0xe01   : > { %v2582_v49 = vadd.f32 %v2534_v15, %v2496_v4  ;;  %v2536_v26 = vpop.f32.mrb[13].mxu0  ;;  %v2577_v24 = vpop.f32.mrb[13].mxu1  ;;  %v2584_v34 = vadd.f32 %v2575_v14, %v2498_v60 }
 0xe02   : > { %v2583_v33 = vadd.f32 %v2536_v26, %v2497_v30  ;;  %v2538_v19 = vpop.f32.mrb[14].mxu0  ;;  %v2579_v32 = vpop.f32.mrb[14].mxu1  ;;  %v2585_v57 = vadd.f32 %v2577_v24, %v2499_v48  ;;  %v2617_v26 = vld [vmem:[#allocation2 + $0x68] sm:$0xff] }
 0xe03   : > { %v3445_v23 = vmul.f32 -1.442695, %v2582_v49  ;;  %v2539_v12 = vpop.f32.mrb[15].mxu0  ;;  %v2580_v20 = vpop.f32.mrb[15].mxu1 }
 0xe04   : > { %v3446_v16 = vmul.f32 -1.442695, %v2583_v33  ;;  %v3447_v62 = vmul.f32 -1.442695, %v2585_v57 }
 0xe05   : > { %3793 = vpow2.f32 %v3445_v23 }
 0xe06   : > { %3795 = vpow2.f32 %v3446_v16 }
 0xe07   : > { %3797 = vpow2.f32 %v3447_v62 }
 0xe08   : > { %3799 = vtanh.f32 %v2584_v34  ;;  %v2619_v34 = vld [vmem:[#allocation2 + $0x78] sm:$0xff] }
 0xe0f   : > { %v3794_v35 = vpop.eup %3793 }
 0xe10   : > { %v3796_v36 = vpop.eup %3795  ;;  %v2589_v37 = vadd.f32 1.0, %v3794_v35 }
 0xe11   : > { %v2595_v43 = vadd.f32 1.0, %v3796_v36  ;;  %v3798_v5 = vpop.eup %3797  ;;  %v2618_v36 = vld [vmem:[#allocation2 + $0x70] sm:$0xff] }
 0xe12   : > { %3801 = vrcp.f32 %v2589_v37  ;;  %v3800_v45 = vpop.eup %3799  ;;  %v2602_v53 = vadd.f32 1.0, %v3798_v5 }
 0xe13   : > { %3803 = vrcp.f32 %v2595_v43 }
 0xe14   : > { %3805 = vrcp.f32 %v2602_v53 }
 0xe1c   : > { %v3802_v1 = vpop.eup %3801 }
 0xe1d   : > { %v3804_v7 = vpop.eup %3803  ;;  %v2606_v52 = vmul.f32 %v3802_v1, %v3800_v45 }
 0xe1e   : > { %v2605_v56 = vmul.f32 %v3804_v7, %v5263_v0  ;;  %v3806_v30 = vpop.eup %3805  ;;  %v2616_v0 = vld [vmem:[#allocation2 + $0x60] sm:$0xff] }
 0xe20   : > { %v5302_v4 = vadd.f32 %v2606_v52, %v2605_v56 }
 0xe22   : > { %3807 = vtanh.f32 %v5302_v4 }
 0xe2c   : > { %v3808_v15 = vpop.eup %3807 }
 0xe2d   : > { %v2609_v14 = vmul.f32 %v3808_v15, %v3806_v30 }
 0xe2f   : > { %v2610_v49 = vpack.c.bf16 %v2609_v14, %v2609_v14 }
 0xe31   : > { %3448 = vst [vmem:[%s4551_s27 + $0x10] sm:$0xf] %v2610_v49  ;;  %2653 = vmatmul.mubr.bf16.vlgmr.msra.gmra.mrb[16].mxu0 %v2610_v49  ;;  %2694 = vmatmul.mubr.bf16.vlgmr.msra.gmra.mrb[16].mxu1 %v2610_v49 }
 0xe32   : > { %2741 = vmatpush1.bf16.msra.mxu0 %v4993_v39  ;;  %2782 = vmatpush1.bf16.msra.mxu1 %v5006_v41 }
 0xe33   : > { %2742 = vmatprep.subr.bf16.mxu0 %v4997_v40  ;;  %2783 = vmatprep.subr.bf16.mxu1 %v5010_v42 }
 0xe34   : > { %2772 = vmatprep.mubr.bf16.mxu0 %v4094_v8  ;;  %2813 = vmatprep.mubr.bf16.mxu1 %v4094_v8 }
 0xe36   : > { %2743 = vmatpush1.bf16.msra.mxu0 %v5015_v2  ;;  %2784 = vmatpush1.bf16.msra.mxu1 %v5026_v3 }
 0xe37   : > { %2744 = vmatprep.subr.bf16.mxu0 %v5021_v44  ;;  %2785 = vmatprep.subr.bf16.mxu1 %v5031_v6 }
 0xe3a   : > { %2745 = vmatpush1.bf16.msra.mxu0 %v5037_v50  ;;  %2786 = vmatpush1.bf16.msra.mxu1 %v5047_v51 }
 0xe3b   : > { %2746 = vmatprep.subr.bf16.mxu0 %v5042_v9  ;;  %2787 = vmatprep.subr.bf16.mxu1 %v5052_v54 }
 0xe3e   : > { %2747 = vmatpush1.bf16.msra.mxu0 %v5058_v55  ;;  %2788 = vmatpush1.bf16.msra.mxu1 %v5068_v18 }
 0xe3f   : > { %2748 = vmatprep.subr.bf16.mxu0 %v5063_v21  ;;  %2789 = vmatprep.subr.bf16.mxu1 %v5073_v46 }
 0xe42   : > { %2749 = vmatpush1.bf16.msra.mxu0 %v5078_v17  ;;  %2790 = vmatpush1.bf16.msra.mxu1 %v5088_v11 }
 0xe43   : > { %2750 = vmatprep.subr.bf16.mxu0 %v5083_v22  ;;  %2791 = vmatprep.subr.bf16.mxu1 %v5093_v29 }
 0xe46   : > { %2751 = vmatpush1.bf16.msra.mxu0 %v5098_v10  ;;  %2792 = vmatpush1.bf16.msra.mxu1 %v5108_v13 }
 0xe47   : > { %2752 = vmatprep.subr.bf16.mxu0 %v5103_v28  ;;  %2793 = vmatprep.subr.bf16.mxu1 %v5113_v63 }
 0xe4a   : > { %2753 = vmatpush1.bf16.msra.mxu0 %v5118_v25  ;;  %2794 = vmatpush1.bf16.msra.mxu1 %v5128_v47 }
 0xe4b   : > { %2754 = vmatprep.subr.bf16.mxu0 %v5123_v31  ;;  %2795 = vmatprep.subr.bf16.mxu1 %v5133_v58 }
 0xe4e   : > { %2755 = vmatpush1.bf16.msra.mxu0 %v5138_v59  ;;  %2796 = vmatpush1.bf16.msra.mxu1 %v5144_v61 }
 0xe4f   : > { %2860 = vmatprep.subr.bf16.mxu0 %v4989_v38  ;;  %2901 = vmatprep.subr.bf16.mxu1 %v5001_v27 }
 0xf04   : > { %v2654_v24 = vpop.f32.mrb[16].mxu0  ;;  %v2695_v33 = vpop.f32.mrb[16].mxu1 }
 0xf05   : > { %v2702_v19 = vadd.f32 %v2654_v24, %v2616_v0  ;;  %v2656_v32 = vpop.f32.mrb[17].mxu0  ;;  %v2697_v23 = vpop.f32.mrb[17].mxu1  ;;  %v2704_v43 = vadd.f32 %v2695_v33, %v2618_v36 }
 0xf06   : > { %v2703_v12 = vadd.f32 %v2656_v32, %v2617_v26  ;;  %v2658_v20 = vpop.f32.mrb[18].mxu0  ;;  %v2699_v16 = vpop.f32.mrb[18].mxu1  ;;  %v2705_v35 = vadd.f32 %v2697_v23, %v2619_v34  ;;  %v2737_v32 = vld [vmem:[#allocation2 + $0x48] sm:$0xff] }
 0xf07   : > { %v3449_v48 = vmul.f32 -1.442695, %v2702_v19  ;;  %v2659_v57 = vpop.f32.mrb[19].mxu0  ;;  %v2700_v60 = vpop.f32.mrb[19].mxu1 }
 0xf08   : > { %v3450_v62 = vmul.f32 -1.442695, %v2703_v12  ;;  %v3451_v37 = vmul.f32 -1.442695, %v2705_v35 }
 0xf09   : > { %3809 = vpow2.f32 %v3449_v48 }
 0xf0a   : > { %3811 = vpow2.f32 %v3450_v62 }
 0xf0b   : > { %3813 = vpow2.f32 %v3451_v37 }
 0xf0c   : > { %3815 = vtanh.f32 %v2704_v43  ;;  %v2739_v43 = vld [vmem:[#allocation2 + $0x58] sm:$0xff] }
 0xf13   : > { %v3810_v5 = vpop.eup %3809 }
 0xf14   : > { %v3812_v45 = vpop.eup %3811  ;;  %v2709_v1 = vadd.f32 1.0, %v3810_v5  ;;  %v2738_v5 = vld [vmem:[#allocation2 + $0x50] sm:$0xff] }
 0xf15   : > { %v2715_v7 = vadd.f32 1.0, %v3812_v45  ;;  %v3814_v52 = vpop.eup %3813 }
 0xf16   : > { %3817 = vrcp.f32 %v2709_v1  ;;  %v3816_v53 = vpop.eup %3815  ;;  %v2722_v14 = vadd.f32 1.0, %v3814_v52 }
 0xf17   : > { %3819 = vrcp.f32 %v2715_v7 }
 0xf18   : > { %3821 = vrcp.f32 %v2722_v14 }
 0xf20   : > { %v3818_v56 = vpop.eup %3817 }
 0xf21   : > { %v3820_v30 = vpop.eup %3819  ;;  %v2726_v15 = vmul.f32 %v3818_v56, %v3816_v53 }
 0xf22   : > { %v2725_v49 = vmul.f32 %v3820_v30, %v5302_v4  ;;  %v3822_v26 = vpop.eup %3821  ;;  %v2736_v4 = vld [vmem:[#allocation2 + $0x40] sm:$0xff] }
 0xf24   : > { %v5341_v0 = vadd.f32 %v2726_v15, %v2725_v49 }
 0xf26   : > { %3823 = vtanh.f32 %v5341_v0 }
 0xf30   : > { %v3824_v24 = vpop.eup %3823 }
 0xf31   : > { %v2729_v33 = vmul.f32 %v3824_v24, %v3822_v26 }
 0xf33   : > { %v2730_v19 = vpack.c.bf16 %v2729_v33, %v2729_v33 }
 0xf35   : > { %3452 = vst [vmem:[%s4551_s27 + $0xc] sm:$0xf] %v2730_v19  ;;  %2773 = vmatmul.mubr.bf16.vlgmr.msra.gmra.mrb[20].mxu0 %v2730_v19  ;;  %2814 = vmatmul.mubr.bf16.vlgmr.msra.gmra.mrb[20].mxu1 %v2730_v19 }
 0xf36   : > { %2861 = vmatpush1.bf16.msra.mxu0 %v4993_v39  ;;  %2902 = vmatpush1.bf16.msra.mxu1 %v5006_v41 }
 0xf37   : > { %2862 = vmatprep.subr.bf16.mxu0 %v4997_v40  ;;  %2903 = vmatprep.subr.bf16.mxu1 %v5010_v42 }
 0xf38   : > { %2892 = vmatprep.mubr.bf16.mxu0 %v4094_v8  ;;  %2933 = vmatprep.mubr.bf16.mxu1 %v4094_v8 }
 0xf3a   : > { %2863 = vmatpush1.bf16.msra.mxu0 %v5015_v2  ;;  %2904 = vmatpush1.bf16.msra.mxu1 %v5026_v3 }
 0xf3b   : > { %2864 = vmatprep.subr.bf16.mxu0 %v5021_v44  ;;  %2905 = vmatprep.subr.bf16.mxu1 %v5031_v6 }
 0xf3e   : > { %2865 = vmatpush1.bf16.msra.mxu0 %v5037_v50  ;;  %2906 = vmatpush1.bf16.msra.mxu1 %v5047_v51 }
 0xf3f   : > { %2866 = vmatprep.subr.bf16.mxu0 %v5042_v9  ;;  %2907 = vmatprep.subr.bf16.mxu1 %v5052_v54 }
 0xf42   : > { %2867 = vmatpush1.bf16.msra.mxu0 %v5058_v55  ;;  %2908 = vmatpush1.bf16.msra.mxu1 %v5068_v18 }
 0xf43   : > { %2868 = vmatprep.subr.bf16.mxu0 %v5063_v21  ;;  %2909 = vmatprep.subr.bf16.mxu1 %v5073_v46 }
 0xf46   : > { %2869 = vmatpush1.bf16.msra.mxu0 %v5078_v17  ;;  %2910 = vmatpush1.bf16.msra.mxu1 %v5088_v11 }
 0xf47   : > { %2870 = vmatprep.subr.bf16.mxu0 %v5083_v22  ;;  %2911 = vmatprep.subr.bf16.mxu1 %v5093_v29 }
 0xf4a   : > { %2871 = vmatpush1.bf16.msra.mxu0 %v5098_v10  ;;  %2912 = vmatpush1.bf16.msra.mxu1 %v5108_v13 }
 0xf4b   : > { %2872 = vmatprep.subr.bf16.mxu0 %v5103_v28  ;;  %2913 = vmatprep.subr.bf16.mxu1 %v5113_v63 }
 0xf4e   : > { %2873 = vmatpush1.bf16.msra.mxu0 %v5118_v25  ;;  %2914 = vmatpush1.bf16.msra.mxu1 %v5128_v47 }
 0xf4f   : > { %2874 = vmatprep.subr.bf16.mxu0 %v5123_v31  ;;  %2915 = vmatprep.subr.bf16.mxu1 %v5133_v58 }
 0xf52   : > { %2875 = vmatpush1.bf16.msra.mxu0 %v5138_v59  ;;  %2916 = vmatpush1.bf16.msra.mxu1 %v5144_v61 }
 0xf53   : > { %2980 = vmatprep.subr.bf16.mxu0 %v4989_v38  ;;  %3021 = vmatprep.subr.bf16.mxu1 %v5001_v27 }
0x1008   : > { %v2774_v23 = vpop.f32.mrb[20].mxu0  ;;  %v2815_v12 = vpop.f32.mrb[20].mxu1 }
0x1009   : > { %v2822_v20 = vadd.f32 %v2774_v23, %v2736_v4  ;;  %v2776_v16 = vpop.f32.mrb[21].mxu0  ;;  %v2817_v48 = vpop.f32.mrb[21].mxu1  ;;  %v2824_v45 = vadd.f32 %v2815_v12, %v2738_v5 }
0x100a   : > { %v2823_v57 = vadd.f32 %v2776_v16, %v2737_v32  ;;  %v2778_v60 = vpop.f32.mrb[22].mxu0  ;;  %v2819_v62 = vpop.f32.mrb[22].mxu1  ;;  %v2825_v38 = vadd.f32 %v2817_v48, %v2739_v43  ;;  %v2976_v48 = vld [vmem:[#allocation2] sm:$0xff] }
0x100b   : > { %v3453_v34 = vmul.f32 -1.442695, %v2822_v20  ;;  %v2779_v35 = vpop.f32.mrb[23].mxu0  ;;  %v2820_v36 = vpop.f32.mrb[23].mxu1 }
0x100c   : > { %v3454_v37 = vmul.f32 -1.442695, %v2823_v57  ;;  %v3455_v27 = vmul.f32 -1.442695, %v2825_v38  ;;  %v2977_v57 = vld [vmem:[#allocation2 + $0x8] sm:$0xff] }
0x100d   : > { %3825 = vpow2.f32 %v3453_v34 }
0x100e   : > { %3827 = vpow2.f32 %v3454_v37 }
0x100f   : > { %3829 = vpow2.f32 %v3455_v27 }
0x1010   : > { %3831 = vtanh.f32 %v2824_v45 }
0x1017   : > { %v3826_v1 = vpop.eup %3825 }
0x1018   : > { %v3828_v7 = vpop.eup %3827  ;;  %v2829_v52 = vadd.f32 1.0, %v3826_v1 }
0x1019   : > { %v2835_v53 = vadd.f32 1.0, %v3828_v7  ;;  %v3830_v56 = vpop.eup %3829  ;;  %v2979_v7 = vld [vmem:[#allocation2 + $0x18] sm:$0xff] }
0x101a   : > { %3833 = vrcp.f32 %v2829_v52  ;;  %v3832_v30 = vpop.eup %3831  ;;  %v2842_v26 = vadd.f32 1.0, %v3830_v56 }
0x101b   : > { %3835 = vrcp.f32 %v2835_v53  ;;  %v2978_v53 = vld [vmem:[#allocation2 + $0x10] sm:$0xff] }
0x101c   : > { %3837 = vrcp.f32 %v2842_v26 }
0x1024   : > { %v3834_v15 = vpop.eup %3833 }
0x1025   : > { %v3836_v14 = vpop.eup %3835  ;;  %v2846_v49 = vmul.f32 %v3834_v15, %v3832_v30 }
0x1026   : > { %v2845_v24 = vmul.f32 %v3836_v14, %v5341_v0  ;;  %v3838_v19 = vpop.eup %3837 }
0x1028   : > { %v5380_v33 = vadd.f32 %v2846_v49, %v2845_v24 }
0x102a   : > { %3839 = vtanh.f32 %v5380_v33 }
0x1034   : > { %v3840_v4 = vpop.eup %3839 }
0x1035   : > { %v2849_v32 = vmul.f32 %v3840_v4, %v3838_v19 }
0x1037   : > { %v2850_v23 = vpack.c.bf16 %v2849_v32, %v2849_v32 }
0x1039   : > { %3456 = vst [vmem:[%s4551_s27 + $0x8] sm:$0xf] %v2850_v23  ;;  %2893 = vmatmul.mubr.bf16.vlgmr.msra.gmra.mrb[24].mxu0 %v2850_v23  ;;  %2934 = vmatmul.mubr.bf16.vlgmr.msra.gmra.mrb[24].mxu1 %v2850_v23 }
0x103a   : > { %2981 = vmatpush1.bf16.msra.mxu0 %v4993_v39  ;;  %3022 = vmatpush1.bf16.msra.mxu1 %v5006_v41  ;;  %v2856_v39 = vld [vmem:[#allocation2 + $0x20] sm:$0xff] }
0x103b   : > { %2982 = vmatprep.subr.bf16.mxu0 %v4997_v40  ;;  %3023 = vmatprep.subr.bf16.mxu1 %v5010_v42  ;;  %v2857_v40 = vld [vmem:[#allocation2 + $0x28] sm:$0xff] }
0x103c   : > { %3012 = vmatprep.mubr.bf16.mxu0 %v4094_v8  ;;  %3053 = vmatprep.mubr.bf16.mxu1 %v4094_v8 }
0x103e   : > { %2983 = vmatpush1.bf16.msra.mxu0 %v5015_v2  ;;  %3024 = vmatpush1.bf16.msra.mxu1 %v5026_v3 }
0x103f   : > { %2984 = vmatprep.subr.bf16.mxu0 %v5021_v44  ;;  %3025 = vmatprep.subr.bf16.mxu1 %v5031_v6 }
0x1042   : > { %2985 = vmatpush1.bf16.msra.mxu0 %v5037_v50  ;;  %3026 = vmatpush1.bf16.msra.mxu1 %v5047_v51 }
0x1043   : > { %2986 = vmatprep.subr.bf16.mxu0 %v5042_v9  ;;  %3027 = vmatprep.subr.bf16.mxu1 %v5052_v54 }
0x1046   : > { %2987 = vmatpush1.bf16.msra.mxu0 %v5058_v55  ;;  %3028 = vmatpush1.bf16.msra.mxu1 %v5068_v18 }
0x1047   : > { %2988 = vmatprep.subr.bf16.mxu0 %v5063_v21  ;;  %3029 = vmatprep.subr.bf16.mxu1 %v5073_v46  ;;  %v2859_v21 = vld [vmem:[#allocation2 + $0x38] sm:$0xff]  ;;  %v2858_v46 = vld [vmem:[#allocation2 + $0x30] sm:$0xff] }
0x104a   : > { %2989 = vmatpush1.bf16.msra.mxu0 %v5078_v17  ;;  %3030 = vmatpush1.bf16.msra.mxu1 %v5088_v11 }
0x104b   : > { %2990 = vmatprep.subr.bf16.mxu0 %v5083_v22  ;;  %3031 = vmatprep.subr.bf16.mxu1 %v5093_v29 }
0x104e   : > { %2991 = vmatpush1.bf16.msra.mxu0 %v5098_v10  ;;  %3032 = vmatpush1.bf16.msra.mxu1 %v5108_v13 }
0x104f   : > { %2992 = vmatprep.subr.bf16.mxu0 %v5103_v28  ;;  %3033 = vmatprep.subr.bf16.mxu1 %v5113_v63 }
0x1052   : > { %2993 = vmatpush1.bf16.msra.mxu0 %v5118_v25  ;;  %3034 = vmatpush1.bf16.msra.mxu1 %v5128_v47 }
0x1053   : > { %2994 = vmatprep.subr.bf16.mxu0 %v5123_v31  ;;  %3035 = vmatprep.subr.bf16.mxu1 %v5133_v58 }
0x1056   : > { %2995 = vmatpush1.bf16.msra.mxu0 %v5138_v59  ;;  %3036 = vmatpush1.bf16.msra.mxu1 %v5144_v61 }
0x110c   : > { %v2894_v41 = vpop.f32.mrb[24].mxu0  ;;  %v2935_v42 = vpop.f32.mrb[24].mxu1 }
0x110d   : > { %v2942_v2 = vadd.f32 %v2894_v41, %v2856_v39  ;;  %v2896_v44 = vpop.f32.mrb[25].mxu0  ;;  %v2937_v3 = vpop.f32.mrb[25].mxu1  ;;  %v2944_v22 = vadd.f32 %v2935_v42, %v2858_v46 }
0x110e   : > { %v2943_v6 = vadd.f32 %v2896_v44, %v2857_v40  ;;  %v2898_v8 = vpop.f32.mrb[26].mxu0  ;;  %v2939_v50 = vpop.f32.mrb[26].mxu1  ;;  %v2945_v18 = vadd.f32 %v2937_v3, %v2859_v21 }
0x110f   : > { %v3457_v9 = vmul.f32 -1.442695, %v2942_v2  ;;  %v2899_v51 = vpop.f32.mrb[27].mxu0  ;;  %v2940_v54 = vpop.f32.mrb[27].mxu1 }
0x1110   : > { %v3458_v55 = vmul.f32 -1.442695, %v2943_v6  ;;  %v3459_v17 = vmul.f32 -1.442695, %v2945_v18 }
0x1111   : > { %3841 = vpow2.f32 %v3457_v9 }
0x1112   : > { %3843 = vpow2.f32 %v3458_v55 }
0x1113   : > { %3845 = vpow2.f32 %v3459_v17 }
0x1114   : > { %3847 = vtanh.f32 %v2944_v22 }
0x111b   : > { %v3842_v11 = vpop.eup %3841 }
0x111c   : > { %v3844_v29 = vpop.eup %3843  ;;  %v2949_v10 = vadd.f32 1.0, %v3842_v11 }
0x111d   : > { %v2955_v28 = vadd.f32 1.0, %v3844_v29  ;;  %v3846_v13 = vpop.eup %3845 }
0x111e   : > { %3849 = vrcp.f32 %v2949_v10  ;;  %v3848_v63 = vpop.eup %3847  ;;  %v2962_v58 = vadd.f32 1.0, %v3846_v13 }
0x111f   : > { %3851 = vrcp.f32 %v2955_v28 }
0x1120   : > { %3853 = vrcp.f32 %v2962_v58 }
0x1128   : > { %v3850_v25 = vpop.eup %3849 }
0x1129   : > { %v3852_v31 = vpop.eup %3851  ;;  %v2966_v47 = vmul.f32 %v3850_v25, %v3848_v63 }
0x112a   : > { %v2965_v59 = vmul.f32 %v3852_v31, %v5380_v33  ;;  %v3854_v0 = vpop.eup %3853 }
0x112c   : > { %v2967_v61 = vadd.f32 %v2966_v47, %v2965_v59 }
0x112e   : > { %3855 = vtanh.f32 %v2967_v61 }
0x1138   : > { %v3856_v12 = vpop.eup %3855 }
0x1139   : > { %v2969_v20 = vmul.f32 %v3856_v12, %v3854_v0 }
0x113b   : > { %v2970_v16 = vpack.c.bf16 %v2969_v20, %v2969_v20 }
0x113d   : > { %3460 = vst [vmem:[%s4551_s27 + $0x4] sm:$0xf] %v2970_v16  ;;  %3013 = vmatmul.mubr.bf16.vlgmr.msra.gmra.mrb[28].mxu0 %v2970_v16  ;;  %3054 = vmatmul.mubr.bf16.vlgmr.msra.gmra.mrb[28].mxu1 %v2970_v16 }
0x1210   : > { %v3014_v60 = vpop.f32.mrb[28].mxu0  ;;  %v3055_v62 = vpop.f32.mrb[28].mxu1 }
0x1211   : > { %v3062_v34 = vadd.f32 %v3014_v60, %v2976_v48  ;;  %v3016_v35 = vpop.f32.mrb[29].mxu0  ;;  %v3057_v36 = vpop.f32.mrb[29].mxu1  ;;  %v3064_v30 = vadd.f32 %v3055_v62, %v2978_v53 }
0x1212   : > { %v3063_v37 = vadd.f32 %v3016_v35, %v2977_v57  ;;  %v3018_v43 = vpop.f32.mrb[30].mxu0  ;;  %v3059_v38 = vpop.f32.mrb[30].mxu1  ;;  %v3065_v52 = vadd.f32 %v3057_v36, %v2979_v7 }
0x1213   : > { %v3461_v5 = vmul.f32 -1.442695, %v3062_v34  ;;  %v3019_v27 = vpop.f32.mrb[31].mxu0  ;;  %v3060_v45 = vpop.f32.mrb[31].mxu1 }
0x1214   : > { %v3462_v1 = vmul.f32 -1.442695, %v3063_v37  ;;  %v3463_v56 = vmul.f32 -1.442695, %v3065_v52 }
0x1215   : > { %3857 = vpow2.f32 %v3461_v5 }
0x1216   : > { %3859 = vpow2.f32 %v3462_v1 }
0x1217   : > { %3861 = vpow2.f32 %v3463_v56 }
0x1218   : > { %3863 = vtanh.f32 %v3064_v30 }
0x121f   : > { %v3858_v15 = vpop.eup %3857 }
0x1220   : > { %v3860_v14 = vpop.eup %3859  ;;  %v3069_v49 = vadd.f32 1.0, %v3858_v15 }
0x1221   : > { %v3075_v26 = vadd.f32 1.0, %v3860_v14  ;;  %v3862_v24 = vpop.eup %3861 }
0x1222   : > { %3865 = vrcp.f32 %v3069_v49  ;;  %v3864_v33 = vpop.eup %3863  ;;  %v3082_v23 = vadd.f32 1.0, %v3862_v24 }
0x1223   : > { %3867 = vrcp.f32 %v3075_v26 }
0x1224   : > { %3869 = vrcp.f32 %v3082_v23 }
0x122c   : > { %v3866_v19 = vpop.eup %3865 }
0x122d   : > { %v3868_v4 = vpop.eup %3867  ;;  %v3086_v32 = vmul.f32 %v3866_v19, %v3864_v33 }
0x122e   : > { %v3085_v39 = vmul.f32 %v3868_v4, %v2967_v61  ;;  %v3870_v41 = vpop.eup %3869 }
0x1230   : > { %v3087_v40 = vadd.f32 %v3086_v32, %v3085_v39 }
0x1232   : > { %3871 = vtanh.f32 %v3087_v40  ;;  %3093 = vst [vmem:[#allocation4] sm:$0xff] %v3087_v40 }
0x123c   : > { %v3872_v42 = vpop.eup %3871 }
0x123d   : > { %v3089_v2 = vmul.f32 %v3872_v42, %v3870_v41 }
0x123f   : > { %v3090_v44 = vpack.c.bf16 %v3089_v2, %v3089_v2  ;;  %3092 = vst [vmem:[#allocation3] sm:$0xff] %v3089_v2 }
0x1241   : > { %3091 = vst [vmem:[%s4551_s27] sm:$0xf] %v3090_v44 }
0x1242 PF: > { %s3472_s13 = sshll.u32 %s4073_s18, 9  ;;  %s3114_s20 = sshll.u32 %s4551_s27, 4  ;;  %s5426_s20 = int_to_ptr.vmem [resolvable:$true] %s3114_s20 }
0x1243   : > { %s5423_s25 = scalar_lea.hbm %s5479_s4, %s3472_s13  ;;  %s3095_s10 = scalar_lea.sflag [#allocation7], %s4352_s29 }
0x1244   : > { %s3991_s6 = scalar_lea.vmem %s5426_s20, 512  ;;  %p5621_p13 = scmp.ne.s32.totalorder %s5552_s28, 0 }
0x1245   : > { %p3992_p11 = scmp.ne.s32.totalorder %s5426_s20, %s3991_s6  ;;  %s4095_s12 = smov [#allocation13]  }
0x1246   : > { %s3995_s5 = sshll.u32 %s4095_s12, 4  ;;  %s3996_s5 = int_to_ptr.vmem [resolvable:$false] %s3995_s5 }
0x1247   : > { %p3993_p1 = pnand %p3992_p11, %p5621_p13  ;;  %s3997_s18 = scalar_lea.vmem %s3996_s5, 1024 }
0x1248   : > { %p3998_p3 = scmp.lt.s32.totalorder %s5426_s20, %s3996_s5  ;;  %p3999_p6 = scmp.lt.s32.totalorder %s3997_s18, %s3991_s6 }
0x1249   : > { %p3994_p0 = pneg %p3993_p1 }
0x124a   : > { %p4000_p2 = por %p3999_p6, %p3998_p3 }
0x124c   : > { %p4001_p10 = pnand %p4000_p2, %p3994_p0 }
0x124e   : > { %4004 = shalt.err (!%p4001_p10)
}
0x124f   : > { %s4005_s9 = scalar_lea.hbm %s5423_s25, 512  ;;  %s4009_s14 = scalar_lea.hbm %s5479_s4, 1024 }
0x1250   : > { %p4006_p4 = scmp.ne.s32.totalorder %s5423_s25, %s4005_s9  ;;  %p4010_p8 = scmp.lt.u32.totalorder %s5423_s25, %s5479_s4 }
0x1251   : > { %p4011_p5 = scmp.lt.u32.totalorder %s4009_s14, %s4005_s9  ;;  %p4013_p11 = scmp.lt.u32.totalorder %s4005_s9, %s5423_s25 }
0x1252   : > { %p4007_p12 = pnand %p4006_p4, %p5621_p13 }
0x1253   : > { %p4012_p9 = por %p4011_p5, %p4010_p8 }
0x1254   : > { %p4008_p7 = pneg %p4007_p12 }
0x1255   : > { %p4014_p1 = por %p4013_p11, %p4012_p9 }
0x1257   : > { %p4015_p0 = pnand %p4014_p1, %p4008_p7 }
0x1259   : > { %4018 = shalt.err (!%p4015_p0)
}
0x125a   : > { %s4096_s7 = smov 64   ;;  %s4097_s17 = smov 4  }
0x125b   : > { %3483 = dma.vmem_to_hbm [thread:$0]  (%p5621_p13), %s5426_s20, 512, %s5423_s25, %s3095_s10, %s4096_s7, %s4096_s7, %s4097_s17  }
0x125c PF: > { %s5622_s21 = sld [smem:[#allocation19_spill]]  ;;  %s3129_s11 = sand.u32 1, %s4061_s15  }
0x125d   : > { %p5623_p3 = scmp.ne.s32.totalorder %s5554_s30, 0  ;;  %s3130_s27 = scalar_lea.sflag [#allocation7], %s3129_s11 }
0x1262   : > { %p5624_p6 = scmp.ge.s32.totalorder %s5622_s21, 2 }
0x1264   : > { %p3499_p2 = pnand %p5624_p6, %p5623_p3 }
0x1266   : > { %4056 = dma.done.wait (!%p3499_p2), %s3130_s27, 512  }
0x1267   : > { %4058 = vsyncadd (!%p3499_p2), %s3130_s27, 4294966784  ;;  %s26_s20 = sadd.s32 1, %s5622_s21   ;;  %s5625_s13 = sld [smem:[#allocation18_spill]] }
0x1268   : > { %p23_p10 = scmp.ge.s32.totalorder %s26_s20, 4   ;;  %s5626_s17 = sld [smem:[#allocation21_spill]] }
0x1269   : > { %s5627_s28 = sld [smem:[#allocation20_spill]]  ;;  %s5628_s15 = smov %s4065_s16 }
0x126a   : > { %s5630_s18 = smov %s4077_s19  ;;  %25 = sbr.rel (!%p23_p10) target bundleno = 12 (0xc), region = 160 }
0x126d   : > { %s5629_s16 = smov %s5625_s13 }
0x126f   : > { %s5631_s19 = smov %s5627_s28 }
0x1271   :  { %3135 = vsyncpa [#allocation6], 1 }
0x1272   :  { %3137 = vsyncpa [#allocation6 + $0x1], 1 }
0x1273   :  { %3138 = vsyncpa [#allocation9], 1 }
0x1274   :  { %3140 = vsyncpa [#allocation9 + $0x1], 1 }
0x1275   :  { %3141 = vsyncpa [#allocation12], 1 }
0x1276   :  { %3143 = vsyncpa [#allocation12 + $0x1], 1 }
0x1277   :  { %3144 = vsyncpa [#allocation7], 1 }
0x1278   :  { %3146 = vsyncpa [#allocation7 + $0x1], 1 }

// kernel: imdb_forward.4
= control target key start
LH: loop header
LB: loop body
LE: loop exit
PB: predicated region body
PF: predicated region fallthrough
CT: control target
= control target key end

     0   :  { %s6044_s0 = inlined_call_operand.hbm [shape: bf16[2,64,128], index: 0, kind: input, shape index: {}]   ;;  %s6045_s1 = inlined_call_operand.hbm [shape: bf16[2,2,128,512], index: 1, kind: input, shape index: {}]   ;;  %s6046_s2 = inlined_call_operand.hbm [shape: bf16[2,128,512], index: 2, kind: input, shape index: {}]   ;;  %s6047_s3 = inlined_call_operand.hbm [shape: f32[2,1,512], index: 3, kind: input, shape index: {}]   ;;  %s6048_s4 = inlined_call_operand.hbm [shape: f32[2,8,128], index: 4, kind: output, shape index: {}]  }
   0x1   :  { %6118 = sst [smem:[#allocation48_spill]] %s6045_s1 }
   0x2   :  { %9 = vsyncpa [#allocation6], 0 }
   0x3   :  { %11 = vsyncpa [#allocation6 + $0x1], 0 }
   0x4   :  { %12 = vsyncpa [#allocation9], 0 }
   0x5   :  { %14 = vsyncpa [#allocation9 + $0x1], 0 }
   0x6   :  { %15 = vsyncpa [#allocation12], 0 }
   0x7   :  { %17 = vsyncpa [#allocation12 + $0x1], 0 }
   0x8   :  { %18 = vsyncpa [#allocation7], 0 }
   0x9   :  { %20 = vsyncpa [#allocation7 + $0x1], 0  ;;  %s4632_s15 = smov 0   ;;  %s4634_s16 = smov 0  }
   0xa   :  { %s4636_s17 = smov 0   ;;  %s4638_s18 = smov 0  }
   0xb   :  { %s4640_s19 = smov 0   ;;  %s4642_s20 = smov 0  }
   0xc LB: > { %6119 = sst [smem:[#allocation18_spill]] %s4580_s17  ;;  %s4663_s21 = sadd.s32 4294967295, %s4592_s20   ;;  %s4592_s20 = sphi %s4642_s20, %s26_s20   ;;  %s4588_s19 = sphi %s4640_s19, %s6207_s19   ;;  %s4584_s18 = sphi %s4638_s18, %s6206_s18   ;;  %s4580_s17 = sphi %s4636_s17, %s6202_s17   ;;  %s4576_s16 = sphi %s4634_s16, %s6205_s16   ;;  %s4572_s15 = sphi %s4632_s15, %s6204_s15  }
   0xd   : > { %6120 = sst [smem:[#allocation19_spill]] %s4592_s20  ;;  %s3650_s22 = sadd.s32 4294967294, %s4592_s20  }
   0xe   : > { %s38_s23 = sadd.s32 1, %s4588_s19  ;;  %s79_s24 = sadd.s32 1, %s4580_s17 }
   0xf   : > { %p40_p0 = scmp.ge.s32.totalorder %s38_s23, 2  ;;  %p86_p1 = scmp.ne.s32.totalorder %s4580_s17, %s4576_s16 }
  0x10   : > { %p6051_p2 = scmp.eq.s32.totalorder %s4592_s20, 0  ;;  %p92_p3 = scmp.ne.s32.totalorder %s4576_s16, %s4572_s15 }
  0x11   : > { %s6209_s23 = smov (%p40_p0, %s38_s23), 0  ;;  %p6049_p5 = scmp.eq.s32.totalorder %s4663_s21, 0 }
  0x12   : > { %6121 = sst [smem:[#allocation20_spill]] %s6209_s23  ;;  %p4677_p4 = por %p6051_p2, %p86_p1 }
  0x13   : > { %s76_s26 = ssub.s32 %s4588_s19, %s6209_s23  ;;  %p168_p6 = scmp.eq.s32.totalorder %s4663_s21, 1 }
  0x14   : > { %p77_p7 = scmp.eq.s32.totalorder %s76_s26, 0  ;;  %p4687_p8 = por %p6049_p5, %p92_p3 }
  0x15   : > { %p4691_p9 = por %p168_p6, %p86_p1  ;;  %p174_p10 = scmp.eq.s32.totalorder %s3650_s22, 1 }
  0x16   : > { %s6123_s27 = scalar_select %p4687_p8, 1, 0 }
  0x17   : > { %s6124_s28 = scalar_select %p4691_p9, 1, 0 }
  0x18   : > { %s4696_s29 = scalar_select %p77_p7, %s4580_s17, %s79_s24  }
  0x19   : > { %p4698_p11 = por %p174_p10, %p92_p3  ;;  %p6050_p13 = scmp.lt.s32.totalorder %s4592_s20, 2 }
  0x1a   : > { %6125 = sst [smem:[#allocation21_spill]] %s4696_s29  ;;  %s219_s5 = sand.u32 1, %s4592_s20  }
  0x1b   : > { %s6126_s30 = scalar_select %p4698_p11, 1, 0 }
  0x1c   : > { %s4706_s6 = sand.u32 1, %s4580_s17   ;;  %s3899_s8 = sshll.u32 %s4588_s19, 13 }
  0x1d   : > { %s3654_s7 = sshll.u32 %s4706_s6, 9  ;;  %s6127_s1 = sld [smem:[#allocation48_spill]] }
  0x1e   : > { %s223_s12 = scalar_lea.vmem [#allocation8], %s3654_s7  ;;  %p4721_p0 = pnand %p6050_p13, %p4677_p4 }
  0x1f   : > { %s230_s13 = sshll.u32 %s223_s12, 4  ;;  %s4726_s22 = scalar_lea.sflag [#allocation9], %s219_s5  ;;  %s4715_s13 = int_to_ptr.vmem [resolvable:$true] %s230_s13 }
  0x20   : > { %s6128_s14 = scalar_select %p4721_p0, 1, 0 }
  0x21   : > { %p4732_p6 = pneg %p4721_p0 }
  0x23   : > { %s4713_s11 = scalar_lea.hbm %s6127_s1, %s3899_s8  ;;  %s4389_s8 = scalar_lea.hbm %s6127_s1, 16384 }
  0x24   : > { %s4384_s24 = scalar_lea.hbm %s4713_s11, 8192  ;;  %p4390_p4 = scmp.lt.u32.totalorder %s4713_s11, %s6127_s1 }
  0x25   : > { %p4385_p3 = scmp.ne.s32.totalorder %s4713_s11, %s4384_s24  ;;  %p4391_p12 = scmp.lt.u32.totalorder %s4389_s8, %s4384_s24 }
  0x26   : > { %s6129_s26 = scalar_select %p4732_p6, 1, 0 }
  0x27   : > { %p4387_p7 = pnand %p4732_p6, %p4385_p3  ;;  %p4392_p5 = por %p4391_p12, %p4390_p4 }
  0x28   : > { %p4393_p13 = scmp.lt.u32.totalorder %s4384_s24, %s4713_s11 }
  0x29   : > { %p4388_p10 = pneg %p4387_p7 }
  0x2a   : > { %p4394_p2 = por %p4393_p13, %p4392_p5 }
  0x2c   : > { %p4395_p1 = pnand %p4394_p2, %p4388_p10 }
  0x2e   : > { %4398 = shalt.err (!%p4395_p1)
}
  0x2f   : > { %s4399_s5 = scalar_lea.vmem %s4715_s13, 8192  ;;  %s4594_s12 = smov [#allocation8]  }
  0x30   : > { %p4400_p3 = scmp.ne.s32.totalorder %s4715_s13, %s4399_s5  ;;  %s4404_s25 = sshll.u32 %s4594_s12, 4  ;;  %s4405_s25 = int_to_ptr.vmem [resolvable:$false] %s4404_s25 }
  0x31   : > { %s4406_s7 = scalar_lea.vmem %s4405_s25, 16384  ;;  %p4407_p9 = scmp.lt.s32.totalorder %s4715_s13, %s4405_s25 }
  0x32   : > { %p4402_p7 = pnand %p4400_p3, %p4732_p6  ;;  %p4408_p8 = scmp.lt.s32.totalorder %s4406_s7, %s4399_s5 }
  0x34   : > { %p4403_p11 = pneg %p4402_p7  ;;  %p4409_p12 = por %p4408_p8, %p4407_p9 }
  0x36   : > { %p4410_p4 = pnand %p4409_p12, %p4403_p11 }
  0x38   : > { %4413 = shalt.err (!%p4410_p4)
}
  0x39   : > { %s6054_s24 = smov 256   ;;  %s6055_s8 = smov 16  }
  0x3a   : > { %3952 = dma.hbm_to_vmem [thread:$0]  (!%p4721_p0), %s4713_s11, 8192, %s4715_s13, %s4726_s22, %s6054_s24, %s6054_s24, %s6055_s8  }
  0x3b   : > { %p278_p2 = scmp.lt.s32.totalorder %s4592_s20, 3  ;;  %p6130_p5 = scmp.ge.s32.totalorder %s4592_s20, 1 }
  0x3c   : > { %s4597_s10 = smov [#allocation5]   ;;  %p6132_p9 = scmp.eq.s32.totalorder %s4592_s20, 0 }
  0x3d   : > { %p4762_p8 = pnand %p6130_p5, %p278_p2  ;;  %s209_s5 = sshll.u32 %s4597_s10, 4  ;;  %s210_s5 = int_to_ptr.vmem [resolvable:$true] %s209_s5 }
  0x3e   : > { %p6133_p11 = scmp.lt.s32.totalorder %s4592_s20, 2  ;;  %s3657_s25 = sshll.u32 %s4706_s6, 8 }
  0x3f   : > { %s6131_s9 = scalar_select %p4762_p8, 1, 0 }
  0x40   : > { %p4770_p13 = pnand %p6133_p11, %p6132_p9  ;;  %s4414_s11 = scalar_lea.hbm %s6044_s0, 1024 }
  0x41   : > { %p4415_p1 = scmp.ne.s32.totalorder %s6044_s0, %s4414_s11  ;;  %p4421_p12 = scmp.lt.u32.totalorder %s4414_s11, %s6044_s0 }
  0x42   : > { %p4416_p10 = pneg %p4770_p13 }
  0x44   : > { %p4417_p3 = pnand %p4416_p10, %p4415_p1 }
  0x46   : > { %p4418_p7 = pneg %p4417_p3 }
  0x48   : > { %p4423_p4 = pnand %p4421_p12, %p4418_p7 }
  0x4a   : > { %4426 = shalt.err (!%p4423_p4)
}
  0x4b   : > { %s4427_s23 = scalar_lea.vmem %s210_s5, 1024  ;;  %s4434_s1 = scalar_lea.vmem %s210_s5, 2048 }
  0x4c   : > { %p4428_p2 = scmp.ne.s32.totalorder %s210_s5, %s4427_s23  ;;  %p4435_p11 = scmp.lt.s32.totalorder %s210_s5, %s210_s5 }
  0x4d   : > { %p4436_p8 = scmp.lt.s32.totalorder %s4434_s1, %s4427_s23 }
  0x4e   : > { %p4430_p5 = pnand %p4428_p2, %p4416_p10 }
  0x4f   : > { %p4437_p0 = por %p4436_p8, %p4435_p11 }
  0x50   : > { %p4431_p9 = pneg %p4430_p5 }
  0x52   : > { %p4438_p6 = pnand %p4437_p0, %p4431_p9 }
  0x54   : > { %4441 = shalt.err (!%p4438_p6)
}
  0x55   : > { %s4598_s24 = smov 64   ;;  %s4599_s7 = smov 4  }
  0x56   : > { %3949 = dma.hbm_to_vmem [thread:$0]  (!%p4770_p13), %s6044_s0, 1024, %s210_s5, [#allocation6], %s4598_s24, %s4598_s24, %s4599_s7  }
  0x57   : > { %s3900_s13 = sshll.u32 %s4588_s19, 12  ;;  %s244_s23 = scalar_lea.vmem [#allocation10], %s3657_s25 }
  0x58   : > { %s4795_s17 = scalar_lea.hbm %s6046_s2, %s3900_s13  ;;  %s251_s1 = sshll.u32 %s244_s23, 4  ;;  %s4797_s1 = int_to_ptr.vmem [resolvable:$true] %s251_s1 }
  0x59   : > { %s4442_s20 = scalar_lea.hbm %s4795_s17, 4096  ;;  %p6135_p6 = scmp.ne.s32.totalorder %s6129_s26, 0 }
  0x5a   : > { %p4443_p0 = scmp.ne.s32.totalorder %s4795_s17, %s4442_s20  ;;  %s4447_s24 = scalar_lea.hbm %s6046_s2, 8192 }
  0x5b   : > { %p4448_p13 = scmp.lt.u32.totalorder %s4795_s17, %s6046_s2  ;;  %p4449_p10 = scmp.lt.u32.totalorder %s4447_s24, %s4442_s20 }
  0x5c   : > { %p4445_p8 = pnand %p4443_p0, %p6135_p6  ;;  %p4451_p7 = scmp.lt.u32.totalorder %s4442_s20, %s4795_s17 }
  0x5d   : > { %p4450_p3 = por %p4449_p10, %p4448_p13 }
  0x5e   : > { %p4446_p1 = pneg %p4445_p8 }
  0x5f   : > { %p4452_p12 = por %p4451_p7, %p4450_p3 }
  0x61   : > { %p4453_p4 = pnand %p4452_p12, %p4446_p1 }
  0x63   : > { %4456 = shalt.err (!%p4453_p4)
}
  0x64   : > { %s4457_s25 = scalar_lea.vmem %s4797_s1, 4096  ;;  %s4600_s8 = smov [#allocation10]  }
  0x65   : > { %p4458_p2 = scmp.ne.s32.totalorder %s4797_s1, %s4457_s25  ;;  %s4462_s11 = sshll.u32 %s4600_s8, 4  ;;  %s4463_s11 = int_to_ptr.vmem [resolvable:$false] %s4462_s11 }
  0x66   : > { %s4464_s13 = scalar_lea.vmem %s4463_s11, 8192  ;;  %p4465_p11 = scmp.lt.s32.totalorder %s4797_s1, %s4463_s11 }
  0x67   : > { %p4460_p5 = pnand %p4458_p2, %p6135_p6  ;;  %p4466_p0 = scmp.lt.s32.totalorder %s4464_s13, %s4457_s25 }
  0x69   : > { %p4461_p9 = pneg %p4460_p5  ;;  %p4467_p8 = por %p4466_p0, %p4465_p11 }
  0x6b   : > { %p4468_p13 = pnand %p4467_p8, %p4461_p9 }
  0x6d   : > { %4471 = shalt.err (!%p4468_p13)
}
  0x6e   : > { %p6136_p1 = scmp.ne.s32.totalorder %s6128_s14, 0  ;;  %s6137_s20 = smov 16  }
  0x6f   : > { %s6138_s10 = smov 256   ;;  %s3660_s23 = sshll.u32 %s4706_s6, 2 }
  0x70   : > { %3955 = dma.hbm_to_vmem [thread:$0]  (!%p6136_p1), %s4795_s17, 4096, %s4797_s1, %s4726_s22, %s6138_s10, %s6138_s10, %s6137_s20  }
  0x71   : > { %s3901_s5 = sshll.u32 %s4588_s19, 6  ;;  %s265_s7 = scalar_lea.vmem [#allocation11], %s3660_s23 }
  0x72   : > { %s4829_s29 = scalar_lea.hbm %s6047_s3, %s3901_s5  ;;  %s273_s25 = sshll.u32 %s265_s7, 4  ;;  %s274_s25 = int_to_ptr.vmem [resolvable:$true] %s273_s25 }
  0x73   : > { %s262_s8 = scalar_lea.sflag [#allocation12], %s4706_s6  ;;  %s4472_s11 = scalar_lea.hbm %s4829_s29, 64 }
  0x74   : > { %p4473_p10 = scmp.ne.s32.totalorder %s4829_s29, %s4472_s11  ;;  %s4477_s1 = scalar_lea.hbm %s6047_s3, 128 }
  0x75   : > { %p4478_p12 = scmp.lt.u32.totalorder %s4829_s29, %s6047_s3  ;;  %p4479_p4 = scmp.lt.u32.totalorder %s4477_s1, %s4472_s11 }
  0x76   : > { %p4475_p3 = pnand %p4473_p10, %p6135_p6  ;;  %p4481_p5 = scmp.lt.u32.totalorder %s4472_s11, %s4829_s29 }
  0x77   : > { %p4480_p2 = por %p4479_p4, %p4478_p12 }
  0x78   : > { %p4476_p7 = pneg %p4475_p3 }
  0x79   : > { %p4482_p9 = por %p4481_p5, %p4480_p2 }
  0x7b   : > { %p4483_p11 = pnand %p4482_p9, %p4476_p7 }
  0x7d   : > { %4486 = shalt.err (!%p4483_p11)
}
  0x7e   : > { %s4487_s6 = scalar_lea.vmem %s274_s25, 64  ;;  %s4601_s10 = smov [#allocation11]  }
  0x7f   : > { %p4488_p0 = scmp.ne.s32.totalorder %s274_s25, %s4487_s6  ;;  %s4492_s23 = sshll.u32 %s4601_s10, 4  ;;  %s4493_s23 = int_to_ptr.vmem [resolvable:$false] %s4492_s23 }
  0x80   : > { %s4494_s5 = scalar_lea.vmem %s4493_s23, 128  ;;  %p4495_p10 = scmp.lt.s32.totalorder %s274_s25, %s4493_s23 }
  0x81   : > { %p4490_p8 = pnand %p4488_p0, %p6135_p6  ;;  %p4496_p3 = scmp.lt.s32.totalorder %s4494_s5, %s4487_s6 }
  0x83   : > { %p4491_p13 = pneg %p4490_p8  ;;  %p4497_p1 = por %p4496_p3, %p4495_p10 }
  0x85   : > { %p4498_p4 = pnand %p4497_p1, %p4491_p13 }
  0x87   : > { %4501 = shalt.err (!%p4498_p4)
}
  0x88   : > { %p6139_p12 = scmp.ne.s32.totalorder %s6128_s14, 0  ;;  %p6140_p7 = scmp.ne.s32.totalorder %s6131_s9, 0 }
  0x8a   : > { %3958 = dma.hbm_to_vmem [thread:$0]  (!%p6139_p12), %s4829_s29, 64, %s274_s25, %s262_s8  }
  0x8b   : > { %282 = sbr.rel (%p6140_p7) target bundleno = 4740 (0x1284), region = 36 }
  0x92   : > { %p6141_p2 = scmp.eq.s32.totalorder %s4663_s21, 0 }
  0x94   : > { %4555 = dma.done.wait (%p6141_p2), [#allocation6], 1024   ;;  %p6142_p6 = pmov %p6141_p2 }
  0x95   : > { %s293_s26 = sand.u32 1, %s4663_s21   ;;  %s4857_s12 = sand.u32 1, %s4576_s16  }
  0x96   : > { %4557 = vsyncadd (%p6142_p6), [#allocation6], 4294966272  ;;  %s3665_s24 = sshll.u32 %s4857_s12, 9  ;;  %s294_s14 = scalar_lea.sflag [#allocation9], %s293_s26 }
  0x97   : > { %s4860_s7 = scalar_lea.vmem [#allocation8], %s3665_s24  ;;  %p6143_p1 = scmp.ne.s32.totalorder %s6123_s27, 0 }
  0x99   : > { %4559 = dma.done.wait (%p6143_p1), %s294_s14, 12288  }
  0x9a   : > { %4561 = vsyncadd (%p6143_p1), %s294_s14, 4294955008  ;;  %s3666_s9 = sshll.u32 %s4857_s12, 8  ;;  %s3667_s29 = sshll.u32 %s4857_s12, 2 }
  0x9b   : > { %s4868_s25 = scalar_lea.vmem [#allocation10], %s3666_s9  ;;  %s312_s21 = scalar_lea.sflag [#allocation12], %s4857_s12 }
  0x9c   : > { %s4871_s8 = scalar_lea.vmem [#allocation11], %s3667_s29 }
  0x9d   : > { %4563 = dma.done.wait (%p6143_p1), %s312_s21, 64  }
  0x9e   : > { %4565 = vsyncadd (%p6143_p1), %s312_s21, 4294967232  ;;  %s3668_s11 = sshll.u32 %s4857_s12, 3  ;;  %v4602_v0 = vmov 0.0   ;;  %v4603_v1 = vmov 0   ;;  %v4884_v2 = vld [vmem:[%s4868_s25] sm:$0xff]  ;;  %v4887_v3 = vld [vmem:[%s4868_s25 + $0x8] sm:$0xff] }
  0x9f   : > { %365 = vst [vmem:[#allocation3] sm:$0xff] %v4602_v0  ;;  %366 = vst [vmem:[#allocation4] sm:$0xff] %v4602_v0  ;;  %666 = vmatprep.mubr.bf16.mxu0 %v4603_v1  ;;  %739 = vmatprep.mubr.bf16.mxu1 %v4603_v1  ;;  %s4880_s27 = scalar_lea.vmem [#allocation13], %s3668_s11  ;;  %v4890_v4 = vld [vmem:[%s4868_s25 + $0x10] sm:$0xff]  ;;  %v4893_v5 = vld [vmem:[%s4868_s25 + $0x18] sm:$0xff]  ;;  %p3781_p5 = scmp.ne.s32.totalorder %s4584_s18, 0 }
  0xa0   : > { %367 = vst [vmem:[%s4880_s27] sm:$0xff] %v4602_v0  ;;  %v4896_v6 = vld [vmem:[%s4868_s25 + $0x20] sm:$0xff]  ;;  %v4899_v7 = vld [vmem:[%s4868_s25 + $0x28] sm:$0xff]  ;;  %v4902_v8 = vld [vmem:[%s4868_s25 + $0x30] sm:$0xff] }
  0xa1   : > { %6144 = vst [vmem:[#allocation22_spill] sm:$0xff] %v4899_v7  ;;  %v4905_v9 = vld [vmem:[%s4868_s25 + $0x38] sm:$0xff]  ;;  %v4908_v10 = vld [vmem:[%s4868_s25 + $0x40] sm:$0xff]  ;;  %v4911_v11 = vld [vmem:[%s4868_s25 + $0x48] sm:$0xff] }
  0xa2   : > { %6145 = vst [vmem:[#allocation23_spill] sm:$0xff] %v4905_v9  ;;  %6146 = vst [vmem:[#allocation24_spill] sm:$0xff] %v4908_v10  ;;  %v4914_v12 = vld [vmem:[%s4868_s25 + $0x50] sm:$0xff]  ;;  %v4917_v13 = vld [vmem:[%s4868_s25 + $0x58] sm:$0xff] }
  0xa3   : > { %6147 = vst [vmem:[#allocation25_spill] sm:$0xff] %v4911_v11  ;;  %6148 = vst [vmem:[#allocation26_spill] sm:$0xff] %v4914_v12  ;;  %v4920_v14 = vld [vmem:[%s4868_s25 + $0x60] sm:$0xff]  ;;  %v4923_v15 = vld [vmem:[%s4868_s25 + $0x68] sm:$0xff] }
  0xa4   : > { %6149 = vst [vmem:[#allocation27_spill] sm:$0xff] %v4917_v13  ;;  %6150 = vst [vmem:[#allocation28_spill] sm:$0xff] %v4920_v14  ;;  %v4926_v16 = vld [vmem:[%s4868_s25 + $0x70] sm:$0xff]  ;;  %v4929_v17 = vld [vmem:[%s4868_s25 + $0x78] sm:$0xff] }
  0xa5   : > { %6151 = vst [vmem:[#allocation29_spill] sm:$0xff] %v4923_v15  ;;  %6152 = vst [vmem:[#allocation30_spill] sm:$0xff] %v4926_v16  ;;  %v4932_v18 = vld [vmem:[%s4868_s25 + $0x80] sm:$0xff]  ;;  %v4935_v19 = vld [vmem:[%s4868_s25 + $0x88] sm:$0xff] }
  0xa6   : > { %6153 = vst [vmem:[#allocation31_spill] sm:$0xff] %v4929_v17  ;;  %6154 = vst [vmem:[#allocation32_spill] sm:$0xff] %v4932_v18  ;;  %v4938_v20 = vld [vmem:[%s4868_s25 + $0x90] sm:$0xff]  ;;  %v4941_v21 = vld [vmem:[%s4868_s25 + $0x98] sm:$0xff] }
  0xa7   : > { %6155 = vst [vmem:[#allocation33_spill] sm:$0xff] %v4935_v19  ;;  %6156 = vst [vmem:[#allocation34_spill] sm:$0xff] %v4938_v20  ;;  %v4944_v22 = vld [vmem:[%s4868_s25 + $0xa0] sm:$0xff]  ;;  %v4947_v23 = vld [vmem:[%s4868_s25 + $0xa8] sm:$0xff] }
  0xa8   : > { %6157 = vst [vmem:[#allocation35_spill] sm:$0xff] %v4941_v21  ;;  %6158 = vst [vmem:[#allocation36_spill] sm:$0xff] %v4944_v22  ;;  %v4950_v24 = vld [vmem:[%s4868_s25 + $0xb0] sm:$0xff]  ;;  %v4953_v25 = vld [vmem:[%s4868_s25 + $0xb8] sm:$0xff] }
  0xa9   : > { %6159 = vst [vmem:[#allocation37_spill] sm:$0xff] %v4947_v23  ;;  %6160 = vst [vmem:[#allocation38_spill] sm:$0xff] %v4950_v24  ;;  %v4956_v26 = vld [vmem:[%s4868_s25 + $0xc0] sm:$0xff]  ;;  %v4959_v27 = vld [vmem:[%s4868_s25 + $0xc8] sm:$0xff] }
  0xaa   : > { %6161 = vst [vmem:[#allocation39_spill] sm:$0xff] %v4953_v25  ;;  %6162 = vst [vmem:[#allocation40_spill] sm:$0xff] %v4956_v26  ;;  %v4962_v28 = vld [vmem:[%s4868_s25 + $0xd0] sm:$0xff]  ;;  %v4965_v29 = vld [vmem:[%s4868_s25 + $0xd8] sm:$0xff] }
  0xab   : > { %6163 = vst [vmem:[#allocation41_spill] sm:$0xff] %v4959_v27  ;;  %6164 = vst [vmem:[#allocation42_spill] sm:$0xff] %v4962_v28  ;;  %v4968_v30 = vld [vmem:[%s4868_s25 + $0xe0] sm:$0xff]  ;;  %v4971_v31 = vld [vmem:[%s4868_s25 + $0xe8] sm:$0xff] }
  0xac   : > { %6165 = vst [vmem:[#allocation43_spill] sm:$0xff] %v4965_v29  ;;  %6166 = vst [vmem:[#allocation44_spill] sm:$0xff] %v4968_v30  ;;  %v4974_v32 = vld [vmem:[%s4868_s25 + $0xf0] sm:$0xff]  ;;  %v4977_v33 = vld [vmem:[%s4868_s25 + $0xf8] sm:$0xff] }
  0xad   : > { %6167 = vst [vmem:[#allocation45_spill] sm:$0xff] %v4971_v31  ;;  %6168 = vst [vmem:[#allocation46_spill] sm:$0xff] %v4974_v32  ;;  %v4024_v34 = vld [vmem:[%s4860_s7 + $0x104] ss:$16 sps:$4 sm:$0xff]   ;;  %v4026_v35 = vld [vmem:[%s4860_s7 + $0x10c] ss:$16 sps:$4 sm:$0xff]  }
  0xae   : > { %6169 = vst [vmem:[#allocation47_spill] sm:$0xff] %v4977_v33  ;;  %v4028_v36 = vld [vmem:[%s4860_s7 + $0x100] ss:$16 sps:$4 sm:$0xff]   ;;  %634 = vmatprep.subr.bf16.mxu0 %v4024_v34  ;;  %v4029_v37 = vld [vmem:[%s4860_s7 + $0x108] ss:$16 sps:$4 sm:$0xff]   ;;  %707 = vmatprep.subr.bf16.mxu1 %v4026_v35 }
  0xaf   : > { %635 = vmatpush1.bf16.msra.mxu0 %v4028_v36  ;;  %v4030_v38 = vld [vmem:[%s4860_s7 + $0x124] ss:$16 sps:$4 sm:$0xff]   ;;  %708 = vmatpush1.bf16.msra.mxu1 %v4029_v37  ;;  %v4032_v39 = vld [vmem:[%s4860_s7 + $0x12c] ss:$16 sps:$4 sm:$0xff]   ;;  %v4034_v40 = vld [vmem:[%s4860_s7 + $0x120] ss:$16 sps:$4 sm:$0xff]  }
  0xb0   : > { %v4035_v41 = vld [vmem:[%s4860_s7 + $0x128] ss:$16 sps:$4 sm:$0xff]   ;;  %636 = vmatprep.subr.bf16.mxu0 %v4030_v38  ;;  %v4036_v42 = vld [vmem:[%s4860_s7 + $0x144] ss:$16 sps:$4 sm:$0xff]   ;;  %709 = vmatprep.subr.bf16.mxu1 %v4032_v39  ;;  %v4038_v43 = vld [vmem:[%s4860_s7 + $0x14c] ss:$16 sps:$4 sm:$0xff]  }
  0xb1   : > { %v4040_v44 = vld [vmem:[%s4860_s7 + $0x140] ss:$16 sps:$4 sm:$0xff]   ;;  %v4041_v45 = vld [vmem:[%s4860_s7 + $0x148] ss:$16 sps:$4 sm:$0xff]   ;;  %v4042_v46 = vld [vmem:[%s4860_s7 + $0x164] ss:$16 sps:$4 sm:$0xff]  }
  0xb2   : > { %v4044_v47 = vld [vmem:[%s4860_s7 + $0x16c] ss:$16 sps:$4 sm:$0xff]   ;;  %v4046_v48 = vld [vmem:[%s4860_s7 + $0x160] ss:$16 sps:$4 sm:$0xff]   ;;  %v4047_v49 = vld [vmem:[%s4860_s7 + $0x168] ss:$16 sps:$4 sm:$0xff]  }
  0xb3   : > { %637 = vmatpush1.bf16.msra.mxu0 %v4034_v40  ;;  %710 = vmatpush1.bf16.msra.mxu1 %v4035_v41  ;;  %v4048_v50 = vld [vmem:[%s4860_s7 + $0x184] ss:$16 sps:$4 sm:$0xff]   ;;  %v4050_v51 = vld [vmem:[%s4860_s7 + $0x18c] ss:$16 sps:$4 sm:$0xff]   ;;  %v4052_v52 = vld [vmem:[%s4860_s7 + $0x180] ss:$16 sps:$4 sm:$0xff]  }
  0xb4   : > { %638 = vmatprep.subr.bf16.mxu0 %v4036_v42  ;;  %711 = vmatprep.subr.bf16.mxu1 %v4038_v43  ;;  %v4053_v53 = vld [vmem:[%s4860_s7 + $0x188] ss:$16 sps:$4 sm:$0xff]   ;;  %v4054_v54 = vld [vmem:[%s4860_s7 + $0x1a4] ss:$16 sps:$4 sm:$0xff]   ;;  %v4056_v55 = vld [vmem:[%s4860_s7 + $0x1ac] ss:$16 sps:$4 sm:$0xff]  }
  0xb5   : > { %v4058_v56 = vld [vmem:[%s4860_s7 + $0x1a0] ss:$16 sps:$4 sm:$0xff]   ;;  %v4059_v57 = vld [vmem:[%s4860_s7 + $0x1a8] ss:$16 sps:$4 sm:$0xff]   ;;  %v4060_v58 = vld [vmem:[%s4860_s7 + $0x1c4] ss:$16 sps:$4 sm:$0xff]  }
  0xb6   : > { %v4062_v59 = vld [vmem:[%s4860_s7 + $0x1cc] ss:$16 sps:$4 sm:$0xff]   ;;  %v4064_v60 = vld [vmem:[%s4860_s7 + $0x1c0] ss:$16 sps:$4 sm:$0xff]   ;;  %v4065_v61 = vld [vmem:[%s4860_s7 + $0x1c8] ss:$16 sps:$4 sm:$0xff]  }
  0xb7   : > { %639 = vmatpush1.bf16.msra.mxu0 %v4040_v44  ;;  %712 = vmatpush1.bf16.msra.mxu1 %v4041_v45  ;;  %v4066_v62 = vld [vmem:[%s4860_s7 + $0x1e4] ss:$16 sps:$4 sm:$0xff]   ;;  %v4068_v63 = vld [vmem:[%s4860_s7 + $0x1ec] ss:$16 sps:$4 sm:$0xff]   ;;  %v4070_v0 = vld [vmem:[%s4860_s7 + $0x1e0] ss:$16 sps:$4 sm:$0xff]  }
  0xb8   : > { %640 = vmatprep.subr.bf16.mxu0 %v4042_v46  ;;  %713 = vmatprep.subr.bf16.mxu1 %v4044_v47  ;;  %v4071_v34 = vld [vmem:[%s4860_s7 + $0x1e8] ss:$16 sps:$4 sm:$0xff]   ;;  %v4075_v35 = vld [vmem:[%s4860_s7 + $0x4] ss:$16 sps:$4 sm:$0xff]   ;;  %v4078_v36 = vld [vmem:[%s4860_s7 + $0xc] ss:$16 sps:$4 sm:$0xff]  }
  0xb9   : > { %v4072_v37 = vld [vmem:[#allocation5 + $0x20] sm:$0xff]   ;;  %v4076_v39 = vld [vmem:[%s4860_s7 + $0x8] ss:$16 sps:$4 sm:$0xff]   ;;  %v4084_v41 = vld [vmem:[%s4860_s7 + $0x2c] ss:$16 sps:$4 sm:$0xff]  }
  0xba   : > { %v4073_v38 = vld [vmem:[%s4860_s7] ss:$16 sps:$4 sm:$0xff]   ;;  %v4081_v40 = vld [vmem:[%s4860_s7 + $0x24] ss:$16 sps:$4 sm:$0xff]   ;;  %v4082_v43 = vld [vmem:[%s4860_s7 + $0x28] ss:$16 sps:$4 sm:$0xff]  }
  0xbb   : > { %641 = vmatpush1.bf16.msra.mxu0 %v4046_v48  ;;  %714 = vmatpush1.bf16.msra.mxu1 %v4047_v49  ;;  %v4079_v42 = vld [vmem:[%s4860_s7 + $0x20] ss:$16 sps:$4 sm:$0xff]   ;;  %v4088_v44 = vld [vmem:[%s4860_s7 + $0x44] ss:$16 sps:$4 sm:$0xff]   ;;  %v4091_v45 = vld [vmem:[%s4860_s7 + $0x4c] ss:$16 sps:$4 sm:$0xff]  }
  0xbc   : > { %642 = vmatprep.subr.bf16.mxu0 %v4048_v50  ;;  %715 = vmatprep.subr.bf16.mxu1 %v4050_v51  ;;  %v4085_v46 = vld [vmem:[#allocation5 + $0x28] sm:$0xff]   ;;  %v4086_v47 = vld [vmem:[%s4860_s7 + $0x40] ss:$16 sps:$4 sm:$0xff]   ;;  %v4094_v49 = vld [vmem:[%s4860_s7 + $0x64] ss:$16 sps:$4 sm:$0xff]  }
  0xbd   : > { %v4089_v48 = vld [vmem:[%s4860_s7 + $0x48] ss:$16 sps:$4 sm:$0xff]   ;;  %v4097_v50 = vld [vmem:[%s4860_s7 + $0x6c] ss:$16 sps:$4 sm:$0xff]   ;;  %v4092_v51 = vld [vmem:[%s4860_s7 + $0x60] ss:$16 sps:$4 sm:$0xff]  }
  0xbf   : > { %643 = vmatpush1.bf16.msra.mxu0 %v4052_v52  ;;  %716 = vmatpush1.bf16.msra.mxu1 %v4053_v53  ;;  %v4095_v52 = vld [vmem:[%s4860_s7 + $0x68] ss:$16 sps:$4 sm:$0xff]   ;;  %v4098_v53 = vld [vmem:[#allocation5 + $0x30] sm:$0xff]  }
  0xc0   : > { %644 = vmatprep.subr.bf16.mxu0 %v4054_v54  ;;  %717 = vmatprep.subr.bf16.mxu1 %v4056_v55  ;;  %v4101_v54 = vld [vmem:[%s4860_s7 + $0x84] ss:$16 sps:$4 sm:$0xff]   ;;  %v4104_v55 = vld [vmem:[%s4860_s7 + $0x8c] ss:$16 sps:$4 sm:$0xff]  }
  0xc3   : > { %645 = vmatpush1.bf16.msra.mxu0 %v4058_v56  ;;  %718 = vmatpush1.bf16.msra.mxu1 %v4059_v57  ;;  %v4099_v56 = vld [vmem:[%s4860_s7 + $0x80] ss:$16 sps:$4 sm:$0xff]   ;;  %v4102_v57 = vld [vmem:[%s4860_s7 + $0x88] ss:$16 sps:$4 sm:$0xff]  }
  0xc4   : > { %646 = vmatprep.subr.bf16.mxu0 %v4060_v58  ;;  %719 = vmatprep.subr.bf16.mxu1 %v4062_v59  ;;  %v4107_v58 = vld [vmem:[%s4860_s7 + $0xa4] ss:$16 sps:$4 sm:$0xff]   ;;  %v4110_v59 = vld [vmem:[%s4860_s7 + $0xac] ss:$16 sps:$4 sm:$0xff]  }
  0xc7   : > { %647 = vmatpush1.bf16.msra.mxu0 %v4064_v60  ;;  %720 = vmatpush1.bf16.msra.mxu1 %v4065_v61  ;;  %v4105_v60 = vld [vmem:[%s4860_s7 + $0xa0] ss:$16 sps:$4 sm:$0xff]   ;;  %v4108_v61 = vld [vmem:[%s4860_s7 + $0xa8] ss:$16 sps:$4 sm:$0xff]  }
  0xc8   : > { %648 = vmatprep.subr.bf16.mxu0 %v4066_v62  ;;  %721 = vmatprep.subr.bf16.mxu1 %v4068_v63  ;;  %v4114_v62 = vld [vmem:[%s4860_s7 + $0xc4] ss:$16 sps:$4 sm:$0xff]   ;;  %v4117_v63 = vld [vmem:[%s4860_s7 + $0xcc] ss:$16 sps:$4 sm:$0xff]  }
  0xcb   : > { %649 = vmatpush1.bf16.msra.mxu0 %v4070_v0  ;;  %722 = vmatpush1.bf16.msra.mxu1 %v4071_v34  ;;  %v4111_v0 = vld [vmem:[#allocation5 + $0x38] sm:$0xff]   ;;  %v4112_v34 = vld [vmem:[%s4860_s7 + $0xc0] ss:$16 sps:$4 sm:$0xff]  }
  0xcc   : > { %964 = vmatprep.subr.bf16.mxu0 %v4075_v35  ;;  %1037 = vmatprep.subr.bf16.mxu1 %v4078_v36  ;;  %v4115_v35 = vld [vmem:[%s4860_s7 + $0xc8] ss:$16 sps:$4 sm:$0xff]   ;;  %v4120_v36 = vld [vmem:[%s4860_s7 + $0xe4] ss:$16 sps:$4 sm:$0xff]  }
  0xce   : > { %667 = vmatmul.mubr.bf16.vlgmr.msra.gmra.mrb[0].mxu0 %v4072_v37  ;;  %740 = vmatmul.mubr.bf16.vlgmr.msra.gmra.mrb[0].mxu1 %v4072_v37  ;;  %v4123_v37 = vld [vmem:[%s4860_s7 + $0xec] ss:$16 sps:$4 sm:$0xff]  }
  0xcf   : > { %965 = vmatpush1.bf16.msra.mxu0 %v4073_v38  ;;  %1038 = vmatpush1.bf16.msra.mxu1 %v4076_v39  ;;  %v4118_v38 = vld [vmem:[%s4860_s7 + $0xe0] ss:$16 sps:$4 sm:$0xff]   ;;  %v4121_v39 = vld [vmem:[%s4860_s7 + $0xe8] ss:$16 sps:$4 sm:$0xff]  }
  0xd0   : > { %966 = vmatprep.subr.bf16.mxu0 %v4081_v40  ;;  %1039 = vmatprep.subr.bf16.mxu1 %v4084_v41  ;;  %v4124_v40 = vld [vmem:[#allocation5] sm:$0xff]   ;;  %v4125_v41 = vld [vmem:[#allocation5 + $0x8] sm:$0xff]  }
  0xd1   : > { %676 = vmatprep.mubr.bf16.mxu0 %v4603_v1  ;;  %749 = vmatprep.mubr.bf16.mxu1 %v4603_v1 }
  0xd3   : > { %967 = vmatpush1.bf16.msra.mxu0 %v4079_v42  ;;  %1040 = vmatpush1.bf16.msra.mxu1 %v4082_v43  ;;  %v4126_v42 = vld [vmem:[#allocation5 + $0x10] sm:$0xff]   ;;  %v4127_v43 = vld [vmem:[#allocation5 + $0x18] sm:$0xff]  }
  0xd4   : > { %968 = vmatprep.subr.bf16.mxu0 %v4088_v44  ;;  %1041 = vmatprep.subr.bf16.mxu1 %v4091_v45  ;;  %v1112_v44 = vlaneseq }
  0xd6   : > { %677 = vmatmul.mubr.bf16.gmra.mrb[4].mxu0 %v4085_v46  ;;  %750 = vmatmul.mubr.bf16.gmra.mrb[4].mxu1 %v4085_v46  ;;  %v1113_v45 = vshrl.u32 %v1112_v44, 7 }
  0xd7   : > { %969 = vmatpush1.bf16.msra.mxu0 %v4086_v47  ;;  %1042 = vmatpush1.bf16.msra.mxu1 %v4089_v48  ;;  %v1110_v47 = vld [vmem:[%s4871_s8] sm:$0xf] }
  0xd8   : > { %970 = vmatprep.subr.bf16.mxu0 %v4094_v49  ;;  %1043 = vmatprep.subr.bf16.mxu1 %v4097_v50  ;;  %v1114_v46 = vsub.s32 0, %v1113_v45  ;;  %v1122_v48 = vsub.s32 2, %v1113_v45  ;;  %v1118_v49 = vsub.s32 1, %v1113_v45  ;;  %v1126_v50 = vsub.s32 3, %v1113_v45 }
  0xd9   : > { %686 = vmatprep.mubr.bf16.mxu0 %v4603_v1  ;;  %759 = vmatprep.mubr.bf16.mxu1 %v4603_v1 }
  0xdb   : > { %971 = vmatpush1.bf16.msra.mxu0 %v4092_v51  ;;  %1044 = vmatpush1.bf16.msra.mxu1 %v4095_v52  ;;  %v5058_v51 = vrot.slane %v1110_v47, %v1114_v46  ;;  %v5060_v52 = vrot.slane %v1110_v47, %v1122_v48 }
  0xdc   : > { %972 = vmatprep.subr.bf16.mxu0 %v4101_v54  ;;  %1045 = vmatprep.subr.bf16.mxu1 %v4104_v55  ;;  %v5064_v54 = vrot.slane %v1110_v47, %v1126_v50 }
  0xde   : > { %687 = vmatmul.mubr.bf16.gmra.mrb[8].mxu0 %v4098_v53  ;;  %760 = vmatmul.mubr.bf16.gmra.mrb[8].mxu1 %v4098_v53  ;;  %v5062_v53 = vrot.slane %v1110_v47, %v1118_v49 }
  0xdf   : > { %973 = vmatpush1.bf16.msra.mxu0 %v4099_v56  ;;  %1046 = vmatpush1.bf16.msra.mxu1 %v4102_v57 }
  0xe0   : > { %974 = vmatprep.subr.bf16.mxu0 %v4107_v58  ;;  %1047 = vmatprep.subr.bf16.mxu1 %v4110_v59 }
  0xe1   : > { %696 = vmatprep.mubr.bf16.mxu0 %v4603_v1  ;;  %769 = vmatprep.mubr.bf16.mxu1 %v4603_v1 }
  0xe3   : > { %975 = vmatpush1.bf16.msra.mxu0 %v4105_v60  ;;  %1048 = vmatpush1.bf16.msra.mxu1 %v4108_v61 }
  0xe4   : > { %976 = vmatprep.subr.bf16.mxu0 %v4114_v62  ;;  %1049 = vmatprep.subr.bf16.mxu1 %v4117_v63 }
  0xe6   : > { %697 = vmatmul.mubr.bf16.gmra.mrb[12].mxu0 %v4111_v0  ;;  %770 = vmatmul.mubr.bf16.gmra.mrb[12].mxu1 %v4111_v0 }
  0xe7   : > { %977 = vmatpush1.bf16.msra.mxu0 %v4112_v34  ;;  %1050 = vmatpush1.bf16.msra.mxu1 %v4115_v35 }
  0xe8   : > { %978 = vmatprep.subr.bf16.mxu0 %v4120_v36  ;;  %1051 = vmatprep.subr.bf16.mxu1 %v4123_v37 }
  0xe9   : > { %996 = vmatprep.mubr.bf16.mxu0 %v4603_v1  ;;  %1069 = vmatprep.mubr.bf16.mxu1 %v4603_v1 }
  0xeb   : > { %979 = vmatpush1.bf16.msra.mxu0 %v4118_v38  ;;  %1052 = vmatpush1.bf16.msra.mxu1 %v4121_v39 }
  0xee   : > { %997 = vmatmul.mubr.bf16.vlgmr.msra.gmra.mrb[0].mxu0 %v4124_v40  ;;  %1070 = vmatmul.mubr.bf16.vlgmr.msra.gmra.mrb[0].mxu1 %v4124_v40 }
  0xef   : > { %1006 = vmatprep.mubr.bf16.mxu0 %v4603_v1  ;;  %1079 = vmatprep.mubr.bf16.mxu1 %v4603_v1 }
  0xf6   : > { %1007 = vmatmul.mubr.bf16.gmra.mrb[4].mxu0 %v4125_v41  ;;  %1080 = vmatmul.mubr.bf16.gmra.mrb[4].mxu1 %v4125_v41 }
  0xf7   : > { %1016 = vmatprep.mubr.bf16.mxu0 %v4603_v1  ;;  %1089 = vmatprep.mubr.bf16.mxu1 %v4603_v1 }
  0xfe   : > { %1017 = vmatmul.mubr.bf16.gmra.mrb[8].mxu0 %v4126_v42  ;;  %1090 = vmatmul.mubr.bf16.gmra.mrb[8].mxu1 %v4126_v42 }
  0xff   : > { %1026 = vmatprep.mubr.bf16.mxu0 %v4603_v1  ;;  %1099 = vmatprep.mubr.bf16.mxu1 %v4603_v1 }
 0x106   : > { %1027 = vmatmul.mubr.bf16.gmra.mrb[12].mxu0 %v4127_v43  ;;  %1100 = vmatmul.mubr.bf16.gmra.mrb[12].mxu1 %v4127_v43 }
 0x1c1   : > { %v998_v55 = vpop.f32.mrb[0].mxu0  ;;  %v1071_v56 = vpop.f32.mrb[0].mxu1 }
 0x1c2   : > { %v1132_v1 = vadd.f32 %v5058_v51, %v998_v55  ;;  %v1000_v57 = vpop.f32.mrb[1].mxu0  ;;  %v1134_v58 = vadd.f32 %v5060_v52, %v1071_v56  ;;  %v1073_v60 = vpop.f32.mrb[1].mxu1 }
 0x1c3   : > { %v1133_v59 = vadd.f32 %v5062_v53, %v1000_v57  ;;  %v1002_v61 = vpop.f32.mrb[2].mxu0  ;;  %v1135_v62 = vadd.f32 %v5064_v54, %v1073_v60  ;;  %v1075_v0 = vpop.f32.mrb[2].mxu1 }
 0x1c4   : > { %1164 = vst [vmem:[#allocation2] sm:$0xff] %v1132_v1  ;;  %v1136_v63 = vadd.f32 %v5058_v51, %v1002_v61  ;;  %v1004_v34 = vpop.f32.mrb[3].mxu0  ;;  %1166 = vst [vmem:[#allocation2 + $0x10] sm:$0xff] %v1134_v58  ;;  %v1138_v35 = vadd.f32 %v5060_v52, %v1075_v0  ;;  %v1077_v37 = vpop.f32.mrb[3].mxu1 }
 0x1c5   : > { %1165 = vst [vmem:[#allocation2 + $0x8] sm:$0xff] %v1133_v59  ;;  %v1137_v36 = vadd.f32 %v5062_v53, %v1004_v34  ;;  %1167 = vst [vmem:[#allocation2 + $0x18] sm:$0xff] %v1135_v62  ;;  %v1139_v38 = vadd.f32 %v5064_v54, %v1077_v37 }
 0x1c6   : > { %1168 = vst [vmem:[#allocation2 + $0x20] sm:$0xff] %v1136_v63  ;;  %1170 = vst [vmem:[#allocation2 + $0x30] sm:$0xff] %v1138_v35 }
 0x1c7   : > { %1169 = vst [vmem:[#allocation2 + $0x28] sm:$0xff] %v1137_v36  ;;  %1171 = vst [vmem:[#allocation2 + $0x38] sm:$0xff] %v1139_v38 }
 0x1c9   : > { %v1008_v39 = vpop.f32.mrb[4].mxu0  ;;  %v1081_v41 = vpop.f32.mrb[4].mxu1 }
 0x1ca   : > { %v1140_v40 = vadd.f32 %v5058_v51, %v1008_v39  ;;  %v1010_v42 = vpop.f32.mrb[5].mxu0  ;;  %v1142_v43 = vadd.f32 %v5060_v52, %v1081_v41  ;;  %v1083_v45 = vpop.f32.mrb[5].mxu1 }
 0x1cb   : > { %v1141_v44 = vadd.f32 %v5062_v53, %v1010_v42  ;;  %v1012_v46 = vpop.f32.mrb[6].mxu0  ;;  %v1143_v47 = vadd.f32 %v5064_v54, %v1083_v45  ;;  %v1085_v49 = vpop.f32.mrb[6].mxu1 }
 0x1cc   : > { %1172 = vst [vmem:[#allocation2 + $0x40] sm:$0xff] %v1140_v40  ;;  %v1144_v48 = vadd.f32 %v5058_v51, %v1012_v46  ;;  %v1014_v50 = vpop.f32.mrb[7].mxu0  ;;  %1174 = vst [vmem:[#allocation2 + $0x50] sm:$0xff] %v1142_v43  ;;  %v1146_v55 = vadd.f32 %v5060_v52, %v1085_v49  ;;  %v1087_v56 = vpop.f32.mrb[7].mxu1 }
 0x1cd   : > { %1173 = vst [vmem:[#allocation2 + $0x48] sm:$0xff] %v1141_v44  ;;  %v1145_v1 = vadd.f32 %v5062_v53, %v1014_v50  ;;  %1175 = vst [vmem:[#allocation2 + $0x58] sm:$0xff] %v1143_v47  ;;  %v1147_v57 = vadd.f32 %v5064_v54, %v1087_v56 }
 0x1ce   : > { %1176 = vst [vmem:[#allocation2 + $0x60] sm:$0xff] %v1144_v48  ;;  %1178 = vst [vmem:[#allocation2 + $0x70] sm:$0xff] %v1146_v55 }
 0x1cf   : > { %1177 = vst [vmem:[#allocation2 + $0x68] sm:$0xff] %v1145_v1  ;;  %1179 = vst [vmem:[#allocation2 + $0x78] sm:$0xff] %v1147_v57 }
 0x1d1   : > { %v1018_v58 = vpop.f32.mrb[8].mxu0  ;;  %v1091_v60 = vpop.f32.mrb[8].mxu1 }
 0x1d2   : > { %v1148_v59 = vadd.f32 %v5058_v51, %v1018_v58  ;;  %v1020_v61 = vpop.f32.mrb[9].mxu0  ;;  %v1150_v62 = vadd.f32 %v5060_v52, %v1091_v60  ;;  %v1093_v0 = vpop.f32.mrb[9].mxu1 }
 0x1d3   : > { %v1149_v63 = vadd.f32 %v5062_v53, %v1020_v61  ;;  %v1022_v34 = vpop.f32.mrb[10].mxu0  ;;  %v1151_v35 = vadd.f32 %v5064_v54, %v1093_v0  ;;  %v1095_v37 = vpop.f32.mrb[10].mxu1  ;;  %v5127_v0 = vcombine.low (!%p3781_p5), %v4896_v6, %v4902_v8 }
 0x1d4   : > { %1180 = vst [vmem:[#allocation2 + $0x80] sm:$0xff] %v1148_v59  ;;  %v1152_v36 = vadd.f32 %v5058_v51, %v1022_v34  ;;  %v1024_v38 = vpop.f32.mrb[11].mxu0  ;;  %1182 = vst [vmem:[#allocation2 + $0x90] sm:$0xff] %v1150_v62  ;;  %v1154_v39 = vadd.f32 %v5060_v52, %v1095_v37  ;;  %v1097_v41 = vpop.f32.mrb[11].mxu1  ;;  %v5118_v62 = vcombine.low (!%p3781_p5), %v4887_v3, %v4893_v5  ;;  %v6064_v37 = vmov (!%p3781_p5), 0  }
 0x1d5   : > { %1181 = vst [vmem:[#allocation2 + $0x88] sm:$0xff] %v1149_v63  ;;  %v1153_v40 = vadd.f32 %v5062_v53, %v1024_v38  ;;  %1183 = vst [vmem:[#allocation2 + $0x98] sm:$0xff] %v1151_v35  ;;  %v1155_v42 = vadd.f32 %v5064_v54, %v1097_v41  ;;  %v5122_v63 = vcombine.high (!%p3781_p5), %v4899_v7, %v4905_v9  ;;  %1434 = vmatprep.mubr.bf16.mxu0 (!%p3781_p5), %v6064_v37 }
 0x1d6   : > { %1184 = vst [vmem:[#allocation2 + $0xa0] sm:$0xff] %v1152_v36  ;;  %1186 = vst [vmem:[#allocation2 + $0xb0] sm:$0xff] %v1154_v39  ;;  %v5133_v34 = vcombine.high (!%p3781_p5), %v4908_v10, %v4914_v12  ;;  %v5138_v35 = vcombine.low (!%p3781_p5), %v4899_v7, %v4905_v9  ;;  %v5143_v36 = vcombine.high (!%p3781_p5), %v4911_v11, %v4917_v13  ;;  %1475 = vmatprep.mubr.bf16.mxu1 (!%p3781_p5), %v6064_v37  ;;  %v1232_v37 = vld [vmem:[#allocation3] sm:$0xff] (!%p3781_p5) }
 0x1d7   : > { %1185 = vst [vmem:[#allocation2 + $0xa8] sm:$0xff] %v1153_v40  ;;  %1187 = vst [vmem:[#allocation2 + $0xb8] sm:$0xff] %v1155_v42  ;;  %v5149_v38 = vcombine.low (!%p3781_p5), %v4908_v10, %v4914_v12  ;;  %v5154_v39 = vcombine.high (!%p3781_p5), %v4920_v14, %v4926_v16  ;;  %v5159_v40 = vcombine.low (!%p3781_p5), %v4911_v11, %v4917_v13 }
 0x1d8   : > { %v5164_v41 = vcombine.high (!%p3781_p5), %v4923_v15, %v4929_v17  ;;  %v5170_v42 = vcombine.low (!%p3781_p5), %v4920_v14, %v4926_v16 }
 0x1d9   : > { %v1028_v43 = vpop.f32.mrb[12].mxu0  ;;  %v1101_v45 = vpop.f32.mrb[12].mxu1  ;;  %1231 = sbr.rel (%p3781_p5) target bundleno = 2595 (0xa23), region = 60 }
 0x1da   : > { %v1156_v44 = vadd.f32 %v5058_v51, %v1028_v43  ;;  %v1030_v46 = vpop.f32.mrb[13].mxu0  ;;  %v1158_v47 = vadd.f32 %v5060_v52, %v1101_v45  ;;  %v1103_v49 = vpop.f32.mrb[13].mxu1  ;;  %v5175_v43 = vcombine.high (!%p3781_p5), %v4932_v18, %v4938_v20  ;;  %v5185_v45 = vcombine.high (!%p3781_p5), %v4935_v19, %v4941_v21 }
 0x1db   : > { %v1157_v48 = vadd.f32 %v5062_v53, %v1030_v46  ;;  %v1032_v50 = vpop.f32.mrb[14].mxu0  ;;  %v1159_v55 = vadd.f32 %v5064_v54, %v1103_v49  ;;  %v1105_v56 = vpop.f32.mrb[14].mxu1  ;;  %v5190_v46 = vcombine.low (!%p3781_p5), %v4932_v18, %v4938_v20  ;;  %v5205_v49 = vcombine.high (!%p3781_p5), %v4947_v23, %v4953_v25  ;;  %v1240_v18 = vld [vmem:[#allocation2 + $0x18] sm:$0xff] (!%p3781_p5) }
 0x1dc   : > { %1188 = vst [vmem:[#allocation2 + $0xc0] sm:$0xff] %v1156_v44  ;;  %v1160_v1 = vadd.f32 %v5058_v51, %v1032_v50  ;;  %v1034_v57 = vpop.f32.mrb[15].mxu0  ;;  %1190 = vst [vmem:[#allocation2 + $0xd0] sm:$0xff] %v1158_v47  ;;  %v1162_v58 = vadd.f32 %v5060_v52, %v1105_v56  ;;  %v1107_v60 = vpop.f32.mrb[15].mxu1  ;;  %v5101_v51 = vcombine.high (!%p3781_p5), %v4884_v2, %v4890_v4 }
 0x1dd   : > { %1189 = vst [vmem:[#allocation2 + $0xc8] sm:$0xff] %v1157_v48  ;;  %v1161_v59 = vadd.f32 %v5062_v53, %v1034_v57  ;;  %1191 = vst [vmem:[#allocation2 + $0xd8] sm:$0xff] %v1159_v55  ;;  %v1163_v61 = vadd.f32 %v5064_v54, %v1107_v60  ;;  %v5105_v52 = vcombine.low (!%p3781_p5), %v4884_v2, %v4890_v4 }
 0x1de   : > { %1192 = vst [vmem:[#allocation2 + $0xe0] sm:$0xff] %v1160_v1  ;;  %1194 = vst [vmem:[#allocation2 + $0xf0] sm:$0xff] %v1162_v58  ;;  %v5109_v53 = vcombine.high (!%p3781_p5), %v4896_v6, %v4902_v8  ;;  %v5113_v54 = vcombine.high (!%p3781_p5), %v4887_v3, %v4893_v5  ;;  %1402 = vmatprep.subr.bf16.mxu0 (!%p3781_p5), %v5101_v51  ;;  %v5180_v44 = vcombine.low (!%p3781_p5), %v4923_v15, %v4929_v17  ;;  %v1239_v17 = vld [vmem:[#allocation2 + $0x10] sm:$0xff] (!%p3781_p5) }
 0x1df   : > { %1193 = vst [vmem:[#allocation2 + $0xe8] sm:$0xff] %v1161_v59  ;;  %1195 = vst [vmem:[#allocation2 + $0xf8] sm:$0xff] %v1163_v61  ;;  %1403 = vmatpush1.bf16.msra.mxu0 (!%p3781_p5), %v5105_v52  ;;  %v5195_v47 = vcombine.high (!%p3781_p5), %v4944_v22, %v4950_v24  ;;  %v5200_v48 = vcombine.low (!%p3781_p5), %v4935_v19, %v4941_v21  ;;  %v5210_v50 = vcombine.low (!%p3781_p5), %v4944_v22, %v4950_v24 }
 0x1e0   : > { %1443 = vmatprep.subr.bf16.mxu1 %v5113_v54  ;;  %1404 = vmatprep.subr.bf16.mxu0 %v5109_v53  ;;  %v5215_v55 = vcombine.high %v4956_v26, %v4962_v28  ;;  %v5220_v1 = vcombine.low %v4947_v23, %v4953_v25  ;;  %v5225_v56 = vcombine.high %v4959_v27, %v4965_v29 }
 0x1e1   : > { %1444 = vmatpush1.bf16.msra.mxu1 %v5118_v62  ;;  %v5230_v57 = vcombine.low %v4956_v26, %v4962_v28  ;;  %v5235_v58 = vcombine.high %v4968_v30, %v4974_v32  ;;  %v5240_v59 = vcombine.low %v4959_v27, %v4965_v29  ;;  %v5245_v60 = vcombine.high %v4971_v31, %v4977_v33 }
 0x1e2   : > { %1445 = vmatprep.subr.bf16.mxu1 %v5122_v63  ;;  %v5250_v61 = vcombine.low %v4968_v30, %v4974_v32  ;;  %v5256_v27 = vcombine.low %v4971_v31, %v4977_v33  ;;  %v1241_v29 = vpack.c.bf16 %v1232_v37, %v1232_v37  ;;  %v6170_v31 = vmov 0   ;;  %v1238_v37 = vld [vmem:[#allocation2 + $0x8] sm:$0xff] }
 0x1e3   : > { %1405 = vmatpush1.bf16.msra.mxu0 %v5127_v0 }
 0x1e4   : > { %1406 = vmatprep.subr.bf16.mxu0 %v5133_v34 }
 0x1e5   : > { %1446 = vmatpush1.bf16.msra.mxu1 %v5138_v35 }
 0x1e6   : > { %1447 = vmatprep.subr.bf16.mxu1 %v5143_v36 }
 0x1e7   : > { %1407 = vmatpush1.bf16.msra.mxu0 %v5149_v38 }
 0x1e8   : > { %1408 = vmatprep.subr.bf16.mxu0 %v5154_v39 }
 0x1e9   : > { %1448 = vmatpush1.bf16.msra.mxu1 %v5159_v40 }
 0x1ea   : > { %1449 = vmatprep.subr.bf16.mxu1 %v5164_v41 }
 0x1eb   : > { %1409 = vmatpush1.bf16.msra.mxu0 %v5170_v42 }
 0x1ec   : > { %1410 = vmatprep.subr.bf16.mxu0 %v5175_v43 }
 0x1ed   : > { %1450 = vmatpush1.bf16.msra.mxu1 %v5180_v44 }
 0x1ee   : > { %1451 = vmatprep.subr.bf16.mxu1 %v5185_v45 }
 0x1ef   : > { %1411 = vmatpush1.bf16.msra.mxu0 %v5190_v46 }
 0x1f0   : > { %1412 = vmatprep.subr.bf16.mxu0 %v5195_v47 }
 0x1f1   : > { %1452 = vmatpush1.bf16.msra.mxu1 %v5200_v48 }
 0x1f2   : > { %1453 = vmatprep.subr.bf16.mxu1 %v5205_v49 }
 0x1f3   : > { %1413 = vmatpush1.bf16.msra.mxu0 %v5210_v50 }
 0x1f4   : > { %1414 = vmatprep.subr.bf16.mxu0 %v5215_v55 }
 0x1f5   : > { %1454 = vmatpush1.bf16.msra.mxu1 %v5220_v1 }
 0x1f6   : > { %1455 = vmatprep.subr.bf16.mxu1 %v5225_v56 }
 0x1f7   : > { %1415 = vmatpush1.bf16.msra.mxu0 %v5230_v57 }
 0x1f8   : > { %1416 = vmatprep.subr.bf16.mxu0 %v5235_v58 }
 0x1f9   : > { %1456 = vmatpush1.bf16.msra.mxu1 %v5240_v59 }
 0x1fa   : > { %1457 = vmatprep.subr.bf16.mxu1 %v5245_v60 }
 0x1fb   : > { %1417 = vmatpush1.bf16.msra.mxu0 %v5250_v61 }
 0x1fc   : > { %1521 = vmatprep.subr.bf16.mxu0 %v5101_v51 }
 0x1fd   : > { %1458 = vmatpush1.bf16.msra.mxu1 %v5256_v27 }
 0x1fe   : > { %1562 = vmatprep.subr.bf16.mxu1 %v5113_v54  ;;  %1435 = vmatmul.mubr.bf16.vlgmr.msra.gmra.mrb[0].mxu0 %v1241_v29 }
 0x1ff   : > { %1522 = vmatpush1.bf16.msra.mxu0 %v5105_v52  ;;  %1553 = vmatprep.mubr.bf16.mxu0 %v6170_v31 }
 0x200   : > { %1476 = vmatmul.mubr.bf16.vlgmr.msra.gmra.mrb[0].mxu1 %v1241_v29  ;;  %1523 = vmatprep.subr.bf16.mxu0 %v5109_v53  ;;  %v1237_v29 = vld [vmem:[#allocation2] sm:$0xff] }
 0x201   : > { %1563 = vmatpush1.bf16.msra.mxu1 %v5118_v62  ;;  %1594 = vmatprep.mubr.bf16.mxu1 %v6170_v31 }
 0x202   : > { %1564 = vmatprep.subr.bf16.mxu1 %v5122_v63 }
 0x203   : > { %1524 = vmatpush1.bf16.msra.mxu0 %v5127_v0 }
 0x204   : > { %1525 = vmatprep.subr.bf16.mxu0 %v5133_v34 }
 0x205   : > { %1565 = vmatpush1.bf16.msra.mxu1 %v5138_v35 }
 0x206   : > { %1566 = vmatprep.subr.bf16.mxu1 %v5143_v36 }
 0x207   : > { %1526 = vmatpush1.bf16.msra.mxu0 %v5149_v38 }
 0x208   : > { %1527 = vmatprep.subr.bf16.mxu0 %v5154_v39 }
 0x209   : > { %1567 = vmatpush1.bf16.msra.mxu1 %v5159_v40 }
 0x20a   : > { %1568 = vmatprep.subr.bf16.mxu1 %v5164_v41 }
 0x20b   : > { %1528 = vmatpush1.bf16.msra.mxu0 %v5170_v42 }
 0x20c   : > { %1529 = vmatprep.subr.bf16.mxu0 %v5175_v43 }
 0x20d   : > { %1569 = vmatpush1.bf16.msra.mxu1 %v5180_v44 }
 0x20e   : > { %1570 = vmatprep.subr.bf16.mxu1 %v5185_v45 }
 0x20f   : > { %1530 = vmatpush1.bf16.msra.mxu0 %v5190_v46 }
 0x210   : > { %1531 = vmatprep.subr.bf16.mxu0 %v5195_v47 }
 0x211   : > { %1571 = vmatpush1.bf16.msra.mxu1 %v5200_v48 }
 0x212   : > { %1572 = vmatprep.subr.bf16.mxu1 %v5205_v49 }
 0x213   : > { %1532 = vmatpush1.bf16.msra.mxu0 %v5210_v50 }
 0x214   : > { %1533 = vmatprep.subr.bf16.mxu0 %v5215_v55 }
 0x215   : > { %1573 = vmatpush1.bf16.msra.mxu1 %v5220_v1 }
 0x216   : > { %1574 = vmatprep.subr.bf16.mxu1 %v5225_v56 }
 0x217   : > { %1534 = vmatpush1.bf16.msra.mxu0 %v5230_v57 }
 0x218   : > { %1535 = vmatprep.subr.bf16.mxu0 %v5235_v58 }
 0x219   : > { %1575 = vmatpush1.bf16.msra.mxu1 %v5240_v59 }
 0x21a   : > { %1576 = vmatprep.subr.bf16.mxu1 %v5245_v60 }
 0x21b   : > { %1536 = vmatpush1.bf16.msra.mxu0 %v5250_v61 }
 0x21c   : > { %1640 = vmatprep.subr.bf16.mxu0 %v5101_v51 }
 0x21d   : > { %1577 = vmatpush1.bf16.msra.mxu1 %v5256_v27 }
 0x21e   : > { %1681 = vmatprep.subr.bf16.mxu1 %v5113_v54 }
 0x2d1   : > { %v1436_v33 = vpop.f32.mrb[0].mxu0 }
 0x2d2   : > { %v1484_v30 = vadd.f32 %v1436_v33, %v1237_v29  ;;  %v1438_v32 = vpop.f32.mrb[1].mxu0 }
 0x2d3   : > { %v1477_v26 = vpop.f32.mrb[0].mxu1  ;;  %v1485_v28 = vadd.f32 %v1438_v32, %v1238_v37  ;;  %v1440_v23 = vpop.f32.mrb[2].mxu0 }
 0x2d4   : > { %v1479_v25 = vpop.f32.mrb[1].mxu1  ;;  %v3814_v22 = vmul.f32 -1.442695, %v1484_v30  ;;  %v1441_v24 = vpop.f32.mrb[3].mxu0  ;;  %v1486_v16 = vadd.f32 %v1477_v26, %v1239_v17  ;;  %v1516_v17 = vld [vmem:[#allocation2 + $0x20] sm:$0xff] }
 0x2d5   : > { %v1481_v19 = vpop.f32.mrb[2].mxu1  ;;  %v3815_v21 = vmul.f32 -1.442695, %v1485_v28  ;;  %v1487_v15 = vadd.f32 %v1479_v25, %v1240_v18  ;;  %v1517_v25 = vld [vmem:[#allocation2 + $0x28] sm:$0xff] }
 0x2d6   : > { %v1482_v20 = vpop.f32.mrb[3].mxu1  ;;  %4128 = vpow2.f32 %v3814_v22  ;;  %v1233_v19 = vld [vmem:[#allocation4] sm:$0xff] }
 0x2d7   : > { %4130 = vpow2.f32 %v3815_v21  ;;  %v3816_v14 = vmul.f32 -1.442695, %v1487_v15 }
 0x2d9   : > { %4132 = vpow2.f32 %v3816_v14 }
 0x2da   : > { %4134 = vtanh.f32 %v1486_v16 }
 0x2e0   : > { %v4129_v11 = vpop.eup %4128 }
 0x2e1   : > { %v4131_v33 = vpop.eup %4130  ;;  %v1491_v29 = vadd.f32 1.0, %v4129_v11 }
 0x2e2   : > { %v1497_v32 = vadd.f32 1.0, %v4131_v33 }
 0x2e3   : > { %4136 = vrcp.f32 %v1491_v29  ;;  %v4133_v23 = vpop.eup %4132 }
 0x2e4   : > { %4138 = vrcp.f32 %v1497_v32  ;;  %v4135_v24 = vpop.eup %4134  ;;  %v1504_v30 = vadd.f32 1.0, %v4133_v23 }
 0x2e6   : > { %4140 = vrcp.f32 %v1504_v30 }
 0x2ed   : > { %v4137_v28 = vpop.eup %4136 }
 0x2ee   : > { %v4139_v20 = vpop.eup %4138  ;;  %v1508_v22 = vmul.f32 %v4137_v28, %v4135_v24 }
 0x2ef   : > { %v1507_v21 = vmul.f32 %v4139_v20, %v1233_v19 }
 0x2f0   : > { %v4141_v14 = vpop.eup %4140 }
 0x2f1   : > { %v5297_v18 = vadd.f32 %v1508_v22, %v1507_v21  ;;  %v1519_v21 = vld [vmem:[#allocation2 + $0x38] sm:$0xff] }
 0x2f3   : > { %4142 = vtanh.f32 %v5297_v18 }
 0x2fd   : > { %v4143_v15 = vpop.eup %4142 }
 0x2fe   : > { %v5300_v11 = vmul.f32 %v4143_v15, %v4141_v14  ;;  %v1518_v15 = vld [vmem:[#allocation2 + $0x30] sm:$0xff] }
 0x300   : > { %v1520_v16 = vpack.c.bf16 %v5300_v11, %v5300_v11 }
 0x302   : > { %1554 = vmatmul.mubr.bf16.vlgmr.msra.gmra.mrb[4].mxu0 %v1520_v16  ;;  %1595 = vmatmul.mubr.bf16.vlgmr.msra.gmra.mrb[4].mxu1 %v1520_v16 }
 0x303   : > { %1641 = vmatpush1.bf16.msra.mxu0 %v5105_v52  ;;  %1682 = vmatpush1.bf16.msra.mxu1 %v5118_v62 }
 0x304   : > { %1642 = vmatprep.subr.bf16.mxu0 %v5109_v53  ;;  %1683 = vmatprep.subr.bf16.mxu1 %v5122_v63 }
 0x305   : > { %1672 = vmatprep.mubr.bf16.mxu0 %v6170_v31  ;;  %1713 = vmatprep.mubr.bf16.mxu1 %v6170_v31 }
 0x307   : > { %1643 = vmatpush1.bf16.msra.mxu0 %v5127_v0  ;;  %1684 = vmatpush1.bf16.msra.mxu1 %v5138_v35 }
 0x308   : > { %1644 = vmatprep.subr.bf16.mxu0 %v5133_v34  ;;  %1685 = vmatprep.subr.bf16.mxu1 %v5143_v36 }
 0x30b   : > { %1645 = vmatpush1.bf16.msra.mxu0 %v5149_v38  ;;  %1686 = vmatpush1.bf16.msra.mxu1 %v5159_v40 }
 0x30c   : > { %1646 = vmatprep.subr.bf16.mxu0 %v5154_v39  ;;  %1687 = vmatprep.subr.bf16.mxu1 %v5164_v41 }
 0x30f   : > { %1647 = vmatpush1.bf16.msra.mxu0 %v5170_v42  ;;  %1688 = vmatpush1.bf16.msra.mxu1 %v5180_v44 }
 0x310   : > { %1648 = vmatprep.subr.bf16.mxu0 %v5175_v43  ;;  %1689 = vmatprep.subr.bf16.mxu1 %v5185_v45 }
 0x313   : > { %1649 = vmatpush1.bf16.msra.mxu0 %v5190_v46  ;;  %1690 = vmatpush1.bf16.msra.mxu1 %v5200_v48 }
 0x314   : > { %1650 = vmatprep.subr.bf16.mxu0 %v5195_v47  ;;  %1691 = vmatprep.subr.bf16.mxu1 %v5205_v49 }
 0x317   : > { %1651 = vmatpush1.bf16.msra.mxu0 %v5210_v50  ;;  %1692 = vmatpush1.bf16.msra.mxu1 %v5220_v1 }
 0x318   : > { %1652 = vmatprep.subr.bf16.mxu0 %v5215_v55  ;;  %1693 = vmatprep.subr.bf16.mxu1 %v5225_v56 }
 0x31b   : > { %1653 = vmatpush1.bf16.msra.mxu0 %v5230_v57  ;;  %1694 = vmatpush1.bf16.msra.mxu1 %v5240_v59 }
 0x31c   : > { %1654 = vmatprep.subr.bf16.mxu0 %v5235_v58  ;;  %1695 = vmatprep.subr.bf16.mxu1 %v5245_v60 }
 0x31f   : > { %1655 = vmatpush1.bf16.msra.mxu0 %v5250_v61  ;;  %1696 = vmatpush1.bf16.msra.mxu1 %v5256_v27 }
 0x320   : > { %1759 = vmatprep.subr.bf16.mxu0 %v5101_v51  ;;  %1800 = vmatprep.subr.bf16.mxu1 %v5113_v54 }
 0x3d5   : > { %v1555_v26 = vpop.f32.mrb[4].mxu0  ;;  %v1596_v37 = vpop.f32.mrb[4].mxu1 }
 0x3d6   : > { %v1603_v33 = vadd.f32 %v1555_v26, %v1516_v17  ;;  %v1557_v29 = vpop.f32.mrb[5].mxu0  ;;  %v1598_v32 = vpop.f32.mrb[5].mxu1  ;;  %v1605_v13 = vadd.f32 %v1596_v37, %v1518_v15 }
 0x3d7   : > { %v1604_v23 = vadd.f32 %v1557_v29, %v1517_v25  ;;  %v1559_v24 = vpop.f32.mrb[6].mxu0  ;;  %v1600_v19 = vpop.f32.mrb[6].mxu1  ;;  %v1606_v14 = vadd.f32 %v1598_v32, %v1519_v21 }
 0x3d8   : > { %v3817_v28 = vmul.f32 -1.442695, %v1603_v33  ;;  %v1560_v30 = vpop.f32.mrb[7].mxu0  ;;  %v1601_v20 = vpop.f32.mrb[7].mxu1 }
 0x3d9   : > { %v3818_v22 = vmul.f32 -1.442695, %v1604_v23  ;;  %v3819_v16 = vmul.f32 -1.442695, %v1606_v14 }
 0x3da   : > { %4144 = vpow2.f32 %v3817_v28 }
 0x3db   : > { %4146 = vpow2.f32 %v3818_v22 }
 0x3dc   : > { %4148 = vpow2.f32 %v3819_v16 }
 0x3dd   : > { %4150 = vtanh.f32 %v1605_v13  ;;  %v1636_v13 = vld [vmem:[#allocation2 + $0x48] sm:$0xff] }
 0x3e4   : > { %v4145_v10 = vpop.eup %4144 }
 0x3e5   : > { %v4147_v12 = vpop.eup %4146  ;;  %v1610_v7 = vadd.f32 1.0, %v4145_v10 }
 0x3e6   : > { %v1616_v17 = vadd.f32 1.0, %v4147_v12  ;;  %v4149_v25 = vpop.eup %4148  ;;  %v1635_v12 = vld [vmem:[#allocation2 + $0x40] sm:$0xff] }
 0x3e7   : > { %4152 = vrcp.f32 %v1610_v7  ;;  %v4151_v26 = vpop.eup %4150  ;;  %v1623_v24 = vadd.f32 1.0, %v4149_v25 }
 0x3e8   : > { %4154 = vrcp.f32 %v1616_v17 }
 0x3e9   : > { %4156 = vrcp.f32 %v1623_v24  ;;  %v1637_v24 = vld [vmem:[#allocation2 + $0x50] sm:$0xff] }
 0x3f1   : > { %v4153_v33 = vpop.eup %4152 }
 0x3f2   : > { %v4155_v29 = vpop.eup %4154  ;;  %v1627_v23 = vmul.f32 %v4153_v33, %v4151_v26 }
 0x3f3   : > { %v1626_v19 = vmul.f32 %v4155_v29, %v5297_v18  ;;  %v4157_v37 = vpop.eup %4156  ;;  %v1638_v29 = vld [vmem:[#allocation2 + $0x58] sm:$0xff] }
 0x3f5   : > { %v5339_v32 = vadd.f32 %v1627_v23, %v1626_v19 }
 0x3f7   : > { %4158 = vtanh.f32 %v5339_v32 }
 0x401   : > { %v4159_v10 = vpop.eup %4158 }
 0x402   : > { %v5342_v28 = vmul.f32 %v4159_v10, %v4157_v37 }
 0x404   : > { %v1639_v7 = vpack.c.bf16 %v5342_v28, %v5342_v28 }
 0x406   : > { %1673 = vmatmul.mubr.bf16.vlgmr.msra.gmra.mrb[8].mxu0 %v1639_v7  ;;  %1714 = vmatmul.mubr.bf16.vlgmr.msra.gmra.mrb[8].mxu1 %v1639_v7 }
 0x407   : > { %1760 = vmatpush1.bf16.msra.mxu0 %v5105_v52  ;;  %1801 = vmatpush1.bf16.msra.mxu1 %v5118_v62 }
 0x408   : > { %1761 = vmatprep.subr.bf16.mxu0 %v5109_v53  ;;  %1802 = vmatprep.subr.bf16.mxu1 %v5122_v63 }
 0x409   : > { %1791 = vmatprep.mubr.bf16.mxu0 %v6170_v31  ;;  %1832 = vmatprep.mubr.bf16.mxu1 %v6170_v31 }
 0x40b   : > { %1762 = vmatpush1.bf16.msra.mxu0 %v5127_v0  ;;  %1803 = vmatpush1.bf16.msra.mxu1 %v5138_v35 }
 0x40c   : > { %1763 = vmatprep.subr.bf16.mxu0 %v5133_v34  ;;  %1804 = vmatprep.subr.bf16.mxu1 %v5143_v36 }
 0x40f   : > { %1764 = vmatpush1.bf16.msra.mxu0 %v5149_v38  ;;  %1805 = vmatpush1.bf16.msra.mxu1 %v5159_v40 }
 0x410   : > { %1765 = vmatprep.subr.bf16.mxu0 %v5154_v39  ;;  %1806 = vmatprep.subr.bf16.mxu1 %v5164_v41 }
 0x413   : > { %1766 = vmatpush1.bf16.msra.mxu0 %v5170_v42  ;;  %1807 = vmatpush1.bf16.msra.mxu1 %v5180_v44 }
 0x414   : > { %1767 = vmatprep.subr.bf16.mxu0 %v5175_v43  ;;  %1808 = vmatprep.subr.bf16.mxu1 %v5185_v45 }
 0x417   : > { %1768 = vmatpush1.bf16.msra.mxu0 %v5190_v46  ;;  %1809 = vmatpush1.bf16.msra.mxu1 %v5200_v48 }
 0x418   : > { %1769 = vmatprep.subr.bf16.mxu0 %v5195_v47  ;;  %1810 = vmatprep.subr.bf16.mxu1 %v5205_v49 }
 0x41b   : > { %1770 = vmatpush1.bf16.msra.mxu0 %v5210_v50  ;;  %1811 = vmatpush1.bf16.msra.mxu1 %v5220_v1 }
 0x41c   : > { %1771 = vmatprep.subr.bf16.mxu0 %v5215_v55  ;;  %1812 = vmatprep.subr.bf16.mxu1 %v5225_v56 }
 0x41f   : > { %1772 = vmatpush1.bf16.msra.mxu0 %v5230_v57  ;;  %1813 = vmatpush1.bf16.msra.mxu1 %v5240_v59 }
 0x420   : > { %1773 = vmatprep.subr.bf16.mxu0 %v5235_v58  ;;  %1814 = vmatprep.subr.bf16.mxu1 %v5245_v60 }
 0x423   : > { %1774 = vmatpush1.bf16.msra.mxu0 %v5250_v61  ;;  %1815 = vmatpush1.bf16.msra.mxu1 %v5256_v27 }
 0x424   : > { %1878 = vmatprep.subr.bf16.mxu0 %v5101_v51  ;;  %1919 = vmatprep.subr.bf16.mxu1 %v5113_v54 }
 0x4d9   : > { %v1674_v18 = vpop.f32.mrb[8].mxu0  ;;  %v1715_v30 = vpop.f32.mrb[8].mxu1 }
 0x4da   : > { %v1722_v20 = vadd.f32 %v1674_v18, %v1635_v12  ;;  %v1676_v22 = vpop.f32.mrb[9].mxu0  ;;  %v1717_v21 = vpop.f32.mrb[9].mxu1  ;;  %v1724_v37 = vadd.f32 %v1715_v30, %v1637_v24 }
 0x4db   : > { %v1723_v14 = vadd.f32 %v1676_v22, %v1636_v13  ;;  %v1678_v15 = vpop.f32.mrb[10].mxu0  ;;  %v1719_v16 = vpop.f32.mrb[10].mxu1  ;;  %v1725_v23 = vadd.f32 %v1717_v21, %v1638_v29 }
 0x4dc   : > { %v3820_v17 = vmul.f32 -1.442695, %v1722_v20  ;;  %v1679_v25 = vpop.f32.mrb[11].mxu0  ;;  %v1720_v26 = vpop.f32.mrb[11].mxu1 }
 0x4dd   : > { %v3821_v33 = vmul.f32 -1.442695, %v1723_v14  ;;  %v3822_v19 = vmul.f32 -1.442695, %v1725_v23  ;;  %v1631_v25 = vadd.f32 %v5342_v28, %v5300_v11  ;;  %v1754_v11 = vld [vmem:[#allocation2 + $0x60] sm:$0xff] }
 0x4de   : > { %4160 = vpow2.f32 %v3820_v17 }
 0x4df   : > { %4162 = vpow2.f32 %v3821_v33 }
 0x4e0   : > { %4164 = vpow2.f32 %v3822_v19 }
 0x4e1   : > { %4166 = vtanh.f32 %v1724_v37 }
 0x4e8   : > { %v4161_v10 = vpop.eup %4160 }
 0x4e9   : > { %v4163_v7 = vpop.eup %4162  ;;  %v1729_v9 = vadd.f32 1.0, %v4161_v10 }
 0x4ea   : > { %v1735_v12 = vadd.f32 1.0, %v4163_v7  ;;  %v4165_v13 = vpop.eup %4164 }
 0x4eb   : > { %4168 = vrcp.f32 %v1729_v9  ;;  %v4167_v18 = vpop.eup %4166  ;;  %v1742_v15 = vadd.f32 1.0, %v4165_v13 }
 0x4ec   : > { %4170 = vrcp.f32 %v1735_v12 }
 0x4ed   : > { %4172 = vrcp.f32 %v1742_v15  ;;  %v1756_v15 = vld [vmem:[#allocation2 + $0x70] sm:$0xff] }
 0x4f5   : > { %v4169_v20 = vpop.eup %4168 }
 0x4f6   : > { %v4171_v22 = vpop.eup %4170  ;;  %v1746_v14 = vmul.f32 %v4169_v20, %v4167_v18 }
 0x4f7   : > { %v1745_v16 = vmul.f32 %v4171_v22, %v5339_v32  ;;  %v4173_v30 = vpop.eup %4172  ;;  %v1755_v32 = vld [vmem:[#allocation2 + $0x68] sm:$0xff]  ;;  %v1757_v22 = vld [vmem:[#allocation2 + $0x78] sm:$0xff] }
 0x4f9   : > { %v5381_v21 = vadd.f32 %v1746_v14, %v1745_v16 }
 0x4fb   : > { %4174 = vtanh.f32 %v5381_v21 }
 0x505   : > { %v4175_v17 = vpop.eup %4174 }
 0x506   : > { %v1749_v9 = vmul.f32 %v4175_v17, %v4173_v30 }
 0x508   : > { %v5386_v26 = vadd.f32 %v1749_v9, %v1631_v25  ;;  %v1758_v33 = vpack.c.bf16 %v1749_v9, %v1749_v9 }
 0x50a   : > { %1792 = vmatmul.mubr.bf16.vlgmr.msra.gmra.mrb[12].mxu0 %v1758_v33  ;;  %1833 = vmatmul.mubr.bf16.vlgmr.msra.gmra.mrb[12].mxu1 %v1758_v33 }
 0x50b   : > { %1879 = vmatpush1.bf16.msra.mxu0 %v5105_v52  ;;  %1920 = vmatpush1.bf16.msra.mxu1 %v5118_v62 }
 0x50c   : > { %1880 = vmatprep.subr.bf16.mxu0 %v5109_v53  ;;  %1921 = vmatprep.subr.bf16.mxu1 %v5122_v63 }
 0x50d   : > { %1910 = vmatprep.mubr.bf16.mxu0 %v6170_v31  ;;  %1951 = vmatprep.mubr.bf16.mxu1 %v6170_v31 }
 0x50f   : > { %1881 = vmatpush1.bf16.msra.mxu0 %v5127_v0  ;;  %1922 = vmatpush1.bf16.msra.mxu1 %v5138_v35 }
 0x510   : > { %1882 = vmatprep.subr.bf16.mxu0 %v5133_v34  ;;  %1923 = vmatprep.subr.bf16.mxu1 %v5143_v36 }
 0x513   : > { %1883 = vmatpush1.bf16.msra.mxu0 %v5149_v38  ;;  %1924 = vmatpush1.bf16.msra.mxu1 %v5159_v40 }
 0x514   : > { %1884 = vmatprep.subr.bf16.mxu0 %v5154_v39  ;;  %1925 = vmatprep.subr.bf16.mxu1 %v5164_v41 }
 0x517   : > { %1885 = vmatpush1.bf16.msra.mxu0 %v5170_v42  ;;  %1926 = vmatpush1.bf16.msra.mxu1 %v5180_v44 }
 0x518   : > { %1886 = vmatprep.subr.bf16.mxu0 %v5175_v43  ;;  %1927 = vmatprep.subr.bf16.mxu1 %v5185_v45 }
 0x51b   : > { %1887 = vmatpush1.bf16.msra.mxu0 %v5190_v46  ;;  %1928 = vmatpush1.bf16.msra.mxu1 %v5200_v48 }
 0x51c   : > { %1888 = vmatprep.subr.bf16.mxu0 %v5195_v47  ;;  %1929 = vmatprep.subr.bf16.mxu1 %v5205_v49 }
 0x51f   : > { %1889 = vmatpush1.bf16.msra.mxu0 %v5210_v50  ;;  %1930 = vmatpush1.bf16.msra.mxu1 %v5220_v1 }
 0x520   : > { %1890 = vmatprep.subr.bf16.mxu0 %v5215_v55  ;;  %1931 = vmatprep.subr.bf16.mxu1 %v5225_v56 }
 0x523   : > { %1891 = vmatpush1.bf16.msra.mxu0 %v5230_v57  ;;  %1932 = vmatpush1.bf16.msra.mxu1 %v5240_v59 }
 0x524   : > { %1892 = vmatprep.subr.bf16.mxu0 %v5235_v58  ;;  %1933 = vmatprep.subr.bf16.mxu1 %v5245_v60 }
 0x527   : > { %1893 = vmatpush1.bf16.msra.mxu0 %v5250_v61  ;;  %1934 = vmatpush1.bf16.msra.mxu1 %v5256_v27 }
 0x528   : > { %1997 = vmatprep.subr.bf16.mxu0 %v5101_v51  ;;  %2038 = vmatprep.subr.bf16.mxu1 %v5113_v54 }
 0x5dd   : > { %v1793_v28 = vpop.f32.mrb[12].mxu0  ;;  %v1834_v29 = vpop.f32.mrb[12].mxu1 }
 0x5de   : > { %v1841_v23 = vadd.f32 %v1793_v28, %v1754_v11  ;;  %v1795_v24 = vpop.f32.mrb[13].mxu0  ;;  %v1836_v19 = vpop.f32.mrb[13].mxu1  ;;  %v1843_v30 = vadd.f32 %v1834_v29, %v1756_v15 }
 0x5df   : > { %v1842_v37 = vadd.f32 %v1795_v24, %v1755_v32  ;;  %v1797_v10 = vpop.f32.mrb[14].mxu0  ;;  %v1838_v7 = vpop.f32.mrb[14].mxu1  ;;  %v1844_v14 = vadd.f32 %v1836_v19, %v1757_v22 }
 0x5e0   : > { %v3823_v12 = vmul.f32 -1.442695, %v1841_v23  ;;  %v1798_v13 = vpop.f32.mrb[15].mxu0  ;;  %v1839_v18 = vpop.f32.mrb[15].mxu1 }
 0x5e1   : > { %v3824_v20 = vmul.f32 -1.442695, %v1842_v37  ;;  %v3825_v16 = vmul.f32 -1.442695, %v1844_v14 }
 0x5e2   : > { %4176 = vpow2.f32 %v3823_v12 }
 0x5e3   : > { %4178 = vpow2.f32 %v3824_v20 }
 0x5e4   : > { %4180 = vpow2.f32 %v3825_v16 }
 0x5e5   : > { %4182 = vtanh.f32 %v1843_v30 }
 0x5ec   : > { %v4177_v17 = vpop.eup %4176 }
 0x5ed   : > { %v4179_v25 = vpop.eup %4178  ;;  %v1848_v9 = vadd.f32 1.0, %v4177_v17 }
 0x5ee   : > { %v1854_v33 = vadd.f32 1.0, %v4179_v25  ;;  %v4181_v11 = vpop.eup %4180 }
 0x5ef   : > { %4184 = vrcp.f32 %v1848_v9  ;;  %v4183_v32 = vpop.eup %4182  ;;  %v1861_v37 = vadd.f32 1.0, %v4181_v11 }
 0x5f0   : > { %4186 = vrcp.f32 %v1854_v33 }
 0x5f1   : > { %4188 = vrcp.f32 %v1861_v37 }
 0x5f9   : > { %v4185_v28 = vpop.eup %4184 }
 0x5fa   : > { %v4187_v23 = vpop.eup %4186  ;;  %v1865_v24 = vmul.f32 %v4185_v28, %v4183_v32  ;;  %v1876_v28 = vld [vmem:[#allocation2 + $0x98] sm:$0xff] }
 0x5fb   : > { %v1864_v10 = vmul.f32 %v4187_v23, %v5381_v21  ;;  %v4189_v29 = vpop.eup %4188  ;;  %v1873_v21 = vld [vmem:[#allocation2 + $0x80] sm:$0xff] }
 0x5fd   : > { %v5423_v19 = vadd.f32 %v1865_v24, %v1864_v10  ;;  %v1875_v24 = vld [vmem:[#allocation2 + $0x90] sm:$0xff] }
 0x5ff   : > { %4190 = vtanh.f32 %v5423_v19 }
 0x609   : > { %v4191_v7 = vpop.eup %4190 }
 0x60a   : > { %v1868_v12 = vmul.f32 %v4191_v7, %v4189_v29 }
 0x60c   : > { %v5427_v13 = vadd.f32 %v1868_v12, %v5386_v26  ;;  %v1877_v18 = vpack.c.bf16 %v1868_v12, %v1868_v12  ;;  %v1874_v26 = vld [vmem:[#allocation2 + $0x88] sm:$0xff] }
 0x60e   : > { %1911 = vmatmul.mubr.bf16.vlgmr.msra.gmra.mrb[16].mxu0 %v1877_v18  ;;  %1952 = vmatmul.mubr.bf16.vlgmr.msra.gmra.mrb[16].mxu1 %v1877_v18 }
 0x60f   : > { %1998 = vmatpush1.bf16.msra.mxu0 %v5105_v52  ;;  %2039 = vmatpush1.bf16.msra.mxu1 %v5118_v62 }
 0x610   : > { %1999 = vmatprep.subr.bf16.mxu0 %v5109_v53  ;;  %2040 = vmatprep.subr.bf16.mxu1 %v5122_v63 }
 0x611   : > { %2029 = vmatprep.mubr.bf16.mxu0 %v6170_v31  ;;  %2070 = vmatprep.mubr.bf16.mxu1 %v6170_v31 }
 0x613   : > { %2000 = vmatpush1.bf16.msra.mxu0 %v5127_v0  ;;  %2041 = vmatpush1.bf16.msra.mxu1 %v5138_v35 }
 0x614   : > { %2001 = vmatprep.subr.bf16.mxu0 %v5133_v34  ;;  %2042 = vmatprep.subr.bf16.mxu1 %v5143_v36 }
 0x617   : > { %2002 = vmatpush1.bf16.msra.mxu0 %v5149_v38  ;;  %2043 = vmatpush1.bf16.msra.mxu1 %v5159_v40 }
 0x618   : > { %2003 = vmatprep.subr.bf16.mxu0 %v5154_v39  ;;  %2044 = vmatprep.subr.bf16.mxu1 %v5164_v41 }
 0x61b   : > { %2004 = vmatpush1.bf16.msra.mxu0 %v5170_v42  ;;  %2045 = vmatpush1.bf16.msra.mxu1 %v5180_v44 }
 0x61c   : > { %2005 = vmatprep.subr.bf16.mxu0 %v5175_v43  ;;  %2046 = vmatprep.subr.bf16.mxu1 %v5185_v45 }
 0x61f   : > { %2006 = vmatpush1.bf16.msra.mxu0 %v5190_v46  ;;  %2047 = vmatpush1.bf16.msra.mxu1 %v5200_v48 }
 0x620   : > { %2007 = vmatprep.subr.bf16.mxu0 %v5195_v47  ;;  %2048 = vmatprep.subr.bf16.mxu1 %v5205_v49 }
 0x623   : > { %2008 = vmatpush1.bf16.msra.mxu0 %v5210_v50  ;;  %2049 = vmatpush1.bf16.msra.mxu1 %v5220_v1 }
 0x624   : > { %2009 = vmatprep.subr.bf16.mxu0 %v5215_v55  ;;  %2050 = vmatprep.subr.bf16.mxu1 %v5225_v56 }
 0x627   : > { %2010 = vmatpush1.bf16.msra.mxu0 %v5230_v57  ;;  %2051 = vmatpush1.bf16.msra.mxu1 %v5240_v59 }
 0x628   : > { %2011 = vmatprep.subr.bf16.mxu0 %v5235_v58  ;;  %2052 = vmatprep.subr.bf16.mxu1 %v5245_v60 }
 0x62b   : > { %2012 = vmatpush1.bf16.msra.mxu0 %v5250_v61  ;;  %2053 = vmatpush1.bf16.msra.mxu1 %v5256_v27 }
 0x62c   : > { %2116 = vmatprep.subr.bf16.mxu0 %v5101_v51  ;;  %2157 = vmatprep.subr.bf16.mxu1 %v5113_v54 }
 0x6e1   : > { %v1912_v20 = vpop.f32.mrb[16].mxu0  ;;  %v1953_v22 = vpop.f32.mrb[16].mxu1 }
 0x6e2   : > { %v1960_v14 = vadd.f32 %v1912_v20, %v1873_v21  ;;  %v1914_v15 = vpop.f32.mrb[17].mxu0  ;;  %v1955_v16 = vpop.f32.mrb[17].mxu1  ;;  %v1962_v10 = vadd.f32 %v1953_v22, %v1875_v24 }
 0x6e3   : > { %v1961_v30 = vadd.f32 %v1914_v15, %v1874_v26  ;;  %v1916_v17 = vpop.f32.mrb[18].mxu0  ;;  %v1957_v25 = vpop.f32.mrb[18].mxu1  ;;  %v1963_v23 = vadd.f32 %v1955_v16, %v1876_v28 }
 0x6e4   : > { %v3826_v9 = vmul.f32 -1.442695, %v1960_v14  ;;  %v1917_v33 = vpop.f32.mrb[19].mxu0  ;;  %v1958_v11 = vpop.f32.mrb[19].mxu1 }
 0x6e5   : > { %v3827_v32 = vmul.f32 -1.442695, %v1961_v30  ;;  %v3828_v37 = vmul.f32 -1.442695, %v1963_v23 }
 0x6e6   : > { %4192 = vpow2.f32 %v3826_v9 }
 0x6e7   : > { %4194 = vpow2.f32 %v3827_v32 }
 0x6e8   : > { %4196 = vpow2.f32 %v3828_v37 }
 0x6e9   : > { %4198 = vtanh.f32 %v1962_v10 }
 0x6f0   : > { %v4193_v29 = vpop.eup %4192 }
 0x6f1   : > { %v4195_v7 = vpop.eup %4194  ;;  %v1967_v12 = vadd.f32 1.0, %v4193_v29 }
 0x6f2   : > { %v1973_v18 = vadd.f32 1.0, %v4195_v7  ;;  %v4197_v21 = vpop.eup %4196 }
 0x6f3   : > { %4200 = vrcp.f32 %v1967_v12  ;;  %v4199_v26 = vpop.eup %4198  ;;  %v1980_v30 = vadd.f32 1.0, %v4197_v21 }
 0x6f4   : > { %4202 = vrcp.f32 %v1973_v18 }
 0x6f5   : > { %4204 = vrcp.f32 %v1980_v30 }
 0x6fd   : > { %v4201_v20 = vpop.eup %4200 }
 0x6fe   : > { %v4203_v14 = vpop.eup %4202  ;;  %v1984_v15 = vmul.f32 %v4201_v20, %v4199_v26  ;;  %v1995_v20 = vld [vmem:[#allocation2 + $0xb8] sm:$0xff] }
 0x6ff   : > { %v1983_v17 = vmul.f32 %v4203_v14, %v5423_v19  ;;  %v4205_v22 = vpop.eup %4204  ;;  %v1992_v19 = vld [vmem:[#allocation2 + $0xa0] sm:$0xff]  ;;  %v1994_v14 = vld [vmem:[#allocation2 + $0xb0] sm:$0xff] }
 0x701   : > { %v5464_v16 = vadd.f32 %v1984_v15, %v1983_v17 }
 0x703   : > { %4206 = vtanh.f32 %v5464_v16 }
 0x70d   : > { %v4207_v25 = vpop.eup %4206 }
 0x70e   : > { %v1987_v9 = vmul.f32 %v4207_v25, %v4205_v22 }
 0x710   : > { %v5468_v33 = vadd.f32 %v1987_v9, %v5427_v13  ;;  %v1996_v11 = vpack.c.bf16 %v1987_v9, %v1987_v9  ;;  %v1993_v13 = vld [vmem:[#allocation2 + $0xa8] sm:$0xff] }
 0x712   : > { %2030 = vmatmul.mubr.bf16.vlgmr.msra.gmra.mrb[20].mxu0 %v1996_v11  ;;  %2071 = vmatmul.mubr.bf16.vlgmr.msra.gmra.mrb[20].mxu1 %v1996_v11 }
 0x713   : > { %2117 = vmatpush1.bf16.msra.mxu0 %v5105_v52  ;;  %2158 = vmatpush1.bf16.msra.mxu1 %v5118_v62 }
 0x714   : > { %2118 = vmatprep.subr.bf16.mxu0 %v5109_v53  ;;  %2159 = vmatprep.subr.bf16.mxu1 %v5122_v63 }
 0x715   : > { %2148 = vmatprep.mubr.bf16.mxu0 %v6170_v31  ;;  %2189 = vmatprep.mubr.bf16.mxu1 %v6170_v31 }
 0x717   : > { %2119 = vmatpush1.bf16.msra.mxu0 %v5127_v0  ;;  %2160 = vmatpush1.bf16.msra.mxu1 %v5138_v35 }
 0x718   : > { %2120 = vmatprep.subr.bf16.mxu0 %v5133_v34  ;;  %2161 = vmatprep.subr.bf16.mxu1 %v5143_v36 }
 0x71b   : > { %2121 = vmatpush1.bf16.msra.mxu0 %v5149_v38  ;;  %2162 = vmatpush1.bf16.msra.mxu1 %v5159_v40 }
 0x71c   : > { %2122 = vmatprep.subr.bf16.mxu0 %v5154_v39  ;;  %2163 = vmatprep.subr.bf16.mxu1 %v5164_v41 }
 0x71f   : > { %2123 = vmatpush1.bf16.msra.mxu0 %v5170_v42  ;;  %2164 = vmatpush1.bf16.msra.mxu1 %v5180_v44 }
 0x720   : > { %2124 = vmatprep.subr.bf16.mxu0 %v5175_v43  ;;  %2165 = vmatprep.subr.bf16.mxu1 %v5185_v45 }
 0x723   : > { %2125 = vmatpush1.bf16.msra.mxu0 %v5190_v46  ;;  %2166 = vmatpush1.bf16.msra.mxu1 %v5200_v48 }
 0x724   : > { %2126 = vmatprep.subr.bf16.mxu0 %v5195_v47  ;;  %2167 = vmatprep.subr.bf16.mxu1 %v5205_v49 }
 0x727   : > { %2127 = vmatpush1.bf16.msra.mxu0 %v5210_v50  ;;  %2168 = vmatpush1.bf16.msra.mxu1 %v5220_v1 }
 0x728   : > { %2128 = vmatprep.subr.bf16.mxu0 %v5215_v55  ;;  %2169 = vmatprep.subr.bf16.mxu1 %v5225_v56 }
 0x72b   : > { %2129 = vmatpush1.bf16.msra.mxu0 %v5230_v57  ;;  %2170 = vmatpush1.bf16.msra.mxu1 %v5240_v59 }
 0x72c   : > { %2130 = vmatprep.subr.bf16.mxu0 %v5235_v58  ;;  %2171 = vmatprep.subr.bf16.mxu1 %v5245_v60 }
 0x72f   : > { %2131 = vmatpush1.bf16.msra.mxu0 %v5250_v61  ;;  %2172 = vmatpush1.bf16.msra.mxu1 %v5256_v27 }
 0x730   : > { %2235 = vmatprep.subr.bf16.mxu0 %v5101_v51  ;;  %2276 = vmatprep.subr.bf16.mxu1 %v5113_v54 }
 0x7e5   : > { %v2031_v32 = vpop.f32.mrb[20].mxu0  ;;  %v2072_v28 = vpop.f32.mrb[20].mxu1 }
 0x7e6   : > { %v2079_v23 = vadd.f32 %v2031_v32, %v1992_v19  ;;  %v2033_v24 = vpop.f32.mrb[21].mxu0  ;;  %v2074_v37 = vpop.f32.mrb[21].mxu1  ;;  %v2081_v15 = vadd.f32 %v2072_v28, %v1994_v14 }
 0x7e7   : > { %v2080_v10 = vadd.f32 %v2033_v24, %v1993_v13  ;;  %v2035_v29 = vpop.f32.mrb[22].mxu0  ;;  %v2076_v7 = vpop.f32.mrb[22].mxu1  ;;  %v2082_v51 = vadd.f32 %v2074_v37, %v1995_v20  ;;  %v2230_v20 = vld [vmem:[#allocation2 + $0xe0] sm:$0xff] }
 0x7e8   : > { %v3829_v12 = vmul.f32 -1.442695, %v2079_v23  ;;  %v2036_v18 = vpop.f32.mrb[23].mxu0  ;;  %v2077_v21 = vpop.f32.mrb[23].mxu1 }
 0x7e9   : > { %v3830_v26 = vmul.f32 -1.442695, %v2080_v10  ;;  %v3831_v54 = vmul.f32 -1.442695, %v2082_v51  ;;  %v2231_v51 = vld [vmem:[#allocation2 + $0xe8] sm:$0xff] }
 0x7ea   : > { %4208 = vpow2.f32 %v3829_v12 }
 0x7eb   : > { %4210 = vpow2.f32 %v3830_v26 }
 0x7ec   : > { %4212 = vpow2.f32 %v3831_v54 }
 0x7ed   : > { %4214 = vtanh.f32 %v2081_v15 }
 0x7f4   : > { %v4209_v30 = vpop.eup %4208 }
 0x7f5   : > { %v4211_v17 = vpop.eup %4210  ;;  %v2086_v22 = vadd.f32 1.0, %v4209_v30 }
 0x7f6   : > { %v2092_v25 = vadd.f32 1.0, %v4211_v17  ;;  %v4213_v9 = vpop.eup %4212 }
 0x7f7   : > { %4216 = vrcp.f32 %v2086_v22  ;;  %v4215_v11 = vpop.eup %4214  ;;  %v2099_v23 = vadd.f32 1.0, %v4213_v9 }
 0x7f8   : > { %4218 = vrcp.f32 %v2092_v25 }
 0x7f9   : > { %4220 = vrcp.f32 %v2099_v23  ;;  %v2233_v23 = vld [vmem:[#allocation2 + $0xf8] sm:$0xff] }
 0x801   : > { %v4217_v19 = vpop.eup %4216 }
 0x802   : > { %v4219_v13 = vpop.eup %4218  ;;  %v2103_v32 = vmul.f32 %v4217_v19, %v4215_v11 }
 0x803   : > { %v2102_v24 = vmul.f32 %v4219_v13, %v5464_v16  ;;  %v4221_v28 = vpop.eup %4220 }
 0x805   : > { %v5505_v37 = vadd.f32 %v2103_v32, %v2102_v24 }
 0x807   : > { %4222 = vtanh.f32 %v5505_v37 }
 0x811   : > { %v4223_v10 = vpop.eup %4222 }
 0x812   : > { %v2106_v29 = vmul.f32 %v4223_v10, %v4221_v28 }
 0x814   : > { %v5509_v7 = vadd.f32 %v2106_v29, %v5468_v33  ;;  %v2115_v12 = vpack.c.bf16 %v2106_v29, %v2106_v29 }
 0x816   : > { %2149 = vmatmul.mubr.bf16.vlgmr.msra.gmra.mrb[24].mxu0 %v2115_v12  ;;  %2190 = vmatmul.mubr.bf16.vlgmr.msra.gmra.mrb[24].mxu1 %v2115_v12 }
 0x817   : > { %2236 = vmatpush1.bf16.msra.mxu0 %v5105_v52  ;;  %2277 = vmatpush1.bf16.msra.mxu1 %v5118_v62  ;;  %v2112_v52 = vld [vmem:[#allocation2 + $0xc8] sm:$0xff] }
 0x818   : > { %2237 = vmatprep.subr.bf16.mxu0 %v5109_v53  ;;  %2278 = vmatprep.subr.bf16.mxu1 %v5122_v63 }
 0x819   : > { %2267 = vmatprep.mubr.bf16.mxu0 %v6170_v31  ;;  %2308 = vmatprep.mubr.bf16.mxu1 %v6170_v31  ;;  %v2111_v31 = vld [vmem:[#allocation2 + $0xc0] sm:$0xff] }
 0x81b   : > { %2238 = vmatpush1.bf16.msra.mxu0 %v5127_v0  ;;  %2279 = vmatpush1.bf16.msra.mxu1 %v5138_v35 }
 0x81c   : > { %2239 = vmatprep.subr.bf16.mxu0 %v5133_v34  ;;  %2280 = vmatprep.subr.bf16.mxu1 %v5143_v36 }
 0x81f   : > { %2240 = vmatpush1.bf16.msra.mxu0 %v5149_v38  ;;  %2281 = vmatpush1.bf16.msra.mxu1 %v5159_v40 }
 0x820   : > { %2241 = vmatprep.subr.bf16.mxu0 %v5154_v39  ;;  %2282 = vmatprep.subr.bf16.mxu1 %v5164_v41 }
 0x823   : > { %2242 = vmatpush1.bf16.msra.mxu0 %v5170_v42  ;;  %2283 = vmatpush1.bf16.msra.mxu1 %v5180_v44 }
 0x824   : > { %2243 = vmatprep.subr.bf16.mxu0 %v5175_v43  ;;  %2284 = vmatprep.subr.bf16.mxu1 %v5185_v45  ;;  %v2114_v43 = vld [vmem:[#allocation2 + $0xd8] sm:$0xff]  ;;  %v2113_v45 = vld [vmem:[#allocation2 + $0xd0] sm:$0xff] }
 0x827   : > { %2244 = vmatpush1.bf16.msra.mxu0 %v5190_v46  ;;  %2285 = vmatpush1.bf16.msra.mxu1 %v5200_v48 }
 0x828   : > { %2245 = vmatprep.subr.bf16.mxu0 %v5195_v47  ;;  %2286 = vmatprep.subr.bf16.mxu1 %v5205_v49 }
 0x82b   : > { %2246 = vmatpush1.bf16.msra.mxu0 %v5210_v50  ;;  %2287 = vmatpush1.bf16.msra.mxu1 %v5220_v1 }
 0x82c   : > { %2247 = vmatprep.subr.bf16.mxu0 %v5215_v55  ;;  %2288 = vmatprep.subr.bf16.mxu1 %v5225_v56 }
 0x82f   : > { %2248 = vmatpush1.bf16.msra.mxu0 %v5230_v57  ;;  %2289 = vmatpush1.bf16.msra.mxu1 %v5240_v59 }
 0x830   : > { %2249 = vmatprep.subr.bf16.mxu0 %v5235_v58  ;;  %2290 = vmatprep.subr.bf16.mxu1 %v5245_v60 }
 0x833   : > { %2250 = vmatpush1.bf16.msra.mxu0 %v5250_v61  ;;  %2291 = vmatpush1.bf16.msra.mxu1 %v5256_v27 }
 0x8e9   : > { %v2150_v53 = vpop.f32.mrb[24].mxu0  ;;  %v2191_v62 = vpop.f32.mrb[24].mxu1 }
 0x8ea   : > { %v2198_v63 = vadd.f32 %v2150_v53, %v2111_v31  ;;  %v2152_v0 = vpop.f32.mrb[25].mxu0  ;;  %v2193_v34 = vpop.f32.mrb[25].mxu1  ;;  %v2200_v46 = vadd.f32 %v2191_v62, %v2113_v45 }
 0x8eb   : > { %v2199_v35 = vadd.f32 %v2152_v0, %v2112_v52  ;;  %v2154_v36 = vpop.f32.mrb[26].mxu0  ;;  %v2195_v38 = vpop.f32.mrb[26].mxu1  ;;  %v2201_v44 = vadd.f32 %v2193_v34, %v2114_v43 }
 0x8ec   : > { %v3832_v39 = vmul.f32 -1.442695, %v2198_v63  ;;  %v2155_v40 = vpop.f32.mrb[27].mxu0  ;;  %v2196_v41 = vpop.f32.mrb[27].mxu1 }
 0x8ed   : > { %v3833_v42 = vmul.f32 -1.442695, %v2199_v35  ;;  %v3834_v27 = vmul.f32 -1.442695, %v2201_v44 }
 0x8ee   : > { %4224 = vpow2.f32 %v3832_v39 }
 0x8ef   : > { %4226 = vpow2.f32 %v3833_v42  ;;  %v2348_v42 = vld [vmem:[%s4880_s27] sm:$0xff] }
 0x8f0   : > { %4228 = vpow2.f32 %v3834_v27 }
 0x8f1   : > { %4230 = vtanh.f32 %v2200_v46 }
 0x8f8   : > { %v4225_v47 = vpop.eup %4224 }
 0x8f9   : > { %v4227_v48 = vpop.eup %4226  ;;  %v2205_v49 = vadd.f32 1.0, %v4225_v47 }
 0x8fa   : > { %v2211_v50 = vadd.f32 1.0, %v4227_v48  ;;  %v4229_v55 = vpop.eup %4228 }
 0x8fb   : > { %4232 = vrcp.f32 %v2205_v49  ;;  %v4231_v1 = vpop.eup %4230  ;;  %v2218_v59 = vadd.f32 1.0, %v4229_v55 }
 0x8fc   : > { %4234 = vrcp.f32 %v2211_v50 }
 0x8fd   : > { %4236 = vrcp.f32 %v2218_v59 }
 0x905   : > { %v4233_v56 = vpop.eup %4232 }
 0x906   : > { %v4235_v57 = vpop.eup %4234  ;;  %v2222_v58 = vmul.f32 %v4233_v56, %v4231_v1 }
 0x907   : > { %v2221_v60 = vmul.f32 %v4235_v57, %v5505_v37  ;;  %v4237_v16 = vpop.eup %4236  ;;  %v2232_v37 = vld [vmem:[#allocation2 + $0xf0] sm:$0xff] }
 0x909   : > { %v2223_v61 = vadd.f32 %v2222_v58, %v2221_v60 }
 0x90b   : > { %4238 = vtanh.f32 %v2223_v61 }
 0x915   : > { %v4239_v33 = vpop.eup %4238 }
 0x916   : > { %v2225_v18 = vmul.f32 %v4239_v33, %v4237_v16 }
 0x918   : > { %v2226_v21 = vadd.f32 %v2225_v18, %v5509_v7  ;;  %v2234_v26 = vpack.c.bf16 %v2225_v18, %v2225_v18 }
 0x91a   : > { %2268 = vmatmul.mubr.bf16.vlgmr.msra.gmra.mrb[28].mxu0 %v2234_v26  ;;  %2309 = vmatmul.mubr.bf16.vlgmr.msra.gmra.mrb[28].mxu1 %v2234_v26 }
 0x9ed   : > { %v2269_v14 = vpop.f32.mrb[28].mxu0  ;;  %v2310_v54 = vpop.f32.mrb[28].mxu1 }
 0x9ee   : > { %v2317_v15 = vadd.f32 %v2269_v14, %v2230_v20  ;;  %v2271_v30 = vpop.f32.mrb[29].mxu0  ;;  %v2312_v17 = vpop.f32.mrb[29].mxu1  ;;  %v2319_v10 = vadd.f32 %v2310_v54, %v2232_v37 }
 0x9ef   : > { %v2318_v22 = vadd.f32 %v2271_v30, %v2231_v51  ;;  %v2273_v25 = vpop.f32.mrb[30].mxu0  ;;  %v2314_v9 = vpop.f32.mrb[30].mxu1  ;;  %v2320_v24 = vadd.f32 %v2312_v17, %v2233_v23 }
 0x9f0   : > { %v3835_v11 = vmul.f32 -1.442695, %v2317_v15  ;;  %v2274_v19 = vpop.f32.mrb[31].mxu0  ;;  %v2315_v13 = vpop.f32.mrb[31].mxu1 }
 0x9f1   : > { %v3836_v32 = vmul.f32 -1.442695, %v2318_v22  ;;  %v3837_v28 = vmul.f32 -1.442695, %v2320_v24 }
 0x9f2   : > { %4240 = vpow2.f32 %v3835_v11 }
 0x9f3   : > { %4242 = vpow2.f32 %v3836_v32 }
 0x9f4   : > { %4244 = vpow2.f32 %v3837_v28 }
 0x9f5   : > { %4246 = vtanh.f32 %v2319_v10 }
 0x9fc   : > { %v4241_v29 = vpop.eup %4240 }
 0x9fd   : > { %v4243_v7 = vpop.eup %4242  ;;  %v2324_v12 = vadd.f32 1.0, %v4241_v29 }
 0x9fe   : > { %v2330_v31 = vadd.f32 1.0, %v4243_v7  ;;  %v4245_v52 = vpop.eup %4244 }
 0x9ff   : > { %4248 = vrcp.f32 %v2324_v12  ;;  %v4247_v53 = vpop.eup %4246  ;;  %v2337_v34 = vadd.f32 1.0, %v4245_v52 }
 0xa00   : > { %4250 = vrcp.f32 %v2330_v31 }
 0xa01   : > { %4252 = vrcp.f32 %v2337_v34 }
 0xa09   : > { %v4249_v62 = vpop.eup %4248 }
 0xa0a   : > { %v4251_v63 = vpop.eup %4250  ;;  %v2341_v0 = vmul.f32 %v4249_v62, %v4247_v53 }
 0xa0b   : > { %v2340_v35 = vmul.f32 %v4251_v63, %v2223_v61  ;;  %v4253_v38 = vpop.eup %4252 }
 0xa0d   : > { %v2342_v36 = vadd.f32 %v2341_v0, %v2340_v35 }
 0xa0f   : > { %4254 = vtanh.f32 %v2342_v36  ;;  %2347 = vst [vmem:[#allocation4] sm:$0xff] %v2342_v36 }
 0xa19   : > { %v4255_v39 = vpop.eup %4254 }
 0xa1a   : > { %v2344_v40 = vmul.f32 %v4255_v39, %v4253_v38 }
 0xa1c   : > { %v2345_v41 = vadd.f32 %v2344_v40, %v2226_v21  ;;  %2346 = vst [vmem:[#allocation3] sm:$0xff] %v2344_v40 }
 0xa1e   : > { %v2349_v43 = vmul.f32 0.125, %v2345_v41 }
 0xa20   : > { %v2350_v44 = vadd.f32 %v2349_v43, %v2348_v42 }
 0xa22   : > { %2351 = vst [vmem:[%s4880_s27] sm:$0xff] %v2350_v44 }
 0xa23 PF: > { %p3838_p9 = scmp.ne.s32.totalorder %s4584_s18, 1 }
 0xa24   : > { %v5550_v45 = vcombine.high (!%p3838_p9), %v4884_v2, %v4890_v4  ;;  %v5554_v27 = vcombine.low (!%p3838_p9), %v4884_v2, %v4890_v4  ;;  %v5558_v46 = vcombine.high (!%p3838_p9), %v4896_v6, %v4902_v8  ;;  %v5562_v47 = vcombine.high (!%p3838_p9), %v4887_v3, %v4893_v5  ;;  %v6171_v49 = vld [vmem:[#allocation23_spill] sm:$0xff] (!%p3838_p9)  ;;  %v6172_v50 = vld [vmem:[#allocation22_spill] sm:$0xff] (!%p3838_p9)  ;;  %v6174_v1 = vld [vmem:[#allocation24_spill] sm:$0xff] (!%p3838_p9) }
 0xa25   : > { %2355 = sbr.rel (%p3838_p9) target bundleno = 4715 (0x126b), region = 64  ;;  %v5567_v48 = vcombine.low (!%p3838_p9), %v4887_v3, %v4893_v5  ;;  %v5571_v55 = vcombine.high (!%p3838_p9), %v6172_v50, %v6171_v49  ;;  %v5576_v2 = vcombine.low (!%p3838_p9), %v4896_v6, %v4902_v8  ;;  %v6173_v4 = vld [vmem:[#allocation26_spill] sm:$0xff] (!%p3838_p9)  ;;  %v5587_v3 = vcombine.low (!%p3838_p9), %v6172_v50, %v6171_v49  ;;  %v6175_v5 = vld [vmem:[#allocation27_spill] sm:$0xff] (!%p3838_p9)  ;;  %v6176_v57 = vld [vmem:[#allocation25_spill] sm:$0xff] (!%p3838_p9) }
 0xa26   : > { %2526 = vmatprep.subr.bf16.mxu0 (!%p3838_p9), %v5550_v45  ;;  %2567 = vmatprep.subr.bf16.mxu1 (!%p3838_p9), %v5562_v47  ;;  %v5582_v56 = vcombine.high (!%p3838_p9), %v6174_v1, %v6173_v4  ;;  %v5592_v6 = vcombine.high (!%p3838_p9), %v6176_v57, %v6175_v5  ;;  %v4605_v8 = vmov (!%p3838_p9), 0   ;;  %v5598_v58 = vcombine.low (!%p3838_p9), %v6174_v1, %v6173_v4  ;;  %v6177_v59 = vld [vmem:[#allocation30_spill] sm:$0xff] (!%p3838_p9)  ;;  %v6178_v60 = vld [vmem:[#allocation28_spill] sm:$0xff] (!%p3838_p9)  ;;  %v6179_v33 = vld [vmem:[#allocation31_spill] sm:$0xff] (!%p3838_p9) }
 0xa27   : > { %2527 = vmatpush1.bf16.msra.mxu0 (!%p3838_p9), %v5554_v27  ;;  %2568 = vmatpush1.bf16.msra.mxu1 (!%p3838_p9), %v5567_v48  ;;  %v5603_v61 = vcombine.high (!%p3838_p9), %v6178_v60, %v6177_v59  ;;  %v5608_v16 = vcombine.low (!%p3838_p9), %v6176_v57, %v6175_v5  ;;  %v6180_v18 = vld [vmem:[#allocation29_spill] sm:$0xff] (!%p3838_p9)  ;;  %v5619_v26 = vcombine.low (!%p3838_p9), %v6178_v60, %v6177_v59  ;;  %v6181_v20 = vld [vmem:[#allocation34_spill] sm:$0xff] (!%p3838_p9)  ;;  %v6182_v51 = vld [vmem:[#allocation32_spill] sm:$0xff] (!%p3838_p9) }
 0xa28   : > { %2528 = vmatprep.subr.bf16.mxu0 (!%p3838_p9), %v5558_v46  ;;  %2569 = vmatprep.subr.bf16.mxu1 (!%p3838_p9), %v5571_v55  ;;  %v5613_v21 = vcombine.high (!%p3838_p9), %v6180_v18, %v6179_v33  ;;  %v5624_v14 = vcombine.high (!%p3838_p9), %v6182_v51, %v6181_v20  ;;  %v5629_v54 = vcombine.low (!%p3838_p9), %v6180_v18, %v6179_v33  ;;  %v6183_v15 = vld [vmem:[#allocation35_spill] sm:$0xff] (!%p3838_p9)  ;;  %v6184_v30 = vld [vmem:[#allocation33_spill] sm:$0xff] (!%p3838_p9)  ;;  %v6185_v25 = vld [vmem:[#allocation38_spill] sm:$0xff] (!%p3838_p9) }
 0xa29   : > { %2558 = vmatprep.mubr.bf16.mxu0 (!%p3838_p9), %v4605_v8  ;;  %2599 = vmatprep.mubr.bf16.mxu1 (!%p3838_p9), %v4605_v8  ;;  %v5634_v17 = vcombine.high (!%p3838_p9), %v6184_v30, %v6183_v15  ;;  %v5639_v22 = vcombine.low (!%p3838_p9), %v6182_v51, %v6181_v20  ;;  %v6186_v9 = vld [vmem:[#allocation36_spill] sm:$0xff] (!%p3838_p9)  ;;  %v5649_v19 = vcombine.low (!%p3838_p9), %v6184_v30, %v6183_v15  ;;  %v6187_v13 = vld [vmem:[#allocation39_spill] sm:$0xff] (!%p3838_p9)  ;;  %v6188_v32 = vld [vmem:[#allocation37_spill] sm:$0xff] (!%p3838_p9) }
 0xa2a   : > { %v5644_v11 = vcombine.high (!%p3838_p9), %v6186_v9, %v6185_v25  ;;  %v5654_v23 = vcombine.high (!%p3838_p9), %v6188_v32, %v6187_v13  ;;  %v5659_v24 = vcombine.low (!%p3838_p9), %v6186_v9, %v6185_v25  ;;  %v6189_v37 = vld [vmem:[#allocation42_spill] sm:$0xff] (!%p3838_p9)  ;;  %v6190_v28 = vld [vmem:[#allocation40_spill] sm:$0xff] (!%p3838_p9)  ;;  %v5669_v29 = vcombine.low (!%p3838_p9), %v6188_v32, %v6187_v13  ;;  %v6191_v7 = vld [vmem:[#allocation43_spill] sm:$0xff] (!%p3838_p9) }
 0xa2b   : > { %2529 = vmatpush1.bf16.msra.mxu0 (!%p3838_p9), %v5576_v2  ;;  %2570 = vmatpush1.bf16.msra.mxu1 (!%p3838_p9), %v5587_v3  ;;  %v5664_v10 = vcombine.high (!%p3838_p9), %v6190_v28, %v6189_v37  ;;  %v6192_v12 = vld [vmem:[#allocation41_spill] sm:$0xff] (!%p3838_p9)  ;;  %v5679_v52 = vcombine.low (!%p3838_p9), %v6190_v28, %v6189_v37  ;;  %v6193_v53 = vld [vmem:[#allocation46_spill] sm:$0xff] (!%p3838_p9)  ;;  %v6194_v62 = vld [vmem:[#allocation44_spill] sm:$0xff] (!%p3838_p9) }
 0xa2c   : > { %2530 = vmatprep.subr.bf16.mxu0 %v5582_v56  ;;  %2571 = vmatprep.subr.bf16.mxu1 %v5592_v6  ;;  %v5674_v31 = vcombine.high %v6192_v12, %v6191_v7  ;;  %v5684_v63 = vcombine.high %v6194_v62, %v6193_v53  ;;  %v5689_v0 = vcombine.low %v6192_v12, %v6191_v7  ;;  %v6195_v34 = vld [vmem:[#allocation47_spill] sm:$0xff]  ;;  %v6196_v35 = vld [vmem:[#allocation45_spill] sm:$0xff]  ;;  %v2362_v43 = vld [vmem:[#allocation2 + $0xe8] sm:$0xff] }
 0xa2d   : > { %v5694_v36 = vcombine.high %v6196_v35, %v6195_v34  ;;  %v5699_v38 = vcombine.low %v6194_v62, %v6193_v53  ;;  %v2356_v39 = vld [vmem:[#allocation3] sm:$0xff]  ;;  %v5705_v40 = vcombine.low %v6196_v35, %v6195_v34  ;;  %v2364_v20 = vld [vmem:[#allocation2 + $0xf8] sm:$0xff]  ;;  %v2363_v30 = vld [vmem:[#allocation2 + $0xf0] sm:$0xff] }
 0xa2e   : > { %v2365_v41 = vpack.c.bf16 %v2356_v39, %v2356_v39  ;;  %v2361_v42 = vld [vmem:[#allocation2 + $0xe0] sm:$0xff]  ;;  %v2357_v53 = vld [vmem:[#allocation4] sm:$0xff] }
 0xa2f   : > { %2531 = vmatpush1.bf16.msra.mxu0 %v5598_v58  ;;  %2572 = vmatpush1.bf16.msra.mxu1 %v5608_v16 }
 0xa30   : > { %2532 = vmatprep.subr.bf16.mxu0 %v5603_v61  ;;  %2573 = vmatprep.subr.bf16.mxu1 %v5613_v21 }
 0xa33   : > { %2533 = vmatpush1.bf16.msra.mxu0 %v5619_v26  ;;  %2574 = vmatpush1.bf16.msra.mxu1 %v5629_v54 }
 0xa34   : > { %2534 = vmatprep.subr.bf16.mxu0 %v5624_v14  ;;  %2575 = vmatprep.subr.bf16.mxu1 %v5634_v17 }
 0xa37   : > { %2535 = vmatpush1.bf16.msra.mxu0 %v5639_v22  ;;  %2576 = vmatpush1.bf16.msra.mxu1 %v5649_v19 }
 0xa38   : > { %2536 = vmatprep.subr.bf16.mxu0 %v5644_v11  ;;  %2577 = vmatprep.subr.bf16.mxu1 %v5654_v23 }
 0xa3b   : > { %2537 = vmatpush1.bf16.msra.mxu0 %v5659_v24  ;;  %2578 = vmatpush1.bf16.msra.mxu1 %v5669_v29 }
 0xa3c   : > { %2538 = vmatprep.subr.bf16.mxu0 %v5664_v10  ;;  %2579 = vmatprep.subr.bf16.mxu1 %v5674_v31 }
 0xa3f   : > { %2539 = vmatpush1.bf16.msra.mxu0 %v5679_v52  ;;  %2580 = vmatpush1.bf16.msra.mxu1 %v5689_v0 }
 0xa40   : > { %2540 = vmatprep.subr.bf16.mxu0 %v5684_v63  ;;  %2581 = vmatprep.subr.bf16.mxu1 %v5694_v36 }
 0xa43   : > { %2541 = vmatpush1.bf16.msra.mxu0 %v5699_v38  ;;  %2582 = vmatpush1.bf16.msra.mxu1 %v5705_v40 }
 0xa44   : > { %2645 = vmatprep.subr.bf16.mxu0 %v5550_v45  ;;  %2686 = vmatprep.subr.bf16.mxu1 %v5562_v47 }
 0xa46   : > { %2559 = vmatmul.mubr.bf16.vlgmr.msra.gmra.mrb[0].mxu0 %v2365_v41  ;;  %2600 = vmatmul.mubr.bf16.vlgmr.msra.gmra.mrb[0].mxu1 %v2365_v41 }
 0xa47   : > { %2646 = vmatpush1.bf16.msra.mxu0 %v5554_v27  ;;  %2687 = vmatpush1.bf16.msra.mxu1 %v5567_v48 }
 0xa48   : > { %2647 = vmatprep.subr.bf16.mxu0 %v5558_v46  ;;  %2688 = vmatprep.subr.bf16.mxu1 %v5571_v55 }
 0xa49   : > { %2677 = vmatprep.mubr.bf16.mxu0 %v4605_v8  ;;  %2718 = vmatprep.mubr.bf16.mxu1 %v4605_v8 }
 0xa4b   : > { %2648 = vmatpush1.bf16.msra.mxu0 %v5576_v2  ;;  %2689 = vmatpush1.bf16.msra.mxu1 %v5587_v3 }
 0xa4c   : > { %2649 = vmatprep.subr.bf16.mxu0 %v5582_v56  ;;  %2690 = vmatprep.subr.bf16.mxu1 %v5592_v6 }
 0xa4f   : > { %2650 = vmatpush1.bf16.msra.mxu0 %v5598_v58  ;;  %2691 = vmatpush1.bf16.msra.mxu1 %v5608_v16 }
 0xa50   : > { %2651 = vmatprep.subr.bf16.mxu0 %v5603_v61  ;;  %2692 = vmatprep.subr.bf16.mxu1 %v5613_v21 }
 0xa53   : > { %2652 = vmatpush1.bf16.msra.mxu0 %v5619_v26  ;;  %2693 = vmatpush1.bf16.msra.mxu1 %v5629_v54 }
 0xa54   : > { %2653 = vmatprep.subr.bf16.mxu0 %v5624_v14  ;;  %2694 = vmatprep.subr.bf16.mxu1 %v5634_v17 }
 0xa57   : > { %2654 = vmatpush1.bf16.msra.mxu0 %v5639_v22  ;;  %2695 = vmatpush1.bf16.msra.mxu1 %v5649_v19 }
 0xa58   : > { %2655 = vmatprep.subr.bf16.mxu0 %v5644_v11  ;;  %2696 = vmatprep.subr.bf16.mxu1 %v5654_v23 }
 0xa5b   : > { %2656 = vmatpush1.bf16.msra.mxu0 %v5659_v24  ;;  %2697 = vmatpush1.bf16.msra.mxu1 %v5669_v29 }
 0xa5c   : > { %2657 = vmatprep.subr.bf16.mxu0 %v5664_v10  ;;  %2698 = vmatprep.subr.bf16.mxu1 %v5674_v31 }
 0xa5f   : > { %2658 = vmatpush1.bf16.msra.mxu0 %v5679_v52  ;;  %2699 = vmatpush1.bf16.msra.mxu1 %v5689_v0 }
 0xa60   : > { %2659 = vmatprep.subr.bf16.mxu0 %v5684_v63  ;;  %2700 = vmatprep.subr.bf16.mxu1 %v5694_v36 }
 0xa63   : > { %2660 = vmatpush1.bf16.msra.mxu0 %v5699_v38  ;;  %2701 = vmatpush1.bf16.msra.mxu1 %v5705_v40 }
 0xa64   : > { %2764 = vmatprep.subr.bf16.mxu0 %v5550_v45  ;;  %2805 = vmatprep.subr.bf16.mxu1 %v5562_v47 }
 0xb19   : > { %v2560_v44 = vpop.f32.mrb[0].mxu0  ;;  %v2601_v4 = vpop.f32.mrb[0].mxu1 }
 0xb1a   : > { %v2608_v49 = vadd.f32 %v2560_v44, %v2361_v42  ;;  %v2562_v50 = vpop.f32.mrb[1].mxu0  ;;  %v2603_v57 = vpop.f32.mrb[1].mxu1  ;;  %v2610_v9 = vadd.f32 %v2601_v4, %v2363_v30  ;;  %v2640_v4 = vld [vmem:[#allocation2 + $0xc0] sm:$0xff] }
 0xb1b   : > { %v2609_v1 = vadd.f32 %v2562_v50, %v2362_v43  ;;  %v2564_v5 = vpop.f32.mrb[2].mxu0  ;;  %v2605_v33 = vpop.f32.mrb[2].mxu1  ;;  %v2611_v15 = vadd.f32 %v2603_v57, %v2364_v20 }
 0xb1c   : > { %v3871_v59 = vmul.f32 -1.442695, %v2608_v49  ;;  %v2565_v60 = vpop.f32.mrb[3].mxu0  ;;  %v2606_v51 = vpop.f32.mrb[3].mxu1 }
 0xb1d   : > { %v3872_v18 = vmul.f32 -1.442695, %v2609_v1  ;;  %v3873_v25 = vmul.f32 -1.442695, %v2611_v15  ;;  %v2641_v1 = vld [vmem:[#allocation2 + $0xc8] sm:$0xff] }
 0xb1e   : > { %4256 = vpow2.f32 %v3871_v59 }
 0xb1f   : > { %4258 = vpow2.f32 %v3872_v18 }
 0xb20   : > { %4260 = vpow2.f32 %v3873_v25 }
 0xb21   : > { %4262 = vtanh.f32 %v2610_v9 }
 0xb28   : > { %v4257_v13 = vpop.eup %4256 }
 0xb29   : > { %v4259_v32 = vpop.eup %4258  ;;  %v2615_v37 = vadd.f32 1.0, %v4257_v13  ;;  %v2643_v13 = vld [vmem:[#allocation2 + $0xd8] sm:$0xff] }
 0xb2a   : > { %v2621_v28 = vadd.f32 1.0, %v4259_v32  ;;  %v4261_v7 = vpop.eup %4260 }
 0xb2b   : > { %4264 = vrcp.f32 %v2615_v37  ;;  %v4263_v12 = vpop.eup %4262  ;;  %v2628_v34 = vadd.f32 1.0, %v4261_v7  ;;  %v2642_v37 = vld [vmem:[#allocation2 + $0xd0] sm:$0xff] }
 0xb2c   : > { %4266 = vrcp.f32 %v2621_v28 }
 0xb2d   : > { %4268 = vrcp.f32 %v2628_v34 }
 0xb35   : > { %v4265_v62 = vpop.eup %4264 }
 0xb36   : > { %v4267_v35 = vpop.eup %4266  ;;  %v2632_v39 = vmul.f32 %v4265_v62, %v4263_v12 }
 0xb37   : > { %v2631_v41 = vmul.f32 %v4267_v35, %v2357_v53  ;;  %v4269_v43 = vpop.eup %4268 }
 0xb39   : > { %v5746_v42 = vadd.f32 %v2632_v39, %v2631_v41 }
 0xb3b   : > { %4270 = vtanh.f32 %v5746_v42 }
 0xb45   : > { %v4271_v44 = vpop.eup %4270 }
 0xb46   : > { %v5749_v49 = vmul.f32 %v4271_v44, %v4269_v43 }
 0xb48   : > { %v2644_v50 = vpack.c.bf16 %v5749_v49, %v5749_v49 }
 0xb4a   : > { %2678 = vmatmul.mubr.bf16.vlgmr.msra.gmra.mrb[4].mxu0 %v2644_v50  ;;  %2719 = vmatmul.mubr.bf16.vlgmr.msra.gmra.mrb[4].mxu1 %v2644_v50 }
 0xb4b   : > { %2765 = vmatpush1.bf16.msra.mxu0 %v5554_v27  ;;  %2806 = vmatpush1.bf16.msra.mxu1 %v5567_v48 }
 0xb4c   : > { %2766 = vmatprep.subr.bf16.mxu0 %v5558_v46  ;;  %2807 = vmatprep.subr.bf16.mxu1 %v5571_v55 }
 0xb4d   : > { %2796 = vmatprep.mubr.bf16.mxu0 %v4605_v8  ;;  %2837 = vmatprep.mubr.bf16.mxu1 %v4605_v8 }
 0xb4f   : > { %2767 = vmatpush1.bf16.msra.mxu0 %v5576_v2  ;;  %2808 = vmatpush1.bf16.msra.mxu1 %v5587_v3 }
 0xb50   : > { %2768 = vmatprep.subr.bf16.mxu0 %v5582_v56  ;;  %2809 = vmatprep.subr.bf16.mxu1 %v5592_v6 }
 0xb53   : > { %2769 = vmatpush1.bf16.msra.mxu0 %v5598_v58  ;;  %2810 = vmatpush1.bf16.msra.mxu1 %v5608_v16 }
 0xb54   : > { %2770 = vmatprep.subr.bf16.mxu0 %v5603_v61  ;;  %2811 = vmatprep.subr.bf16.mxu1 %v5613_v21 }
 0xb57   : > { %2771 = vmatpush1.bf16.msra.mxu0 %v5619_v26  ;;  %2812 = vmatpush1.bf16.msra.mxu1 %v5629_v54 }
 0xb58   : > { %2772 = vmatprep.subr.bf16.mxu0 %v5624_v14  ;;  %2813 = vmatprep.subr.bf16.mxu1 %v5634_v17 }
 0xb5b   : > { %2773 = vmatpush1.bf16.msra.mxu0 %v5639_v22  ;;  %2814 = vmatpush1.bf16.msra.mxu1 %v5649_v19 }
 0xb5c   : > { %2774 = vmatprep.subr.bf16.mxu0 %v5644_v11  ;;  %2815 = vmatprep.subr.bf16.mxu1 %v5654_v23 }
 0xb5f   : > { %2775 = vmatpush1.bf16.msra.mxu0 %v5659_v24  ;;  %2816 = vmatpush1.bf16.msra.mxu1 %v5669_v29 }
 0xb60   : > { %2776 = vmatprep.subr.bf16.mxu0 %v5664_v10  ;;  %2817 = vmatprep.subr.bf16.mxu1 %v5674_v31 }
 0xb63   : > { %2777 = vmatpush1.bf16.msra.mxu0 %v5679_v52  ;;  %2818 = vmatpush1.bf16.msra.mxu1 %v5689_v0 }
 0xb64   : > { %2778 = vmatprep.subr.bf16.mxu0 %v5684_v63  ;;  %2819 = vmatprep.subr.bf16.mxu1 %v5694_v36 }
 0xb67   : > { %2779 = vmatpush1.bf16.msra.mxu0 %v5699_v38  ;;  %2820 = vmatpush1.bf16.msra.mxu1 %v5705_v40 }
 0xb68   : > { %2883 = vmatprep.subr.bf16.mxu0 %v5550_v45  ;;  %2924 = vmatprep.subr.bf16.mxu1 %v5562_v47 }
 0xc1d   : > { %v2679_v5 = vpop.f32.mrb[4].mxu0  ;;  %v2720_v57 = vpop.f32.mrb[4].mxu1 }
 0xc1e   : > { %v2727_v59 = vadd.f32 %v2679_v5, %v2640_v4  ;;  %v2681_v60 = vpop.f32.mrb[5].mxu0  ;;  %v2722_v33 = vpop.f32.mrb[5].mxu1  ;;  %v2729_v7 = vadd.f32 %v2720_v57, %v2642_v37 }
 0xc1f   : > { %v2728_v18 = vadd.f32 %v2681_v60, %v2641_v1  ;;  %v2683_v20 = vpop.f32.mrb[6].mxu0  ;;  %v2724_v51 = vpop.f32.mrb[6].mxu1  ;;  %v2730_v32 = vadd.f32 %v2722_v33, %v2643_v13  ;;  %v2760_v33 = vld [vmem:[#allocation2 + $0xa8] sm:$0xff] }
 0xc20   : > { %v3874_v15 = vmul.f32 -1.442695, %v2727_v59  ;;  %v2684_v30 = vpop.f32.mrb[7].mxu0  ;;  %v2725_v25 = vpop.f32.mrb[7].mxu1 }
 0xc21   : > { %v3875_v9 = vmul.f32 -1.442695, %v2728_v18  ;;  %v3876_v28 = vmul.f32 -1.442695, %v2730_v32 }
 0xc22   : > { %4272 = vpow2.f32 %v3874_v15 }
 0xc23   : > { %4274 = vpow2.f32 %v3875_v9 }
 0xc24   : > { %4276 = vpow2.f32 %v3876_v28 }
 0xc25   : > { %4278 = vtanh.f32 %v2729_v7 }
 0xc2c   : > { %v4273_v12 = vpop.eup %4272 }
 0xc2d   : > { %v4275_v53 = vpop.eup %4274  ;;  %v2734_v62 = vadd.f32 1.0, %v4273_v12  ;;  %v2762_v12 = vld [vmem:[#allocation2 + $0xb8] sm:$0xff] }
 0xc2e   : > { %v2740_v34 = vadd.f32 1.0, %v4275_v53  ;;  %v4277_v35 = vpop.eup %4276 }
 0xc2f   : > { %4280 = vrcp.f32 %v2734_v62  ;;  %v4279_v39 = vpop.eup %4278  ;;  %v2747_v50 = vadd.f32 1.0, %v4277_v35  ;;  %v2761_v62 = vld [vmem:[#allocation2 + $0xb0] sm:$0xff] }
 0xc30   : > { %4282 = vrcp.f32 %v2740_v34 }
 0xc31   : > { %4284 = vrcp.f32 %v2747_v50 }
 0xc39   : > { %v4281_v41 = vpop.eup %4280 }
 0xc3a   : > { %v4283_v43 = vpop.eup %4282  ;;  %v2751_v44 = vmul.f32 %v4281_v41, %v4279_v39 }
 0xc3b   : > { %v2750_v4 = vmul.f32 %v4283_v43, %v5746_v42  ;;  %v4285_v5 = vpop.eup %4284  ;;  %v2759_v42 = vld [vmem:[#allocation2 + $0xa0] sm:$0xff] }
 0xc3d   : > { %v5788_v1 = vadd.f32 %v2751_v44, %v2750_v4 }
 0xc3f   : > { %4286 = vtanh.f32 %v5788_v1 }
 0xc49   : > { %v4287_v57 = vpop.eup %4286 }
 0xc4a   : > { %v5791_v59 = vmul.f32 %v4287_v57, %v4285_v5 }
 0xc4c   : > { %v2763_v60 = vpack.c.bf16 %v5791_v59, %v5791_v59 }
 0xc4e   : > { %2797 = vmatmul.mubr.bf16.vlgmr.msra.gmra.mrb[8].mxu0 %v2763_v60  ;;  %2838 = vmatmul.mubr.bf16.vlgmr.msra.gmra.mrb[8].mxu1 %v2763_v60 }
 0xc4f   : > { %2884 = vmatpush1.bf16.msra.mxu0 %v5554_v27  ;;  %2925 = vmatpush1.bf16.msra.mxu1 %v5567_v48 }
 0xc50   : > { %2885 = vmatprep.subr.bf16.mxu0 %v5558_v46  ;;  %2926 = vmatprep.subr.bf16.mxu1 %v5571_v55 }
 0xc51   : > { %2915 = vmatprep.mubr.bf16.mxu0 %v4605_v8  ;;  %2956 = vmatprep.mubr.bf16.mxu1 %v4605_v8 }
 0xc53   : > { %2886 = vmatpush1.bf16.msra.mxu0 %v5576_v2  ;;  %2927 = vmatpush1.bf16.msra.mxu1 %v5587_v3 }
 0xc54   : > { %2887 = vmatprep.subr.bf16.mxu0 %v5582_v56  ;;  %2928 = vmatprep.subr.bf16.mxu1 %v5592_v6 }
 0xc57   : > { %2888 = vmatpush1.bf16.msra.mxu0 %v5598_v58  ;;  %2929 = vmatpush1.bf16.msra.mxu1 %v5608_v16 }
 0xc58   : > { %2889 = vmatprep.subr.bf16.mxu0 %v5603_v61  ;;  %2930 = vmatprep.subr.bf16.mxu1 %v5613_v21 }
 0xc5b   : > { %2890 = vmatpush1.bf16.msra.mxu0 %v5619_v26  ;;  %2931 = vmatpush1.bf16.msra.mxu1 %v5629_v54 }
 0xc5c   : > { %2891 = vmatprep.subr.bf16.mxu0 %v5624_v14  ;;  %2932 = vmatprep.subr.bf16.mxu1 %v5634_v17 }
 0xc5f   : > { %2892 = vmatpush1.bf16.msra.mxu0 %v5639_v22  ;;  %2933 = vmatpush1.bf16.msra.mxu1 %v5649_v19 }
 0xc60   : > { %2893 = vmatprep.subr.bf16.mxu0 %v5644_v11  ;;  %2934 = vmatprep.subr.bf16.mxu1 %v5654_v23 }
 0xc63   : > { %2894 = vmatpush1.bf16.msra.mxu0 %v5659_v24  ;;  %2935 = vmatpush1.bf16.msra.mxu1 %v5669_v29 }
 0xc64   : > { %2895 = vmatprep.subr.bf16.mxu0 %v5664_v10  ;;  %2936 = vmatprep.subr.bf16.mxu1 %v5674_v31 }
 0xc67   : > { %2896 = vmatpush1.bf16.msra.mxu0 %v5679_v52  ;;  %2937 = vmatpush1.bf16.msra.mxu1 %v5689_v0 }
 0xc68   : > { %2897 = vmatprep.subr.bf16.mxu0 %v5684_v63  ;;  %2938 = vmatprep.subr.bf16.mxu1 %v5694_v36 }
 0xc6b   : > { %2898 = vmatpush1.bf16.msra.mxu0 %v5699_v38  ;;  %2939 = vmatpush1.bf16.msra.mxu1 %v5705_v40 }
 0xc6c   : > { %3002 = vmatprep.subr.bf16.mxu0 %v5550_v45  ;;  %3043 = vmatprep.subr.bf16.mxu1 %v5562_v47 }
 0xd21   : > { %v2798_v18 = vpop.f32.mrb[8].mxu0  ;;  %v2839_v20 = vpop.f32.mrb[8].mxu1 }
 0xd22   : > { %v2846_v51 = vadd.f32 %v2798_v18, %v2759_v42  ;;  %v2800_v15 = vpop.f32.mrb[9].mxu0  ;;  %v2841_v30 = vpop.f32.mrb[9].mxu1  ;;  %v2848_v35 = vadd.f32 %v2839_v20, %v2761_v62 }
 0xd23   : > { %v2847_v25 = vadd.f32 %v2800_v15, %v2760_v33  ;;  %v2802_v9 = vpop.f32.mrb[10].mxu0  ;;  %v2843_v13 = vpop.f32.mrb[10].mxu1  ;;  %v2849_v53 = vadd.f32 %v2841_v30, %v2762_v12  ;;  %v2755_v15 = vadd.f32 %v5791_v59, %v5749_v49  ;;  %v2878_v49 = vld [vmem:[#allocation2 + $0x80] sm:$0xff] }
 0xd24   : > { %v3877_v32 = vmul.f32 -1.442695, %v2846_v51  ;;  %v2803_v37 = vpop.f32.mrb[11].mxu0  ;;  %v2844_v28 = vpop.f32.mrb[11].mxu1 }
 0xd25   : > { %v3878_v7 = vmul.f32 -1.442695, %v2847_v25  ;;  %v3879_v34 = vmul.f32 -1.442695, %v2849_v53 }
 0xd26   : > { %4288 = vpow2.f32 %v3877_v32 }
 0xd27   : > { %4290 = vpow2.f32 %v3878_v7 }
 0xd28   : > { %4292 = vpow2.f32 %v3879_v34 }
 0xd29   : > { %4294 = vtanh.f32 %v2848_v35 }
 0xd30   : > { %v4289_v39 = vpop.eup %4288 }
 0xd31   : > { %v4291_v41 = vpop.eup %4290  ;;  %v2853_v43 = vadd.f32 1.0, %v4289_v39 }
 0xd32   : > { %v2859_v44 = vadd.f32 1.0, %v4291_v41  ;;  %v4293_v50 = vpop.eup %4292  ;;  %v2881_v41 = vld [vmem:[#allocation2 + $0x98] sm:$0xff] }
 0xd33   : > { %4296 = vrcp.f32 %v2853_v43  ;;  %v4295_v4 = vpop.eup %4294  ;;  %v2866_v42 = vadd.f32 1.0, %v4293_v50 }
 0xd34   : > { %4298 = vrcp.f32 %v2859_v44  ;;  %v2880_v44 = vld [vmem:[#allocation2 + $0x90] sm:$0xff] }
 0xd35   : > { %4300 = vrcp.f32 %v2866_v42 }
 0xd3d   : > { %v4297_v5 = vpop.eup %4296 }
 0xd3e   : > { %v4299_v57 = vpop.eup %4298  ;;  %v2870_v60 = vmul.f32 %v4297_v5, %v4295_v4 }
 0xd3f   : > { %v2869_v33 = vmul.f32 %v4299_v57, %v5788_v1  ;;  %v4301_v20 = vpop.eup %4300  ;;  %v2879_v1 = vld [vmem:[#allocation2 + $0x88] sm:$0xff] }
 0xd41   : > { %v5830_v18 = vadd.f32 %v2870_v60, %v2869_v33 }
 0xd43   : > { %4302 = vtanh.f32 %v5830_v18 }
 0xd4d   : > { %v4303_v51 = vpop.eup %4302 }
 0xd4e   : > { %v2873_v30 = vmul.f32 %v4303_v51, %v4301_v20 }
 0xd50   : > { %v5835_v25 = vadd.f32 %v2873_v30, %v2755_v15  ;;  %v2882_v9 = vpack.c.bf16 %v2873_v30, %v2873_v30 }
 0xd52   : > { %2916 = vmatmul.mubr.bf16.vlgmr.msra.gmra.mrb[12].mxu0 %v2882_v9  ;;  %2957 = vmatmul.mubr.bf16.vlgmr.msra.gmra.mrb[12].mxu1 %v2882_v9 }
 0xd53   : > { %3003 = vmatpush1.bf16.msra.mxu0 %v5554_v27  ;;  %3044 = vmatpush1.bf16.msra.mxu1 %v5567_v48 }
 0xd54   : > { %3004 = vmatprep.subr.bf16.mxu0 %v5558_v46  ;;  %3045 = vmatprep.subr.bf16.mxu1 %v5571_v55 }
 0xd55   : > { %3034 = vmatprep.mubr.bf16.mxu0 %v4605_v8  ;;  %3075 = vmatprep.mubr.bf16.mxu1 %v4605_v8 }
 0xd57   : > { %3005 = vmatpush1.bf16.msra.mxu0 %v5576_v2  ;;  %3046 = vmatpush1.bf16.msra.mxu1 %v5587_v3 }
 0xd58   : > { %3006 = vmatprep.subr.bf16.mxu0 %v5582_v56  ;;  %3047 = vmatprep.subr.bf16.mxu1 %v5592_v6 }
 0xd5b   : > { %3007 = vmatpush1.bf16.msra.mxu0 %v5598_v58  ;;  %3048 = vmatpush1.bf16.msra.mxu1 %v5608_v16 }
 0xd5c   : > { %3008 = vmatprep.subr.bf16.mxu0 %v5603_v61  ;;  %3049 = vmatprep.subr.bf16.mxu1 %v5613_v21 }
 0xd5f   : > { %3009 = vmatpush1.bf16.msra.mxu0 %v5619_v26  ;;  %3050 = vmatpush1.bf16.msra.mxu1 %v5629_v54 }
 0xd60   : > { %3010 = vmatprep.subr.bf16.mxu0 %v5624_v14  ;;  %3051 = vmatprep.subr.bf16.mxu1 %v5634_v17 }
 0xd63   : > { %3011 = vmatpush1.bf16.msra.mxu0 %v5639_v22  ;;  %3052 = vmatpush1.bf16.msra.mxu1 %v5649_v19 }
 0xd64   : > { %3012 = vmatprep.subr.bf16.mxu0 %v5644_v11  ;;  %3053 = vmatprep.subr.bf16.mxu1 %v5654_v23 }
 0xd67   : > { %3013 = vmatpush1.bf16.msra.mxu0 %v5659_v24  ;;  %3054 = vmatpush1.bf16.msra.mxu1 %v5669_v29 }
 0xd68   : > { %3014 = vmatprep.subr.bf16.mxu0 %v5664_v10  ;;  %3055 = vmatprep.subr.bf16.mxu1 %v5674_v31 }
 0xd6b   : > { %3015 = vmatpush1.bf16.msra.mxu0 %v5679_v52  ;;  %3056 = vmatpush1.bf16.msra.mxu1 %v5689_v0 }
 0xd6c   : > { %3016 = vmatprep.subr.bf16.mxu0 %v5684_v63  ;;  %3057 = vmatprep.subr.bf16.mxu1 %v5694_v36 }
 0xd6f   : > { %3017 = vmatpush1.bf16.msra.mxu0 %v5699_v38  ;;  %3058 = vmatpush1.bf16.msra.mxu1 %v5705_v40 }
 0xd70   : > { %3121 = vmatprep.subr.bf16.mxu0 %v5550_v45  ;;  %3162 = vmatprep.subr.bf16.mxu1 %v5562_v47 }
 0xe25   : > { %v2917_v59 = vpop.f32.mrb[12].mxu0  ;;  %v2958_v13 = vpop.f32.mrb[12].mxu1 }
 0xe26   : > { %v2965_v32 = vadd.f32 %v2917_v59, %v2878_v49  ;;  %v2919_v37 = vpop.f32.mrb[13].mxu0  ;;  %v2960_v28 = vpop.f32.mrb[13].mxu1  ;;  %v2967_v4 = vadd.f32 %v2958_v13, %v2880_v44 }
 0xe27   : > { %v2966_v7 = vadd.f32 %v2919_v37, %v2879_v1  ;;  %v2921_v12 = vpop.f32.mrb[14].mxu0  ;;  %v2962_v53 = vpop.f32.mrb[14].mxu1  ;;  %v2968_v43 = vadd.f32 %v2960_v28, %v2881_v41 }
 0xe28   : > { %v3880_v62 = vmul.f32 -1.442695, %v2965_v32  ;;  %v2922_v34 = vpop.f32.mrb[15].mxu0  ;;  %v2963_v35 = vpop.f32.mrb[15].mxu1 }
 0xe29   : > { %v3881_v39 = vmul.f32 -1.442695, %v2966_v7  ;;  %v3882_v50 = vmul.f32 -1.442695, %v2968_v43 }
 0xe2a   : > { %4304 = vpow2.f32 %v3880_v62 }
 0xe2b   : > { %4306 = vpow2.f32 %v3881_v39 }
 0xe2c   : > { %4308 = vpow2.f32 %v3882_v50 }
 0xe2d   : > { %4310 = vtanh.f32 %v2967_v4 }
 0xe34   : > { %v4305_v5 = vpop.eup %4304 }
 0xe35   : > { %v4307_v57 = vpop.eup %4306  ;;  %v2972_v60 = vadd.f32 1.0, %v4305_v5  ;;  %v3000_v5 = vld [vmem:[#allocation2 + $0x78] sm:$0xff] }
 0xe36   : > { %v2978_v42 = vadd.f32 1.0, %v4307_v57  ;;  %v4309_v33 = vpop.eup %4308 }
 0xe37   : > { %4312 = vrcp.f32 %v2972_v60  ;;  %v4311_v20 = vpop.eup %4310  ;;  %v2985_v9 = vadd.f32 1.0, %v4309_v33  ;;  %v2999_v60 = vld [vmem:[#allocation2 + $0x70] sm:$0xff] }
 0xe38   : > { %4314 = vrcp.f32 %v2978_v42 }
 0xe39   : > { %4316 = vrcp.f32 %v2985_v9 }
 0xe41   : > { %v4313_v51 = vpop.eup %4312 }
 0xe42   : > { %v4315_v15 = vpop.eup %4314  ;;  %v2989_v30 = vmul.f32 %v4313_v51, %v4311_v20 }
 0xe43   : > { %v2988_v49 = vmul.f32 %v4315_v15, %v5830_v18  ;;  %v4317_v59 = vpop.eup %4316  ;;  %v2997_v18 = vld [vmem:[#allocation2 + $0x60] sm:$0xff] }
 0xe45   : > { %v5872_v1 = vadd.f32 %v2989_v30, %v2988_v49 }
 0xe47   : > { %4318 = vtanh.f32 %v5872_v1 }
 0xe51   : > { %v4319_v13 = vpop.eup %4318 }
 0xe52   : > { %v2992_v32 = vmul.f32 %v4319_v13, %v4317_v59 }
 0xe54   : > { %v5876_v37 = vadd.f32 %v2992_v32, %v5835_v25  ;;  %v3001_v28 = vpack.c.bf16 %v2992_v32, %v2992_v32  ;;  %v2998_v25 = vld [vmem:[#allocation2 + $0x68] sm:$0xff] }
 0xe56   : > { %3035 = vmatmul.mubr.bf16.vlgmr.msra.gmra.mrb[16].mxu0 %v3001_v28  ;;  %3076 = vmatmul.mubr.bf16.vlgmr.msra.gmra.mrb[16].mxu1 %v3001_v28 }
 0xe57   : > { %3122 = vmatpush1.bf16.msra.mxu0 %v5554_v27  ;;  %3163 = vmatpush1.bf16.msra.mxu1 %v5567_v48 }
 0xe58   : > { %3123 = vmatprep.subr.bf16.mxu0 %v5558_v46  ;;  %3164 = vmatprep.subr.bf16.mxu1 %v5571_v55 }
 0xe59   : > { %3153 = vmatprep.mubr.bf16.mxu0 %v4605_v8  ;;  %3194 = vmatprep.mubr.bf16.mxu1 %v4605_v8 }
 0xe5b   : > { %3124 = vmatpush1.bf16.msra.mxu0 %v5576_v2  ;;  %3165 = vmatpush1.bf16.msra.mxu1 %v5587_v3 }
 0xe5c   : > { %3125 = vmatprep.subr.bf16.mxu0 %v5582_v56  ;;  %3166 = vmatprep.subr.bf16.mxu1 %v5592_v6 }
 0xe5f   : > { %3126 = vmatpush1.bf16.msra.mxu0 %v5598_v58  ;;  %3167 = vmatpush1.bf16.msra.mxu1 %v5608_v16 }
 0xe60   : > { %3127 = vmatprep.subr.bf16.mxu0 %v5603_v61  ;;  %3168 = vmatprep.subr.bf16.mxu1 %v5613_v21 }
 0xe63   : > { %3128 = vmatpush1.bf16.msra.mxu0 %v5619_v26  ;;  %3169 = vmatpush1.bf16.msra.mxu1 %v5629_v54 }
 0xe64   : > { %3129 = vmatprep.subr.bf16.mxu0 %v5624_v14  ;;  %3170 = vmatprep.subr.bf16.mxu1 %v5634_v17 }
 0xe67   : > { %3130 = vmatpush1.bf16.msra.mxu0 %v5639_v22  ;;  %3171 = vmatpush1.bf16.msra.mxu1 %v5649_v19 }
 0xe68   : > { %3131 = vmatprep.subr.bf16.mxu0 %v5644_v11  ;;  %3172 = vmatprep.subr.bf16.mxu1 %v5654_v23 }
 0xe6b   : > { %3132 = vmatpush1.bf16.msra.mxu0 %v5659_v24  ;;  %3173 = vmatpush1.bf16.msra.mxu1 %v5669_v29 }
 0xe6c   : > { %3133 = vmatprep.subr.bf16.mxu0 %v5664_v10  ;;  %3174 = vmatprep.subr.bf16.mxu1 %v5674_v31 }
 0xe6f   : > { %3134 = vmatpush1.bf16.msra.mxu0 %v5679_v52  ;;  %3175 = vmatpush1.bf16.msra.mxu1 %v5689_v0 }
 0xe70   : > { %3135 = vmatprep.subr.bf16.mxu0 %v5684_v63  ;;  %3176 = vmatprep.subr.bf16.mxu1 %v5694_v36 }
 0xe73   : > { %3136 = vmatpush1.bf16.msra.mxu0 %v5699_v38  ;;  %3177 = vmatpush1.bf16.msra.mxu1 %v5705_v40 }
 0xe74   : > { %3240 = vmatprep.subr.bf16.mxu0 %v5550_v45  ;;  %3281 = vmatprep.subr.bf16.mxu1 %v5562_v47 }
 0xf29   : > { %v3036_v7 = vpop.f32.mrb[16].mxu0  ;;  %v3077_v12 = vpop.f32.mrb[16].mxu1 }
 0xf2a   : > { %v3084_v53 = vadd.f32 %v3036_v7, %v2997_v18  ;;  %v3038_v62 = vpop.f32.mrb[17].mxu0  ;;  %v3079_v34 = vpop.f32.mrb[17].mxu1  ;;  %v3086_v33 = vadd.f32 %v3077_v12, %v2999_v60 }
 0xf2b   : > { %v3085_v35 = vadd.f32 %v3038_v62, %v2998_v25  ;;  %v3040_v39 = vpop.f32.mrb[18].mxu0  ;;  %v3081_v41 = vpop.f32.mrb[18].mxu1  ;;  %v3087_v57 = vadd.f32 %v3079_v34, %v3000_v5 }
 0xf2c   : > { %v3883_v43 = vmul.f32 -1.442695, %v3084_v53  ;;  %v3041_v44 = vpop.f32.mrb[19].mxu0  ;;  %v3082_v50 = vpop.f32.mrb[19].mxu1 }
 0xf2d   : > { %v3884_v4 = vmul.f32 -1.442695, %v3085_v35  ;;  %v3885_v42 = vmul.f32 -1.442695, %v3087_v57 }
 0xf2e   : > { %4320 = vpow2.f32 %v3883_v43 }
 0xf2f   : > { %4322 = vpow2.f32 %v3884_v4 }
 0xf30   : > { %4324 = vpow2.f32 %v3885_v42 }
 0xf31   : > { %4326 = vtanh.f32 %v3086_v33 }
 0xf38   : > { %v4321_v20 = vpop.eup %4320 }
 0xf39   : > { %v4323_v51 = vpop.eup %4322  ;;  %v3091_v15 = vadd.f32 1.0, %v4321_v20  ;;  %v3119_v20 = vld [vmem:[#allocation2 + $0x58] sm:$0xff] }
 0xf3a   : > { %v3097_v30 = vadd.f32 1.0, %v4323_v51  ;;  %v4325_v9 = vpop.eup %4324  ;;  %v3118_v51 = vld [vmem:[#allocation2 + $0x50] sm:$0xff] }
 0xf3b   : > { %4328 = vrcp.f32 %v3091_v15  ;;  %v4327_v49 = vpop.eup %4326  ;;  %v3104_v28 = vadd.f32 1.0, %v4325_v9 }
 0xf3c   : > { %4330 = vrcp.f32 %v3097_v30 }
 0xf3d   : > { %4332 = vrcp.f32 %v3104_v28 }
 0xf45   : > { %v4329_v59 = vpop.eup %4328 }
 0xf46   : > { %v4331_v13 = vpop.eup %4330  ;;  %v3108_v32 = vmul.f32 %v4329_v59, %v4327_v49 }
 0xf47   : > { %v3107_v18 = vmul.f32 %v4331_v13, %v5872_v1  ;;  %v4333_v7 = vpop.eup %4332  ;;  %v3116_v1 = vld [vmem:[#allocation2 + $0x40] sm:$0xff] }
 0xf49   : > { %v5913_v25 = vadd.f32 %v3108_v32, %v3107_v18 }
 0xf4b   : > { %4334 = vtanh.f32 %v5913_v25 }
 0xf55   : > { %v4335_v12 = vpop.eup %4334 }
 0xf56   : > { %v3111_v53 = vmul.f32 %v4335_v12, %v4333_v7 }
 0xf58   : > { %v5917_v62 = vadd.f32 %v3111_v53, %v5876_v37  ;;  %v3120_v34 = vpack.c.bf16 %v3111_v53, %v3111_v53  ;;  %v3117_v37 = vld [vmem:[#allocation2 + $0x48] sm:$0xff] }
 0xf5a   : > { %3154 = vmatmul.mubr.bf16.vlgmr.msra.gmra.mrb[20].mxu0 %v3120_v34  ;;  %3195 = vmatmul.mubr.bf16.vlgmr.msra.gmra.mrb[20].mxu1 %v3120_v34 }
 0xf5b   : > { %3241 = vmatpush1.bf16.msra.mxu0 %v5554_v27  ;;  %3282 = vmatpush1.bf16.msra.mxu1 %v5567_v48 }
 0xf5c   : > { %3242 = vmatprep.subr.bf16.mxu0 %v5558_v46  ;;  %3283 = vmatprep.subr.bf16.mxu1 %v5571_v55 }
 0xf5d   : > { %3272 = vmatprep.mubr.bf16.mxu0 %v4605_v8  ;;  %3313 = vmatprep.mubr.bf16.mxu1 %v4605_v8 }
 0xf5f   : > { %3243 = vmatpush1.bf16.msra.mxu0 %v5576_v2  ;;  %3284 = vmatpush1.bf16.msra.mxu1 %v5587_v3 }
 0xf60   : > { %3244 = vmatprep.subr.bf16.mxu0 %v5582_v56  ;;  %3285 = vmatprep.subr.bf16.mxu1 %v5592_v6 }
 0xf63   : > { %3245 = vmatpush1.bf16.msra.mxu0 %v5598_v58  ;;  %3286 = vmatpush1.bf16.msra.mxu1 %v5608_v16 }
 0xf64   : > { %3246 = vmatprep.subr.bf16.mxu0 %v5603_v61  ;;  %3287 = vmatprep.subr.bf16.mxu1 %v5613_v21 }
 0xf67   : > { %3247 = vmatpush1.bf16.msra.mxu0 %v5619_v26  ;;  %3288 = vmatpush1.bf16.msra.mxu1 %v5629_v54 }
 0xf68   : > { %3248 = vmatprep.subr.bf16.mxu0 %v5624_v14  ;;  %3289 = vmatprep.subr.bf16.mxu1 %v5634_v17 }
 0xf6b   : > { %3249 = vmatpush1.bf16.msra.mxu0 %v5639_v22  ;;  %3290 = vmatpush1.bf16.msra.mxu1 %v5649_v19 }
 0xf6c   : > { %3250 = vmatprep.subr.bf16.mxu0 %v5644_v11  ;;  %3291 = vmatprep.subr.bf16.mxu1 %v5654_v23 }
 0xf6f   : > { %3251 = vmatpush1.bf16.msra.mxu0 %v5659_v24  ;;  %3292 = vmatpush1.bf16.msra.mxu1 %v5669_v29 }
 0xf70   : > { %3252 = vmatprep.subr.bf16.mxu0 %v5664_v10  ;;  %3293 = vmatprep.subr.bf16.mxu1 %v5674_v31 }
 0xf73   : > { %3253 = vmatpush1.bf16.msra.mxu0 %v5679_v52  ;;  %3294 = vmatpush1.bf16.msra.mxu1 %v5689_v0 }
 0xf74   : > { %3254 = vmatprep.subr.bf16.mxu0 %v5684_v63  ;;  %3295 = vmatprep.subr.bf16.mxu1 %v5694_v36 }
 0xf77   : > { %3255 = vmatpush1.bf16.msra.mxu0 %v5699_v38  ;;  %3296 = vmatpush1.bf16.msra.mxu1 %v5705_v40 }
 0xf78   : > { %3359 = vmatprep.subr.bf16.mxu0 %v5550_v45  ;;  %3400 = vmatprep.subr.bf16.mxu1 %v5562_v47 }
0x102d   : > { %v3155_v35 = vpop.f32.mrb[20].mxu0  ;;  %v3196_v39 = vpop.f32.mrb[20].mxu1 }
0x102e   : > { %v3203_v41 = vadd.f32 %v3155_v35, %v3116_v1  ;;  %v3157_v43 = vpop.f32.mrb[21].mxu0  ;;  %v3198_v44 = vpop.f32.mrb[21].mxu1  ;;  %v3205_v15 = vadd.f32 %v3196_v39, %v3118_v51 }
0x102f   : > { %v3204_v50 = vadd.f32 %v3157_v43, %v3117_v37  ;;  %v3159_v4 = vpop.f32.mrb[22].mxu0  ;;  %v3200_v5 = vpop.f32.mrb[22].mxu1  ;;  %v3206_v45 = vadd.f32 %v3198_v44, %v3119_v20 }
0x1030   : > { %v3886_v57 = vmul.f32 -1.442695, %v3203_v41  ;;  %v3160_v60 = vpop.f32.mrb[23].mxu0  ;;  %v3201_v42 = vpop.f32.mrb[23].mxu1  ;;  %v3354_v4 = vld [vmem:[#allocation2] sm:$0xff]  ;;  %v3355_v5 = vld [vmem:[#allocation2 + $0x8] sm:$0xff] }
0x1031   : > { %v3887_v33 = vmul.f32 -1.442695, %v3204_v50  ;;  %v3888_v47 = vmul.f32 -1.442695, %v3206_v45 }
0x1032   : > { %4336 = vpow2.f32 %v3886_v57 }
0x1033   : > { %4338 = vpow2.f32 %v3887_v33 }
0x1034   : > { %4340 = vpow2.f32 %v3888_v47 }
0x1035   : > { %4342 = vtanh.f32 %v3205_v15 }
0x103c   : > { %v4337_v30 = vpop.eup %4336 }
0x103d   : > { %v4339_v9 = vpop.eup %4338  ;;  %v3210_v49 = vadd.f32 1.0, %v4337_v30 }
0x103e   : > { %v3216_v59 = vadd.f32 1.0, %v4339_v9  ;;  %v4341_v13 = vpop.eup %4340 }
0x103f   : > { %4344 = vrcp.f32 %v3210_v49  ;;  %v4343_v32 = vpop.eup %4342  ;;  %v3223_v12 = vadd.f32 1.0, %v4341_v13 }
0x1040   : > { %4346 = vrcp.f32 %v3216_v59  ;;  %v3357_v59 = vld [vmem:[#allocation2 + $0x18] sm:$0xff] }
0x1041   : > { %4348 = vrcp.f32 %v3223_v12 }
0x1049   : > { %v4345_v28 = vpop.eup %4344 }
0x104a   : > { %v4347_v18 = vpop.eup %4346  ;;  %v3227_v7 = vmul.f32 %v4345_v28, %v4343_v32  ;;  %v3356_v32 = vld [vmem:[#allocation2 + $0x10] sm:$0xff] }
0x104b   : > { %v3226_v53 = vmul.f32 %v4347_v18, %v5913_v25  ;;  %v4349_v1 = vpop.eup %4348 }
0x104d   : > { %v5954_v34 = vadd.f32 %v3227_v7, %v3226_v53 }
0x104f   : > { %4350 = vtanh.f32 %v5954_v34 }
0x1059   : > { %v4351_v37 = vpop.eup %4350 }
0x105a   : > { %v3230_v35 = vmul.f32 %v4351_v37, %v4349_v1 }
0x105c   : > { %v5958_v39 = vadd.f32 %v3230_v35, %v5917_v62  ;;  %v3239_v41 = vpack.c.bf16 %v3230_v35, %v3230_v35 }
0x105e   : > { %3273 = vmatmul.mubr.bf16.vlgmr.msra.gmra.mrb[24].mxu0 %v3239_v41  ;;  %3314 = vmatmul.mubr.bf16.vlgmr.msra.gmra.mrb[24].mxu1 %v3239_v41 }
0x105f   : > { %3360 = vmatpush1.bf16.msra.mxu0 %v5554_v27  ;;  %3401 = vmatpush1.bf16.msra.mxu1 %v5567_v48  ;;  %v3235_v27 = vld [vmem:[#allocation2 + $0x20] sm:$0xff] }
0x1060   : > { %3361 = vmatprep.subr.bf16.mxu0 %v5558_v46  ;;  %3402 = vmatprep.subr.bf16.mxu1 %v5571_v55  ;;  %v3236_v46 = vld [vmem:[#allocation2 + $0x28] sm:$0xff] }
0x1061   : > { %3391 = vmatprep.mubr.bf16.mxu0 %v4605_v8  ;;  %3432 = vmatprep.mubr.bf16.mxu1 %v4605_v8 }
0x1063   : > { %3362 = vmatpush1.bf16.msra.mxu0 %v5576_v2  ;;  %3403 = vmatpush1.bf16.msra.mxu1 %v5587_v3 }
0x1064   : > { %3363 = vmatprep.subr.bf16.mxu0 %v5582_v56  ;;  %3404 = vmatprep.subr.bf16.mxu1 %v5592_v6 }
0x1067   : > { %3364 = vmatpush1.bf16.msra.mxu0 %v5598_v58  ;;  %3405 = vmatpush1.bf16.msra.mxu1 %v5608_v16 }
0x1068   : > { %3365 = vmatprep.subr.bf16.mxu0 %v5603_v61  ;;  %3406 = vmatprep.subr.bf16.mxu1 %v5613_v21 }
0x106b   : > { %3366 = vmatpush1.bf16.msra.mxu0 %v5619_v26  ;;  %3407 = vmatpush1.bf16.msra.mxu1 %v5629_v54 }
0x106c   : > { %3367 = vmatprep.subr.bf16.mxu0 %v5624_v14  ;;  %3408 = vmatprep.subr.bf16.mxu1 %v5634_v17  ;;  %v3238_v14 = vld [vmem:[#allocation2 + $0x38] sm:$0xff]  ;;  %v3237_v17 = vld [vmem:[#allocation2 + $0x30] sm:$0xff] }
0x106f   : > { %3368 = vmatpush1.bf16.msra.mxu0 %v5639_v22  ;;  %3409 = vmatpush1.bf16.msra.mxu1 %v5649_v19 }
0x1070   : > { %3369 = vmatprep.subr.bf16.mxu0 %v5644_v11  ;;  %3410 = vmatprep.subr.bf16.mxu1 %v5654_v23 }
0x1073   : > { %3370 = vmatpush1.bf16.msra.mxu0 %v5659_v24  ;;  %3411 = vmatpush1.bf16.msra.mxu1 %v5669_v29 }
0x1074   : > { %3371 = vmatprep.subr.bf16.mxu0 %v5664_v10  ;;  %3412 = vmatprep.subr.bf16.mxu1 %v5674_v31 }
0x1077   : > { %3372 = vmatpush1.bf16.msra.mxu0 %v5679_v52  ;;  %3413 = vmatpush1.bf16.msra.mxu1 %v5689_v0 }
0x1078   : > { %3373 = vmatprep.subr.bf16.mxu0 %v5684_v63  ;;  %3414 = vmatprep.subr.bf16.mxu1 %v5694_v36 }
0x107b   : > { %3374 = vmatpush1.bf16.msra.mxu0 %v5699_v38  ;;  %3415 = vmatpush1.bf16.msra.mxu1 %v5705_v40 }
0x1131   : > { %v3274_v48 = vpop.f32.mrb[24].mxu0  ;;  %v3315_v55 = vpop.f32.mrb[24].mxu1 }
0x1132   : > { %v3322_v2 = vadd.f32 %v3274_v48, %v3235_v27  ;;  %v3276_v56 = vpop.f32.mrb[25].mxu0  ;;  %v3317_v3 = vpop.f32.mrb[25].mxu1  ;;  %v3324_v11 = vadd.f32 %v3315_v55, %v3237_v17 }
0x1133   : > { %v3323_v6 = vadd.f32 %v3276_v56, %v3236_v46  ;;  %v3278_v8 = vpop.f32.mrb[26].mxu0  ;;  %v3319_v58 = vpop.f32.mrb[26].mxu1  ;;  %v3325_v54 = vadd.f32 %v3317_v3, %v3238_v14 }
0x1134   : > { %v3889_v61 = vmul.f32 -1.442695, %v3322_v2  ;;  %v3279_v16 = vpop.f32.mrb[27].mxu0  ;;  %v3320_v21 = vpop.f32.mrb[27].mxu1 }
0x1135   : > { %v3890_v26 = vmul.f32 -1.442695, %v3323_v6  ;;  %v3891_v22 = vmul.f32 -1.442695, %v3325_v54  ;;  %v3472_v6 = vld [vmem:[%s4880_s27] sm:$0xff] }
0x1136   : > { %4352 = vpow2.f32 %v3889_v61 }
0x1137   : > { %4354 = vpow2.f32 %v3890_v26 }
0x1138   : > { %4356 = vpow2.f32 %v3891_v22 }
0x1139   : > { %4358 = vtanh.f32 %v3324_v11 }
0x1140   : > { %v4353_v19 = vpop.eup %4352 }
0x1141   : > { %v4355_v23 = vpop.eup %4354  ;;  %v3329_v24 = vadd.f32 1.0, %v4353_v19 }
0x1142   : > { %v3335_v10 = vadd.f32 1.0, %v4355_v23  ;;  %v4357_v29 = vpop.eup %4356 }
0x1143   : > { %4360 = vrcp.f32 %v3329_v24  ;;  %v4359_v31 = vpop.eup %4358  ;;  %v3342_v36 = vadd.f32 1.0, %v4357_v29 }
0x1144   : > { %4362 = vrcp.f32 %v3335_v10 }
0x1145   : > { %4364 = vrcp.f32 %v3342_v36 }
0x114d   : > { %v4361_v52 = vpop.eup %4360 }
0x114e   : > { %v4363_v63 = vpop.eup %4362  ;;  %v3346_v0 = vmul.f32 %v4361_v52, %v4359_v31 }
0x114f   : > { %v3345_v38 = vmul.f32 %v4363_v63, %v5954_v34  ;;  %v4365_v25 = vpop.eup %4364 }
0x1151   : > { %v3347_v40 = vadd.f32 %v3346_v0, %v3345_v38 }
0x1153   : > { %4366 = vtanh.f32 %v3347_v40 }
0x115d   : > { %v4367_v62 = vpop.eup %4366 }
0x115e   : > { %v3349_v43 = vmul.f32 %v4367_v62, %v4365_v25 }
0x1160   : > { %v3350_v44 = vadd.f32 %v3349_v43, %v5958_v39  ;;  %v3358_v50 = vpack.c.bf16 %v3349_v43, %v3349_v43 }
0x1162   : > { %3392 = vmatmul.mubr.bf16.vlgmr.msra.gmra.mrb[28].mxu0 %v3358_v50  ;;  %3433 = vmatmul.mubr.bf16.vlgmr.msra.gmra.mrb[28].mxu1 %v3358_v50 }
0x1235   : > { %v3393_v57 = vpop.f32.mrb[28].mxu0  ;;  %v3434_v60 = vpop.f32.mrb[28].mxu1 }
0x1236   : > { %v3441_v42 = vadd.f32 %v3393_v57, %v3354_v4  ;;  %v3395_v33 = vpop.f32.mrb[29].mxu0  ;;  %v3436_v20 = vpop.f32.mrb[29].mxu1  ;;  %v3443_v18 = vadd.f32 %v3434_v60, %v3356_v32 }
0x1237   : > { %v3442_v45 = vadd.f32 %v3395_v33, %v3355_v5  ;;  %v3397_v51 = vpop.f32.mrb[30].mxu0  ;;  %v3438_v47 = vpop.f32.mrb[30].mxu1  ;;  %v3444_v13 = vadd.f32 %v3436_v20, %v3357_v59 }
0x1238   : > { %v3892_v15 = vmul.f32 -1.442695, %v3441_v42  ;;  %v3398_v30 = vpop.f32.mrb[31].mxu0  ;;  %v3439_v9 = vpop.f32.mrb[31].mxu1 }
0x1239   : > { %v3893_v49 = vmul.f32 -1.442695, %v3442_v45  ;;  %v3894_v28 = vmul.f32 -1.442695, %v3444_v13 }
0x123a   : > { %4368 = vpow2.f32 %v3892_v15 }
0x123b   : > { %4370 = vpow2.f32 %v3893_v49 }
0x123c   : > { %4372 = vpow2.f32 %v3894_v28 }
0x123d   : > { %4374 = vtanh.f32 %v3443_v18 }
0x1244   : > { %v4369_v7 = vpop.eup %4368 }
0x1245   : > { %v4371_v12 = vpop.eup %4370  ;;  %v3448_v53 = vadd.f32 1.0, %v4369_v7 }
0x1246   : > { %v3454_v34 = vadd.f32 1.0, %v4371_v12  ;;  %v4373_v1 = vpop.eup %4372 }
0x1247   : > { %4376 = vrcp.f32 %v3448_v53  ;;  %v4375_v37 = vpop.eup %4374  ;;  %v3461_v27 = vadd.f32 1.0, %v4373_v1 }
0x1248   : > { %4378 = vrcp.f32 %v3454_v34 }
0x1249   : > { %4380 = vrcp.f32 %v3461_v27 }
0x1251   : > { %v4377_v35 = vpop.eup %4376 }
0x1252   : > { %v4379_v39 = vpop.eup %4378  ;;  %v3465_v41 = vmul.f32 %v4377_v35, %v4375_v37 }
0x1253   : > { %v3464_v46 = vmul.f32 %v4379_v39, %v3347_v40  ;;  %v4381_v55 = vpop.eup %4380 }
0x1255   : > { %v3466_v48 = vadd.f32 %v3465_v41, %v3464_v46 }
0x1257   : > { %4382 = vtanh.f32 %v3466_v48  ;;  %3471 = vst [vmem:[#allocation4] sm:$0xff] %v3466_v48 }
0x1261   : > { %v4383_v2 = vpop.eup %4382 }
0x1262   : > { %v3468_v56 = vmul.f32 %v4383_v2, %v4381_v55 }
0x1264   : > { %v3469_v3 = vadd.f32 %v3468_v56, %v3350_v44  ;;  %3470 = vst [vmem:[#allocation3] sm:$0xff] %v3468_v56 }
0x1266   : > { %v3473_v8 = vmul.f32 0.125, %v3469_v3 }
0x1268   : > { %v3474_v58 = vadd.f32 %v3473_v8, %v3472_v6 }
0x126a   : > { %3475 = vst [vmem:[%s4880_s27] sm:$0xff] %v3474_v58 }
0x126b PF: > { %s3896_s17 = sshll.u32 %s4584_s18, 7  ;;  %s3490_s20 = sshll.u32 %s4880_s27, 4  ;;  %s3491_s20 = int_to_ptr.vmem [resolvable:$true] %s3490_s20 }
0x126c   : > { %s6000_s13 = scalar_lea.hbm %s6048_s4, %s3896_s17  ;;  %s3477_s6 = scalar_lea.sflag [#allocation7], %s4857_s12 }
0x126d   : > { %s4502_s10 = scalar_lea.vmem %s3491_s20, 128  ;;  %p6197_p0 = scmp.ne.s32.totalorder %s6124_s28, 0 }
0x126e   : > { %p4503_p11 = scmp.ne.s32.totalorder %s3491_s20, %s4502_s10  ;;  %s4606_s23 = smov [#allocation13]  }
0x126f   : > { %s4506_s5 = sshll.u32 %s4606_s23, 4  ;;  %s4507_s5 = int_to_ptr.vmem [resolvable:$false] %s4506_s5 }
0x1270   : > { %p4504_p8 = pnand %p4503_p11, %p6197_p0  ;;  %s4508_s26 = scalar_lea.vmem %s4507_s5, 256 }
0x1271   : > { %p4509_p10 = scmp.lt.s32.totalorder %s3491_s20, %s4507_s5  ;;  %p4510_p3 = scmp.lt.s32.totalorder %s4508_s26, %s4502_s10 }
0x1272   : > { %p4505_p13 = pneg %p4504_p8 }
0x1273   : > { %p4511_p4 = por %p4510_p3, %p4509_p10 }
0x1275   : > { %p4512_p12 = pnand %p4511_p4, %p4505_p13 }
0x1277   : > { %4515 = shalt.err (!%p4512_p12)
}
0x1278   : > { %s4516_s18 = scalar_lea.hbm %s6000_s13, 128  ;;  %s4520_s14 = scalar_lea.hbm %s6048_s4, 256 }
0x1279   : > { %p4517_p7 = scmp.ne.s32.totalorder %s6000_s13, %s4516_s18  ;;  %p4521_p1 = scmp.lt.u32.totalorder %s6000_s13, %s6048_s4 }
0x127a   : > { %p4522_p5 = scmp.lt.u32.totalorder %s4520_s14, %s4516_s18  ;;  %p4524_p11 = scmp.lt.u32.totalorder %s4516_s18, %s6000_s13 }
0x127b   : > { %p4518_p2 = pnand %p4517_p7, %p6197_p0 }
0x127c   : > { %p4523_p9 = por %p4522_p5, %p4521_p1 }
0x127d   : > { %p4519_p6 = pneg %p4518_p2 }
0x127e   : > { %p4525_p8 = por %p4524_p11, %p4523_p9 }
0x1280   : > { %p4526_p13 = pnand %p4525_p8, %p4519_p6 }
0x1282   : > { %4529 = shalt.err (!%p4526_p13)
}
0x1283   : > { %3944 = dma.vmem_to_hbm [thread:$0]  (%p6197_p0), %s3491_s20, 128, %s6000_s13, %s3477_s6  }
0x1284 PF: > { %s6198_s29 = sld [smem:[#allocation19_spill]]  ;;  %s3502_s25 = sand.u32 1, %s4572_s15  }
0x1285   : > { %p6199_p10 = scmp.ne.s32.totalorder %s6126_s30, 0  ;;  %s3503_s21 = scalar_lea.sflag [#allocation7], %s3502_s25 }
0x128a   : > { %p6200_p3 = scmp.ge.s32.totalorder %s6198_s29, 2 }
0x128c   : > { %p3960_p4 = pnand %p6200_p3, %p6199_p10 }
0x128e   : > { %4567 = dma.done.wait (!%p3960_p4), %s3503_s21, 128  }
0x128f   : > { %4569 = vsyncadd (!%p3960_p4), %s3503_s21, 4294967168  ;;  %s26_s20 = sadd.s32 1, %s6198_s29   ;;  %s6201_s8 = sld [smem:[#allocation18_spill]] }
0x1290   : > { %p23_p12 = scmp.ge.s32.totalorder %s26_s20, 4   ;;  %s6202_s17 = sld [smem:[#allocation21_spill]] }
0x1291   : > { %s6203_s28 = sld [smem:[#allocation20_spill]]  ;;  %s6204_s15 = smov %s4576_s16 }
0x1292   : > { %s6206_s18 = smov %s4588_s19  ;;  %25 = sbr.rel (!%p23_p12) target bundleno = 12 (0xc), region = 148 }
0x1295   : > { %s6205_s16 = smov %s6201_s8 }
0x1297   : > { %s6207_s19 = smov %s6203_s28 }
0x1299   :  { %3508 = vsyncpa [#allocation6], 1 }
0x129a   :  { %3510 = vsyncpa [#allocation6 + $0x1], 1 }
0x129b   :  { %3511 = vsyncpa [#allocation9], 1 }
0x129c   :  { %3513 = vsyncpa [#allocation9 + $0x1], 1 }
0x129d   :  { %3514 = vsyncpa [#allocation12], 1 }
0x129e   :  { %3516 = vsyncpa [#allocation12 + $0x1], 1 }
0x129f   :  { %3517 = vsyncpa [#allocation7], 1 }
0x12a0   :  { %3519 = vsyncpa [#allocation7 + $0x1], 1 }

</bundles_post_ra>
